<compile_context>
chip_gen: v7x
topology: tpu7x:2x2x1
jax: 0.10.0
libtpu: 0.0.40
codegen_flags: <defaults>
</compile_context>

<pallas_src>
import math

import jax
import jax.numpy as jnp
from jax.experimental import pallas as pl
from jax.experimental.pallas import tpu as pltpu


# ----------------------------------------------------------------------------
# In-kernel helpers (operate on values / small refs)
# ----------------------------------------------------------------------------
def _conv3x3_relu_flat(x, w_ref, b_ref):
    """3x3 VALID conv + bias + ReLU on one image, per-tap accumulation.

    x:     (H, W, Cin) value in the compute dtype (e.g. bf16)
    w_ref: (9, Cin, Cout) ref in the compute dtype (tap index = kh*3 + kw)
    b_ref: (1, Cout) ref, float32
    returns flat f32 accumulator of shape ((H-2)*(W-2), Cout)
    """
    h, w, cin = x.shape
    ho, wo = h - 2, w - 2

    acc = None
    for kh in range(3):
        for kw in range(3):
            # Shifted tap window; no concatenation, no 9x footprint.
            xs = jax.lax.slice(x, (kh, kw, 0), (kh + ho, kw + wo, cin))
            part = jnp.dot(xs.reshape(ho * wo, cin), w_ref[kh * 3 + kw],
                           preferred_element_type=jnp.float32)
            acc = part if acc is None else acc + part

    acc = acc + b_ref[...]            # (1, Cout) f32 bias broadcast
    return jnp.maximum(acc, 0.0)      # ReLU on the f32 accumulator


def _maxpool2x2(y):
    """2x2 / stride-2 max pool on a single (H, W, C) f32 image (floor mode)."""
    h, w, c = y.shape
    hp, wp = h // 2, w // 2
    y = jax.lax.slice(y, (0, 0, 0), (2 * hp, 2 * wp, c))   # ceil_mode=False

    # Pool along H (splits only the major dim -> cheap).
    yh = y.reshape(hp, 2, 2 * wp, c)
    yh = jnp.maximum(yh[:, 0], yh[:, 1])                    # (hp, 2*wp, c)

    # Pool along W.
    yw = yh.reshape(hp, wp, 2, c)
    return jnp.maximum(yw[:, :, 0, :], yw[:, :, 1, :])      # (hp, wp, c)


# ----------------------------------------------------------------------------
# Fused per-block kernels
# ----------------------------------------------------------------------------
def block_pool_kernel(x_ref, w1_ref, b1_ref, w2_ref, b2_ref,
                      feat_ref, pool_ref):
    """conv1+ReLU -> conv2+ReLU -> 2x2 maxpool for one batch element.

    x_ref:    (1, H, W, Cin)                 compute dtype
    w1_ref:   (9, Cin,  Cmid)   b1_ref: (1, Cmid)  f32
    w2_ref:   (9, Cmid, Cout)   b2_ref: (1, Cout)  f32
    feat_ref: (1, (H-4)*(W-4), Cout)         flat skip-connection features
    pool_ref: (1, (H-4)//2, (W-4)//2, Cout)  pooled activation
    """
    _, h, w, _ = x_ref.shape
    cmid = w1_ref.shape[-1]
    cout = w2_ref.shape[-1]
    ho1, wo1 = h - 2, w - 2
    ho2, wo2 = h - 4, w - 4

    y1 = _conv3x3_relu_flat(x_ref[0], w1_ref, b1_ref)        # (ho1*wo1, cmid) f32
    y1 = y1.reshape(ho1, wo1, cmid).astype(w2_ref.dtype)     # bf16 for the MXU
    y2 = _conv3x3_relu_flat(y1, w2_ref, b2_ref)              # (ho2*wo2, cout) f32

    feat_ref[0] = y2.astype(feat_ref.dtype)                  # flat, lane = Cout
    pool_ref[0] = _maxpool2x2(y2.reshape(ho2, wo2, cout)).astype(pool_ref.dtype)


def block_final_kernel(x_ref, w1_ref, b1_ref, w2_ref, b2_ref, out_ref):
    """conv1+ReLU -> conv2+ReLU (no pooling, final encoder block)."""
    _, h, w, _ = x_ref.shape
    cmid = w1_ref.shape[-1]
    ho1, wo1 = h - 2, w - 2

    y1 = _conv3x3_relu_flat(x_ref[0], w1_ref, b1_ref)
    y1 = y1.reshape(ho1, wo1, cmid).astype(w2_ref.dtype)
    y2 = _conv3x3_relu_flat(y1, w2_ref, b2_ref)              # flat f32
    out_ref[0] = y2.astype(out_ref.dtype)                    # flat store


# ----------------------------------------------------------------------------
# Pallas wrappers
# ----------------------------------------------------------------------------
def encoder_block(x_nhwc, w1, b1, w2, b2, *, is_final,
                  compute_dtype=jnp.bfloat16):
    """One U-Net encoder Block as a single fused pallas_call.

    x_nhwc: (N, H, W, Cin)
    w1: (3, 3, Cin, Cmid)  b1: (1, Cmid)
    w2: (3, 3, Cmid, Cout) b2: (1, Cout)
    Returns:
      is_final=False: (feat (N,H-4,W-4,Cout), pooled (N,(H-4)//2,(W-4)//2,Cout))
      is_final=True : conv output (N, H-4, W-4, Cout)
    """
    n, h, wd, cin = x_nhwc.shape
    cmid = w1.shape[-1]
    cout = w2.shape[-1]
    h1, wd1 = h - 2, wd - 2
    h2, wd2 = h - 4, wd - 4

    # bf16 I/O at the boundary; biases stay f32 (added on the f32 accumulator).
    x_c = x_nhwc.astype(compute_dtype)
    w1_t = w1.reshape(9, cin, cmid).astype(compute_dtype)    # tap = kh*3 + kw
    w2_t = w2.reshape(9, cmid, cout).astype(compute_dtype)
    b1_f = b1.astype(jnp.float32)
    b2_f = b2.astype(jnp.float32)

    in_specs = [
        pl.BlockSpec((1, h, wd, cin), lambda i: (i, 0, 0, 0)),
        pl.BlockSpec((9, cin, cmid), lambda i: (0, 0, 0)),   # resident (const idx)
        pl.BlockSpec((1, cmid), lambda i: (0, 0)),
        pl.BlockSpec((9, cmid, cout), lambda i: (0, 0, 0)),
        pl.BlockSpec((1, cout), lambda i: (0, 0)),
    ]

    # Explicit VMEM budget for the per-step working set (I/O double-buffered,
    # weights resident once, f32 intermediates), clamped to be safe on all gens.
    act_item = jnp.dtype(compute_dtype).itemsize
    io_bytes = (h * wd * cin + h2 * wd2 * cout
                + (0 if is_final else (h2 // 2) * (wd2 // 2) * cout)) * act_item
    wt_bytes = 9 * (cin * cmid + cmid * cout) * act_item + (cmid + cout) * 4
    interm_bytes = (h1 * wd1 * cmid + 2 * h2 * wd2 * cout) * 4
    vmem_limit = int(min(64 * 2 ** 20,
                         max(16 * 2 ** 20,
                             4 * (2 * io_bytes + wt_bytes + interm_bytes))))

    compiler_params = pltpu.CompilerParams(
        dimension_semantics=("parallel",),
        vmem_limit_bytes=vmem_limit)

    if is_final:
        out_flat = pl.pallas_call(
            block_final_kernel,
            out_shape=jax.ShapeDtypeStruct((n, h2 * wd2, cout), compute_dtype),
            grid=(n,),
            in_specs=in_specs,
            out_specs=pl.BlockSpec((1, h2 * wd2, cout), lambda i: (i, 0, 0)),
            compiler_params=compiler_params,
        )(x_c, w1_t, b1_f, w2_t, b2_f)
        return out_flat.reshape(n, h2, wd2, cout)            # contiguous => free

    hp, wp = h2 // 2, wd2 // 2
    feat_flat, pooled = pl.pallas_call(
        block_pool_kernel,
        out_shape=(
            jax.ShapeDtypeStruct((n, h2 * wd2, cout), compute_dtype),
            jax.ShapeDtypeStruct((n, hp, wp, cout), compute_dtype),
        ),
        grid=(n,),
        in_specs=in_specs,
        out_specs=(
            pl.BlockSpec((1, h2 * wd2, cout), lambda i: (i, 0, 0)),
            pl.BlockSpec((1, hp, wp, cout), lambda i: (i, 0, 0, 0)),
        ),
        compiler_params=compiler_params,
    )(x_c, w1_t, b1_f, w2_t, b2_f)
    return feat_flat.reshape(n, h2, wd2, cout), pooled


# ----------------------------------------------------------------------------
# Parameter init (matches the PyTorch module: weight ~ N(0, 2/sqrt(C*k^2)),
# bias ~ U(-1/sqrt(fan_in), 1/sqrt(fan_in)) -- Conv2d default bias init)
# ----------------------------------------------------------------------------
def init_encoder_params(key, channels, kernel_size=3, dtype=jnp.float32):
    params = []
    for in_c, out_c in zip(channels[:-1], channels[1:]):
        block = []
        for cin, cout in ((in_c, out_c), (out_c, out_c)):
            key, kw_, kb_ = jax.random.split(key, 3)
            std = 2.0 / math.sqrt(cin * kernel_size ** 2)
            # weight stored in HWIO layout (KH, KW, Cin, Cout)
            w = jax.random.normal(
                kw_, (kernel_size, kernel_size, cin, cout), dtype) * std
            bound = 1.0 / math.sqrt(cin * kernel_size ** 2)
            b = jax.random.uniform(kb_, (1, cout), dtype,
                                   minval=-bound, maxval=bound)
            block.append((w, b))
        params.append(tuple(block))
    return params


# ----------------------------------------------------------------------------
# Encoder forward (matches PyTorch Encoder.forward semantics)
# ----------------------------------------------------------------------------
def encoder_forward(x_nchw, params, compute_dtype=jnp.bfloat16):
    """x_nchw: (N, C, H, W). Returns (final NCHW tensor, list of NCHW feat maps).

    Activations are bf16 between blocks; all conv accumulation is f32.
    """
    x = jnp.transpose(x_nchw, (0, 2, 3, 1))      # single NCHW->NHWC at the boundary
    feat_maps_nhwc = []
    n_blocks = len(params)
    for layer_no, ((w1, b1), (w2, b2)) in enumerate(params):
        if layer_no != n_blocks - 1:
            feat, x = encoder_block(x, w1, b1, w2, b2, is_final=False,
                                    compute_dtype=compute_dtype)
            feat_maps_nhwc.append(feat)
        else:
            x = encoder_block(x, w1, b1, w2, b2, is_final=True,
                              compute_dtype=compute_dtype)
    out_nchw = jnp.transpose(x, (0, 3, 1, 2))
    feat_maps_nchw = [jnp.transpose(f, (0, 3, 1, 2)) for f in feat_maps_nhwc]
    return out_nchw, feat_maps_nchw


# ----------------------------------------------------------------------------
# Pure-JAX reference (mirrors the kernel's precision scheme: bf16 conv inputs,
# f32 accumulation / bias / ReLU / pool, bf16 activations between convs).
# ----------------------------------------------------------------------------
def encoder_reference(x_nchw, params, compute_dtype=jnp.bfloat16):
    x = jnp.transpose(x_nchw, (0, 2, 3, 1)).astype(compute_dtype)
    feat_maps = []
    n_blocks = len(params)
    for layer_no, ((w1, b1), (w2, b2)) in enumerate(params):
        y = x
        for w, b in ((w1, b1), (w2, b2)):
            y = jax.lax.conv_general_dilated(
                y.astype(compute_dtype), w.astype(compute_dtype),
                window_strides=(1, 1), padding="VALID",
                dimension_numbers=("NHWC", "HWIO", "NHWC"),
                preferred_element_type=jnp.float32)
            y = jnp.maximum(y + b[0], 0.0)
        if layer_no != n_blocks - 1:
            feat_maps.append(jnp.transpose(y.astype(compute_dtype), (0, 3, 1, 2)))
            y = jax.lax.reduce_window(
                y, -jnp.inf, jax.lax.max,
                window_dimensions=(1, 2, 2, 1),
                window_strides=(1, 2, 2, 1), padding="VALID")
        x = y.astype(compute_dtype)
    return jnp.transpose(x, (0, 3, 1, 2)), feat_maps


# ----------------------------------------------------------------------------
if __name__ == "__main__":
    key = jax.random.PRNGKey(0)
    channels = [4, 8, 16]                                    # -> two encoder Blocks
    kx, kp = jax.random.split(key)
    x = jax.random.normal(kx, (2, 4, 16, 16), jnp.float32)   # NCHW like PyTorch

    params = init_encoder_params(kp, channels)

    out, feat_maps = encoder_forward(x, params)
    out = jax.block_until_ready(out)
    feat_maps = [jax.block_until_ready(f) for f in feat_maps]

    # sanity: shapes follow the PyTorch module (16->14->12 ->pool 6 ->4->2)
    assert out.shape == (2, channels[-1], 2, 2), out.shape
    assert feat_maps[0].shape == (2, channels[1], 12, 12), feat_maps[0].shape

    ref_out, ref_feats = encoder_reference(x, params)
    ref_out = jax.block_until_ready(ref_out)

    # bf16 activations on both sides; tolerance covers bf16 ULP / accumulation
    # order differences only.
    o32, r32 = out.astype(jnp.float32), ref_out.astype(jnp.float32)
    assert jnp.allclose(o32, r32, atol=1e-1, rtol=3e-2), (
        float(jnp.max(jnp.abs(o32 - r32))))
    for f, rf in zip(feat_maps, ref_feats):
        f32v, rf32 = f.astype(jnp.float32), rf.astype(jnp.float32)
        assert jnp.allclose(f32v, rf32, atol=1e-1, rtol=3e-2), (
            float(jnp.max(jnp.abs(f32v - rf32))))

    print("KERNEL_OK")
</pallas_src>

<mosaic_0001>
module attributes {stable_mosaic.version = 11 : i64} {
  func.func @block_pool_kernel(%arg0: i32, %arg1: memref<1x16x16x4xbf16, #tpu.memory_space<vmem>>, %arg2: memref<9x4x8xbf16, #tpu.memory_space<vmem>>, %arg3: memref<1x8xf32, #tpu.memory_space<vmem>>, %arg4: memref<9x8x8xbf16, #tpu.memory_space<vmem>>, %arg5: memref<1x8xf32, #tpu.memory_space<vmem>>, %arg6: memref<1x144x8xbf16, #tpu.memory_space<vmem>>, %arg7: memref<1x6x6x8xbf16, #tpu.memory_space<vmem>>) attributes {dimension_semantics = [#tpu.dimension_semantics<parallel>], iteration_bounds = array<i64: 2>, scalar_prefetch = 0 : i64, scratch_operands = 0 : i64, tpu.core_type = #tpu.core_type<tc>, window_params = [{transform_indices = @transform_0, window_bounds = array<i64: 1, 16, 16, 4>}, {pipeline_mode = #tpu.pipeline_mode<synchronous>, transform_indices = @transform_1, window_bounds = array<i64: 9, 4, 8>}, {pipeline_mode = #tpu.pipeline_mode<synchronous>, transform_indices = @transform_2, window_bounds = array<i64: 1, 8>}, {pipeline_mode = #tpu.pipeline_mode<synchronous>, transform_indices = @transform_3, window_bounds = array<i64: 9, 8, 8>}, {pipeline_mode = #tpu.pipeline_mode<synchronous>, transform_indices = @transform_4, window_bounds = array<i64: 1, 8>}, {transform_indices = @transform_5, window_bounds = array<i64: 1, 144, 8>}, {transform_indices = @transform_6, window_bounds = array<i64: 1, 6, 6, 8>}]} {
    %c0 = arith.constant 0 : index
    %c0_0 = arith.constant 0 : index
    %c0_1 = arith.constant 0 : index
    %c0_2 = arith.constant 0 : index
    %0 = vector.load %arg1[%c0, %c0_0, %c0_1, %c0_2] : memref<1x16x16x4xbf16, #tpu.memory_space<vmem>>, vector<1x16x16x4xbf16>
    %1 = vector.shape_cast %0 : vector<1x16x16x4xbf16> to vector<16x16x4xbf16>
    %2 = vector.extract_strided_slice %1 {offsets = [0, 0, 0], sizes = [14, 14, 4], strides = [1, 1, 1]} : vector<16x16x4xbf16> to vector<14x14x4xbf16>
    %3 = vector.shape_cast %2 : vector<14x14x4xbf16> to vector<196x4xbf16>
    %c0_3 = arith.constant 0 : index
    %c0_4 = arith.constant 0 : index
    %c0_5 = arith.constant 0 : index
    %4 = vector.load %arg2[%c0_3, %c0_4, %c0_5] : memref<9x4x8xbf16, #tpu.memory_space<vmem>>, vector<1x4x8xbf16>
    %5 = vector.shape_cast %4 : vector<1x4x8xbf16> to vector<4x8xbf16>
    %cst = arith.constant dense<0.000000e+00> : vector<196x8xf32>
    %6 = tpu.matmul %3, %5, %cst {dimension_numbers = #tpu.dot_dimension_numbers<[1], [0], [0], [1], [0, 0, 1, 1], [], []>} : vector<196x4xbf16>, vector<4x8xbf16>, vector<196x8xf32> -> vector<196x8xf32>
    %7 = vector.extract_strided_slice %1 {offsets = [0, 1, 0], sizes = [14, 14, 4], strides = [1, 1, 1]} : vector<16x16x4xbf16> to vector<14x14x4xbf16>
    %8 = vector.shape_cast %7 : vector<14x14x4xbf16> to vector<196x4xbf16>
    %c1 = arith.constant 1 : index
    %c0_6 = arith.constant 0 : index
    %c0_7 = arith.constant 0 : index
    %9 = vector.load %arg2[%c1, %c0_6, %c0_7] : memref<9x4x8xbf16, #tpu.memory_space<vmem>>, vector<1x4x8xbf16>
    %10 = vector.shape_cast %9 : vector<1x4x8xbf16> to vector<4x8xbf16>
    %cst_8 = arith.constant dense<0.000000e+00> : vector<196x8xf32>
    %11 = tpu.matmul %8, %10, %cst_8 {dimension_numbers = #tpu.dot_dimension_numbers<[1], [0], [0], [1], [0, 0, 1, 1], [], []>} : vector<196x4xbf16>, vector<4x8xbf16>, vector<196x8xf32> -> vector<196x8xf32>
    %12 = arith.addf %6, %11 : vector<196x8xf32>
    %13 = vector.extract_strided_slice %1 {offsets = [0, 2, 0], sizes = [14, 14, 4], strides = [1, 1, 1]} : vector<16x16x4xbf16> to vector<14x14x4xbf16>
    %14 = vector.shape_cast %13 : vector<14x14x4xbf16> to vector<196x4xbf16>
    %c2 = arith.constant 2 : index
    %c0_9 = arith.constant 0 : index
    %c0_10 = arith.constant 0 : index
    %15 = vector.load %arg2[%c2, %c0_9, %c0_10] : memref<9x4x8xbf16, #tpu.memory_space<vmem>>, vector<1x4x8xbf16>
    %16 = vector.shape_cast %15 : vector<1x4x8xbf16> to vector<4x8xbf16>
    %cst_11 = arith.constant dense<0.000000e+00> : vector<196x8xf32>
    %17 = tpu.matmul %14, %16, %cst_11 {dimension_numbers = #tpu.dot_dimension_numbers<[1], [0], [0], [1], [0, 0, 1, 1], [], []>} : vector<196x4xbf16>, vector<4x8xbf16>, vector<196x8xf32> -> vector<196x8xf32>
    %18 = arith.addf %12, %17 : vector<196x8xf32>
    %19 = vector.extract_strided_slice %1 {offsets = [1, 0, 0], sizes = [14, 14, 4], strides = [1, 1, 1]} : vector<16x16x4xbf16> to vector<14x14x4xbf16>
    %20 = vector.shape_cast %19 : vector<14x14x4xbf16> to vector<196x4xbf16>
    %c3 = arith.constant 3 : index
    %c0_12 = arith.constant 0 : index
    %c0_13 = arith.constant 0 : index
    %21 = vector.load %arg2[%c3, %c0_12, %c0_13] : memref<9x4x8xbf16, #tpu.memory_space<vmem>>, vector<1x4x8xbf16>
    %22 = vector.shape_cast %21 : vector<1x4x8xbf16> to vector<4x8xbf16>
    %cst_14 = arith.constant dense<0.000000e+00> : vector<196x8xf32>
    %23 = tpu.matmul %20, %22, %cst_14 {dimension_numbers = #tpu.dot_dimension_numbers<[1], [0], [0], [1], [0, 0, 1, 1], [], []>} : vector<196x4xbf16>, vector<4x8xbf16>, vector<196x8xf32> -> vector<196x8xf32>
    %24 = arith.addf %18, %23 : vector<196x8xf32>
    %25 = vector.extract_strided_slice %1 {offsets = [1, 1, 0], sizes = [14, 14, 4], strides = [1, 1, 1]} : vector<16x16x4xbf16> to vector<14x14x4xbf16>
    %26 = vector.shape_cast %25 : vector<14x14x4xbf16> to vector<196x4xbf16>
    %c4 = arith.constant 4 : index
    %c0_15 = arith.constant 0 : index
    %c0_16 = arith.constant 0 : index
    %27 = vector.load %arg2[%c4, %c0_15, %c0_16] : memref<9x4x8xbf16, #tpu.memory_space<vmem>>, vector<1x4x8xbf16>
    %28 = vector.shape_cast %27 : vector<1x4x8xbf16> to vector<4x8xbf16>
    %cst_17 = arith.constant dense<0.000000e+00> : vector<196x8xf32>
    %29 = tpu.matmul %26, %28, %cst_17 {dimension_numbers = #tpu.dot_dimension_numbers<[1], [0], [0], [1], [0, 0, 1, 1], [], []>} : vector<196x4xbf16>, vector<4x8xbf16>, vector<196x8xf32> -> vector<196x8xf32>
    %30 = arith.addf %24, %29 : vector<196x8xf32>
    %31 = vector.extract_strided_slice %1 {offsets = [1, 2, 0], sizes = [14, 14, 4], strides = [1, 1, 1]} : vector<16x16x4xbf16> to vector<14x14x4xbf16>
    %32 = vector.shape_cast %31 : vector<14x14x4xbf16> to vector<196x4xbf16>
    %c5 = arith.constant 5 : index
    %c0_18 = arith.constant 0 : index
    %c0_19 = arith.constant 0 : index
    %33 = vector.load %arg2[%c5, %c0_18, %c0_19] : memref<9x4x8xbf16, #tpu.memory_space<vmem>>, vector<1x4x8xbf16>
    %34 = vector.shape_cast %33 : vector<1x4x8xbf16> to vector<4x8xbf16>
    %cst_20 = arith.constant dense<0.000000e+00> : vector<196x8xf32>
    %35 = tpu.matmul %32, %34, %cst_20 {dimension_numbers = #tpu.dot_dimension_numbers<[1], [0], [0], [1], [0, 0, 1, 1], [], []>} : vector<196x4xbf16>, vector<4x8xbf16>, vector<196x8xf32> -> vector<196x8xf32>
    %36 = arith.addf %30, %35 : vector<196x8xf32>
    %37 = vector.extract_strided_slice %1 {offsets = [2, 0, 0], sizes = [14, 14, 4], strides = [1, 1, 1]} : vector<16x16x4xbf16> to vector<14x14x4xbf16>
    %38 = vector.shape_cast %37 : vector<14x14x4xbf16> to vector<196x4xbf16>
    %c6 = arith.constant 6 : index
    %c0_21 = arith.constant 0 : index
    %c0_22 = arith.constant 0 : index
    %39 = vector.load %arg2[%c6, %c0_21, %c0_22] : memref<9x4x8xbf16, #tpu.memory_space<vmem>>, vector<1x4x8xbf16>
    %40 = vector.shape_cast %39 : vector<1x4x8xbf16> to vector<4x8xbf16>
    %cst_23 = arith.constant dense<0.000000e+00> : vector<196x8xf32>
    %41 = tpu.matmul %38, %40, %cst_23 {dimension_numbers = #tpu.dot_dimension_numbers<[1], [0], [0], [1], [0, 0, 1, 1], [], []>} : vector<196x4xbf16>, vector<4x8xbf16>, vector<196x8xf32> -> vector<196x8xf32>
    %42 = arith.addf %36, %41 : vector<196x8xf32>
    %43 = vector.extract_strided_slice %1 {offsets = [2, 1, 0], sizes = [14, 14, 4], strides = [1, 1, 1]} : vector<16x16x4xbf16> to vector<14x14x4xbf16>
    %44 = vector.shape_cast %43 : vector<14x14x4xbf16> to vector<196x4xbf16>
    %c7 = arith.constant 7 : index
    %c0_24 = arith.constant 0 : index
    %c0_25 = arith.constant 0 : index
    %45 = vector.load %arg2[%c7, %c0_24, %c0_25] : memref<9x4x8xbf16, #tpu.memory_space<vmem>>, vector<1x4x8xbf16>
    %46 = vector.shape_cast %45 : vector<1x4x8xbf16> to vector<4x8xbf16>
    %cst_26 = arith.constant dense<0.000000e+00> : vector<196x8xf32>
    %47 = tpu.matmul %44, %46, %cst_26 {dimension_numbers = #tpu.dot_dimension_numbers<[1], [0], [0], [1], [0, 0, 1, 1], [], []>} : vector<196x4xbf16>, vector<4x8xbf16>, vector<196x8xf32> -> vector<196x8xf32>
    %48 = arith.addf %42, %47 : vector<196x8xf32>
    %49 = vector.extract_strided_slice %1 {offsets = [2, 2, 0], sizes = [14, 14, 4], strides = [1, 1, 1]} : vector<16x16x4xbf16> to vector<14x14x4xbf16>
    %50 = vector.shape_cast %49 : vector<14x14x4xbf16> to vector<196x4xbf16>
    %c8 = arith.constant 8 : index
    %c0_27 = arith.constant 0 : index
    %c0_28 = arith.constant 0 : index
    %51 = vector.load %arg2[%c8, %c0_27, %c0_28] : memref<9x4x8xbf16, #tpu.memory_space<vmem>>, vector<1x4x8xbf16>
    %52 = vector.shape_cast %51 : vector<1x4x8xbf16> to vector<4x8xbf16>
    %cst_29 = arith.constant dense<0.000000e+00> : vector<196x8xf32>
    %53 = tpu.matmul %50, %52, %cst_29 {dimension_numbers = #tpu.dot_dimension_numbers<[1], [0], [0], [1], [0, 0, 1, 1], [], []>} : vector<196x4xbf16>, vector<4x8xbf16>, vector<196x8xf32> -> vector<196x8xf32>
    %54 = arith.addf %48, %53 : vector<196x8xf32>
    %c0_30 = arith.constant 0 : index
    %c0_31 = arith.constant 0 : index
    %55 = vector.load %arg3[%c0_30, %c0_31] : memref<1x8xf32, #tpu.memory_space<vmem>>, vector<1x8xf32>
    %56 = vector.broadcast %55 : vector<1x8xf32> to vector<196x8xf32>
    %57 = arith.addf %54, %56 : vector<196x8xf32>
    %cst_32 = arith.constant 0.000000e+00 : f32
    %58 = vector.broadcast %cst_32 : f32 to vector<196x8xf32>
    %59 = arith.maximumf %57, %58 : vector<196x8xf32>
    %60 = vector.shape_cast %59 : vector<196x8xf32> to vector<14x14x8xf32>
    %61 = arith.truncf %60 : vector<14x14x8xf32> to vector<14x14x8xbf16>
    %62 = vector.extract_strided_slice %61 {offsets = [0, 0, 0], sizes = [12, 12, 8], strides = [1, 1, 1]} : vector<14x14x8xbf16> to vector<12x12x8xbf16>
    %63 = vector.shape_cast %62 : vector<12x12x8xbf16> to vector<144x8xbf16>
    %c0_33 = arith.constant 0 : index
    %c0_34 = arith.constant 0 : index
    %c0_35 = arith.constant 0 : index
    %64 = vector.load %arg4[%c0_33, %c0_34, %c0_35] : memref<9x8x8xbf16, #tpu.memory_space<vmem>>, vector<1x8x8xbf16>
    %65 = vector.shape_cast %64 : vector<1x8x8xbf16> to vector<8x8xbf16>
    %cst_36 = arith.constant dense<0.000000e+00> : vector<144x8xf32>
    %66 = tpu.matmul %63, %65, %cst_36 {dimension_numbers = #tpu.dot_dimension_numbers<[1], [0], [0], [1], [0, 0, 1, 1], [], []>} : vector<144x8xbf16>, vector<8x8xbf16>, vector<144x8xf32> -> vector<144x8xf32>
    %67 = vector.extract_strided_slice %61 {offsets = [0, 1, 0], sizes = [12, 12, 8], strides = [1, 1, 1]} : vector<14x14x8xbf16> to vector<12x12x8xbf16>
    %68 = vector.shape_cast %67 : vector<12x12x8xbf16> to vector<144x8xbf16>
    %c1_37 = arith.constant 1 : index
    %c0_38 = arith.constant 0 : index
    %c0_39 = arith.constant 0 : index
    %69 = vector.load %arg4[%c1_37, %c0_38, %c0_39] : memref<9x8x8xbf16, #tpu.memory_space<vmem>>, vector<1x8x8xbf16>
    %70 = vector.shape_cast %69 : vector<1x8x8xbf16> to vector<8x8xbf16>
    %cst_40 = arith.constant dense<0.000000e+00> : vector<144x8xf32>
    %71 = tpu.matmul %68, %70, %cst_40 {dimension_numbers = #tpu.dot_dimension_numbers<[1], [0], [0], [1], [0, 0, 1, 1], [], []>} : vector<144x8xbf16>, vector<8x8xbf16>, vector<144x8xf32> -> vector<144x8xf32>
    %72 = arith.addf %66, %71 : vector<144x8xf32>
    %73 = vector.extract_strided_slice %61 {offsets = [0, 2, 0], sizes = [12, 12, 8], strides = [1, 1, 1]} : vector<14x14x8xbf16> to vector<12x12x8xbf16>
    %74 = vector.shape_cast %73 : vector<12x12x8xbf16> to vector<144x8xbf16>
    %c2_41 = arith.constant 2 : index
    %c0_42 = arith.constant 0 : index
    %c0_43 = arith.constant 0 : index
    %75 = vector.load %arg4[%c2_41, %c0_42, %c0_43] : memref<9x8x8xbf16, #tpu.memory_space<vmem>>, vector<1x8x8xbf16>
    %76 = vector.shape_cast %75 : vector<1x8x8xbf16> to vector<8x8xbf16>
    %cst_44 = arith.constant dense<0.000000e+00> : vector<144x8xf32>
    %77 = tpu.matmul %74, %76, %cst_44 {dimension_numbers = #tpu.dot_dimension_numbers<[1], [0], [0], [1], [0, 0, 1, 1], [], []>} : vector<144x8xbf16>, vector<8x8xbf16>, vector<144x8xf32> -> vector<144x8xf32>
    %78 = arith.addf %72, %77 : vector<144x8xf32>
    %79 = vector.extract_strided_slice %61 {offsets = [1, 0, 0], sizes = [12, 12, 8], strides = [1, 1, 1]} : vector<14x14x8xbf16> to vector<12x12x8xbf16>
    %80 = vector.shape_cast %79 : vector<12x12x8xbf16> to vector<144x8xbf16>
    %c3_45 = arith.constant 3 : index
    %c0_46 = arith.constant 0 : index
    %c0_47 = arith.constant 0 : index
    %81 = vector.load %arg4[%c3_45, %c0_46, %c0_47] : memref<9x8x8xbf16, #tpu.memory_space<vmem>>, vector<1x8x8xbf16>
    %82 = vector.shape_cast %81 : vector<1x8x8xbf16> to vector<8x8xbf16>
    %cst_48 = arith.constant dense<0.000000e+00> : vector<144x8xf32>
    %83 = tpu.matmul %80, %82, %cst_48 {dimension_numbers = #tpu.dot_dimension_numbers<[1], [0], [0], [1], [0, 0, 1, 1], [], []>} : vector<144x8xbf16>, vector<8x8xbf16>, vector<144x8xf32> -> vector<144x8xf32>
    %84 = arith.addf %78, %83 : vector<144x8xf32>
    %85 = vector.extract_strided_slice %61 {offsets = [1, 1, 0], sizes = [12, 12, 8], strides = [1, 1, 1]} : vector<14x14x8xbf16> to vector<12x12x8xbf16>
    %86 = vector.shape_cast %85 : vector<12x12x8xbf16> to vector<144x8xbf16>
    %c4_49 = arith.constant 4 : index
    %c0_50 = arith.constant 0 : index
    %c0_51 = arith.constant 0 : index
    %87 = vector.load %arg4[%c4_49, %c0_50, %c0_51] : memref<9x8x8xbf16, #tpu.memory_space<vmem>>, vector<1x8x8xbf16>
    %88 = vector.shape_cast %87 : vector<1x8x8xbf16> to vector<8x8xbf16>
    %cst_52 = arith.constant dense<0.000000e+00> : vector<144x8xf32>
    %89 = tpu.matmul %86, %88, %cst_52 {dimension_numbers = #tpu.dot_dimension_numbers<[1], [0], [0], [1], [0, 0, 1, 1], [], []>} : vector<144x8xbf16>, vector<8x8xbf16>, vector<144x8xf32> -> vector<144x8xf32>
    %90 = arith.addf %84, %89 : vector<144x8xf32>
    %91 = vector.extract_strided_slice %61 {offsets = [1, 2, 0], sizes = [12, 12, 8], strides = [1, 1, 1]} : vector<14x14x8xbf16> to vector<12x12x8xbf16>
    %92 = vector.shape_cast %91 : vector<12x12x8xbf16> to vector<144x8xbf16>
    %c5_53 = arith.constant 5 : index
    %c0_54 = arith.constant 0 : index
    %c0_55 = arith.constant 0 : index
    %93 = vector.load %arg4[%c5_53, %c0_54, %c0_55] : memref<9x8x8xbf16, #tpu.memory_space<vmem>>, vector<1x8x8xbf16>
    %94 = vector.shape_cast %93 : vector<1x8x8xbf16> to vector<8x8xbf16>
    %cst_56 = arith.constant dense<0.000000e+00> : vector<144x8xf32>
    %95 = tpu.matmul %92, %94, %cst_56 {dimension_numbers = #tpu.dot_dimension_numbers<[1], [0], [0], [1], [0, 0, 1, 1], [], []>} : vector<144x8xbf16>, vector<8x8xbf16>, vector<144x8xf32> -> vector<144x8xf32>
    %96 = arith.addf %90, %95 : vector<144x8xf32>
    %97 = vector.extract_strided_slice %61 {offsets = [2, 0, 0], sizes = [12, 12, 8], strides = [1, 1, 1]} : vector<14x14x8xbf16> to vector<12x12x8xbf16>
    %98 = vector.shape_cast %97 : vector<12x12x8xbf16> to vector<144x8xbf16>
    %c6_57 = arith.constant 6 : index
    %c0_58 = arith.constant 0 : index
    %c0_59 = arith.constant 0 : index
    %99 = vector.load %arg4[%c6_57, %c0_58, %c0_59] : memref<9x8x8xbf16, #tpu.memory_space<vmem>>, vector<1x8x8xbf16>
    %100 = vector.shape_cast %99 : vector<1x8x8xbf16> to vector<8x8xbf16>
    %cst_60 = arith.constant dense<0.000000e+00> : vector<144x8xf32>
    %101 = tpu.matmul %98, %100, %cst_60 {dimension_numbers = #tpu.dot_dimension_numbers<[1], [0], [0], [1], [0, 0, 1, 1], [], []>} : vector<144x8xbf16>, vector<8x8xbf16>, vector<144x8xf32> -> vector<144x8xf32>
    %102 = arith.addf %96, %101 : vector<144x8xf32>
    %103 = vector.extract_strided_slice %61 {offsets = [2, 1, 0], sizes = [12, 12, 8], strides = [1, 1, 1]} : vector<14x14x8xbf16> to vector<12x12x8xbf16>
    %104 = vector.shape_cast %103 : vector<12x12x8xbf16> to vector<144x8xbf16>
    %c7_61 = arith.constant 7 : index
    %c0_62 = arith.constant 0 : index
    %c0_63 = arith.constant 0 : index
    %105 = vector.load %arg4[%c7_61, %c0_62, %c0_63] : memref<9x8x8xbf16, #tpu.memory_space<vmem>>, vector<1x8x8xbf16>
    %106 = vector.shape_cast %105 : vector<1x8x8xbf16> to vector<8x8xbf16>
    %cst_64 = arith.constant dense<0.000000e+00> : vector<144x8xf32>
    %107 = tpu.matmul %104, %106, %cst_64 {dimension_numbers = #tpu.dot_dimension_numbers<[1], [0], [0], [1], [0, 0, 1, 1], [], []>} : vector<144x8xbf16>, vector<8x8xbf16>, vector<144x8xf32> -> vector<144x8xf32>
    %108 = arith.addf %102, %107 : vector<144x8xf32>
    %109 = vector.extract_strided_slice %61 {offsets = [2, 2, 0], sizes = [12, 12, 8], strides = [1, 1, 1]} : vector<14x14x8xbf16> to vector<12x12x8xbf16>
    %110 = vector.shape_cast %109 : vector<12x12x8xbf16> to vector<144x8xbf16>
    %c8_65 = arith.constant 8 : index
    %c0_66 = arith.constant 0 : index
    %c0_67 = arith.constant 0 : index
    %111 = vector.load %arg4[%c8_65, %c0_66, %c0_67] : memref<9x8x8xbf16, #tpu.memory_space<vmem>>, vector<1x8x8xbf16>
    %112 = vector.shape_cast %111 : vector<1x8x8xbf16> to vector<8x8xbf16>
    %cst_68 = arith.constant dense<0.000000e+00> : vector<144x8xf32>
    %113 = tpu.matmul %110, %112, %cst_68 {dimension_numbers = #tpu.dot_dimension_numbers<[1], [0], [0], [1], [0, 0, 1, 1], [], []>} : vector<144x8xbf16>, vector<8x8xbf16>, vector<144x8xf32> -> vector<144x8xf32>
    %114 = arith.addf %108, %113 : vector<144x8xf32>
    %c0_69 = arith.constant 0 : index
    %c0_70 = arith.constant 0 : index
    %115 = vector.load %arg5[%c0_69, %c0_70] : memref<1x8xf32, #tpu.memory_space<vmem>>, vector<1x8xf32>
    %116 = vector.broadcast %115 : vector<1x8xf32> to vector<144x8xf32>
    %117 = arith.addf %114, %116 : vector<144x8xf32>
    %cst_71 = arith.constant 0.000000e+00 : f32
    %118 = vector.broadcast %cst_71 : f32 to vector<144x8xf32>
    %119 = arith.maximumf %117, %118 : vector<144x8xf32>
    %120 = arith.truncf %119 : vector<144x8xf32> to vector<144x8xbf16>
    %c0_72 = arith.constant 0 : index
    %c0_73 = arith.constant 0 : index
    %c0_74 = arith.constant 0 : index
    %121 = vector.load %arg6[%c0_72, %c0_73, %c0_74] : memref<1x144x8xbf16, #tpu.memory_space<vmem>>, vector<1x144x8xbf16>
    %122 = vector.shape_cast %121 : vector<1x144x8xbf16> to vector<144x8xbf16>
    %123 = vector.shape_cast %120 : vector<144x8xbf16> to vector<1x144x8xbf16>
    tpu.vector_store %arg6[%c0_72, %c0_73, %c0_74], %123 {strides = array<i32>} : memref<1x144x8xbf16, #tpu.memory_space<vmem>>, vector<1x144x8xbf16>,
    %124 = vector.shape_cast %119 : vector<144x8xf32> to vector<12x12x8xf32>
    %125 = vector.extract_strided_slice %124 {offsets = [0, 0, 0], sizes = [12, 12, 8], strides = [1, 1, 1]} : vector<12x12x8xf32> to vector<12x12x8xf32>
    %126 = vector.shape_cast %125 : vector<12x12x8xf32> to vector<6x2x12x8xf32>
    %127 = vector.extract_strided_slice %126 {offsets = [0, 0, 0, 0], sizes = [6, 1, 12, 8], strides = [1, 1, 1, 1]} : vector<6x2x12x8xf32> to vector<6x1x12x8xf32>
    %128 = vector.shape_cast %127 : vector<6x1x12x8xf32> to vector<6x12x8xf32>
    %129 = vector.extract_strided_slice %126 {offsets = [0, 1, 0, 0], sizes = [6, 1, 12, 8], strides = [1, 1, 1, 1]} : vector<6x2x12x8xf32> to vector<6x1x12x8xf32>
    %130 = vector.shape_cast %129 : vector<6x1x12x8xf32> to vector<6x12x8xf32>
    %131 = arith.maximumf %128, %130 : vector<6x12x8xf32>
    %132 = vector.shape_cast %131 : vector<6x12x8xf32> to vector<6x6x2x8xf32>
    %133 = vector.extract_strided_slice %132 {offsets = [0, 0, 0, 0], sizes = [6, 6, 1, 8], strides = [1, 1, 1, 1]} : vector<6x6x2x8xf32> to vector<6x6x1x8xf32>
    %134 = vector.shape_cast %133 : vector<6x6x1x8xf32> to vector<6x6x8xf32>
    %135 = vector.extract_strided_slice %132 {offsets = [0, 0, 1, 0], sizes = [6, 6, 1, 8], strides = [1, 1, 1, 1]} : vector<6x6x2x8xf32> to vector<6x6x1x8xf32>
    %136 = vector.shape_cast %135 : vector<6x6x1x8xf32> to vector<6x6x8xf32>
    %137 = arith.maximumf %134, %136 : vector<6x6x8xf32>
    %138 = arith.truncf %137 : vector<6x6x8xf32> to vector<6x6x8xbf16>
    %c0_75 = arith.constant 0 : index
    %c0_76 = arith.constant 0 : index
    %c0_77 = arith.constant 0 : index
    %c0_78 = arith.constant 0 : index
    %139 = vector.load %arg7[%c0_75, %c0_76, %c0_77, %c0_78] : memref<1x6x6x8xbf16, #tpu.memory_space<vmem>>, vector<1x6x6x8xbf16>
    %140 = vector.shape_cast %139 : vector<1x6x6x8xbf16> to vector<6x6x8xbf16>
    %141 = vector.shape_cast %138 : vector<6x6x8xbf16> to vector<1x6x6x8xbf16>
    tpu.vector_store %arg7[%c0_75, %c0_76, %c0_77, %c0_78], %141 {strides = array<i32>} : memref<1x6x6x8xbf16, #tpu.memory_space<vmem>>, vector<1x6x6x8xbf16>,
    return
  }
  func.func @transform_0(%arg0: i32) -> (i32, i32, i32, i32) {
    %c0_i32 = arith.constant 0 : i32
    %c0_i32_0 = arith.constant 0 : i32
    %c0_i32_1 = arith.constant 0 : i32
    %c0_i32_2 = arith.constant 0 : i32
    return %arg0, %c0_i32, %c0_i32_0, %c0_i32_1 : i32, i32, i32, i32
  }
  func.func @transform_1(%arg0: i32) -> (i32, i32, i32) {
    %c0_i32 = arith.constant 0 : i32
    %c0_i32_0 = arith.constant 0 : i32
    %c0_i32_1 = arith.constant 0 : i32
    %c0_i32_2 = arith.constant 0 : i32
    return %c0_i32, %c0_i32_0, %c0_i32_1 : i32, i32, i32
  }
  func.func @transform_2(%arg0: i32) -> (i32, i32) {
    %c0_i32 = arith.constant 0 : i32
    %c0_i32_0 = arith.constant 0 : i32
    %c0_i32_1 = arith.constant 0 : i32
    return %c0_i32, %c0_i32_0 : i32, i32
  }
  func.func @transform_3(%arg0: i32) -> (i32, i32, i32) {
    %c0_i32 = arith.constant 0 : i32
    %c0_i32_0 = arith.constant 0 : i32
    %c0_i32_1 = arith.constant 0 : i32
    %c0_i32_2 = arith.constant 0 : i32
    return %c0_i32, %c0_i32_0, %c0_i32_1 : i32, i32, i32
  }
  func.func @transform_4(%arg0: i32) -> (i32, i32) {
    %c0_i32 = arith.constant 0 : i32
    %c0_i32_0 = arith.constant 0 : i32
    %c0_i32_1 = arith.constant 0 : i32
    return %c0_i32, %c0_i32_0 : i32, i32
  }
  func.func @transform_5(%arg0: i32) -> (i32, i32, i32) {
    %c0_i32 = arith.constant 0 : i32
    %c0_i32_0 = arith.constant 0 : i32
    %c0_i32_1 = arith.constant 0 : i32
    return %arg0, %c0_i32, %c0_i32_0 : i32, i32, i32
  }
  func.func @transform_6(%arg0: i32) -> (i32, i32, i32, i32) {
    %c0_i32 = arith.constant 0 : i32
    %c0_i32_0 = arith.constant 0 : i32
    %c0_i32_1 = arith.constant 0 : i32
    %c0_i32_2 = arith.constant 0 : i32
    return %arg0, %c0_i32, %c0_i32_0, %c0_i32_1 : i32, i32, i32, i32
  }
}

</mosaic_0001>

<bundles_post_ra>
// kernel: tpu_custom_call.1
= control target key start
LH: loop header
LB: loop body
LE: loop exit
PB: predicated region body
PF: predicated region fallthrough
CT: control target
= control target key end

     0   :  { %s14364_s21 = smov 0   ;;  %s20744_s0 = inlined_call_operand.vmem [shape: bf16[2,16,16,4], index: 0, kind: input, shape index: {}]   ;;  %s20745_s1 = inlined_call_operand.vmem [shape: bf16[9,4,8], index: 1, kind: input, shape index: {}]   ;;  %s20746_s2 = inlined_call_operand.vmem [shape: f32[1,8], index: 2, kind: input, shape index: {}]   ;;  %s20747_s3 = inlined_call_operand.vmem [shape: bf16[9,8,8], index: 3, kind: input, shape index: {}]   ;;  %s20748_s4 = inlined_call_operand.vmem [shape: f32[1,8], index: 4, kind: input, shape index: {}]   ;;  %s20749_s5 = inlined_call_operand.vmem [shape: bf16[2,144,8], index: 5, kind: output, shape index: {0}]   ;;  %s20750_s6 = inlined_call_operand.vmem [shape: bf16[2,6,6,8], index: 6, kind: output, shape index: {1}]  }
   0x1 LB: > { %s12681_s22 = sadd.s32 4294967295, %s14323_s21   ;;  %p12685_p0 = scmp.ge.s32.totalorder %s14323_s21, 1  ;;  %s14323_s21 = sphi %s14364_s21, %s17_s21  }
   0x2   : > { %p215_p1 = scmp.lt.s32.totalorder %s14323_s21, 3 }
   0x4   : > { %p216_p2 = pnand %p12685_p0, %p215_p1 }
   0x6   : > { %219 = sbr.rel (%p216_p2) target bundleno = 1561 (0x619), region = 40 }
   0xd   : > { %v12816_v0 = vld [vmem:[%s20745_s1 + $0x2] sm:$0x3]  ;;  %vm2457_vm0 = vcmask 1041408   ;;  %p250_p3 = scmp.lt.s32.totalorder %s12681_s22, 1  ;;  %v337_v1 = vlaneseq  ;;  %v20751_v2 = vmov 0.0   ;;  %vm14327_vm4 = vmmov 0  }
   0xe   : > { %13472 = vmatprep.subr.bf16.mxu0 %v20751_v2  ;;  %14300 = vmatprep.subr.bf16.mxu1 %v20751_v2  ;;  %v2459_v3 = vsel %vm2457_vm0, %v12816_v0, 0  ;;  %vm999_vm1 = vsmask.f32 256  ;;  %v14326_v4 = vmov 1966171168   ;;  %v21224_v24 = vmov 0 }
   0xf   : > { %13473 = vmatpush3.bf16.msra.mxu0 %v2459_v3  ;;  %14301 = vmatpush3.bf16.msra.mxu1 %v2459_v3  ;;  %s22191_s22 = smov (!%p250_p3, %s12681_s22), 1  ;;  %v335_v5 = vunpack.c.l.s4 %v14326_v4  ;;  %v14380_v6 = vshrl.u32 %v337_v1, 7  ;;  %vm1000_vm2 = vsmask.f32 1284  ;;  %vm1002_vm3 = vsmask.f32 2312 }
  0x10   : > { %13474 = vmatprep.mubr.msk.bf16.mxu0 %vm14327_vm4, %v20751_v2  ;;  %13518 = vmatprep.mubr.msk.bf16.mxu1 %vm14327_vm4, %v20751_v2  ;;  %vm1001_vm5 = vmor %vm999_vm1, %vm1000_vm2  ;;  %vm1004_vm6 = vsmask.f32 3340  ;;  %vm1006_vm7 = vsmask.f32 4368  ;;  %s13201_s25 = sshll.u32 %s22191_s22, 7  ;;  %vm2417_vm2 = vcmask 31744  }
  0x11   : > { %21223 = vst [vmem:[#allocation2_spill] sm:$0xff] %v14380_v6  ;;  %13580 = vmatprep.subr.bf16.mxu0 %v20751_v2  ;;  %v336_v7 = vunpack.c.0.s8 %v335_v5  ;;  %vm1003_vm8 = vmor %vm1001_vm5, %vm1002_vm3  ;;  %vm1008_vm9 = vsmask.f32 5396  ;;  %13526 = vmatprep.subr.bf16.mxu1 %v20751_v2  ;;  %s14392_s28 = scalar_lea.vmem %s20744_s0, %s13201_s25  ;;  %vm1010_vm11 = vsmask.f32 6424  ;;  %vm9734_vm3 = vcmask 1040384  }
  0x12   : > { %vm1005_vm10 = vmor %vm1003_vm8, %vm1004_vm6  ;;  %v12690_v8 = vld.sshfl [vmem:[%s14392_s28] sm:$0x33 pattern:$0x75316420]  ;;  %v12850_v10 = vld [vmem:[%s20745_s1 + $0x4] sm:$0x3] }
  0x13   : > { %v14396_v9 = vsub.s32 %v336_v7, %v14380_v6  ;;  %vm1007_vm12 = vmor %vm1005_vm10, %vm1006_vm7  ;;  %v12691_v11 = vld.sshfl [vmem:[%s14392_s28 + $0x4] sm:$0x33 pattern:$0x75316420]  ;;  %v333_v12 = vcombine.high %v12690_v8, %v12690_v8  ;;  %vm1012_vm14 = vsmask.f32 7452 }
  0x14   : > { %vm1009_vm13 = vmor %vm1007_vm12, %vm1008_vm9  ;;  %v12692_v13 = vld.sshfl [vmem:[%s14392_s28 + $0x8] sm:$0x33 pattern:$0x75316420]  ;;  %v357_v15 = vcombine.high %v12691_v11, %v12691_v11  ;;  %v14416_v20 = vsel %vm2457_vm0, %v12850_v10, 0  ;;  %vm9735_vm5 = vcmask 1042434  }
  0x15   : > { %v14404_v14 = vrot.slane %v12690_v8, %v14396_v9  ;;  %v14407_v16 = vrot.slane %v12691_v11, %v14396_v9  ;;  %vm1011_vm15 = vmor %vm1009_vm13, %vm1010_vm11  ;;  %v14410_v17 = vrot.slane %v333_v12, %v14396_v9  ;;  %v380_v18 = vcombine.high %v12692_v13, %v12692_v13  ;;  %v984_v42 = vld [vmem:[%s20745_s1] sm:$0x3]  ;;  %v12715_v47 = vld.sshfl [vmem:[%s14392_s28 + $0x64] sm:$0x33 pattern:$0x75316420] }
  0x16   : > { %v14413_v19 = vrot.slane %v12692_v13, %v14396_v9  ;;  %v14423_v22 = vrot.slane %v357_v15, %v14396_v9  ;;  %vm14429_vm1 = vmor %vm1011_vm15, %vm1012_vm14  ;;  %v12716_v56 = vld.sshfl [vmem:[%s14392_s28 + $0x68] sm:$0x33 pattern:$0x75316420]  ;;  %v921_v59 = vcombine.high %v12715_v47, %v12715_v47  ;;  %v14485_v60 = vrot.slane %v12715_v47, %v14396_v9  ;;  %s14302_s25 = smul.u32 72, %s22191_s22 }
  0x17   : > { %v14420_v21 = vcombine.high %v14404_v14, %v14404_v14  ;;  %v14427_v23 = vcombine.high %v14407_v16, %v14407_v16  ;;  %v21225_v24 = vsel %vm14429_vm1, 4294967295, %v21224_v24  ;;  %v1015_v25 = vshrl.u32 %v14404_v14, 16  ;;  %v12717_v58 = vld.sshfl [vmem:[%s14392_s28 + $0x6c] sm:$0x33 pattern:$0x75316420]  ;;  %vm9736_vm8 = vmor %vm9734_vm3, %vm9735_vm5 }
  0x18   : > { %21226 = vst [vmem:[#allocation3_spill] sm:$0xff] %v21225_v24  ;;  %v14436_v26 = vcombine.high %v14410_v17, %v14410_v17  ;;  %v14439_v27 = vrot.slane %v380_v18, %v14396_v9  ;;  %v1020_v28 = vshll.u32 %v14410_v17, 16  ;;  %v1023_v29 = vshrl.u32 %v14410_v17, 16  ;;  %s14303_s29 = smul.u32 24, %s22191_s22 }
  0x19   : > { %v14445_v30 = vcombine.high %v14423_v22, %v14423_v22  ;;  %v1028_v31 = vshll.u32 %v14420_v21, 16  ;;  %v1031_v32 = vshrl.u32 %v14420_v21, 16  ;;  %v1044_v33 = vshll.u32 %v14407_v16, 16 }
  0x1a   : > { %v1022_v34 = vsel %vm14429_vm1, %v1015_v25, %v1020_v28  ;;  %v1036_v35 = vshll.u32 %v14436_v26, 16  ;;  %v1039_v36 = vshrl.u32 %v14436_v26, 16  ;;  %v1047_v37 = vshrl.u32 %v14407_v16, 16  ;;  %s20612_s7 = scalar_lea.vmem %s20750_s6, %s14303_s29 }
  0x1b   : > { %v1030_v38 = vsel %vm14429_vm1, %v1023_v29, %v1028_v31  ;;  %v1052_v39 = vshll.u32 %v14423_v22, 16  ;;  %v1055_v40 = vshrl.u32 %v14423_v22, 16  ;;  %v1060_v41 = vshll.u32 %v14427_v23, 16 }
  0x1c   : > { %v1038_v43 = vsel %vm14429_vm1, %v1031_v32, %v1036_v35  ;;  %v1046_v44 = vsel %vm14429_vm1, %v1039_v36, %v1044_v33  ;;  %v1063_v45 = vshrl.u32 %v14427_v23, 16  ;;  %v1068_v46 = vshll.u32 %v14445_v30, 16 }
  0x1d   : > { %v1054_v48 = vsel %vm14429_vm1, %v1047_v37, %v1052_v39  ;;  %v1062_v49 = vsel %vm14429_vm1, %v1055_v40, %v1060_v41  ;;  %v1072_v50 = vshrl.u32 %v14413_v19, 16  ;;  %v1077_v51 = vshll.u32 %v14439_v27, 16 }
  0x1e   : > { %v1070_v52 = vsel %vm14429_vm1, %v1063_v45, %v1068_v46  ;;  %v1814_v53 = vcombine.low %v1022_v34, %v1030_v38  ;;  %v1815_v54 = vcombine.low %v1038_v43, %v1046_v44  ;;  %v1816_v55 = vcombine.low %v1054_v48, %v1062_v49 }
  0x1f   : > { %v14481_v57 = vsel %vm14429_vm1, %v1072_v50, %v1077_v51  ;;  %v14488_v61 = vsel %vm2457_vm0, %v984_v42, 0  ;;  %v14495_v3 = vrot.slane %v921_v59, %v14396_v9  ;;  %v14499_v4 = vcombine.high %v14485_v60, %v14485_v60 }
  0x20   : > { %21227 = vst [vmem:[#allocation4_spill] sm:$0xff] %v14481_v57  ;;  %v1817_v62 = vcombine.low %v1070_v52, %v14481_v57  ;;  %v1824_v63 = vrot.slane %v1814_v53, %v14396_v9  ;;  %v1831_v0 = vrot.slane %v1815_v54, %v14396_v9  ;;  %v1838_v1 = vrot.slane %v1816_v55, %v14396_v9 }
  0x21   : > { %v944_v5 = vcombine.high %v12716_v56, %v12716_v56  ;;  %v14502_v7 = vrot.slane %v12716_v56, %v14396_v9  ;;  %v968_v11 = vcombine.high %v12717_v58, %v12717_v58  ;;  %v14506_v12 = vrot.slane %v12717_v58, %v14396_v9  ;;  %v12693_v58 = vld.sshfl [vmem:[%s14392_s28 + $0xc] sm:$0x33 pattern:$0x75316420] }
  0x22   : > { %v1845_v8 = vrot.slane %v1817_v62, %v14396_v9  ;;  %v1846_v10 = vcombine.low %v1824_v63, %v1831_v0  ;;  %v14517_v18 = vcombine.high %v14495_v3, %v14495_v3  ;;  %v1731_v25 = vshrl.u32 %v14485_v60, 16  ;;  %v12694_v0 = vld.sshfl [vmem:[%s14392_s28 + $0x10] sm:$0x33 pattern:$0x75316420] }
  0x23   : > { %v14509_v13 = vrot.slane %v944_v5, %v14396_v9  ;;  %v14513_v15 = vcombine.high %v14502_v7, %v14502_v7  ;;  %v14522_v31 = vrot.slane %v968_v11, %v14396_v9  ;;  %v1736_v32 = vshll.u32 %v14495_v3, 16 }
  0x24   : > { %21228 = vst [vmem:[#allocation5_spill] sm:$0xff] %v14517_v18  ;;  %v1847_v28 = vcombine.low %v1838_v1, %v1845_v8  ;;  %v1854_v29 = vrot.slane %v1846_v10, %v14396_v9  ;;  %v1739_v34 = vshrl.u32 %v14495_v3, 16  ;;  %v1744_v35 = vshll.u32 %v14499_v4, 16 }
  0x25   : > { %21229 = vst [vmem:[#allocation6_spill] sm:$0xff] %v14522_v31  ;;  %v14527_v33 = vcombine.high %v14509_v13, %v14509_v13  ;;  %v1747_v36 = vshrl.u32 %v14499_v4, 16  ;;  %v14535_v38 = vsel %vm14429_vm1, %v1731_v25, %v1736_v32  ;;  %v1752_v39 = vshll.u32 %v14517_v18, 16 }
  0x26   : > { %v1861_v37 = vrot.slane %v1847_v28, %v14396_v9  ;;  %21230 = vst [vmem:[#allocation7_spill] sm:$0xff] %v14535_v38  ;;  %v1756_v40 = vshrl.u32 %v14502_v7, 16  ;;  %v14541_v41 = vsel %vm14429_vm1, %v1739_v34, %v1744_v35  ;;  %v1761_v42 = vshll.u32 %v14509_v13, 16 }
  0x27   : > { %21231 = vst [vmem:[#allocation8_spill] sm:$0xff] %v14541_v41  ;;  %v1764_v43 = vshrl.u32 %v14509_v13, 16  ;;  %v1769_v44 = vshll.u32 %v14513_v15, 16  ;;  %v14548_v46 = vsel %vm14429_vm1, %v1747_v36, %v1752_v39  ;;  %v1772_v47 = vshrl.u32 %v14513_v15, 16 }
  0x28   : > { %v1862_v45 = vcombine.low %v1854_v29, %v1861_v37  ;;  %21232 = vst [vmem:[#allocation9_spill] sm:$0xff] %v14548_v46  ;;  %v1777_v48 = vshll.u32 %v14527_v33, 16  ;;  %v14554_v49 = vsel %vm14429_vm1, %v1756_v40, %v1761_v42  ;;  %v1780_v51 = vshrl.u32 %v14527_v33, 16 }
  0x29   : > { %21233 = vst [vmem:[#allocation10_spill] sm:$0xff] %v14554_v49  ;;  %v14558_v50 = vsel %vm14429_vm1, %v1764_v43, %v1769_v44  ;;  %v1785_v52 = vshll.u32 %v14506_v12, 16  ;;  %v1788_v54 = vshrl.u32 %v14506_v12, 16  ;;  %v1793_v55 = vshll.u32 %v14522_v31, 16 }
  0x2a   : > { %21234 = vst [vmem:[#allocation11_spill] sm:$0xff] %v14558_v50  ;;  %13475 = vmatmul.mubr.msk.bf16.vlgmr.msra.gmra.mrb[0].mxu0 %vm2417_vm2, %v1862_v45  ;;  %v14565_v53 = vsel %vm14429_vm1, %v1772_v47, %v1777_v48  ;;  %v2353_v56 = vcombine.low %v14535_v38, %v14541_v41  ;;  %v2354_v62 = vcombine.low %v14548_v46, %v14554_v49  ;;  %v1080_v1 = vshrl.u32 %v14439_v27, 16 }
  0x2b   : > { %21235 = vst [vmem:[#allocation12_spill] sm:$0xff] %v14565_v53  ;;  %v14574_v59 = vsel %vm14429_vm1, %v1780_v51, %v1785_v52  ;;  %v2355_v63 = vcombine.low %v14558_v50, %v14565_v53  ;;  %13581 = vmatpush3.bf16.msra.mxu0 %v14416_v20  ;;  %13478 = vmatprep.mubr.msk.bf16.mxu0 %vm14327_vm4, %v20751_v2  ;;  %vm9737_vm6 = vcmask 1044484   ;;  %vm9739_vm7 = vcmask 1046534  }
  0x2c   : > { %21236 = vst [vmem:[#allocation13_spill] sm:$0xff] %v14574_v59  ;;  %v14587_v5 = vsel %vm14429_vm1, %v1788_v54, %v1793_v55  ;;  %v14590_v8 = vrot.slane %v2353_v56, %v14396_v9  ;;  %v14594_v10 = vcombine.high %v14413_v19, %v14413_v19  ;;  %v14598_v20 = vcombine.high %v14439_v27, %v14439_v27  ;;  %vm18267_vm9 = vmor %vm9736_vm8, %vm9737_vm6 }
  0x2d   : > { %21237 = vst [vmem:[#allocation14_spill] sm:$0xff] %v14587_v5  ;;  %13688 = vmatprep.subr.bf16.mxu0 %v20751_v2  ;;  %v2356_v11 = vcombine.low %v14574_v59, %v14587_v5  ;;  %v14604_v25 = vrot.slane %v2354_v62, %v14396_v9  ;;  %v14607_v28 = vrot.slane %v2355_v63, %v14396_v9  ;;  %vm8739_vm10 = vsmask.f32 1280  ;;  %vm18293_vm12 = vmor %vm18267_vm9, %vm9739_vm7 }
  0x2e   : > { %21238 = vst [vmem:[#allocation15_spill] sm:$0xff] %v14590_v8  ;;  %v404_v29 = vcombine.high %v12693_v58, %v12693_v58  ;;  %v14610_v32 = vrot.slane %v12693_v58, %v14396_v9  ;;  %v427_v34 = vcombine.high %v12694_v0, %v12694_v0  ;;  %v14613_v35 = vrot.slane %v12694_v0, %v14396_v9 }
  0x2f   : > { %21239 = vst [vmem:[#allocation16_spill] sm:$0xff] %v14604_v25  ;;  %21240 = vst [vmem:[#allocation17_spill] sm:$0xff] %v14607_v28  ;;  %v1085_v36 = vshll.u32 %v14594_v10, 16  ;;  %v14617_v37 = vrot.slane %v2356_v11, %v14396_v9  ;;  %v2385_v39 = vcombine.low %v14590_v8, %v14604_v25  ;;  %v1088_v42 = vshrl.u32 %v14594_v10, 16 }
  0x30   : > { %21241 = vst [vmem:[#allocation18_spill] sm:$0xff] %v14613_v35  ;;  %v14622_v40 = vrot.slane %v404_v29, %v14396_v9  ;;  %v14627_v43 = vcombine.high %v14610_v32, %v14610_v32  ;;  %v14630_v44 = vrot.slane %v427_v34, %v14396_v9  ;;  %v14634_v45 = vcombine.high %v14613_v35, %v14613_v35 }
  0x31   : > { %21242 = vst [vmem:[#allocation19_spill] sm:$0xff] %v14617_v37  ;;  %v14638_v47 = vsel %vm14429_vm1, %v1080_v1, %v1085_v36  ;;  %v2386_v48 = vcombine.low %v14607_v28, %v14617_v37  ;;  %v2393_v51 = vrot.slane %v2385_v39, %v14396_v9  ;;  %v1093_v54 = vshll.u32 %v14598_v20, 16 }
  0x32   : > { %21243 = vst [vmem:[#allocation20_spill] sm:$0xff] %v14627_v43  ;;  %21244 = vst [vmem:[#allocation21_spill] sm:$0xff] %v14638_v47  ;;  %v14645_v52 = vcombine.high %v14622_v40, %v14622_v40  ;;  %v1096_v55 = vshrl.u32 %v14598_v20, 16  ;;  %v1101_v56 = vshll.u32 %v14610_v32, 16  ;;  %v1104_v58 = vshrl.u32 %v14610_v32, 16 }
  0x33   : > { %v1109_v62 = vshll.u32 %v14622_v40, 16  ;;  %v2400_v63 = vrot.slane %v2386_v48, %v14396_v9  ;;  %v14655_v0 = vsel %vm14429_vm1, %v1088_v42, %v1093_v54  ;;  %v1112_v1 = vshrl.u32 %v14622_v40, 16 }
  0x34   : > { %21245 = vst [vmem:[#allocation22_spill] sm:$0xff] %v14655_v0  ;;  %v1117_v11 = vshll.u32 %v14627_v43, 16  ;;  %v14661_v29 = vsel %vm14429_vm1, %v1096_v55, %v1101_v56  ;;  %v1120_v36 = vshrl.u32 %v14627_v43, 16  ;;  %v1125_v39 = vshll.u32 %v14645_v52, 16 }
  0x35   : > { %21246 = vst [vmem:[#allocation23_spill] sm:$0xff] %v14661_v29  ;;  %v14665_v34 = vsel %vm14429_vm1, %v1104_v58, %v1109_v62  ;;  %v2401_v48 = vcombine.low %v2393_v51, %v2400_v63  ;;  %v1129_v54 = vshrl.u32 %v14613_v35, 16  ;;  %v1134_v2 = vshll.u32 %v14630_v44, 16 }
  0x36   : > { %21247 = vst [vmem:[#allocation24_spill] sm:$0xff] %v14665_v34  ;;  %v14671_v42 = vsel %vm14429_vm1, %v1112_v1, %v1117_v11  ;;  %v14677_v55 = vsel %vm14429_vm1, %v1120_v36, %v1125_v39  ;;  %v1137_v56 = vshrl.u32 %v14630_v44, 16  ;;  %v1142_v58 = vshll.u32 %v14634_v45, 16 }
  0x37   : > { %21248 = vst [vmem:[#allocation25_spill] sm:$0xff] %v14671_v42  ;;  %21249 = vst [vmem:[#allocation26_spill] sm:$0xff] %v14677_v55  ;;  %v1863_v62 = vcombine.low %v14638_v47, %v14655_v0  ;;  %13519 = vmatmul.mubr.msk.bf16.vlgmr.msra.gmra.mrb[0].mxu1 %vm2417_vm2, %v2401_v48  ;;  %v14686_v51 = vsel %vm14429_vm1, %v1129_v54, %v1134_v2  ;;  %v1864_v63 = vcombine.low %v14661_v29, %v14665_v34  ;;  %v21251_v36 = vmov 0.0  }
  0x38   : > { %21250 = vst [vmem:[#allocation27_spill] sm:$0xff] %v14686_v51  ;;  %v1865_v1 = vcombine.low %v14671_v42, %v14677_v55  ;;  %13522 = vmatprep.mubr.msk.bf16.mxu1 %vm14327_vm4, %v21251_v36  ;;  %v14698_v39 = vsel %vm14429_vm1, %v1137_v56, %v1142_v58  ;;  %13527 = vmatpush3.bf16.msra.mxu1 %v14488_v61  ;;  %v1796_v48 = vshrl.u32 %v14522_v31, 16  ;;  %v14877_v29 = vld.sshfl [vmem:[%s14392_s28 + $0x24] sm:$0x33 pattern:$0x75316420] }
  0x39   : > { %21252 = vst [vmem:[#allocation28_spill] sm:$0xff] %v14698_v39  ;;  %v1873_v2 = vrot.slane %v1863_v62, %v14396_v9  ;;  %v1866_v6 = vcombine.low %v14686_v51, %v14698_v39  ;;  %v1880_v11 = vrot.slane %v1864_v63, %v14396_v9  ;;  %v14714_v58 = vcombine.high %v14506_v12, %v14506_v12 }
  0x3a   : > { %v1887_v37 = vrot.slane %v1865_v1, %v14396_v9  ;;  %13634 = vmatprep.subr.bf16.mxu1 %v21251_v36  ;;  %v14722_v63 = vcombine.high %v14522_v31, %v14522_v31  ;;  %v12695_v1 = vld.sshfl [vmem:[%s14392_s28 + $0x14] sm:$0x33 pattern:$0x75316420]  ;;  %vm8740_vm11 = vsmask.f32 3336 }
  0x3b   : > { %21253 = vst [vmem:[#allocation29_spill] sm:$0xff] %v14714_v58  ;;  %v14718_v62 = vrot.slane %v1866_v6, %v14396_v9  ;;  %v1895_v54 = vcombine.low %v1873_v2, %v1880_v11  ;;  %v1801_v56 = vshll.u32 %v14714_v58, 16  ;;  %v1804_v61 = vshrl.u32 %v14714_v58, 16 }
  0x3c   : > { %21255 = vst [vmem:[#allocation31_spill] sm:$0xff] %v14722_v63  ;;  %v1809_v8 = vshll.u32 %v14722_v63, 16  ;;  %v12696_v11 = vld.sshfl [vmem:[%s14392_s28 + $0x18] sm:$0x33 pattern:$0x75316420]  ;;  %v451_v2 = vcombine.high %v12695_v1, %v12695_v1 }
  0x3d   : > { %21254 = vst [vmem:[#allocation30_spill] sm:$0xff] %v14718_v62  ;;  %v1896_v25 = vcombine.low %v1887_v37, %v14718_v62  ;;  %v1903_v28 = vrot.slane %v1895_v54, %v14396_v9  ;;  %v14733_v6 = vsel %vm14429_vm1, %v1796_v48, %v1801_v56  ;;  %v14745_v37 = vcombine.high %v14630_v44, %v14630_v44 }
  0x3e   : > { %21256 = vst [vmem:[#allocation32_spill] sm:$0xff] %v14733_v6  ;;  %v14739_v59 = vsel %vm14429_vm1, %v1804_v61, %v1809_v8  ;;  %v14750_v48 = vrot.slane %v12695_v1, %v14396_v9  ;;  %v14753_v56 = vrot.slane %v451_v2, %v14396_v9  ;;  %v474_v63 = vcombine.high %v12696_v11, %v12696_v11 }
  0x3f   : > { %v1910_v53 = vrot.slane %v1896_v25, %v14396_v9  ;;  %21257 = vst [vmem:[#allocation33_spill] sm:$0xff] %v14739_v59  ;;  %21258 = vst [vmem:[#allocation34_spill] sm:$0xff] %v14745_v37  ;;  %v2402_v54 = vcombine.low %v14733_v6, %v14739_v59  ;;  %v14756_v8 = vrot.slane %v12696_v11, %v14396_v9  ;;  %v1145_v61 = vshrl.u32 %v14634_v45, 16 }
  0x40   : > { %21259 = vst [vmem:[#allocation35_spill] sm:$0xff] %v14750_v48  ;;  %21260 = vst [vmem:[#allocation36_spill] sm:$0xff] %v14753_v56  ;;  %v14764_v50 = vcombine.high %v14750_v48, %v14750_v48  ;;  %v14768_v1 = vcombine.high %v14753_v56, %v14753_v56  ;;  %v1150_v11 = vshll.u32 %v14745_v37, 16  ;;  %v1158_v41 = vshll.u32 %v14750_v48, 16 }
  0x41   : > { %v1911_v25 = vcombine.low %v1903_v28, %v1910_v53  ;;  %21261 = vst [vmem:[#allocation37_spill] sm:$0xff] %v14756_v8  ;;  %v14760_v49 = vrot.slane %v2402_v54, %v14396_v9  ;;  %v14772_v53 = vrot.slane %v474_v63, %v14396_v9  ;;  %v14776_v28 = vcombine.high %v14756_v8, %v14756_v8 }
  0x42   : > { %21263 = vst [vmem:[#allocation39_spill] sm:$0xff] %v14764_v50  ;;  %21264 = vst [vmem:[#allocation40_spill] sm:$0xff] %v14768_v1  ;;  %v1153_v54 = vshrl.u32 %v14745_v37, 16  ;;  %v14792_v46 = vsel %vm14429_vm1, %v1145_v61, %v1150_v11  ;;  %v1166_v38 = vshll.u32 %v14753_v56, 16  ;;  %v1174_v5 = vshll.u32 %v14764_v50, 16 }
  0x43   : > { %21262 = vst [vmem:[#allocation38_spill] sm:$0xff] %v14760_v49  ;;  %13479 = vmatmul.mubr.msk.bf16.gmra.mrb[4].mxu0 %vm2417_vm2, %v1911_v25  ;;  %21265 = vst [vmem:[#allocation41_spill] sm:$0xff] %v14772_v53  ;;  %v2416_v2 = vrot.slane %v14760_v49, %v14396_v9  ;;  %v1161_v25 = vshrl.u32 %v14750_v48, 16  ;;  %v14788_v63 = vcombine.high %v14772_v53, %v14772_v53  ;;  %v1169_v49 = vshrl.u32 %v14753_v56, 16 }
  0x44   : > { %13482 = vmatprep.mubr.msk.bf16.mxu0 %vm14327_vm4, %v21251_v36  ;;  %21266 = vst [vmem:[#allocation42_spill] sm:$0xff] %v14792_v46  ;;  %v14799_v6 = vsel %vm14429_vm1, %v1153_v54, %v1158_v41  ;;  %v1177_v59 = vshrl.u32 %v14764_v50, 16  ;;  %v1182_v39 = vshll.u32 %v14768_v1, 16  ;;  %v1186_v11 = vshrl.u32 %v14756_v8, 16 }
  0x45   : > { %13523 = vmatmul.mubr.msk.bf16.gmra.mrb[4].mxu1 %vm2417_vm2, %v2416_v2  ;;  %21267 = vst [vmem:[#allocation43_spill] sm:$0xff] %v14799_v6  ;;  %v14808_v61 = vsel %vm14429_vm1, %v1161_v25, %v1166_v38  ;;  %v1191_v2 = vshll.u32 %v14772_v53, 16  ;;  %v1194_v41 = vshrl.u32 %v14772_v53, 16  ;;  %v14815_v54 = vsel %vm14429_vm1, %v1169_v49, %v1174_v5 }
  0x46   : > { %13528 = vmatprep.mubr.msk.bf16.mxu1 %vm14327_vm4, %v21251_v36  ;;  %21268 = vst [vmem:[#allocation44_spill] sm:$0xff] %v14808_v61  ;;  %21269 = vst [vmem:[#allocation45_spill] sm:$0xff] %v14815_v54  ;;  %v14819_v18 = vsel %vm14429_vm1, %v1177_v59, %v1182_v39  ;;  %v1199_v51 = vshll.u32 %v14776_v28, 16  ;;  %v1202_v38 = vshrl.u32 %v14776_v28, 16  ;;  %v1207_v55 = vshll.u32 %v14788_v63, 16 }
  0x47   : > { %21270 = vst [vmem:[#allocation46_spill] sm:$0xff] %v14819_v18  ;;  %v14825_v25 = vsel %vm14429_vm1, %v1186_v11, %v1191_v2  ;;  %v1912_v42 = vcombine.low %v14792_v46, %v14799_v6  ;;  %v1913_v49 = vcombine.low %v14808_v61, %v14815_v54  ;;  %v2597_v39 = vcombine.low %v14404_v14, %v14410_v17  ;;  %v12698_v46 = vld.sshfl [vmem:[%s14392_s28 + $0x20] sm:$0x33 pattern:$0x75316420] }
  0x48   : > { %21271 = vst [vmem:[#allocation47_spill] sm:$0xff] %v14825_v25  ;;  %v14834_v59 = vsel %vm14429_vm1, %v1194_v41, %v1199_v51  ;;  %v1914_v5 = vcombine.low %v14819_v18, %v14825_v25  ;;  %v12830_v11 = vcombine.high %v14404_v14, %v14410_v17  ;;  %v14844_v2 = vsel %vm14429_vm1, %v1202_v38, %v1207_v55  ;;  %v12697_v25 = vld.sshfl [vmem:[%s14392_s28 + $0x1c] sm:$0x33 pattern:$0x75316420] }
  0x49   : > { %21272 = vst [vmem:[#allocation48_spill] sm:$0xff] %v14834_v59  ;;  %21273 = vst [vmem:[#allocation49_spill] sm:$0xff] %v14844_v2  ;;  %v14847_v54 = vrot.slane %v1912_v42, %v14396_v9  ;;  %v14850_v51 = vrot.slane %v1913_v49, %v14396_v9  ;;  %v2599_v41 = vcombine.low %v14407_v16, %v14423_v22  ;;  %vm9309_vm13 = vcmask 64512  }
  0x4a   : > { %v1915_v18 = vcombine.low %v14834_v59, %v14844_v2  ;;  %v14858_v14 = vrot.slane %v1914_v5, %v14396_v9  ;;  %v2600_v55 = vcombine.low %v14427_v23, %v14413_v19  ;;  %v2607_v42 = vrot.slane %v2597_v39, %v14396_v9 }
  0x4b   : > { %21274 = vst [vmem:[#allocation50_spill] sm:$0xff] %v14847_v54  ;;  %21275 = vst [vmem:[#allocation51_spill] sm:$0xff] %v14850_v51  ;;  %v1944_v38 = vcombine.low %v14847_v54, %v14850_v51  ;;  %v2614_v6 = vrot.slane %v12830_v11, %v14396_v9  ;;  %v2621_v61 = vrot.slane %v2599_v41, %v14396_v9  ;;  %vm8742_vm14 = vsmask.f32 5392 }
  0x4c   : > { %21276 = vst [vmem:[#allocation52_spill] sm:$0xff] %v14858_v14  ;;  %v14870_v2 = vrot.slane %v1915_v18, %v14396_v9  ;;  %v2628_v59 = vrot.slane %v2600_v55, %v14396_v9  ;;  %v498_v39 = vcombine.high %v12697_v25, %v12697_v25  ;;  %v14880_v0 = vrot.slane %v12697_v25, %v14396_v9 }
  0x4d   : > { %v2629_v34 = vcombine.low %v2607_v42, %v2614_v6  ;;  %v1952_v41 = vrot.slane %v1944_v38, %v14396_v9  ;;  %v521_v6 = vcombine.high %v12698_v46, %v12698_v46  ;;  %v14894_v42 = vrot.slane %v12698_v46, %v14396_v9 }
  0x4e   : > { %21277 = vst [vmem:[#allocation53_spill] sm:$0xff] %v14870_v2  ;;  %21278 = vst [vmem:[#allocation54_spill] sm:$0xff] %v14880_v0  ;;  %v1945_v11 = vcombine.low %v14858_v14, %v14870_v2  ;;  %v2630_v18 = vcombine.low %v2621_v61, %v2628_v59  ;;  %v14886_v49 = vrot.slane %v498_v39, %v14396_v9  ;;  %v1210_v46 = vshrl.u32 %v14788_v63, 16 }
  0x4f   : > { %v2637_v5 = vrot.slane %v2629_v34, %v14396_v9  ;;  %v14891_v55 = vcombine.high %v14880_v0, %v14880_v0  ;;  %21281 = vst [vmem:[#allocation57_spill] sm:$0xff] %v14894_v42  ;;  %v14900_v61 = vrot.slane %v14877_v29, %v14396_v9  ;;  %v14907_v34 = vrot.slane %v521_v6, %v14396_v9 }
  0x50   : > { %21279 = vst [vmem:[#allocation55_spill] sm:$0xff] %v14886_v49  ;;  %v1959_v25 = vrot.slane %v1945_v11, %v14396_v9  ;;  %v2644_v2 = vrot.slane %v2630_v18, %v14396_v9  ;;  %v14904_v59 = vcombine.high %v14886_v49, %v14886_v49  ;;  %v14911_v38 = vcombine.high %v14894_v42, %v14894_v42 }
  0x51   : > { %21280 = vst [vmem:[#allocation56_spill] sm:$0xff] %v14891_v55  ;;  %21282 = vst [vmem:[#allocation58_spill] sm:$0xff] %v14900_v61  ;;  %v1215_v39 = vshll.u32 %v14880_v0, 16  ;;  %v1218_v14 = vshrl.u32 %v14880_v0, 16  ;;  %v1223_v51 = vshll.u32 %v14886_v49, 16  ;;  %v14919_v54 = vcombine.high %v14907_v34, %v14907_v34 }
  0x52   : > { %21283 = vst [vmem:[#allocation59_spill] sm:$0xff] %v14904_v59  ;;  %21284 = vst [vmem:[#allocation60_spill] sm:$0xff] %v14907_v34  ;;  %v1960_v11 = vcombine.low %v1952_v41, %v1959_v25  ;;  %v2645_v18 = vcombine.low %v2637_v5, %v2644_v2  ;;  %v1226_v62 = vshrl.u32 %v14886_v49, 16  ;;  %v1231_v47 = vshll.u32 %v14891_v55, 16 }
  0x53   : > { %21285 = vst [vmem:[#allocation61_spill] sm:$0xff] %v14911_v38  ;;  %21286 = vst [vmem:[#allocation62_spill] sm:$0xff] %v14919_v54  ;;  %v14923_v6 = vsel %vm14429_vm1, %v1210_v46, %v1215_v39  ;;  %v14931_v2 = vsel %vm14429_vm1, %v1218_v14, %v1223_v51  ;;  %v1234_v5 = vshrl.u32 %v14891_v55, 16  ;;  %v1239_v41 = vshll.u32 %v14904_v59, 16 }
  0x54   : > { %21287 = vst [vmem:[#allocation63_spill] sm:$0xff] %v14923_v6  ;;  %13483 = vmatmul.mubr.msk.bf16.gmra.mrb[8].mxu0 %vm2417_vm2, %v1960_v11  ;;  %13529 = vmatmul.mubr.msk.bf16.vlgmr.msra.gmra.mrb[8].mxu1 %vm2417_vm2, %v2645_v18  ;;  %21288 = vst [vmem:[#allocation64_spill] sm:$0xff] %v14931_v2  ;;  %v1243_v25 = vshrl.u32 %v14894_v42, 16  ;;  %v14942_v46 = vsel %vm14429_vm1, %v1226_v62, %v1231_v47  ;;  %v1248_v39 = vshll.u32 %v14907_v34, 16  ;;  %v1251_v51 = vshrl.u32 %v14907_v34, 16 }
  0x55   : > { %13486 = vmatprep.mubr.msk.bf16.mxu0 %vm14327_vm4, %v21251_v36  ;;  %13532 = vmatprep.mubr.msk.bf16.mxu1 %vm14327_vm4, %v21251_v36  ;;  %21289 = vst [vmem:[#allocation65_spill] sm:$0xff] %v14942_v46  ;;  %v1256_v14 = vshll.u32 %v14911_v38, 16  ;;  %v14949_v11 = vsel %vm14429_vm1, %v1234_v5, %v1239_v41  ;;  %v1259_v18 = vshrl.u32 %v14911_v38, 16  ;;  %v1264_v59 = vshll.u32 %v14919_v54, 16 }
  0x56   : > { %21290 = vst [vmem:[#allocation66_spill] sm:$0xff] %v14949_v11  ;;  %v1267_v57 = vshrl.u32 %v14919_v54, 16  ;;  %v14956_v47 = vsel %vm14429_vm1, %v1243_v25, %v1248_v39  ;;  %v1272_v31 = vshll.u32 %v14900_v61, 16  ;;  %v1961_v5 = vcombine.low %v14923_v6, %v14931_v2 }
  0x57   : > { %21291 = vst [vmem:[#allocation67_spill] sm:$0xff] %v14956_v47  ;;  %v14960_v62 = vsel %vm14429_vm1, %v1251_v51, %v1256_v14  ;;  %v14967_v41 = vsel %vm14429_vm1, %v1259_v18, %v1264_v59  ;;  %v1962_v58 = vcombine.low %v14942_v46, %v14949_v11  ;;  %v2646_v39 = vcombine.low %v14439_v27, %v14594_v10  ;;  %v12701_v46 = vld.sshfl [vmem:[%s14392_s28 + $0x2c] sm:$0x33 pattern:$0x75316420] }
  0x58   : > { %21292 = vst [vmem:[#allocation68_spill] sm:$0xff] %v14960_v62  ;;  %21293 = vst [vmem:[#allocation69_spill] sm:$0xff] %v14967_v41  ;;  %v1963_v25 = vcombine.low %v14956_v47, %v14960_v62  ;;  %v14977_v51 = vsel %vm14429_vm1, %v1267_v57, %v1272_v31  ;;  %v14980_v14 = vrot.slane %v1961_v5, %v14396_v9  ;;  %v12700_v31 = vld.sshfl [vmem:[%s14392_s28 + $0x28] sm:$0x33 pattern:$0x75316420] }
  0x59   : > { %21294 = vst [vmem:[#allocation70_spill] sm:$0xff] %v14977_v51  ;;  %v2647_v59 = vcombine.low %v14598_v20, %v14610_v32  ;;  %v2648_v18 = vcombine.low %v14622_v40, %v14627_v43  ;;  %v1964_v62 = vcombine.low %v14967_v41, %v14977_v51  ;;  %v14989_v11 = vrot.slane %v1962_v58, %v14396_v9 }
  0x5a   : > { %21295 = vst [vmem:[#allocation71_spill] sm:$0xff] %v14980_v14  ;;  %v14992_v10 = vrot.slane %v1963_v25, %v14396_v9  ;;  %v2649_v57 = vcombine.low %v14613_v35, %v14630_v44  ;;  %v2656_v5 = vrot.slane %v2646_v39, %v14396_v9  ;;  %v5655_v2 = vcombine.low %v14645_v52, %v14630_v44 }
  0x5b   : > { %21296 = vst [vmem:[#allocation72_spill] sm:$0xff] %v14989_v11  ;;  %v2663_v20 = vrot.slane %v2647_v59, %v14396_v9  ;;  %v2670_v47 = vrot.slane %v2648_v18, %v14396_v9  ;;  %v15003_v51 = vrot.slane %v1964_v62, %v14396_v9  ;;  %v1993_v58 = vcombine.low %v14980_v14, %v14989_v11 }
  0x5c   : > { %21297 = vst [vmem:[#allocation73_spill] sm:$0xff] %v14992_v10  ;;  %v15008_v25 = vrot.slane %v2649_v57, %v14396_v9  ;;  %v545_v41 = vcombine.high %v14877_v29, %v14877_v29  ;;  %v5662_v59 = vrot.slane %v5655_v2, %v14396_v9  ;;  %v15016_v18 = vcombine.high %v14900_v61, %v14900_v61 }
  0x5d   : > { %21298 = vst [vmem:[#allocation74_spill] sm:$0xff] %v15003_v51  ;;  %v2678_v39 = vcombine.low %v2656_v5, %v2663_v20  ;;  %v568_v52 = vcombine.high %v12700_v31, %v12700_v31  ;;  %v1994_v62 = vcombine.low %v14992_v10, %v15003_v51  ;;  %v2001_v11 = vrot.slane %v1993_v58, %v14396_v9 }
  0x5e   : > { %21299 = vst [vmem:[#allocation75_spill] sm:$0xff] %v15008_v25  ;;  %21300 = vst [vmem:[#allocation76_spill] sm:$0xff] %v15016_v18  ;;  %v2679_v57 = vcombine.low %v2670_v47, %v15008_v25  ;;  %v15023_v14 = vrot.slane %v545_v41, %v14396_v9  ;;  %v5663_v2 = vcombine.low %v2670_v47, %v5662_v59  ;;  %v1288_v43 = vshll.u32 %v15016_v18, 16 }
  0x5f   : > { %v15026_v29 = vrot.slane %v2678_v39, %v14396_v9  ;;  %v15029_v5 = vrot.slane %v12700_v31, %v14396_v9  ;;  %v15032_v20 = vrot.slane %v568_v52, %v14396_v9  ;;  %v2008_v6 = vrot.slane %v1994_v62, %v14396_v9 }
  0x60   : > { %21301 = vst [vmem:[#allocation77_spill] sm:$0xff] %v15023_v14  ;;  %v2693_v51 = vrot.slane %v2679_v57, %v14396_v9  ;;  %v592_v58 = vcombine.high %v12701_v46, %v12701_v46  ;;  %v15037_v10 = vrot.slane %v12701_v46, %v14396_v9  ;;  %v15040_v41 = vrot.slane %v5663_v2, %v14396_v9 }
  0x61   : > { %21302 = vst [vmem:[#allocation78_spill] sm:$0xff] %v15026_v29  ;;  %21303 = vst [vmem:[#allocation79_spill] sm:$0xff] %v15029_v5  ;;  %v15044_v47 = vcombine.high %v15029_v5, %v15029_v5  ;;  %v15048_v31 = vcombine.high %v15032_v20, %v15032_v20  ;;  %v15052_v39 = vcombine.high %v15023_v14, %v15023_v14  ;;  %v1275_v62 = vshrl.u32 %v14900_v61, 16 }
  0x62   : > { %21304 = vst [vmem:[#allocation80_spill] sm:$0xff] %v15032_v20  ;;  %21305 = vst [vmem:[#allocation81_spill] sm:$0xff] %v15037_v10  ;;  %v2009_v59 = vcombine.low %v2001_v11, %v2008_v6  ;;  %v2694_v52 = vcombine.low %v15026_v29, %v2693_v51  ;;  %v15056_v46 = vrot.slane %v592_v58, %v14396_v9  ;;  %v1280_v2 = vshll.u32 %v15023_v14, 16 }
  0x63   : > { %21306 = vst [vmem:[#allocation82_spill] sm:$0xff] %v15040_v41  ;;  %21307 = vst [vmem:[#allocation83_spill] sm:$0xff] %v15052_v39  ;;  %v1283_v54 = vshrl.u32 %v15023_v14, 16  ;;  %v1291_v6 = vshrl.u32 %v15016_v18, 16  ;;  %v1296_v11 = vshll.u32 %v15052_v39, 16  ;;  %v1300_v51 = vshrl.u32 %v15029_v5, 16 }
  0x64   : > { %21308 = vst [vmem:[#allocation84_spill] sm:$0xff] %v15056_v46  ;;  %13487 = vmatmul.mubr.msk.bf16.gmra.mrb[12].mxu0 %vm2417_vm2, %v2009_v59  ;;  %13533 = vmatmul.mubr.msk.bf16.gmra.mrb[12].mxu1 %vm2417_vm2, %v2694_v52  ;;  %v1305_v58 = vshll.u32 %v15032_v20, 16  ;;  %v15076_v57 = vsel %vm14429_vm1, %v1275_v62, %v1280_v2  ;;  %v1308_v52 = vshrl.u32 %v15032_v20, 16  ;;  %v1313_v41 = vshll.u32 %v15044_v47, 16 }
  0x65   : > { %13490 = vmatprep.mubr.msk.bf16.mxu0 %vm14327_vm4, %v21251_v36  ;;  %13536 = vmatprep.mubr.msk.bf16.mxu1 %vm14327_vm4, %v21251_v36  ;;  %21309 = vst [vmem:[#allocation85_spill] sm:$0xff] %v15076_v57  ;;  %v15080_v59 = vsel %vm14429_vm1, %v1283_v54, %v1288_v43  ;;  %v15086_v29 = vsel %vm14429_vm1, %v1291_v6, %v1296_v11  ;;  %v1316_v38 = vshrl.u32 %v15044_v47, 16  ;;  %v1321_v62 = vshll.u32 %v15048_v31, 16 }
  0x66   : > { %21310 = vst [vmem:[#allocation86_spill] sm:$0xff] %v15080_v59  ;;  %21311 = vst [vmem:[#allocation87_spill] sm:$0xff] %v15086_v29  ;;  %v15090_v39 = vsel %vm14429_vm1, %v1300_v51, %v1305_v58  ;;  %v15096_v43 = vsel %vm14429_vm1, %v1308_v52, %v1313_v41  ;;  %v1324_v54 = vshrl.u32 %v15048_v31, 16  ;;  %v1329_v2 = vshll.u32 %v15037_v10, 16 }
  0x67   : > { %21312 = vst [vmem:[#allocation88_spill] sm:$0xff] %v15090_v39  ;;  %21313 = vst [vmem:[#allocation89_spill] sm:$0xff] %v15096_v43  ;;  %v1332_v6 = vshrl.u32 %v15037_v10, 16  ;;  %v15103_v11 = vsel %vm14429_vm1, %v1316_v38, %v1321_v62  ;;  %v1337_v51 = vshll.u32 %v15056_v46, 16  ;;  %v2010_v58 = vcombine.low %v15076_v57, %v15080_v59 }
  0x68   : > { %21314 = vst [vmem:[#allocation90_spill] sm:$0xff] %v15103_v11  ;;  %v2011_v41 = vcombine.low %v15086_v29, %v15090_v39  ;;  %v15112_v52 = vsel %vm14429_vm1, %v1324_v54, %v1329_v2  ;;  %v2012_v1 = vcombine.low %v15096_v43, %v15103_v11  ;;  %v12831_v37 = vcombine.high %v14613_v35, %v14630_v44  ;;  %v12702_v11 = vld.sshfl [vmem:[%s14392_s28 + $0x30] sm:$0x33 pattern:$0x75316420] }
  0x69   : > { %21315 = vst [vmem:[#allocation91_spill] sm:$0xff] %v15112_v52  ;;  %v2696_v38 = vcombine.low %v14750_v48, %v14753_v56  ;;  %v15122_v62 = vsel %vm14429_vm1, %v1332_v6, %v1337_v51  ;;  %v15125_v39 = vrot.slane %v2010_v58, %v14396_v9  ;;  %v2697_v2 = vcombine.low %v14764_v50, %v14756_v8 }
  0x6a   : > { %21316 = vst [vmem:[#allocation92_spill] sm:$0xff] %v15122_v62  ;;  %v15128_v54 = vrot.slane %v2011_v41, %v14396_v9  ;;  %v2013_v43 = vcombine.low %v15112_v52, %v15122_v62  ;;  %v15136_v59 = vrot.slane %v2012_v1, %v14396_v9  ;;  %v2698_v6 = vcombine.low %v14772_v53, %v14776_v28 }
  0x6b   : > { %21317 = vst [vmem:[#allocation93_spill] sm:$0xff] %v15125_v39  ;;  %v15141_v51 = vrot.slane %v12831_v37, %v14396_v9  ;;  %v15146_v41 = vrot.slane %v2696_v38, %v14396_v9  ;;  %v15149_v29 = vrot.slane %v2697_v2, %v14396_v9  ;;  %v12703_v37 = vld.sshfl [vmem:[%s14392_s28 + $0x34] sm:$0x33 pattern:$0x75316420]  ;;  %v615_v52 = vcombine.high %v12702_v11, %v12702_v11 }
  0x6c   : > { %21318 = vst [vmem:[#allocation94_spill] sm:$0xff] %v15128_v54  ;;  %21319 = vst [vmem:[#allocation95_spill] sm:$0xff] %v15136_v59  ;;  %v2042_v58 = vcombine.low %v15125_v39, %v15128_v54  ;;  %v15152_v62 = vrot.slane %v2013_v43, %v14396_v9  ;;  %v15155_v1 = vrot.slane %v2698_v6, %v14396_v9  ;;  %vm8744_vm15 = vsmask.f32 7448 }
  0x6d   : > { %21320 = vst [vmem:[#allocation96_spill] sm:$0xff] %v15141_v51  ;;  %21321 = vst [vmem:[#allocation97_spill] sm:$0xff] %v15146_v41  ;;  %v2727_v54 = vcombine.low %v15141_v51, %v15146_v41  ;;  %v15166_v2 = vcombine.high %v15037_v10, %v15037_v10  ;;  %v15169_v43 = vrot.slane %v12702_v11, %v14396_v9  ;;  %vm12516_vm7 = vcmask 1043459  }
  0x6e   : > { %21322 = vst [vmem:[#allocation98_spill] sm:$0xff] %v15149_v29  ;;  %21323 = vst [vmem:[#allocation99_spill] sm:$0xff] %v15152_v62  ;;  %v2043_v6 = vcombine.low %v15136_v59, %v15152_v62  ;;  %v2050_v28 = vrot.slane %v2042_v58, %v14396_v9  ;;  %v2728_v39 = vcombine.low %v15149_v29, %v15155_v1  ;;  %vm12522_vm8 = vcmask 1045509  }
  0x6f   : > { %21324 = vst [vmem:[#allocation100_spill] sm:$0xff] %v15155_v1  ;;  %21325 = vst [vmem:[#allocation101_spill] sm:$0xff] %v15166_v2  ;;  %v15177_v57 = vrot.slane %v615_v52, %v14396_v9  ;;  %v15182_v41 = vrot.slane %v2727_v54, %v14396_v9  ;;  %v15186_v11 = vcombine.high %v15169_v43, %v15169_v43  ;;  %v1340_v1 = vshrl.u32 %v15056_v46, 16 }
  0x70   : > { %21326 = vst [vmem:[#allocation102_spill] sm:$0xff] %v15169_v43  ;;  %v639_v51 = vcombine.high %v12703_v37, %v12703_v37  ;;  %v2057_v62 = vrot.slane %v2043_v6, %v14396_v9  ;;  %v2742_v58 = vrot.slane %v2728_v39, %v14396_v9  ;;  %v15195_v52 = vrot.slane %v12703_v37, %v14396_v9 }
  0x71   : > { %21327 = vst [vmem:[#allocation103_spill] sm:$0xff] %v15177_v57  ;;  %21328 = vst [vmem:[#allocation104_spill] sm:$0xff] %v15182_v41  ;;  %v15192_v59 = vcombine.high %v15177_v57, %v15177_v57  ;;  %v15202_v54 = vcombine.high %v15056_v46, %v15056_v46  ;;  %v1345_v6 = vshll.u32 %v15166_v2, 16  ;;  %v1348_v37 = vshrl.u32 %v15166_v2, 16 }
  0x72   : > { %21329 = vst [vmem:[#allocation105_spill] sm:$0xff] %v15186_v11  ;;  %21331 = vst [vmem:[#allocation107_spill] sm:$0xff] %v15195_v52  ;;  %v15198_v38 = vrot.slane %v639_v51, %v14396_v9  ;;  %v2058_v29 = vcombine.low %v2050_v28, %v2057_v62  ;;  %v2743_v39 = vcombine.low %v15182_v41, %v2742_v58  ;;  %v1357_v8 = vshrl.u32 %v15169_v43, 16 }
  0x73   : > { %21330 = vst [vmem:[#allocation106_spill] sm:$0xff] %v15192_v59  ;;  %21333 = vst [vmem:[#allocation109_spill] sm:$0xff] %v15202_v54  ;;  %v15209_v25 = vcombine.high %v15195_v52, %v15195_v52  ;;  %v15214_v51 = vsel %vm14429_vm1, %v1340_v1, %v1345_v6  ;;  %v1353_v35 = vshll.u32 %v15202_v54, 16  ;;  %v1362_v53 = vshll.u32 %v15177_v57, 16 }
  0x74   : > { %21332 = vst [vmem:[#allocation108_spill] sm:$0xff] %v15198_v38  ;;  %21334 = vst [vmem:[#allocation110_spill] sm:$0xff] %v15214_v51  ;;  %13491 = vmatmul.mubr.msk.bf16.gmra.mrb[16].mxu0 %vm2417_vm2, %v2058_v29  ;;  %13537 = vmatmul.mubr.msk.bf16.gmra.mrb[16].mxu1 %vm2417_vm2, %v2743_v39  ;;  %v1365_v62 = vshrl.u32 %v15177_v57, 16  ;;  %v1370_v28 = vshll.u32 %v15186_v11, 16  ;;  %v1373_v58 = vshrl.u32 %v15186_v11, 16  ;;  %v1378_v41 = vshll.u32 %v15192_v59, 16 }
  0x75   : > { %13494 = vmatprep.mubr.msk.bf16.mxu0 %vm14327_vm4, %v21251_v36  ;;  %13540 = vmatprep.mubr.msk.bf16.mxu1 %vm14327_vm4, %v21251_v36  ;;  %v15231_v1 = vsel %vm14429_vm1, %v1348_v37, %v1353_v35  ;;  %v15235_v29 = vsel %vm14429_vm1, %v1357_v8, %v1362_v53  ;;  %v1381_v6 = vshrl.u32 %v15192_v59, 16  ;;  %v1386_v39 = vshll.u32 %v15195_v52, 16 }
  0x76   : > { %21335 = vst [vmem:[#allocation111_spill] sm:$0xff] %v15231_v1  ;;  %21336 = vst [vmem:[#allocation112_spill] sm:$0xff] %v15235_v29  ;;  %v15241_v54 = vsel %vm14429_vm1, %v1365_v62, %v1370_v28  ;;  %v15245_v11 = vsel %vm14429_vm1, %v1373_v58, %v1378_v41  ;;  %v1389_v35 = vshrl.u32 %v15195_v52, 16  ;;  %v1394_v37 = vshll.u32 %v15198_v38, 16 }
  0x77   : > { %21337 = vst [vmem:[#allocation113_spill] sm:$0xff] %v15241_v54  ;;  %21338 = vst [vmem:[#allocation114_spill] sm:$0xff] %v15245_v11  ;;  %v15251_v8 = vsel %vm14429_vm1, %v1381_v6, %v1386_v39  ;;  %v1397_v53 = vshrl.u32 %v15198_v38, 16  ;;  %v1402_v59 = vshll.u32 %v15209_v25, 16  ;;  %v2059_v62 = vcombine.low %v15214_v51, %v15231_v1 }
  0x78   : > { %21339 = vst [vmem:[#allocation115_spill] sm:$0xff] %v15251_v8  ;;  %v15259_v41 = vsel %vm14429_vm1, %v1389_v35, %v1394_v37  ;;  %v2060_v28 = vcombine.low %v15235_v29, %v15241_v54  ;;  %v2061_v58 = vcombine.low %v15245_v11, %v15251_v8  ;;  %v2744_v6 = vcombine.low %v14788_v63, %v14880_v0  ;;  %v12704_v39 = vld.sshfl [vmem:[%s14392_s28 + $0x38] sm:$0x33 pattern:$0x75316420] }
  0x79   : > { %21340 = vst [vmem:[#allocation116_spill] sm:$0xff] %v15259_v41  ;;  %v15270_v56 = vsel %vm14429_vm1, %v1397_v53, %v1402_v59  ;;  %v15273_v1 = vrot.slane %v2059_v62, %v14396_v9  ;;  %v2745_v35 = vcombine.low %v14886_v49, %v14891_v55  ;;  %v2746_v37 = vcombine.low %v14894_v42, %v14907_v34  ;;  %v12705_v53 = vld.sshfl [vmem:[%s14392_s28 + $0x3c] sm:$0x33 pattern:$0x75316420] }
  0x7a   : > { %21341 = vst [vmem:[#allocation117_spill] sm:$0xff] %v15270_v56  ;;  %v2062_v8 = vcombine.low %v15259_v41, %v15270_v56  ;;  %v15282_v54 = vrot.slane %v2060_v28, %v14396_v9  ;;  %v15285_v63 = vrot.slane %v2061_v58, %v14396_v9  ;;  %v12832_v59 = vcombine.high %v14894_v42, %v14907_v34 }
  0x7b   : > { %21342 = vst [vmem:[#allocation118_spill] sm:$0xff] %v15273_v1  ;;  %v15291_v62 = vrot.slane %v2744_v6, %v14396_v9  ;;  %v15294_v11 = vrot.slane %v2745_v35, %v14396_v9  ;;  %v15297_v29 = vrot.slane %v2746_v37, %v14396_v9  ;;  %v662_v56 = vcombine.high %v12704_v39, %v12704_v39 }
  0x7c   : > { %21343 = vst [vmem:[#allocation119_spill] sm:$0xff] %v15282_v54  ;;  %21344 = vst [vmem:[#allocation120_spill] sm:$0xff] %v15285_v63  ;;  %v15300_v28 = vrot.slane %v2062_v8, %v14396_v9  ;;  %v2091_v58 = vcombine.low %v15273_v1, %v15282_v54  ;;  %v15305_v41 = vrot.slane %v12832_v59, %v14396_v9  ;;  %vm12586_vm9 = vcmask 59392  }
  0x7d   : > { %21345 = vst [vmem:[#allocation121_spill] sm:$0xff] %v15291_v62  ;;  %21346 = vst [vmem:[#allocation122_spill] sm:$0xff] %v15294_v11  ;;  %v15308_v51 = vrot.slane %v12704_v39, %v14396_v9  ;;  %v2776_v6 = vcombine.low %v15291_v62, %v15294_v11  ;;  %v15313_v35 = vrot.slane %v662_v56, %v14396_v9 }
  0x7e   : > { %21347 = vst [vmem:[#allocation123_spill] sm:$0xff] %v15297_v29  ;;  %21348 = vst [vmem:[#allocation124_spill] sm:$0xff] %v15300_v28  ;;  %v686_v37 = vcombine.high %v12705_v53, %v12705_v53  ;;  %v15316_v55 = vrot.slane %v12705_v53, %v14396_v9  ;;  %v2092_v8 = vcombine.low %v15285_v63, %v15300_v28 }
  0x7f   : > { %21349 = vst [vmem:[#allocation125_spill] sm:$0xff] %v15305_v41  ;;  %21350 = vst [vmem:[#allocation126_spill] sm:$0xff] %v15308_v51  ;;  %v2099_v54 = vrot.slane %v2091_v58, %v14396_v9  ;;  %v2777_v59 = vcombine.low %v15297_v29, %v15305_v41  ;;  %v15325_v39 = vcombine.high %v15308_v51, %v15308_v51  ;;  %v1419_v62 = vshll.u32 %v15313_v35, 16 }
  0x80   : > { %21351 = vst [vmem:[#allocation127_spill] sm:$0xff] %v15316_v55  ;;  %v15328_v1 = vrot.slane %v2776_v6, %v14396_v9  ;;  %v15332_v56 = vcombine.high %v15313_v35, %v15313_v35  ;;  %v15335_v53 = vrot.slane %v686_v37, %v14396_v9  ;;  %v15339_v58 = vcombine.high %v15316_v55, %v15316_v55 }
  0x81   : > { %v2106_v28 = vrot.slane %v2092_v8, %v14396_v9  ;;  %v2791_v63 = vrot.slane %v2777_v59, %v14396_v9  ;;  %v15345_v11 = vcombine.high %v15198_v38, %v15198_v38  ;;  %v1405_v6 = vshrl.u32 %v15209_v25, 16 }
  0x82   : > { %21352 = vst [vmem:[#allocation128_spill] sm:$0xff] %v15328_v1  ;;  %21353 = vst [vmem:[#allocation129_spill] sm:$0xff] %v15335_v53  ;;  %v15350_v29 = vcombine.high %v15335_v53, %v15335_v53  ;;  %v1414_v37 = vshrl.u32 %v15308_v51, 16  ;;  %v1422_v41 = vshrl.u32 %v15313_v35, 16  ;;  %v1427_v34 = vshll.u32 %v15325_v39, 16 }
  0x83   : > { %21354 = vst [vmem:[#allocation130_spill] sm:$0xff] %v15339_v58  ;;  %21355 = vst [vmem:[#allocation131_spill] sm:$0xff] %v15345_v11  ;;  %v2107_v42 = vcombine.low %v2099_v54, %v2106_v28  ;;  %v2792_v8 = vcombine.low %v15328_v1, %v2791_v63  ;;  %v1410_v59 = vshll.u32 %v15345_v11, 16  ;;  %v1430_v49 = vshrl.u32 %v15325_v39, 16 }
  0x84   : > { %21356 = vst [vmem:[#allocation132_spill] sm:$0xff] %v15350_v29  ;;  %v15360_v0 = vsel %vm14429_vm1, %v1414_v37, %v1419_v62  ;;  %v1435_v50 = vshll.u32 %v15332_v56, 16  ;;  %v1438_v48 = vshrl.u32 %v15332_v56, 16  ;;  %v15373_v63 = vsel %vm14429_vm1, %v1422_v41, %v1427_v34 }
  0x85   : > { %21357 = vst [vmem:[#allocation133_spill] sm:$0xff] %v15360_v0  ;;  %13495 = vmatmul.mubr.msk.bf16.gmra.mrb[20].mxu0 %vm2417_vm2, %v2107_v42  ;;  %13541 = vmatmul.mubr.msk.bf16.gmra.mrb[20].mxu1 %vm2417_vm2, %v2792_v8  ;;  %v15369_v54 = vsel %vm14429_vm1, %v1405_v6, %v1410_v59  ;;  %21359 = vst [vmem:[#allocation135_spill] sm:$0xff] %v15373_v63  ;;  %v1443_v62 = vshll.u32 %v15316_v55, 16  ;;  %v1446_v28 = vshrl.u32 %v15316_v55, 16  ;;  %v1451_v6 = vshll.u32 %v15335_v53, 16 }
  0x86   : > { %21358 = vst [vmem:[#allocation134_spill] sm:$0xff] %v15369_v54  ;;  %13498 = vmatprep.mubr.msk.bf16.mxu0 %vm14327_vm4, %v21251_v36  ;;  %13544 = vmatprep.mubr.msk.bf16.mxu1 %vm14327_vm4, %v21251_v36  ;;  %v15383_v42 = vsel %vm14429_vm1, %v1430_v49, %v1435_v50  ;;  %v1454_v34 = vshrl.u32 %v15335_v53, 16  ;;  %v1459_v41 = vshll.u32 %v15339_v58, 16  ;;  %v1462_v8 = vshrl.u32 %v15339_v58, 16 }
  0x87   : > { %21360 = vst [vmem:[#allocation136_spill] sm:$0xff] %v15383_v42  ;;  %v15390_v37 = vsel %vm14429_vm1, %v1438_v48, %v1443_v62  ;;  %v1467_v59 = vshll.u32 %v15350_v29, 16  ;;  %v2108_v1 = vcombine.low %v15369_v54, %v15360_v0  ;;  %v15398_v50 = vsel %vm14429_vm1, %v1446_v28, %v1451_v6  ;;  %v12706_v11 = vld.sshfl [vmem:[%s14392_s28 + $0x40] sm:$0x33 pattern:$0x75316420] }
  0x88   : > { %21361 = vst [vmem:[#allocation137_spill] sm:$0xff] %v15390_v37  ;;  %21362 = vst [vmem:[#allocation138_spill] sm:$0xff] %v15398_v50  ;;  %v15402_v49 = vsel %vm14429_vm1, %v1454_v34, %v1459_v41  ;;  %v2109_v48 = vcombine.low %v15373_v63, %v15383_v42  ;;  %v2793_v62 = vcombine.low %v14900_v61, %v15023_v14 }
  0x89   : > { %21363 = vst [vmem:[#allocation139_spill] sm:$0xff] %v15402_v49  ;;  %v15411_v29 = vsel %vm14429_vm1, %v1462_v8, %v1467_v59  ;;  %v2110_v0 = vcombine.low %v15390_v37, %v15398_v50  ;;  %v15416_v28 = vrot.slane %v2108_v1, %v14396_v9  ;;  %v2794_v6 = vcombine.low %v15016_v18, %v15029_v5  ;;  %v12707_v50 = vld.sshfl [vmem:[%s14392_s28 + $0x44] sm:$0x33 pattern:$0x75316420] }
  0x8a   : > { %21364 = vst [vmem:[#allocation140_spill] sm:$0xff] %v15411_v29  ;;  %v2111_v34 = vcombine.low %v15402_v49, %v15411_v29  ;;  %v15423_v41 = vrot.slane %v2109_v48, %v14396_v9  ;;  %v2795_v8 = vcombine.low %v15032_v20, %v15044_v47  ;;  %v2796_v59 = vcombine.low %v15048_v31, %v15037_v10 }
  0x8b   : > { %21365 = vst [vmem:[#allocation141_spill] sm:$0xff] %v15416_v28  ;;  %v15431_v1 = vrot.slane %v2110_v0, %v14396_v9  ;;  %v15434_v42 = vrot.slane %v2793_v62, %v14396_v9  ;;  %v15437_v37 = vrot.slane %v2794_v6, %v14396_v9  ;;  %v709_v29 = vcombine.high %v12706_v11, %v12706_v11  ;;  %v12708_v62 = vld.sshfl [vmem:[%s14392_s28 + $0x48] sm:$0x33 pattern:$0x75316420] }
  0x8c   : > { %21366 = vst [vmem:[#allocation142_spill] sm:$0xff] %v15423_v41  ;;  %v15440_v48 = vrot.slane %v2111_v34, %v14396_v9  ;;  %v2140_v47 = vcombine.low %v15416_v28, %v15423_v41  ;;  %v15445_v49 = vrot.slane %v2795_v8, %v14396_v9  ;;  %v15448_v31 = vrot.slane %v2796_v59, %v14396_v9 }
  0x8d   : > { %21367 = vst [vmem:[#allocation143_spill] sm:$0xff] %v15431_v1  ;;  %21368 = vst [vmem:[#allocation144_spill] sm:$0xff] %v15434_v42  ;;  %v2825_v0 = vcombine.low %v15434_v42, %v15437_v37  ;;  %v15454_v6 = vrot.slane %v12706_v11, %v14396_v9  ;;  %v15457_v63 = vrot.slane %v709_v29, %v14396_v9 }
  0x8e   : > { %21369 = vst [vmem:[#allocation145_spill] sm:$0xff] %v15437_v37  ;;  %21370 = vst [vmem:[#allocation146_spill] sm:$0xff] %v15440_v48  ;;  %v733_v34 = vcombine.high %v12707_v50, %v12707_v50  ;;  %v2141_v41 = vcombine.low %v15431_v1, %v15440_v48  ;;  %v2148_v8 = vrot.slane %v2140_v47, %v14396_v9 }
  0x8f   : > { %21371 = vst [vmem:[#allocation147_spill] sm:$0xff] %v15445_v49  ;;  %21372 = vst [vmem:[#allocation148_spill] sm:$0xff] %v15448_v31  ;;  %v2826_v59 = vcombine.low %v15445_v49, %v15448_v31  ;;  %v15465_v28 = vrot.slane %v12707_v50, %v14396_v9  ;;  %v2833_v37 = vrot.slane %v2825_v0, %v14396_v9  ;;  %v1476_v42 = vshll.u32 %v15457_v63, 16 }
  0x90   : > { %21373 = vst [vmem:[#allocation149_spill] sm:$0xff] %v15454_v6  ;;  %21374 = vst [vmem:[#allocation150_spill] sm:$0xff] %v15457_v63  ;;  %v15470_v11 = vcombine.high %v15454_v6, %v15454_v6  ;;  %v15474_v29 = vcombine.high %v15457_v63, %v15457_v63  ;;  %v15477_v48 = vrot.slane %v733_v34, %v14396_v9  ;;  %v1471_v34 = vshrl.u32 %v15454_v6, 16 }
  0x91   : > { %21375 = vst [vmem:[#allocation151_spill] sm:$0xff] %v15465_v28  ;;  %v2155_v47 = vrot.slane %v2141_v41, %v14396_v9  ;;  %v15481_v1 = vrot.slane %v2826_v59, %v14396_v9  ;;  %v15485_v50 = vcombine.high %v15465_v28, %v15465_v28  ;;  %v756_v0 = vcombine.high %v12708_v62, %v12708_v62 }
  0x92   : > { %21376 = vst [vmem:[#allocation152_spill] sm:$0xff] %v15470_v11  ;;  %21377 = vst [vmem:[#allocation153_spill] sm:$0xff] %v15474_v29  ;;  %v15488_v31 = vrot.slane %v12708_v62, %v14396_v9  ;;  %v15492_v49 = vcombine.high %v15477_v48, %v15477_v48  ;;  %v1479_v10 = vshrl.u32 %v15457_v63, 16  ;;  %v15503_v62 = vsel %vm14429_vm1, %v1471_v34, %v1476_v42 }
  0x93   : > { %21378 = vst [vmem:[#allocation154_spill] sm:$0xff] %v15477_v48  ;;  %21379 = vst [vmem:[#allocation155_spill] sm:$0xff] %v15481_v1  ;;  %v2156_v41 = vcombine.low %v2148_v8, %v2155_v47  ;;  %v2841_v59 = vcombine.low %v2833_v37, %v15481_v1  ;;  %v15498_v54 = vrot.slane %v756_v0, %v14396_v9  ;;  %v1484_v5 = vshll.u32 %v15470_v11, 16 }
  0x94   : > { %21380 = vst [vmem:[#allocation156_spill] sm:$0xff] %v15485_v50  ;;  %21381 = vst [vmem:[#allocation157_spill] sm:$0xff] %v15488_v31  ;;  %v1487_v20 = vshrl.u32 %v15470_v11, 16  ;;  %v1492_v14 = vshll.u32 %v15474_v29, 16  ;;  %v1495_v37 = vshrl.u32 %v15474_v29, 16  ;;  %v1500_v8 = vshll.u32 %v15465_v28, 16 }
  0x95   : > { %21382 = vst [vmem:[#allocation158_spill] sm:$0xff] %v15492_v49  ;;  %21383 = vst [vmem:[#allocation159_spill] sm:$0xff] %v15503_v62  ;;  %13499 = vmatmul.mubr.msk.bf16.gmra.mrb[24].mxu0 %vm2417_vm2, %v2156_v41  ;;  %13545 = vmatmul.mubr.msk.bf16.gmra.mrb[24].mxu1 %vm2417_vm2, %v2841_v59  ;;  %v1503_v47 = vshrl.u32 %v15465_v28, 16  ;;  %v1508_v0 = vshll.u32 %v15477_v48, 16  ;;  %v15520_v42 = vsel %vm14429_vm1, %v1479_v10, %v1484_v5  ;;  %v1511_v41 = vshrl.u32 %v15477_v48, 16 }
  0x96   : > { %13502 = vmatprep.mubr.msk.bf16.mxu0 %vm14327_vm4, %v21251_v36  ;;  %13548 = vmatprep.mubr.msk.bf16.mxu1 %vm14327_vm4, %v21251_v36  ;;  %21384 = vst [vmem:[#allocation160_spill] sm:$0xff] %v15520_v42  ;;  %v15524_v34 = vsel %vm14429_vm1, %v1487_v20, %v1492_v14  ;;  %v1516_v59 = vshll.u32 %v15485_v50, 16  ;;  %v15530_v1 = vsel %vm14429_vm1, %v1495_v37, %v1500_v8  ;;  %v1519_v10 = vshrl.u32 %v15485_v50, 16 }
  0x97   : > { %21385 = vst [vmem:[#allocation161_spill] sm:$0xff] %v15524_v34  ;;  %21386 = vst [vmem:[#allocation162_spill] sm:$0xff] %v15530_v1  ;;  %v15534_v29 = vsel %vm14429_vm1, %v1503_v47, %v1508_v0  ;;  %v1524_v5 = vshll.u32 %v15492_v49, 16  ;;  %v1528_v20 = vshrl.u32 %v15488_v31, 16  ;;  %v1533_v11 = vshll.u32 %v15498_v54, 16 }
  0x98   : > { %21387 = vst [vmem:[#allocation163_spill] sm:$0xff] %v15534_v29  ;;  %v15540_v14 = vsel %vm14429_vm1, %v1511_v41, %v1516_v59  ;;  %v2157_v37 = vcombine.low %v15503_v62, %v15520_v42  ;;  %v2158_v47 = vcombine.low %v15524_v34, %v15530_v1  ;;  %v2842_v41 = vcombine.low %v15056_v46, %v15166_v2  ;;  %v12709_v1 = vld.sshfl [vmem:[%s14392_s28 + $0x4c] sm:$0x33 pattern:$0x75316420] }
  0x99   : > { %21388 = vst [vmem:[#allocation164_spill] sm:$0xff] %v15540_v14  ;;  %v15548_v8 = vsel %vm14429_vm1, %v1519_v10, %v1524_v5  ;;  %v2159_v0 = vcombine.low %v15534_v29, %v15540_v14  ;;  %v15558_v59 = vsel %vm14429_vm1, %v1528_v20, %v1533_v11  ;;  %v2843_v10 = vcombine.low %v15169_v43, %v15177_v57  ;;  %v12710_v20 = vld.sshfl [vmem:[%s14392_s28 + $0x50] sm:$0x33 pattern:$0x75316420] }
  0x9a   : > { %21389 = vst [vmem:[#allocation165_spill] sm:$0xff] %v15548_v8  ;;  %21390 = vst [vmem:[#allocation166_spill] sm:$0xff] %v15558_v59  ;;  %v15561_v49 = vrot.slane %v2157_v37, %v14396_v9  ;;  %v12833_v5 = vcombine.high %v15169_v43, %v15177_v57  ;;  %v2160_v14 = vcombine.low %v15548_v8, %v15558_v59 }
  0x9b   : > { %v15571_v29 = vrot.slane %v2158_v47, %v14396_v9  ;;  %v15574_v42 = vrot.slane %v2159_v0, %v14396_v9  ;;  %v2845_v11 = vcombine.low %v15195_v52, %v15198_v38  ;;  %v15580_v37 = vrot.slane %v2842_v41, %v14396_v9 }
  0x9c   : > { %21391 = vst [vmem:[#allocation167_spill] sm:$0xff] %v15561_v49  ;;  %v15583_v34 = vrot.slane %v2843_v10, %v14396_v9  ;;  %v15586_v62 = vrot.slane %v12833_v5, %v14396_v9  ;;  %v15590_v47 = vcombine.high %v15488_v31, %v15488_v31  ;;  %v15593_v0 = vrot.slane %v2160_v14, %v14396_v9 }
  0x9d   : > { %21392 = vst [vmem:[#allocation168_spill] sm:$0xff] %v15571_v29  ;;  %21393 = vst [vmem:[#allocation169_spill] sm:$0xff] %v15574_v42  ;;  %v2189_v59 = vcombine.low %v15561_v49, %v15571_v29  ;;  %v15598_v8 = vrot.slane %v2845_v11, %v14396_v9  ;;  %v15602_v41 = vcombine.high %v15498_v54, %v15498_v54 }
  0x9e   : > { %21394 = vst [vmem:[#allocation170_spill] sm:$0xff] %v15580_v37  ;;  %21395 = vst [vmem:[#allocation171_spill] sm:$0xff] %v15583_v34  ;;  %v2874_v10 = vcombine.low %v15580_v37, %v15583_v34  ;;  %v780_v5 = vcombine.high %v12709_v1, %v12709_v1  ;;  %v15607_v2 = vrot.slane %v12709_v1, %v14396_v9 }
  0x9f   : > { %21396 = vst [vmem:[#allocation172_spill] sm:$0xff] %v15586_v62  ;;  %21397 = vst [vmem:[#allocation173_spill] sm:$0xff] %v15593_v0  ;;  %v803_v43 = vcombine.high %v12710_v20, %v12710_v20  ;;  %v2190_v14 = vcombine.low %v15574_v42, %v15593_v0  ;;  %v2197_v29 = vrot.slane %v2189_v59, %v14396_v9  ;;  %v1541_v42 = vshll.u32 %v15590_v47, 16 }
  0xa0   : > { %21398 = vst [vmem:[#allocation174_spill] sm:$0xff] %v15598_v8  ;;  %v2875_v11 = vcombine.low %v15586_v62, %v15598_v8  ;;  %v15615_v49 = vrot.slane %v12710_v20, %v14396_v9  ;;  %v2882_v38 = vrot.slane %v2874_v10, %v14396_v9  ;;  %v15619_v34 = vrot.slane %v780_v5, %v14396_v9 }
  0xa1   : > { %v15623_v1 = vcombine.high %v15607_v2, %v15607_v2  ;;  %v15626_v37 = vrot.slane %v803_v43, %v14396_v9  ;;  %v2204_v59 = vrot.slane %v2190_v14, %v14396_v9  ;;  %v1536_v10 = vshrl.u32 %v15498_v54, 16 }
  0xa2   : > { %v15630_v0 = vrot.slane %v2875_v11, %v14396_v9  ;;  %v15634_v20 = vcombine.high %v15615_v49, %v15615_v49  ;;  %v15639_v5 = vcombine.high %v15619_v34, %v15619_v34  ;;  %v1544_v43 = vshrl.u32 %v15590_v47, 16 }
  0xa3   : > { %v1549_v8 = vshll.u32 %v15602_v41, 16  ;;  %v2205_v14 = vcombine.low %v2197_v29, %v2204_v59  ;;  %v1552_v62 = vshrl.u32 %v15602_v41, 16  ;;  %v1557_v52 = vshll.u32 %v15607_v2, 16 }
  0xa4   : > { %21399 = vst [vmem:[#allocation175_spill] sm:$0xff] %v15630_v0  ;;  %21400 = vst [vmem:[#allocation176_spill] sm:$0xff] %v15634_v20  ;;  %v2890_v11 = vcombine.low %v2882_v38, %v15630_v0  ;;  %v15649_v57 = vsel %vm14429_vm1, %v1536_v10, %v1541_v42  ;;  %v1560_v18 = vshrl.u32 %v15607_v2, 16  ;;  %v1565_v61 = vshll.u32 %v15619_v34, 16 }
  0xa5   : > { %21401 = vst [vmem:[#allocation177_spill] sm:$0xff] %v15639_v5  ;;  %21402 = vst [vmem:[#allocation178_spill] sm:$0xff] %v15649_v57  ;;  %v15653_v46 = vsel %vm14429_vm1, %v1544_v43, %v1549_v8  ;;  %13503 = vmatmul.mubr.msk.bf16.gmra.mrb[28].mxu0 %vm2417_vm2, %v2205_v14  ;;  %v15661_v38 = vsel %vm14429_vm1, %v1552_v62, %v1557_v52  ;;  %v1568_v29 = vshrl.u32 %v15619_v34, 16  ;;  %v1573_v42 = vshll.u32 %v15623_v1, 16 }
  0xa6   : > { %21403 = vst [vmem:[#allocation179_spill] sm:$0xff] %v15653_v46  ;;  %13549 = vmatmul.mubr.msk.bf16.gmra.mrb[28].mxu1 %vm2417_vm2, %v2890_v11  ;;  %21404 = vst [vmem:[#allocation180_spill] sm:$0xff] %v15661_v38  ;;  %v1576_v59 = vshrl.u32 %v15623_v1, 16  ;;  %13506 = vmatprep.mubr.msk.bf16.mxu0 %vm14327_vm4, %v21251_v36  ;;  %v15672_v8 = vsel %vm14429_vm1, %v1560_v18, %v1565_v61  ;;  %v1581_v52 = vshll.u32 %v15639_v5, 16  ;;  %v1585_v62 = vshrl.u32 %v15615_v49, 16 }
  0xa7   : > { %13552 = vmatprep.mubr.msk.bf16.mxu1 %vm14327_vm4, %v21251_v36  ;;  %21405 = vst [vmem:[#allocation181_spill] sm:$0xff] %v15672_v8  ;;  %v1590_v10 = vshll.u32 %v15626_v37, 16  ;;  %v15679_v43 = vsel %vm14429_vm1, %v1568_v29, %v1573_v42  ;;  %v1593_v14 = vshrl.u32 %v15626_v37, 16  ;;  %v1598_v11 = vshll.u32 %v15634_v20, 16 }
  0xa8   : > { %21406 = vst [vmem:[#allocation182_spill] sm:$0xff] %v15679_v43  ;;  %v2206_v61 = vcombine.low %v15649_v57, %v15653_v46  ;;  %v15687_v18 = vsel %vm14429_vm1, %v1576_v59, %v1581_v52  ;;  %v2207_v29 = vcombine.low %v15661_v38, %v15672_v8  ;;  %v2891_v42 = vcombine.low %v15209_v25, %v15308_v51 }
  0xa9   : > { %21407 = vst [vmem:[#allocation183_spill] sm:$0xff] %v15687_v18  ;;  %v15691_v5 = vsel %vm14429_vm1, %v1585_v62, %v1590_v10  ;;  %v15699_v0 = vsel %vm14429_vm1, %v1593_v14, %v1598_v11  ;;  %v2208_v46 = vcombine.low %v15679_v43, %v15687_v18  ;;  %v2892_v52 = vcombine.low %v15313_v35, %v15325_v39  ;;  %v12711_v62 = vld.sshfl [vmem:[%s14392_s28 + $0x54] sm:$0x33 pattern:$0x75316420] }
  0xaa   : > { %21408 = vst [vmem:[#allocation184_spill] sm:$0xff] %v15691_v5  ;;  %21409 = vst [vmem:[#allocation185_spill] sm:$0xff] %v15699_v0  ;;  %v15704_v59 = vrot.slane %v2206_v61, %v14396_v9  ;;  %v2209_v10 = vcombine.low %v15691_v5, %v15699_v0  ;;  %v15712_v8 = vrot.slane %v2207_v29, %v14396_v9  ;;  %v12712_v18 = vld.sshfl [vmem:[%s14392_s28 + $0x58] sm:$0x33 pattern:$0x75316420] }
  0xab   : > { %v2893_v14 = vcombine.low %v15332_v56, %v15316_v55  ;;  %v2894_v11 = vcombine.low %v15335_v53, %v15339_v58  ;;  %v15720_v61 = vrot.slane %v2208_v46, %v14396_v9  ;;  %v15723_v43 = vrot.slane %v2891_v42, %v14396_v9 }
  0xac   : > { %21410 = vst [vmem:[#allocation186_spill] sm:$0xff] %v15704_v59  ;;  %21411 = vst [vmem:[#allocation187_spill] sm:$0xff] %v15712_v8  ;;  %v15726_v39 = vrot.slane %v2892_v52, %v14396_v9  ;;  %v15730_v29 = vcombine.high %v15626_v37, %v15626_v37  ;;  %v15733_v0 = vrot.slane %v2209_v10, %v14396_v9 }
  0xad   : > { %21412 = vst [vmem:[#allocation188_spill] sm:$0xff] %v15720_v61  ;;  %21413 = vst [vmem:[#allocation189_spill] sm:$0xff] %v15723_v43  ;;  %v2238_v56 = vcombine.low %v15704_v59, %v15712_v8  ;;  %v15738_v5 = vrot.slane %v2893_v14, %v14396_v9  ;;  %v15741_v46 = vrot.slane %v2894_v11, %v14396_v9 }
  0xae   : > { %21414 = vst [vmem:[#allocation190_spill] sm:$0xff] %v15726_v39  ;;  %21415 = vst [vmem:[#allocation191_spill] sm:$0xff] %v15730_v29  ;;  %v2923_v42 = vcombine.low %v15723_v43, %v15726_v39  ;;  %v827_v52 = vcombine.high %v12711_v62, %v12711_v62  ;;  %v15746_v38 = vrot.slane %v12711_v62, %v14396_v9 }
  0xaf   : > { %21416 = vst [vmem:[#allocation192_spill] sm:$0xff] %v15733_v0  ;;  %21417 = vst [vmem:[#allocation193_spill] sm:$0xff] %v15738_v5  ;;  %v850_v57 = vcombine.high %v12712_v18, %v12712_v18  ;;  %v2239_v10 = vcombine.low %v15720_v61, %v15733_v0  ;;  %v2246_v58 = vrot.slane %v2238_v56, %v14396_v9 }
  0xb0   : > { %21418 = vst [vmem:[#allocation194_spill] sm:$0xff] %v15741_v46  ;;  %21419 = vst [vmem:[#allocation195_spill] sm:$0xff] %v15746_v38  ;;  %v2924_v14 = vcombine.low %v15738_v5, %v15741_v46  ;;  %v15754_v8 = vrot.slane %v12712_v18, %v14396_v9  ;;  %v2931_v11 = vrot.slane %v2923_v42, %v14396_v9  ;;  %v1601_v42 = vshrl.u32 %v15634_v20, 16 }
  0xb1   : > { %v15758_v59 = vrot.slane %v827_v52, %v14396_v9  ;;  %v15762_v62 = vcombine.high %v15746_v38, %v15746_v38  ;;  %v15765_v43 = vrot.slane %v850_v57, %v14396_v9  ;;  %v2253_v56 = vrot.slane %v2239_v10, %v14396_v9 }
  0xb2   : > { %v15769_v0 = vrot.slane %v2924_v14, %v14396_v9  ;;  %v15773_v18 = vcombine.high %v15754_v8, %v15754_v8  ;;  %v1606_v57 = vshll.u32 %v15730_v29, 16  ;;  %v1609_v10 = vshrl.u32 %v15730_v29, 16 }
  0xb3   : > { %v15778_v52 = vcombine.high %v15765_v43, %v15765_v43  ;;  %v15782_v61 = vcombine.high %v15758_v59, %v15758_v59  ;;  %v2254_v14 = vcombine.low %v2246_v58, %v2253_v56  ;;  %v1614_v5 = vshll.u32 %v15746_v38, 16 }
  0xb4   : > { %21420 = vst [vmem:[#allocation196_spill] sm:$0xff] %v15769_v0  ;;  %v2939_v46 = vcombine.low %v2931_v11, %v15769_v0  ;;  %v1617_v39 = vshrl.u32 %v15746_v38, 16  ;;  %v15791_v20 = vsel %vm14429_vm1, %v1601_v42, %v1606_v57  ;;  %v1622_v55 = vshll.u32 %v15758_v59, 16 }
  0xb5   : > { %21421 = vst [vmem:[#allocation197_spill] sm:$0xff] %v15782_v61  ;;  %21422 = vst [vmem:[#allocation198_spill] sm:$0xff] %v15791_v20  ;;  %v1625_v53 = vshrl.u32 %v15758_v59, 16  ;;  %v1630_v51 = vshll.u32 %v15762_v62, 16  ;;  %13507 = vmatmul.mubr.msk.bf16.gmra.mrb[32].mxu0 %vm2417_vm2, %v2254_v14  ;;  %v15800_v58 = vsel %vm14429_vm1, %v1609_v10, %v1614_v5  ;;  %v1633_v11 = vshrl.u32 %v15762_v62, 16 }
  0xb6   : > { %13553 = vmatmul.mubr.msk.bf16.gmra.mrb[32].mxu1 %vm2417_vm2, %v2939_v46  ;;  %21423 = vst [vmem:[#allocation199_spill] sm:$0xff] %v15800_v58  ;;  %v1638_v56 = vshll.u32 %v15782_v61, 16  ;;  %v1642_v42 = vshrl.u32 %v15754_v8, 16  ;;  %13510 = vmatprep.mubr.msk.bf16.mxu0 %vm14327_vm4, %v21251_v36  ;;  %v15811_v57 = vsel %vm14429_vm1, %v1617_v39, %v1622_v55  ;;  %v1647_v46 = vshll.u32 %v15765_v43, 16 }
  0xb7   : > { %13556 = vmatprep.mubr.msk.bf16.mxu1 %vm14327_vm4, %v21251_v36  ;;  %21424 = vst [vmem:[#allocation200_spill] sm:$0xff] %v15811_v57  ;;  %v15815_v5 = vsel %vm14429_vm1, %v1625_v53, %v1630_v51  ;;  %v1650_v10 = vshrl.u32 %v15765_v43, 16  ;;  %v1655_v0 = vshll.u32 %v15773_v18, 16  ;;  %v1658_v61 = vshrl.u32 %v15773_v18, 16 }
  0xb8   : > { %21425 = vst [vmem:[#allocation201_spill] sm:$0xff] %v15815_v5  ;;  %v15821_v14 = vsel %vm14429_vm1, %v1633_v11, %v1638_v56  ;;  %v1663_v55 = vshll.u32 %v15778_v52, 16  ;;  %v15828_v39 = vsel %vm14429_vm1, %v1642_v42, %v1647_v46  ;;  %v2255_v51 = vcombine.low %v15791_v20, %v15800_v58  ;;  %v12713_v58 = vld.sshfl [vmem:[%s14392_s28 + $0x5c] sm:$0x33 pattern:$0x75316420] }
  0xb9   : > { %21426 = vst [vmem:[#allocation202_spill] sm:$0xff] %v15821_v14  ;;  %21427 = vst [vmem:[#allocation203_spill] sm:$0xff] %v15828_v39  ;;  %v2256_v53 = vcombine.low %v15811_v57, %v15815_v5  ;;  %v2940_v11 = vcombine.low %v15454_v6, %v15457_v63  ;;  %v15838_v56 = vsel %vm14429_vm1, %v1650_v10, %v1655_v0  ;;  %v12714_v10 = vld.sshfl [vmem:[%s14392_s28 + $0x60] sm:$0x33 pattern:$0x75316420] }
  0xba   : > { %21428 = vst [vmem:[#allocation204_spill] sm:$0xff] %v15838_v56  ;;  %v15842_v29 = vsel %vm14429_vm1, %v1658_v61, %v1663_v55  ;;  %v2257_v42 = vcombine.low %v15821_v14, %v15828_v39  ;;  %v12834_v46 = vcombine.high %v15454_v6, %v15457_v63  ;;  %v15852_v57 = vrot.slane %v2255_v51, %v14396_v9 }
  0xbb   : > { %21429 = vst [vmem:[#allocation205_spill] sm:$0xff] %v15842_v29  ;;  %v2258_v5 = vcombine.low %v15838_v56, %v15842_v29  ;;  %v15855_v0 = vrot.slane %v2256_v53, %v14396_v9  ;;  %v2942_v61 = vcombine.low %v15465_v28, %v15477_v48  ;;  %v2943_v39 = vcombine.low %v15485_v50, %v15488_v31 }
  0xbc   : > { %21430 = vst [vmem:[#allocation206_spill] sm:$0xff] %v15852_v57  ;;  %v15861_v55 = vrot.slane %v2257_v42, %v14396_v9  ;;  %v15866_v14 = vrot.slane %v2940_v11, %v14396_v9  ;;  %v15869_v29 = vrot.slane %v12834_v46, %v14396_v9  ;;  %v874_v42 = vcombine.high %v12713_v58, %v12713_v58 }
  0xbd   : > { %21431 = vst [vmem:[#allocation207_spill] sm:$0xff] %v15855_v0  ;;  %v15872_v51 = vrot.slane %v2258_v5, %v14396_v9  ;;  %v2287_v53 = vcombine.low %v15852_v57, %v15855_v0  ;;  %v15877_v56 = vrot.slane %v2942_v61, %v14396_v9  ;;  %v15880_v20 = vrot.slane %v2943_v39, %v14396_v9 }
  0xbe   : > { %21432 = vst [vmem:[#allocation208_spill] sm:$0xff] %v15861_v55  ;;  %21433 = vst [vmem:[#allocation209_spill] sm:$0xff] %v15866_v14  ;;  %v2972_v11 = vcombine.low %v15866_v14, %v15869_v29  ;;  %v15885_v6 = vrot.slane %v12713_v58, %v14396_v9  ;;  %v897_v46 = vcombine.high %v12714_v10, %v12714_v10 }
  0xbf   : > { %21434 = vst [vmem:[#allocation210_spill] sm:$0xff] %v15869_v29  ;;  %21435 = vst [vmem:[#allocation211_spill] sm:$0xff] %v15872_v51  ;;  %v2288_v5 = vcombine.low %v15861_v55, %v15872_v51  ;;  %v2295_v31 = vrot.slane %v2287_v53, %v14396_v9  ;;  %v15891_v0 = vrot.slane %v874_v42, %v14396_v9  ;;  %v1666_v51 = vshrl.u32 %v15778_v52, 16 }
  0xc0   : > { %21436 = vst [vmem:[#allocation212_spill] sm:$0xff] %v15877_v56  ;;  %21437 = vst [vmem:[#allocation213_spill] sm:$0xff] %v15880_v20  ;;  %v15894_v61 = vrot.slane %v12714_v10, %v14396_v9  ;;  %v2973_v39 = vcombine.low %v15877_v56, %v15880_v20  ;;  %v2980_v57 = vrot.slane %v2972_v11, %v14396_v9 }
  0xc1   : > { %v15901_v58 = vcombine.high %v15885_v6, %v15885_v6  ;;  %v15904_v14 = vrot.slane %v897_v46, %v14396_v9  ;;  %v2302_v53 = vrot.slane %v2288_v5, %v14396_v9  ;;  %v15913_v10 = vcombine.high %v15891_v0, %v15891_v0 }
  0xc2   : > { %21438 = vst [vmem:[#allocation214_spill] sm:$0xff] %v15894_v61  ;;  %v15909_v42 = vcombine.high %v15894_v61, %v15894_v61  ;;  %v2987_v11 = vrot.slane %v2973_v39, %v14396_v9  ;;  %v1671_v46 = vshll.u32 %v15885_v6, 16  ;;  %v1674_v5 = vshrl.u32 %v15885_v6, 16 }
  0xc3   : > { %21439 = vst [vmem:[#allocation215_spill] sm:$0xff] %v15901_v58  ;;  %21440 = vst [vmem:[#allocation216_spill] sm:$0xff] %v15913_v10  ;;  %v15919_v55 = vcombine.high %v15904_v14, %v15904_v14  ;;  %v2303_v20 = vcombine.low %v2295_v31, %v2302_v53  ;;  %v1679_v56 = vshll.u32 %v15891_v0, 16  ;;  %v1682_v29 = vshrl.u32 %v15891_v0, 16 }
  0xc4   : > { %v1687_v48 = vshll.u32 %v15901_v58, 16  ;;  %v2988_v50 = vcombine.low %v2980_v57, %v2987_v11  ;;  %v15928_v28 = vsel %vm14429_vm1, %v1666_v51, %v1671_v46  ;;  %v1690_v39 = vshrl.u32 %v15901_v58, 16 }
  0xc5   : > { %21441 = vst [vmem:[#allocation217_spill] sm:$0xff] %v15919_v55  ;;  %21442 = vst [vmem:[#allocation218_spill] sm:$0xff] %v15928_v28  ;;  %v1695_v63 = vshll.u32 %v15913_v10, 16  ;;  %13511 = vmatmul.mubr.msk.bf16.gmra.mrb[36].mxu0 %vm2417_vm2, %v2303_v20  ;;  %v15935_v31 = vsel %vm14429_vm1, %v1674_v5, %v1679_v56  ;;  %v1699_v57 = vshrl.u32 %v15894_v61, 16  ;;  %v1704_v11 = vshll.u32 %v15904_v14, 16 }
  0xc6   : > { %21443 = vst [vmem:[#allocation219_spill] sm:$0xff] %v15935_v31  ;;  %v15939_v53 = vsel %vm14429_vm1, %v1682_v29, %v1687_v48  ;;  %13557 = vmatmul.mubr.msk.bf16.gmra.mrb[36].mxu1 %vm2417_vm2, %v2988_v50  ;;  %13514 = vmatprep.mubr.msk.bf16.mxu0 %vm14327_vm4, %v21251_v36  ;;  %v1707_v56 = vshrl.u32 %v15904_v14, 16  ;;  %v1712_v51 = vshll.u32 %v15909_v42, 16  ;;  %v1715_v48 = vshrl.u32 %v15909_v42, 16 }
  0xc7   : > { %21444 = vst [vmem:[#allocation220_spill] sm:$0xff] %v15939_v53  ;;  %v15948_v20 = vsel %vm14429_vm1, %v1690_v39, %v1695_v63  ;;  %13560 = vmatprep.mubr.msk.bf16.mxu1 %vm14327_vm4, %v21251_v36  ;;  %v15957_v29 = vsel %vm14429_vm1, %v1699_v57, %v1704_v11  ;;  %v1720_v50 = vshll.u32 %v15919_v55, 16  ;;  %v1723_v46 = vshrl.u32 %v15919_v55, 16 }
  0xc8   : > { %21445 = vst [vmem:[#allocation221_spill] sm:$0xff] %v15948_v20  ;;  %21446 = vst [vmem:[#allocation222_spill] sm:$0xff] %v15957_v29  ;;  %v1728_v63 = vshll.u32 %v14485_v60, 16  ;;  %v15964_v5 = vsel %vm14429_vm1, %v1707_v56, %v1712_v51  ;;  %v2304_v39 = vcombine.low %v15928_v28, %v15935_v31  ;;  %v2305_v10 = vcombine.low %v15939_v53, %v15948_v20  ;;  %v12880_v20 = vld [vmem:[%s20745_s1 + $0x6] sm:$0x3]  ;;  %v21495_v31 = vld [vmem:[#allocation77_spill] sm:$0xff] }
  0xc9   : > { %21447 = vst [vmem:[#allocation223_spill] sm:$0xff] %v15964_v5  ;;  %v2989_v57 = vcombine.low %v15498_v54, %v15590_v47  ;;  %v15974_v11 = vsel %vm14429_vm1, %v1715_v48, %v1720_v50  ;;  %v2306_v56 = vcombine.low %v15957_v29, %v15964_v5  ;;  %v2990_v51 = vcombine.low %v15602_v41, %v15607_v2  ;;  %v21496_v53 = vld [vmem:[#allocation80_spill] sm:$0xff]  ;;  %v21497_v28 = vld [vmem:[#allocation83_spill] sm:$0xff] }
  0xca   : > { %21448 = vst [vmem:[#allocation224_spill] sm:$0xff] %v15974_v11  ;;  %v15978_v55 = vsel %vm14429_vm1, %v1723_v46, %v1728_v63  ;;  %v15990_v48 = vrot.slane %v2304_v39, %v14396_v9  ;;  %v15993_v50 = vrot.slane %v2305_v10, %v14396_v9  ;;  %v2991_v46 = vcombine.low %v15619_v34, %v15623_v1 }
  0xcb   : > { %21449 = vst [vmem:[#allocation225_spill] sm:$0xff] %v15978_v55  ;;  %v2307_v47 = vcombine.low %v15974_v11, %v15978_v55  ;;  %v15998_v63 = vrot.slane %v2306_v56, %v14396_v9  ;;  %v2992_v41 = vcombine.low %v15615_v49, %v15626_v37  ;;  %v16003_v5 = vrot.slane %v2989_v57, %v14396_v9 }
  0xcc   : > { %21450 = vst [vmem:[#allocation226_spill] sm:$0xff] %v15990_v48  ;;  %21451 = vst [vmem:[#allocation227_spill] sm:$0xff] %v15993_v50  ;;  %v16006_v55 = vrot.slane %v2990_v51, %v14396_v9  ;;  %v2336_v10 = vcombine.low %v15990_v48, %v15993_v50  ;;  %v16014_v11 = vrot.slane %v2991_v46, %v14396_v9  ;;  %v4624_v56 = vsel %vm2457_vm0, %v12880_v20, 0 }
  0xcd   : > { %21452 = vst [vmem:[#allocation228_spill] sm:$0xff] %v15998_v63  ;;  %21453 = vst [vmem:[#allocation229_spill] sm:$0xff] %v16003_v5  ;;  %v16009_v39 = vrot.slane %v2307_v47, %v14396_v9  ;;  %v16018_v29 = vrot.slane %v2992_v41, %v14396_v9  ;;  %13635 = vmatpush3.bf16.msra.mxu1 %v4624_v56  ;;  %v12835_v51 = vcombine.high %v15615_v49, %v15626_v37 }
  0xce   : > { %21454 = vst [vmem:[#allocation230_spill] sm:$0xff] %v16006_v55  ;;  %21456 = vst [vmem:[#allocation232_spill] sm:$0xff] %v16014_v11  ;;  %v3021_v57 = vcombine.low %v16003_v5, %v16006_v55  ;;  %v3039_v47 = vcombine.low %v15746_v38, %v15758_v59  ;;  %v2344_v46 = vrot.slane %v2336_v10, %v14396_v9  ;;  %13742 = vmatprep.subr.bf16.mxu1 %v21251_v36 }
  0xcf   : > { %21455 = vst [vmem:[#allocation231_spill] sm:$0xff] %v16009_v39  ;;  %21457 = vst [vmem:[#allocation233_spill] sm:$0xff] %v16018_v29  ;;  %v2337_v50 = vcombine.low %v15998_v63, %v16009_v39  ;;  %v3040_v20 = vcombine.low %v15762_v62, %v15754_v8  ;;  %v3041_v41 = vcombine.low %v15765_v43, %v15773_v18 }
  0xd0   : > { %v3022_v56 = vcombine.low %v16014_v11, %v16018_v29  ;;  %v16037_v48 = vrot.slane %v3021_v57, %v14396_v9  ;;  %v16040_v55 = vrot.slane %v12835_v51, %v14396_v9  ;;  %v16043_v39 = vrot.slane %v3039_v47, %v14396_v9 }
  0xd1   : > { %v2351_v10 = vrot.slane %v2337_v50, %v14396_v9  ;;  %v16047_v63 = vrot.slane %v3040_v20, %v14396_v9  ;;  %v16050_v18 = vrot.slane %v3041_v41, %v14396_v9  ;;  %v3380_v29 = vcombine.low %v14410_v17, %v14420_v21 }
  0xd2   : > { %21458 = vst [vmem:[#allocation234_spill] sm:$0xff] %v16037_v48  ;;  %21459 = vst [vmem:[#allocation235_spill] sm:$0xff] %v16040_v55  ;;  %v3036_v57 = vrot.slane %v3022_v56, %v14396_v9  ;;  %v3070_v51 = vcombine.low %v16040_v55, %v16043_v39  ;;  %v3381_v47 = vcombine.low %v14436_v26, %v14407_v16 }
  0xd3   : > { %21460 = vst [vmem:[#allocation236_spill] sm:$0xff] %v16043_v39  ;;  %21461 = vst [vmem:[#allocation237_spill] sm:$0xff] %v16047_v63  ;;  %v3382_v50 = vcombine.low %v14423_v22, %v14427_v23  ;;  %v2352_v5 = vcombine.low %v2344_v46, %v2351_v10  ;;  %v3071_v20 = vcombine.low %v16047_v63, %v16050_v18 }
  0xd4   : > { %21462 = vst [vmem:[#allocation238_spill] sm:$0xff] %v16050_v18  ;;  %v3390_v41 = vrot.slane %v3380_v29, %v14396_v9  ;;  %v21463_v17 = vcombine.low %v14445_v30, %v14439_v27  ;;  %v3037_v56 = vcombine.low %v16037_v48, %v3036_v57  ;;  %v3397_v39 = vrot.slane %v3381_v47, %v14396_v9  ;;  %v12901_v47 = vld [vmem:[%s20745_s1 + $0x8] sm:$0x3]  ;;  %v21491_v18 = vld [vmem:[#allocation6_spill] sm:$0xff] }
  0xd5   : > { %v3404_v16 = vrot.slane %v3382_v50, %v14396_v9  ;;  %13515 = vmatmul.mubr.msk.bf16.gmra.mrb[40].mxu0 %vm2417_vm2, %v2352_v5  ;;  %v16073_v22 = vrot.slane %v3070_v51, %v14396_v9  ;;  %v3085_v23 = vrot.slane %v3071_v20, %v14396_v9  ;;  %v3087_v26 = vcombine.low %v15778_v52, %v15885_v6 }
  0xd6   : > { %v3411_v21 = vrot.slane %v21463_v17, %v14396_v9  ;;  %v3088_v30 = vcombine.low %v15891_v0, %v15901_v58  ;;  %13561 = vmatmul.mubr.msk.bf16.gmra.mrb[40].mxu1 %vm2417_vm2, %v3037_v56  ;;  %13582 = vmatprep.mubr.msk.bf16.mxu0 %vm14327_vm4, %v21251_v36  ;;  %v3412_v29 = vcombine.low %v3390_v41, %v3397_v39  ;;  %v21509_v58 = vld [vmem:[#allocation108_spill] sm:$0xff] }
  0xd7   : > { %21464 = vst [vmem:[#allocation239_spill] sm:$0xff] %v16073_v22  ;;  %v3089_v5 = vcombine.low %v15894_v61, %v15904_v14  ;;  %13564 = vmatprep.mubr.msk.bf16.mxu1 %vm14327_vm4, %v21251_v36  ;;  %v12836_v10 = vcombine.high %v15894_v61, %v15904_v14  ;;  %v16090_v52 = vrot.slane %v3087_v26, %v14396_v9 }
  0xd8   : > { %v3413_v46 = vcombine.low %v3404_v16, %v3411_v21  ;;  %v16093_v57 = vrot.slane %v3088_v30, %v14396_v9  ;;  %v3420_v51 = vrot.slane %v3412_v29, %v14396_v9  ;;  %v12851_v20 = vcombine.high %v14413_v19, %v14439_v27 }
  0xd9   : > { %21465 = vst [vmem:[#allocation240_spill] sm:$0xff] %v16090_v52  ;;  %v16101_v50 = vrot.slane %v3089_v5, %v14396_v9  ;;  %v3086_v41 = vcombine.low %v16073_v22, %v3085_v23  ;;  %v16107_v17 = vrot.slane %v12836_v10, %v14396_v9  ;;  %v3430_v21 = vcombine.low %v14610_v32, %v14622_v40  ;;  %v21490_v22 = vld [vmem:[#allocation29_spill] sm:$0xff] }
  0xda   : > { %21466 = vst [vmem:[#allocation241_spill] sm:$0xff] %v16093_v57  ;;  %v3427_v39 = vrot.slane %v3413_v46, %v14396_v9  ;;  %v12852_v56 = vcombine.high %v14610_v32, %v14622_v40  ;;  %v3119_v26 = vcombine.low %v16090_v52, %v16093_v57  ;;  %v3432_v30 = vcombine.low %v14630_v44, %v14634_v45  ;;  %v21479_v52 = vld [vmem:[#allocation40_spill] sm:$0xff] }
  0xdb   : > { %21467 = vst [vmem:[#allocation242_spill] sm:$0xff] %v16101_v50  ;;  %21468 = vst [vmem:[#allocation243_spill] sm:$0xff] %v16107_v17  ;;  %v16118_v29 = vrot.slane %v12851_v20, %v14396_v9  ;;  %v5490_v23 = vsel %vm2457_vm0, %v12901_v47, 0  ;;  %v3120_v46 = vcombine.low %v16101_v50, %v16107_v17  ;;  %v16124_v5 = vrot.slane %v3430_v21, %v14396_v9  ;;  %v21478_v50 = vld [vmem:[#allocation41_spill] sm:$0xff] }
  0xdc   : > { %v3428_v16 = vcombine.low %v3420_v51, %v3427_v39  ;;  %v3453_v32 = vrot.slane %v12852_v56, %v14396_v9  ;;  %v16128_v40 = vrot.slane %v3432_v30, %v14396_v9  ;;  %v3136_v10 = vcombine.low %v14485_v60, %v14495_v3 }
  0xdd   : > { %v3461_v44 = vcombine.low %v16118_v29, %v16124_v5  ;;  %v3137_v45 = vcombine.low %v14499_v4, %v14502_v7  ;;  %v3138_v51 = vcombine.low %v14509_v13, %v14513_v15  ;;  %v16141_v39 = vrot.slane %v3119_v26, %v14396_v9 }
  0xde   : > { %13583 = vmatmul.mubr.msk.bf16.vlgmr.msra.gmra.mrb[44].mxu0 %vm2417_vm2, %v3428_v16  ;;  %13565 = vmatmul.mubr.msk.bf16.gmra.mrb[44].mxu1 %vm2417_vm2, %v3086_v41  ;;  %v3134_v47 = vrot.slane %v3120_v46, %v14396_v9  ;;  %v3462_v20 = vcombine.low %v3453_v32, %v16128_v40  ;;  %v3139_v15 = vcombine.low %v14527_v33, %v14506_v12  ;;  %v21475_v46 = vld [vmem:[#allocation34_spill] sm:$0xff] }
  0xdf   : > { %13689 = vmatpush3.bf16.msra.mxu0 %v5490_v23  ;;  %21469 = vst [vmem:[#allocation244_spill] sm:$0xff] %v16141_v39  ;;  %13568 = vmatprep.mubr.msk.bf16.mxu1 %vm14327_vm4, %v21251_v36  ;;  %v3469_v21 = vrot.slane %v3461_v44, %v14396_v9  ;;  %v16154_v56 = vrot.slane %v3136_v10, %v14396_v9  ;;  %v21474_v23 = vld [vmem:[#allocation35_spill] sm:$0xff]  ;;  %v21477_v10 = vld [vmem:[#allocation36_spill] sm:$0xff] }
  0xe0   : > { %13586 = vmatprep.mubr.msk.bf16.mxu0 %vm14327_vm4, %v21251_v36  ;;  %v3476_v41 = vrot.slane %v3462_v20, %v14396_v9  ;;  %13796 = vmatprep.subr.bf16.mxu0 %v21251_v36  ;;  %v16158_v16 = vrot.slane %v3137_v45, %v14396_v9  ;;  %v16161_v26 = vrot.slane %v3138_v51, %v14396_v9  ;;  %v21476_v20 = vld [vmem:[#allocation39_spill] sm:$0xff] }
  0xe1   : > { %21470 = vst [vmem:[#allocation245_spill] sm:$0xff] %v16154_v56  ;;  %v16164_v30 = vrot.slane %v3139_v15, %v14396_v9  ;;  %v3478_v32 = vcombine.low %v21475_v46, %v21474_v23  ;;  %v3135_v33 = vcombine.low %v16141_v39, %v3134_v47  ;;  %v3479_v57 = vcombine.low %v21477_v10, %v21476_v20  ;;  %v21480_v15 = vld [vmem:[#allocation37_spill] sm:$0xff]  ;;  %v21482_v20 = vld [vmem:[#allocation54_spill] sm:$0xff]  ;;  %v21499_v23 = vld [vmem:[#allocation84_spill] sm:$0xff] }
  0xe2   : > { %21471 = vst [vmem:[#allocation246_spill] sm:$0xff] %v16158_v16  ;;  %21472 = vst [vmem:[#allocation247_spill] sm:$0xff] %v16161_v26  ;;  %v3477_v44 = vcombine.low %v3469_v21, %v3476_v41  ;;  %v3480_v63 = vcombine.low %v21479_v52, %v21478_v50  ;;  %v3168_v45 = vcombine.low %v16154_v56, %v16158_v16  ;;  %v21481_v41 = vld [vmem:[#allocation55_spill] sm:$0xff]  ;;  %v21500_v10 = vld [vmem:[#allocation81_spill] sm:$0xff] }
  0xe3   : > { %21473 = vst [vmem:[#allocation248_spill] sm:$0xff] %v16164_v30  ;;  %v3169_v51 = vcombine.low %v16161_v26, %v16164_v30  ;;  %v12853_v55 = vcombine.high %v21480_v15, %v21478_v50  ;;  %v3488_v46 = vrot.slane %v3478_v32, %v14396_v9  ;;  %v16181_v47 = vrot.slane %v3479_v57, %v14396_v9  ;;  %v21487_v26 = vld [vmem:[#allocation20_spill] sm:$0xff] }
  0xe4   : > { %v3502_v21 = vrot.slane %v3480_v63, %v14396_v9  ;;  %v3527_v39 = vcombine.low %v21482_v20, %v21481_v41  ;;  %v4237_v52 = vcombine.low %v14413_v19, %v14439_v27  ;;  %v3176_v30 = vrot.slane %v3168_v45, %v14396_v9  ;;  %v21485_v19 = vld [vmem:[#allocation60_spill] sm:$0xff]  ;;  %v21486_v45 = vld [vmem:[#allocation18_spill] sm:$0xff] }
  0xe5   : > { %v16191_v16 = vrot.slane %v12853_v55, %v14396_v9  ;;  %v12854_v32 = vcombine.high %v21482_v20, %v21481_v41  ;;  %v16199_v63 = vrot.slane %v3169_v51, %v14396_v9  ;;  %v3510_v57 = vcombine.low %v3488_v46, %v16181_v47  ;;  %v21489_v20 = vld [vmem:[#allocation62_spill] sm:$0xff] }
  0xe6   : > { %13587 = vmatmul.mubr.msk.bf16.gmra.mrb[48].mxu0 %vm2417_vm2, %v3477_v44  ;;  %13569 = vmatmul.mubr.msk.bf16.gmra.mrb[48].mxu1 %vm2417_vm2, %v3135_v33  ;;  %v21484_v44 = vld [vmem:[#allocation61_spill] sm:$0xff]  ;;  %v4238_v55 = vcombine.low %v21487_v26, %v21486_v45  ;;  %v21488_v33 = vld [vmem:[#allocation58_spill] sm:$0xff]  ;;  %v16212_v17 = vrot.slane %v3527_v39, %v14396_v9  ;;  %v3185_v48 = vcombine.low %v21491_v18, %v21490_v22 }
  0xe7   : > { %13590 = vmatprep.mubr.msk.bf16.mxu0 %vm14327_vm4, %v21251_v36  ;;  %21483 = vst [vmem:[#allocation34_spill] sm:$0xff] %v16199_v63  ;;  %v3529_v27 = vcombine.low %v21485_v19, %v21484_v44  ;;  %13572 = vmatprep.mubr.msk.bf16.mxu1 %vm14327_vm4, %v21251_v36  ;;  %v3511_v41 = vcombine.low %v3502_v21, %v16191_v16  ;;  %v21498_v19 = vld [vmem:[#allocation79_spill] sm:$0xff] }
  0xe8   : > { %v3530_v56 = vcombine.low %v21489_v20, %v21488_v33  ;;  %v3518_v51 = vrot.slane %v3510_v57, %v14396_v9  ;;  %v16218_v44 = vrot.slane %v12854_v32, %v14396_v9  ;;  %v21494_v20 = vld [vmem:[#allocation76_spill] sm:$0xff]  ;;  %v3577_v57 = vcombine.low %v21497_v28, %v21496_v53 }
  0xe9   : > { %v16221_v26 = vrot.slane %v3529_v27, %v14396_v9  ;;  %v3525_v45 = vrot.slane %v3511_v41, %v14396_v9  ;;  %v3576_v39 = vcombine.low %v21495_v31, %v21494_v20  ;;  %v3184_v33 = vcombine.low %v3176_v30, %v16199_v63 }
  0xea   : > { %21492 = vst [vmem:[#allocation39_spill] sm:$0xff] %v16218_v44  ;;  %v16225_v11 = vrot.slane %v3530_v56, %v14396_v9  ;;  %v3559_v32 = vcombine.low %v16212_v17, %v16218_v44  ;;  %v12855_v27 = vcombine.high %v21498_v19, %v21496_v53  ;;  %v3579_v41 = vcombine.low %v21500_v10, %v21499_v23 }
  0xeb   : > { %21493 = vst [vmem:[#allocation41_spill] sm:$0xff] %v16221_v26  ;;  %v3526_v22 = vcombine.low %v3518_v51, %v3525_v45  ;;  %v16241_v20 = vrot.slane %v3576_v39, %v14396_v9  ;;  %v16244_v28 = vrot.slane %v3577_v57, %v14396_v9  ;;  %v4245_v45 = vrot.slane %v4237_v52, %v14396_v9  ;;  %v21505_v52 = vld [vmem:[#allocation105_spill] sm:$0xff] }
  0xec   : > { %v3560_v56 = vcombine.low %v16221_v26, %v16225_v11  ;;  %v3567_v30 = vrot.slane %v3559_v32, %v14396_v9  ;;  %v16250_v63 = vrot.slane %v12855_v27, %v14396_v9  ;;  %v16253_v51 = vrot.slane %v3579_v41, %v14396_v9  ;;  %v21506_v27 = vld [vmem:[#allocation103_spill] sm:$0xff] }
  0xed   : > { %21501 = vst [vmem:[#allocation40_spill] sm:$0xff] %v16244_v28  ;;  %v4252_v39 = vrot.slane %v4238_v55, %v14396_v9  ;;  %v12856_v57 = vcombine.high %v21500_v10, %v21499_v23  ;;  %v3608_v32 = vcombine.low %v16241_v20, %v16244_v28  ;;  %v3626_v55 = vcombine.low %v21506_v27, %v21505_v52  ;;  %v21507_v41 = vld [vmem:[#allocation107_spill] sm:$0xff] }
  0xee   : > { %13591 = vmatmul.mubr.msk.bf16.gmra.mrb[52].mxu0 %vm2417_vm2, %v3526_v22  ;;  %v3574_v44 = vrot.slane %v3560_v56, %v14396_v9  ;;  %21502 = vst [vmem:[#allocation37_spill] sm:$0xff] %v16250_v63  ;;  %21503 = vst [vmem:[#allocation55_spill] sm:$0xff] %v16253_v51  ;;  %13573 = vmatmul.mubr.msk.bf16.gmra.mrb[52].mxu1 %vm2417_vm2, %v3184_v33  ;;  %v16261_v22 = vrot.slane %v3185_v48, %v14396_v9  ;;  %v21508_v33 = vld [vmem:[#allocation106_spill] sm:$0xff] }
  0xef   : > { %13594 = vmatprep.mubr.msk.bf16.mxu0 %vm14327_vm4, %v21251_v36  ;;  %13576 = vmatprep.mubr.msk.bf16.mxu1 %vm14327_vm4, %v21251_v36  ;;  %v3627_v56 = vcombine.low %v21508_v33, %v21507_v41  ;;  %v4278_v31 = vcombine.low %v16128_v40, %v3488_v46  ;;  %v3609_v48 = vcombine.low %v16250_v63, %v16253_v51 }
  0xf0   : > { %21504 = vst [vmem:[#allocation54_spill] sm:$0xff] %v16261_v22  ;;  %v3575_v24 = vcombine.low %v3567_v30, %v3574_v44  ;;  %v3628_v61 = vcombine.low %v21509_v58, %v15209_v25  ;;  %v7154_v23 = vcombine.low %v16181_v47, %v3502_v21  ;;  %v4253_v10 = vcombine.low %v4245_v45, %v16118_v29 }
  0xf1   : > { %v4254_v28 = vcombine.low %v16124_v5, %v4252_v39  ;;  %v3199_v52 = vrot.slane %v16261_v22, %v14396_v9  ;;  %v4270_v33 = vcombine.low %v21480_v15, %v21478_v50  ;;  %v16286_v40 = vrot.slane %v4278_v31, %v14396_v9  ;;  %v21515_v39 = vld [vmem:[#allocation126_spill] sm:$0xff]  ;;  %v21519_v15 = vld [vmem:[#allocation56_spill] sm:$0xff]  ;;  %v12915_v22 = vld [vmem:[%s20745_s1 + $0xa] sm:$0x3] }
  0xf2   : > { %v16289_v46 = vrot.slane %v7154_v23, %v14396_v9  ;;  %v3616_v25 = vrot.slane %v3608_v32, %v14396_v9  ;;  %v16293_v21 = vrot.slane %v12856_v57, %v14396_v9  ;;  %v16296_v29 = vrot.slane %v3626_v55, %v14396_v9  ;;  %v21516_v32 = vld [vmem:[#allocation129_spill] sm:$0xff]  ;;  %v21517_v55 = vld [vmem:[#allocation127_spill] sm:$0xff] }
  0xf3   : > { %21510 = vst [vmem:[#allocation61_spill] sm:$0xff] %v16286_v40  ;;  %v3623_v5 = vrot.slane %v3609_v48, %v14396_v9  ;;  %v16301_v50 = vrot.slane %v3627_v56, %v14396_v9  ;;  %v16304_v31 = vrot.slane %v3628_v61, %v14396_v9  ;;  %v4261_v44 = vrot.slane %v4253_v10, %v14396_v9  ;;  %v21514_v61 = vld [vmem:[#allocation131_spill] sm:$0xff] }
  0xf4   : > { %21511 = vst [vmem:[#allocation18_spill] sm:$0xff] %v16289_v46  ;;  %21512 = vst [vmem:[#allocation20_spill] sm:$0xff] %v16293_v21  ;;  %v4268_v30 = vrot.slane %v4254_v28, %v14396_v9  ;;  %v3674_v45 = vcombine.low %v21514_v61, %v15313_v35  ;;  %v12857_v57 = vcombine.high %v21515_v39, %v15313_v35  ;;  %v21518_v61 = vld [vmem:[#allocation57_spill] sm:$0xff] }
  0xf5   : > { %21513 = vst [vmem:[#allocation62_spill] sm:$0xff] %v16304_v31  ;;  %v3676_v56 = vcombine.low %v21517_v55, %v21516_v32  ;;  %v12858_v28 = vcombine.high %v21517_v55, %v21516_v32  ;;  %v3624_v48 = vcombine.low %v3616_v25, %v3623_v5  ;;  %v3657_v23 = vcombine.low %v16293_v21, %v16296_v29 }
  0xf6   : > { %13595 = vmatmul.mubr.msk.bf16.gmra.mrb[56].mxu0 %vm2417_vm2, %v3575_v24  ;;  %13577 = vmatmul.mubr.msk.bf16.gmra.mrb[56].mxu1 %vm2417_vm2, %v3199_v52  ;;  %v4277_v24 = vrot.slane %v4270_v33, %v14396_v9  ;;  %v3658_v10 = vcombine.low %v16301_v50, %v16304_v31  ;;  %v4269_v52 = vcombine.low %v4261_v44, %v4268_v30  ;;  %v5954_v30 = vsel %vm2457_vm0, %v12915_v22, 0  ;;  %v21522_v22 = vld [vmem:[#allocation152_spill] sm:$0xff] }
  0xf7   : > { %13598 = vmatprep.mubr.msk.bf16.mxu0 %vm14327_vm4, %v21251_v36  ;;  %13636 = vmatprep.mubr.msk.bf16.mxu1 %vm14327_vm4, %v21251_v36  ;;  %v4295_v46 = vcombine.low %v21519_v15, %v21518_v61  ;;  %v16335_v41 = vrot.slane %v3674_v45, %v14396_v9  ;;  %v16338_v25 = vrot.slane %v12857_v57, %v14396_v9  ;;  %v21528_v61 = vld [vmem:[#allocation158_spill] sm:$0xff] }
  0xf8   : > { %v4279_v33 = vcombine.low %v16181_v47, %v4277_v24  ;;  %v16341_v5 = vrot.slane %v3676_v56, %v14396_v9  ;;  %v16344_v44 = vrot.slane %v12858_v28, %v14396_v9  ;;  %v3665_v47 = vrot.slane %v3657_v23, %v14396_v9  ;;  %v21523_v56 = vld [vmem:[#allocation150_spill] sm:$0xff]  ;;  %v21525_v23 = vld [vmem:[#allocation153_spill] sm:$0xff] }
  0xf9   : > { %21520 = vst [vmem:[#allocation6_spill] sm:$0xff] %v16335_v41  ;;  %v3672_v15 = vrot.slane %v3658_v10, %v14396_v9  ;;  %v4302_v45 = vrot.slane %v4295_v46, %v14396_v9  ;;  %v3706_v57 = vcombine.low %v16335_v41, %v16338_v25  ;;  %v3723_v28 = vcombine.low %v21523_v56, %v21522_v22 }
  0xfa   : > { %21521 = vst [vmem:[#allocation76_spill] sm:$0xff] %v16344_v44  ;;  %v4293_v24 = vrot.slane %v4279_v33, %v14396_v9  ;;  %v3707_v32 = vcombine.low %v16341_v5, %v16344_v44  ;;  %v21527_v33 = vld [vmem:[#allocation154_spill] sm:$0xff]  ;;  %v3726_v21 = vcombine.low %v21528_v61, %v15498_v54  ;;  %v4303_v22 = vcombine.low %v16191_v16, %v16212_v17 }
  0xfb   : > { %v3673_v41 = vcombine.low %v3665_v47, %v3672_v15  ;;  %v3714_v61 = vrot.slane %v3706_v57, %v14396_v9  ;;  %v16383_v47 = vrot.slane %v3723_v28, %v14396_v9  ;;  %v3773_v57 = vcombine.low %v15607_v2, %v15619_v34  ;;  %v21533_v28 = vld [vmem:[#allocation176_spill] sm:$0xff] }
  0xfc   : > { %v4294_v44 = vcombine.low %v16286_v40, %v4293_v24  ;;  %v16392_v17 = vrot.slane %v3726_v21, %v14396_v9 }
  0xfd   : > { %v16361_v55 = vpop.f32.mrb[0].mxu0  ;;  %21529 = vst [vmem:[#allocation80_spill] sm:$0xff] %v16383_v47 }
  0xfe   : > { %13599 = vmatmul.mubr.msk.bf16.gmra.mrb[60].mxu0 %vm2417_vm2, %v3624_v48  ;;  %13637 = vmatmul.mubr.msk.bf16.vlgmr.msra.gmra.mrb[60].mxu1 %vm2417_vm2, %v4269_v52  ;;  %v21524_v48 = vld [vmem:[#allocation151_spill] sm:$0xff]  ;;  %v21526_v52 = vld [vmem:[#allocation156_spill] sm:$0xff]  ;;  %v13476_v58 = vpop.f32.mrb[1].mxu0  ;;  %21530 = vst [vmem:[#allocation83_spill] sm:$0xff] %v16392_v17 }
  0xff   : > { %13602 = vmatprep.mubr.msk.bf16.mxu0 %vm14327_vm4, %v21251_v36  ;;  %13640 = vmatprep.mubr.msk.bf16.mxu1 %vm14327_vm4, %v21251_v36  ;;  %v3724_v10 = vcombine.low %v21525_v23, %v21524_v48  ;;  %v3725_v46 = vcombine.low %v21527_v33, %v21526_v52  ;;  %v16371_v27 = vpop.f32.mrb[2].mxu0  ;;  %v4304_v23 = vcombine.low %v4302_v45, %v16221_v26  ;;  %v21550_v26 = vld [vmem:[#allocation24_spill] sm:$0xff] }
 0x100   : > { %13743 = vmatpush3.bf16.msra.mxu1 %v5954_v30  ;;  %v4320_v52 = vcombine.low %v21498_v19, %v21496_v53  ;;  %v13477_v48 = vpop.f32.mrb[3].mxu0  ;;  %v3721_v58 = vrot.slane %v3707_v32, %v14396_v9  ;;  %v16399_v53 = vrot.slane %v4303_v22, %v14396_v9  ;;  %v12860_v32 = vcombine.high %v15607_v2, %v15619_v34 }
 0x101   : > { %13850 = vmatprep.subr.bf16.mxu1 %v21251_v36  ;;  %v16386_v15 = vrot.slane %v3724_v10, %v14396_v9  ;;  %v16389_v30 = vrot.slane %v3725_v46, %v14396_v9  ;;  %v4318_v16 = vrot.slane %v4304_v23, %v14396_v9  ;;  %v3775_v48 = vcombine.low %v15626_v37, %v21533_v28  ;;  %v21534_v23 = vld [vmem:[#allocation102_spill] sm:$0xff]  ;;  %v21543_v28 = vld [vmem:[#allocation197_spill] sm:$0xff] }
 0x102   : > { %21531 = vst [vmem:[#allocation79_spill] sm:$0xff] %v16399_v53  ;;  %v4327_v19 = vrot.slane %v4320_v52, %v14396_v9  ;;  %v3722_v24 = vcombine.low %v3714_v61, %v3721_v58  ;;  %v4328_v46 = vcombine.low %v16225_v11, %v16241_v20  ;;  %v21535_v52 = vld [vmem:[#allocation101_spill] sm:$0xff]  ;;  %v16432_v34 = vrot.slane %v3773_v57, %v14396_v9 }
 0x103   : > { %v3755_v21 = vcombine.low %v16383_v47, %v16386_v15  ;;  %v4319_v10 = vcombine.low %v16399_v53, %v4318_v16  ;;  %v4345_v61 = vcombine.low %v21535_v52, %v21534_v23  ;;  %v16435_v11 = vrot.slane %v12860_v32, %v14396_v9  ;;  %v21545_v23 = vld [vmem:[#allocation21_spill] sm:$0xff] }
 0x104   : > { %v4329_v22 = vcombine.low %v4327_v19, %v16250_v63  ;;  %21538 = vst [vmem:[#allocation105_spill] sm:$0xff] %v16432_v34  ;;  %v16438_v20 = vrot.slane %v3775_v48, %v14396_v9  ;;  %v16444_v19 = vrot.slane %v4328_v46, %v14396_v9  ;;  %v3822_v32 = vcombine.low %v15758_v59, %v15762_v62  ;;  %v21548_v63 = vld [vmem:[#allocation23_spill] sm:$0xff]  ;;  %v21551_v62 = vld [vmem:[#allocation25_spill] sm:$0xff] }
 0x105   : > { %v3763_v58 = vrot.slane %v3755_v21, %v14396_v9  ;;  %21539 = vst [vmem:[#allocation106_spill] sm:$0xff] %v16435_v11  ;;  %v4352_v21 = vrot.slane %v4345_v61, %v14396_v9  ;;  %v3823_v48 = vcombine.low %v21543_v28, %v15765_v43 }
 0x106   : > { %13603 = vmatmul.mubr.msk.bf16.gmra.mrb[64].mxu0 %vm2417_vm2, %v3673_v41  ;;  %13641 = vmatmul.mubr.msk.bf16.gmra.mrb[64].mxu1 %vm2417_vm2, %v4294_v44  ;;  %v3756_v41 = vcombine.low %v16389_v30, %v16392_v17  ;;  %v21532_v44 = vld [vmem:[#allocation157_spill] sm:$0xff]  ;;  %21540 = vst [vmem:[#allocation131_spill] sm:$0xff] %v16444_v19 }
 0x107   : > { %13606 = vmatprep.mubr.msk.bf16.mxu0 %vm14327_vm4, %v21251_v36  ;;  %13644 = vmatprep.mubr.msk.bf16.mxu1 %vm14327_vm4, %v21251_v36  ;;  %v12859_v45 = vcombine.high %v21532_v44, %v15498_v54 }
 0x108   : > { %v3770_v17 = vrot.slane %v3756_v41, %v14396_v9 }
 0x109   : > { %v16429_v2 = vrot.slane %v12859_v45, %v14396_v9  ;;  %v21542_v45 = vld [vmem:[#allocation191_spill] sm:$0xff] }
 0x10a   : > { %v16425_v40 = vpop.f32.mrb[0].mxu1  ;;  %v3821_v57 = vcombine.low %v21542_v45, %v15746_v38  ;;  %v3771_v28 = vcombine.low %v3763_v58, %v3770_v17  ;;  %v4370_v17 = vcombine.low %v21515_v39, %v15313_v35 }
 0x10b   : > { %21536 = vst [vmem:[#allocation84_spill] sm:$0xff] %v16425_v40  ;;  %21537 = vst [vmem:[#allocation81_spill] sm:$0xff] %v16429_v2  ;;  %v13520_v16 = vpop.f32.mrb[1].mxu1  ;;  %v3804_v38 = vcombine.low %v16429_v2, %v16432_v34 }
 0x10c   : > { %v16448_v41 = vpop.f32.mrb[2].mxu1  ;;  %v21547_v16 = vld [vmem:[#allocation22_spill] sm:$0xff]  ;;  %v16487_v58 = vrot.slane %v3821_v57, %v14396_v9  ;;  %v4377_v57 = vrot.slane %v4370_v17, %v14396_v9 }
 0x10d   : > { %21541 = vst [vmem:[#allocation126_spill] sm:$0xff] %v16448_v41  ;;  %v13521_v46 = vpop.f32.mrb[3].mxu1  ;;  %v21549_v53 = vcombine.low %v21547_v16, %v21548_v63  ;;  %v21552_v41 = vcombine.low %v21550_v26, %v21551_v62  ;;  %v4353_v26 = vcombine.low %v16253_v51, %v4352_v21 }
 0x10e   : > { %13607 = vmatmul.mubr.msk.bf16.gmra.mrb[68].mxu0 %vm2417_vm2, %v3722_v24  ;;  %13645 = vmatmul.mubr.msk.bf16.gmra.mrb[68].mxu1 %vm2417_vm2, %v4319_v10  ;;  %v4343_v24 = vrot.slane %v4329_v22, %v14396_v9  ;;  %v12861_v10 = vcombine.high %v15754_v8, %v15765_v43  ;;  %v21544_v22 = vld [vmem:[#allocation4_spill] sm:$0xff]  ;;  %v3805_v46 = vcombine.low %v16435_v11, %v16438_v20  ;;  %v21596_v11 = vld [vmem:[#allocation75_spill] sm:$0xff] }
 0x10f   : > { %13610 = vmatprep.mubr.msk.bf16.mxu0 %vm14327_vm4, %v21251_v36  ;;  %13648 = vmatprep.mubr.msk.bf16.mxu1 %vm14327_vm4, %v21251_v36  ;;  %v21546_v52 = vcombine.low %v21544_v22, %v21545_v23  ;;  %v4864_v45 = vrot.slane %v21549_v53, %v14396_v9  ;;  %v4871_v40 = vrot.slane %v21552_v41, %v14396_v9  ;;  %v21553_v23 = vld [vmem:[#allocation26_spill] sm:$0xff] }
 0x110   : > { %v4354_v22 = vcombine.low %v16296_v29, %v16301_v50  ;;  %v4344_v16 = vcombine.low %v16444_v19, %v4343_v24  ;;  %v16490_v41 = vrot.slane %v3822_v32, %v14396_v9  ;;  %v16493_v29 = vrot.slane %v3823_v48, %v14396_v9 }
 0x111   : > { %v4857_v61 = vrot.slane %v21546_v52, %v14396_v9  ;;  %v21554_v52 = vld [vmem:[#allocation27_spill] sm:$0xff]  ;;  %v16496_v50 = vrot.slane %v12861_v10, %v14396_v9  ;;  %v3812_v24 = vrot.slane %v3804_v38, %v14396_v9  ;;  %v3819_v21 = vrot.slane %v3805_v46, %v14396_v9 }
 0x112   : > { %v21555_v63 = vcombine.low %v21553_v23, %v21554_v52  ;;  %21556 = vst [vmem:[#allocation129_spill] sm:$0xff] %v16490_v41  ;;  %21557 = vst [vmem:[#allocation127_spill] sm:$0xff] %v16493_v29  ;;  %v16502_v35 = vrot.slane %v4354_v22, %v14396_v9  ;;  %v4361_v39 = vrot.slane %v4353_v26, %v14396_v9 }
 0x113   : > { %v4879_v32 = vcombine.low %v4857_v61, %v4864_v45  ;;  %v3853_v38 = vcombine.low %v16487_v58, %v16490_v41  ;;  %v3854_v48 = vcombine.low %v16493_v29, %v16496_v50  ;;  %v3870_v10 = vcombine.low %v15885_v6, %v15891_v0  ;;  %v21559_v61 = vld [vmem:[#allocation217_spill] sm:$0xff] }
 0x114   : > { %v4878_v53 = vrot.slane %v21555_v63, %v14396_v9  ;;  %21558 = vst [vmem:[#allocation57_spill] sm:$0xff] %v16502_v35  ;;  %v3872_v46 = vcombine.low %v15904_v14, %v15909_v42  ;;  %v3873_v45 = vcombine.low %v21559_v61, %v14485_v60  ;;  %v3820_v52 = vcombine.low %v3812_v24, %v3819_v21  ;;  %v21560_v42 = vld [vmem:[#allocation149_spill] sm:$0xff] }
 0x115   : > { %v16524_v22 = vrot.slane %v4879_v32, %v14396_v9  ;;  %v3861_v32 = vrot.slane %v3853_v38, %v14396_v9  ;;  %v3868_v24 = vrot.slane %v3854_v48, %v14396_v9 }
 0x116   : > { %13611 = vmatmul.mubr.msk.bf16.gmra.mrb[72].mxu0 %vm2417_vm2, %v3771_v28  ;;  %13649 = vmatmul.mubr.msk.bf16.gmra.mrb[72].mxu1 %vm2417_vm2, %v4344_v16  ;;  %v4880_v62 = vcombine.low %v4871_v40, %v4878_v53  ;;  %v12862_v28 = vcombine.high %v15885_v6, %v15891_v0  ;;  %v16526_v23 = vpop.f32.mrb[4].mxu0  ;;  %v4369_v40 = vcombine.low %v4361_v39, %v16502_v35  ;;  %v21561_v53 = vld [vmem:[#allocation130_spill] sm:$0xff] }
 0x117   : > { %13614 = vmatprep.mubr.msk.bf16.mxu0 %vm14327_vm4, %v21251_v36  ;;  %13652 = vmatprep.mubr.msk.bf16.mxu1 %vm14327_vm4, %v21251_v36  ;;  %v13480_v16 = vpop.f32.mrb[5].mxu0  ;;  %v4378_v6 = vcombine.low %v16304_v31, %v4377_v57  ;;  %v4379_v0 = vcombine.low %v16338_v25, %v16341_v5  ;;  %v4395_v26 = vcombine.low %v21561_v53, %v21560_v42 }
 0x118   : > { %v16529_v63 = vrot.slane %v4880_v62, %v14396_v9  ;;  %v16537_v17 = vpop.f32.mrb[6].mxu0  ;;  %v16543_v61 = vpop.f32.mrb[4].mxu1  ;;  %v16546_v39 = vrot.slane %v3870_v10, %v14396_v9  ;;  %v16549_v25 = vrot.slane %v12862_v28, %v14396_v9  ;;  %v16552_v5 = vrot.slane %v3872_v46, %v14396_v9 }
 0x119   : > { %v13481_v62 = vpop.f32.mrb[7].mxu0  ;;  %21562 = vst [vmem:[#allocation56_spill] sm:$0xff] %v16543_v61  ;;  %v16555_v57 = vrot.slane %v3873_v45, %v14396_v9  ;;  %v13524_v38 = vpop.f32.mrb[5].mxu1  ;;  %v4386_v10 = vrot.slane %v4378_v6, %v14396_v9  ;;  %v16563_v28 = vrot.slane %v4379_v0, %v14396_v9  ;;  %v4402_v46 = vrot.slane %v4395_v26, %v14396_v9  ;;  %v21566_v0 = vld [vmem:[#allocation5_spill] sm:$0xff] }
 0x11a   : > { %21563 = vst [vmem:[#allocation152_spill] sm:$0xff] %v16549_v25  ;;  %21564 = vst [vmem:[#allocation150_spill] sm:$0xff] %v16552_v5  ;;  %v2594_v48 = vpop.f32.mrb[6].mxu1  ;;  %v3869_v45 = vcombine.low %v3861_v32, %v3868_v24  ;;  %v4404_v42 = vcombine.low %v16386_v15, %v16389_v30  ;;  %v3919_v6 = vcombine.low %v14495_v3, %v14499_v4 }
 0x11b   : > { %21565 = vst [vmem:[#allocation153_spill] sm:$0xff] %v16563_v28  ;;  %v13525_v16 = vpop.f32.mrb[7].mxu1  ;;  %v3920_v53 = vcombine.low %v21566_v0, %v14509_v13  ;;  %v12863_v26 = vcombine.high %v14502_v7, %v14509_v13  ;;  %v3922_v32 = vcombine.low %v14506_v12, %v21491_v18  ;;  %v4394_v24 = vcombine.low %v4386_v10, %v16563_v28 }
 0x11c   : > { %v4403_v62 = vcombine.low %v4402_v46, %v16383_v47  ;;  %v4420_v38 = vcombine.low %v21532_v44, %v15498_v54  ;;  %v4421_v15 = vcombine.low %v15623_v1, %v15615_v49  ;;  %v16591_v48 = vrot.slane %v4404_v42, %v14396_v9 }
 0x11d   : > { %v16595_v16 = vrot.slane %v3919_v6, %v14396_v9  ;;  %v16598_v10 = vrot.slane %v3920_v53, %v14396_v9  ;;  %v16601_v54 = vrot.slane %v12863_v26, %v14396_v9  ;;  %v16604_v49 = vrot.slane %v3922_v32, %v14396_v9 }
 0x11e   : > { %13615 = vmatmul.mubr.msk.bf16.gmra.mrb[76].mxu0 %vm2417_vm2, %v3820_v52  ;;  %13653 = vmatmul.mubr.msk.bf16.gmra.mrb[76].mxu1 %vm2417_vm2, %v4369_v40  ;;  %v3902_v52 = vcombine.low %v16546_v39, %v16549_v25  ;;  %v3903_v40 = vcombine.low %v16552_v5, %v16555_v57  ;;  %21567 = vst [vmem:[#allocation156_spill] sm:$0xff] %v16591_v48 }
 0x11f   : > { %13618 = vmatprep.mubr.msk.bf16.mxu0 %vm14327_vm4, %v21251_v36  ;;  %13656 = vmatprep.mubr.msk.bf16.mxu1 %vm14327_vm4, %v21251_v36  ;;  %21568 = vst [vmem:[#allocation154_spill] sm:$0xff] %v16598_v10  ;;  %21569 = vst [vmem:[#allocation158_spill] sm:$0xff] %v16601_v54  ;;  %v4411_v1 = vrot.slane %v4403_v62, %v14396_v9  ;;  %v4428_v44 = vrot.slane %v4420_v38, %v14396_v9 }
 0x120   : > { %v3910_v4 = vrot.slane %v3902_v52, %v14396_v9  ;;  %v3917_v30 = vrot.slane %v3903_v40, %v14396_v9  ;;  %21570 = vst [vmem:[#allocation157_spill] sm:$0xff] %v16604_v49  ;;  %v4435_v46 = vrot.slane %v4421_v15, %v14396_v9  ;;  %v3951_v52 = vcombine.low %v16595_v16, %v16598_v10  ;;  %v12878_v15 = vld.sshfl [vmem:[%s14392_s28 + $0x70] sm:$0x33 pattern:$0x75316420]  ;;  %v21588_v10 = vld [vmem:[#allocation49_spill] sm:$0xff] }
 0x121   : > { %v3952_v40 = vcombine.low %v16601_v54, %v16604_v49  ;;  %v4453_v42 = vcombine.low %v15754_v8, %v15765_v43  ;;  %v4419_v6 = vcombine.low %v4411_v1, %v16591_v48  ;;  %v4436_v0 = vcombine.low %v4428_v44, %v16429_v2  ;;  %v21597_v2 = vld [vmem:[#allocation96_spill] sm:$0xff] }
 0x122   : > { %v4437_v53 = vcombine.low %v16432_v34, %v4435_v46  ;;  %v21598_v48 = vcombine.low %v21596_v11, %v21597_v2 }
 0x123   : > { %v3966_v8 = vrot.slane %v3952_v40, %v14396_v9  ;;  %v4460_v43 = vrot.slane %v4453_v42, %v14396_v9  ;;  %v4195_v40 = vcombine.high %v12878_v15, %v12878_v15 }
 0x124   : > { %v4451_v44 = vrot.slane %v4437_v53, %v14396_v9  ;;  %v16748_v47 = vrot.slane %v21598_v48, %v14396_v9 }
 0x126   : > { %13619 = vmatmul.mubr.msk.bf16.gmra.mrb[80].mxu0 %vm2417_vm2, %v3869_v45  ;;  %13657 = vmatmul.mubr.msk.bf16.gmra.mrb[80].mxu1 %vm2417_vm2, %v4394_v24  ;;  %v3918_v45 = vcombine.low %v3910_v4, %v3917_v30  ;;  %v3959_v4 = vrot.slane %v3951_v52, %v14396_v9 }
 0x127   : > { %13622 = vmatprep.mubr.msk.bf16.mxu0 %vm14327_vm4, %v21251_v36  ;;  %13660 = vmatprep.mubr.msk.bf16.mxu1 %vm14327_vm4, %v21251_v36  ;;  %v16623_v26 = vpop.f32.mrb[8].mxu0  ;;  %v3276_v32 = vpop.f32.mrb[8].mxu1 }
 0x128   : > { %v16626_v24 = vadd.f32 %v3276_v32, %v16361_v55  ;;  %v13484_v62 = vpop.f32.mrb[9].mxu0  ;;  %v13530_v38 = vpop.f32.mrb[9].mxu1  ;;  %v4444_v55 = vrot.slane %v4436_v0, %v14396_v9  ;;  %v3967_v42 = vcombine.low %v3959_v4, %v3966_v8  ;;  %v4461_v32 = vcombine.low %v16438_v20, %v16487_v58  ;;  %v21572_v0 = vld [vmem:[#allocation215_spill] sm:$0xff] }
 0x129   : > { %v16633_v30 = vpop.f32.mrb[10].mxu0  ;;  %v3279_v1 = vpop.f32.mrb[10].mxu1  ;;  %v21571_v62 = vld [vmem:[#allocation214_spill] sm:$0xff]  ;;  %v4486_v8 = vcombine.low %v16496_v50, %v16546_v39 }
 0x12a   : > { %v16641_v46 = vadd.f32 %v3279_v1, %v16371_v27  ;;  %v13531_v52 = vpop.f32.mrb[11].mxu1  ;;  %v4478_v38 = vcombine.low %v21572_v0, %v21571_v62  ;;  %v4452_v53 = vcombine.low %v4444_v55, %v4451_v44  ;;  %v4462_v27 = vcombine.low %v16490_v41, %v4460_v43  ;;  %v21575_v55 = vld [vmem:[#allocation42_spill] sm:$0xff]  ;;  %v21576_v44 = vld [vmem:[#allocation28_spill] sm:$0xff]  ;;  %v21580_v62 = vld [vmem:[#allocation45_spill] sm:$0xff] }
 0x12b   : > { %v16653_v1 = vrot.slane %v12878_v15, %v14396_v9  ;;  %v4503_v43 = vcombine.low %v14502_v7, %v14509_v13  ;;  %v4896_v52 = vcombine.low %v21576_v44, %v21575_v55  ;;  %v12879_v13 = vld.sshfl [vmem:[%s14392_s28 + $0x74] sm:$0x33 pattern:$0x75316420]  ;;  %v16696_v44 = vrot.slane %v4486_v8, %v14396_v9 }
 0x12c   : > { %v4485_v20 = vrot.slane %v4478_v38, %v14396_v9  ;;  %v4476_v15 = vrot.slane %v4462_v27, %v14396_v9  ;;  %v21581_v38 = vld [vmem:[#allocation48_spill] sm:$0xff]  ;;  %v16714_v8 = vrot.slane %v12879_v13, %v14396_v9 }
 0x12d   : > { %v4789_v4 = vshrl.u32 %v16653_v1, 16  ;;  %21585 = vst [vmem:[#allocation191_spill] sm:$0xff] %v16696_v44 }
 0x12e   : > { %13623 = vmatmul.mubr.msk.bf16.gmra.mrb[84].mxu0 %vm2417_vm2, %v3918_v45  ;;  %13661 = vmatmul.mubr.msk.bf16.gmra.mrb[84].mxu1 %vm2417_vm2, %v4419_v6  ;;  %v13485_v45 = vpop.f32.mrb[11].mxu0  ;;  %v12864_v6 = vcombine.high %v14506_v12, %v21491_v18  ;;  %v16664_v18 = vrot.slane %v4461_v32, %v14396_v9  ;;  %v21579_v32 = vld [vmem:[#allocation46_spill] sm:$0xff]  ;;  %v4487_v7 = vcombine.low %v4485_v20, %v16552_v5  ;;  %v21589_v5 = vld [vmem:[#allocation65_spill] sm:$0xff] }
 0x12f   : > { %13626 = vmatprep.mubr.msk.bf16.mxu0 %vm14327_vm4, %v21251_v36  ;;  %13664 = vmatprep.mubr.msk.bf16.mxu1 %vm14327_vm4, %v21251_v36  ;;  %v16656_v45 = vrot.slane %v4195_v40, %v14396_v9  ;;  %v21577_v40 = vld [vmem:[#allocation44_spill] sm:$0xff]  ;;  %v4898_v0 = vcombine.low %v21580_v62, %v21579_v32  ;;  %v16704_v20 = vcombine.high %v16653_v1, %v16653_v1 }
 0x130   : > { %v16661_v12 = vrot.slane %v12864_v6, %v14396_v9  ;;  %21574 = vst [vmem:[#allocation102_spill] sm:$0xff] %v16664_v18  ;;  %v4477_v55 = vcombine.low %v16664_v18, %v4476_v15  ;;  %v21590_v18 = vld [vmem:[#allocation64_spill] sm:$0xff] }
 0x131   : > { %v4794_v58 = vshll.u32 %v16656_v45, 16  ;;  %v4920_v62 = vrot.slane %v4898_v0, %v14396_v9  ;;  %v16711_v15 = vcombine.high %v16656_v45, %v16656_v45  ;;  %v4501_v0 = vrot.slane %v4487_v7, %v14396_v9  ;;  %v21592_v7 = vld [vmem:[#allocation66_spill] sm:$0xff] }
 0x132   : > { %21573 = vst [vmem:[#allocation176_spill] sm:$0xff] %v16661_v12  ;;  %v3982_v50 = vrot.slane %v16661_v12, %v14396_v9  ;;  %v4946_v41 = vcombine.low %v21590_v18, %v21589_v5 }
 0x133   : > { %v16692_v21 = vsel %vm14429_vm1, %v4789_v4, %v4794_v58  ;;  %v4502_v2 = vcombine.low %v16696_v44, %v4501_v0  ;;  %v21600_v0 = vcombine.low %v16524_v22, %v16529_v63  ;;  %v4813_v22 = vshrl.u32 %v16711_v15, 16  ;;  %v21611_v44 = vld [vmem:[#allocation90_spill] sm:$0xff] }
 0x134   : > { %21584 = vst [vmem:[#allocation101_spill] sm:$0xff] %v16692_v21  ;;  %v4818_v63 = vshll.u32 %v16714_v8, 16 }
 0x136   : > { %13627 = vmatmul.mubr.msk.bf16.gmra.mrb[88].mxu0 %vm2417_vm2, %v3967_v42  ;;  %13665 = vmatmul.mubr.msk.bf16.gmra.mrb[88].mxu1 %vm2417_vm2, %v4452_v53  ;;  %v21578_v42 = vld [vmem:[#allocation43_spill] sm:$0xff] }
 0x137   : > { %13630 = vmatprep.mubr.msk.bf16.mxu0 %vm14327_vm4, %v21251_v36  ;;  %13668 = vmatprep.mubr.msk.bf16.mxu1 %vm14327_vm4, %v21251_v36  ;;  %v4897_v6 = vcombine.low %v21578_v42, %v21577_v40  ;;  %v21582_v53 = vld [vmem:[#allocation47_spill] sm:$0xff]  ;;  %v4510_v40 = vrot.slane %v4503_v43, %v14396_v9  ;;  %v4906_v42 = vrot.slane %v4896_v52, %v14396_v9  ;;  %v3284_v4 = vpop.f32.mrb[12].mxu1 }
 0x138   : > { %v4899_v27 = vcombine.low %v21582_v53, %v21581_v38  ;;  %v16706_v38 = vpop.f32.mrb[12].mxu0  ;;  %v16717_v43 = vadd.f32 %v3284_v4, %v16526_v23  ;;  %v21586_v53 = vld [vmem:[#allocation29_spill] sm:$0xff]  ;;  %v12939_v23 = vld [vmem:[%s20745_s1 + $0xc] sm:$0x3] }
 0x139   : > { %v4913_v32 = vrot.slane %v4897_v6, %v14396_v9  ;;  %v13488_v52 = vpop.f32.mrb[13].mxu0  ;;  %v13534_v6 = vpop.f32.mrb[13].mxu1  ;;  %v4528_v12 = vcombine.low %v21586_v53, %v16653_v1  ;;  %v6459_v11 = vsel %vm2457_vm0, %v12939_v23, 0 }
 0x13a   : > { %v4927_v58 = vrot.slane %v4899_v27, %v14396_v9  ;;  %v21587_v27 = vld [vmem:[#allocation63_spill] sm:$0xff]  ;;  %v16727_v29 = vpop.f32.mrb[14].mxu0  ;;  %v3287_v34 = vpop.f32.mrb[14].mxu1  ;;  %v21593_v52 = vld [vmem:[#allocation69_spill] sm:$0xff] }
 0x13b   : > { %v4945_v25 = vcombine.low %v21588_v10, %v21587_v27  ;;  %v21594_v10 = vld [vmem:[#allocation68_spill] sm:$0xff]  ;;  %v16740_v5 = vadd.f32 %v3287_v34, %v16537_v17  ;;  %v13489_v18 = vpop.f32.mrb[15].mxu0  ;;  %v13535_v53 = vpop.f32.mrb[15].mxu1  ;;  %v4512_v34 = vcombine.low %v4510_v40, %v16601_v54  ;;  %v4928_v17 = vcombine.low %v4906_v42, %v4913_v32 }
 0x13c   : > { %v4948_v6 = vcombine.low %v21594_v10, %v21593_v52  ;;  %v4529_v52 = vcombine.low %v16656_v45, %v16704_v20  ;;  %v4530_v10 = vcombine.low %v16711_v15, %v16714_v8  ;;  %v4537_v48 = vrot.slane %v4528_v12, %v14396_v9 }
 0x13d   : > { %v4219_v18 = vcombine.high %v12879_v13, %v12879_v13  ;;  %v4955_v53 = vrot.slane %v4945_v25, %v14396_v9  ;;  %v4526_v32 = vrot.slane %v4512_v34, %v14396_v9  ;;  %v4936_v12 = vrot.slane %v4928_v17, %v14396_v9 }
 0x13e   : > { %13631 = vmatmul.mubr.msk.bf16.gmra.mrb[92].mxu0 %vm2417_vm2, %v3982_v50  ;;  %13669 = vmatmul.mubr.msk.bf16.gmra.mrb[92].mxu1 %vm2417_vm2, %v4477_v55  ;;  %v21591_v50 = vld [vmem:[#allocation67_spill] sm:$0xff]  ;;  %v21595_v55 = vld [vmem:[#allocation33_spill] sm:$0xff]  ;;  %v4976_v40 = vrot.slane %v4948_v6, %v14396_v9  ;;  %v4544_v25 = vrot.slane %v4529_v52, %v14396_v9  ;;  %v4552_v23 = vcombine.low %v16604_v49, %v4537_v48  ;;  %v4805_v6 = vshrl.u32 %v16704_v20, 16  ;;  %v21602_v52 = vld [vmem:[#allocation70_spill] sm:$0xff] }
 0x13f   : > { %13690 = vmatprep.mubr.msk.bf16.mxu0 %vm14327_vm4, %v21251_v36  ;;  %v4947_v4 = vcombine.low %v21592_v7, %v21591_v50  ;;  %13672 = vmatprep.mubr.msk.bf16.mxu1 %vm14327_vm4, %v21251_v36  ;;  %v4511_v50 = vcombine.low %v16555_v57, %v16595_v16  ;;  %v4929_v7 = vcombine.low %v4920_v62, %v4927_v58  ;;  %v4797_v62 = vshrl.u32 %v16656_v45, 16  ;;  %v21604_v48 = vld [vmem:[#allocation98_spill] sm:$0xff]  ;;  %v21610_v49 = vld [vmem:[#allocation91_spill] sm:$0xff] }
 0x140   : > { %v4962_v57 = vrot.slane %v4946_v41, %v14396_v9  ;;  %v4802_v58 = vshll.u32 %v16704_v20, 16  ;;  %v4551_v41 = vrot.slane %v4530_v10, %v14396_v9  ;;  %v4821_v20 = vshrl.u32 %v16714_v8, 16 }
 0x141   : > { %v4969_v16 = vrot.slane %v4947_v4, %v14396_v9  ;;  %v16767_v42 = vrot.slane %v4511_v50, %v14396_v9  ;;  %v4943_v13 = vrot.slane %v4929_v7, %v14396_v9  ;;  %v16782_v4 = vrot.slane %v4219_v18, %v14396_v9  ;;  %v21601_v7 = vld [vmem:[#allocation85_spill] sm:$0xff] }
 0x142   : > { %v4810_v50 = vshll.u32 %v16711_v15, 16  ;;  %v4977_v34 = vcombine.low %v4955_v53, %v4962_v57  ;;  %v4994_v10 = vcombine.low %v21602_v52, %v21601_v7  ;;  %v21608_v7 = vld [vmem:[#allocation89_spill] sm:$0xff]  ;;  %v21609_v52 = vld [vmem:[#allocation88_spill] sm:$0xff]  ;;  %v4997_v54 = vcombine.low %v21611_v44, %v21610_v49 }
 0x143   : > { %21599 = vst [vmem:[#allocation197_spill] sm:$0xff] %v16767_v42  ;;  %v4978_v17 = vcombine.low %v4969_v16, %v4976_v40  ;;  %v4527_v57 = vcombine.low %v16767_v42, %v4526_v32  ;;  %v21606_v16 = vld [vmem:[#allocation87_spill] sm:$0xff]  ;;  %v21607_v40 = vld [vmem:[#allocation86_spill] sm:$0xff]  ;;  %v4996_v15 = vcombine.low %v21609_v52, %v21608_v7  ;;  %v4944_v27 = vcombine.low %v4936_v12, %v4943_v13 }
 0x144   : > { %v16813_v28 = vsel %vm14429_vm1, %v4797_v62, %v4802_v58  ;;  %v4553_v32 = vcombine.low %v4544_v25, %v4551_v41  ;;  %v5004_v12 = vrot.slane %v4994_v10, %v14396_v9  ;;  %v16825_v49 = vsel %vm14429_vm1, %v4813_v22, %v4818_v63  ;;  %v21624_v42 = vld [vmem:[#allocation114_spill] sm:$0xff] }
 0x145   : > { %21612 = vst [vmem:[#allocation4_spill] sm:$0xff] %v16813_v28  ;;  %21614 = vst [vmem:[#allocation22_spill] sm:$0xff] %v16825_v49  ;;  %v5018_v13 = vrot.slane %v4996_v15, %v14396_v9  ;;  %v5025_v10 = vrot.slane %v4997_v54, %v14396_v9  ;;  %v16861_v54 = vcombine.high %v16714_v8, %v16714_v8  ;;  %v4829_v52 = vshrl.u32 %v16782_v4, 16  ;;  %v21620_v15 = vld [vmem:[#allocation110_spill] sm:$0xff] }
 0x146   : > { %13691 = vmatmul.mubr.msk.bf16.vlgmr.msra.gmra.mrb[96].mxu0 %vm2417_vm2, %v21600_v0  ;;  %13673 = vmatmul.mubr.msk.bf16.gmra.mrb[96].mxu1 %vm2417_vm2, %v4502_v2  ;;  %v4826_v2 = vshll.u32 %v16782_v4, 16  ;;  %v4995_v0 = vcombine.low %v21607_v40, %v21606_v16  ;;  %v4992_v16 = vrot.slane %v4978_v17, %v14396_v9 }
 0x147   : > { %13797 = vmatpush3.bf16.msra.mxu0 %v6459_v11  ;;  %13676 = vmatprep.mubr.msk.bf16.mxu1 %vm14327_vm4, %v21251_v36  ;;  %v21603_v11 = vld [vmem:[#allocation97_spill] sm:$0xff]  ;;  %v16835_v25 = vpop.f32.mrb[16].mxu0  ;;  %v3292_v41 = vpop.f32.mrb[16].mxu1  ;;  %v4834_v51 = vshll.u32 %v16861_v54, 16 }
 0x148   : > { %13694 = vmatprep.mubr.msk.bf16.mxu0 %vm14327_vm4, %v21251_v36  ;;  %v21605_v18 = vcombine.low %v21603_v11, %v21604_v48  ;;  %13904 = vmatprep.subr.bf16.mxu0 %v21251_v36  ;;  %v16817_v11 = vsel %vm14429_vm1, %v4805_v6, %v4810_v50  ;;  %v4560_v48 = vrot.slane %v4552_v23, %v14396_v9  ;;  %v21615_v6 = vld [vmem:[#allocation14_spill] sm:$0xff]  ;;  %v21616_v50 = vld [vmem:[#allocation32_spill] sm:$0xff]  ;;  %v13492_v63 = vpop.f32.mrb[17].mxu0 }
 0x149   : > { %21613 = vst [vmem:[#allocation21_spill] sm:$0xff] %v16817_v11  ;;  %v16829_v44 = vsel %vm14429_vm1, %v4821_v20, %v4826_v2  ;;  %v5388_v62 = vcombine.low %v16813_v28, %v16817_v11  ;;  %v5011_v58 = vrot.slane %v4995_v0, %v14396_v9  ;;  %v16846_v22 = vadd.f32 %v3292_v41, %v16623_v26  ;;  %v13538_v20 = vpop.f32.mrb[17].mxu1  ;;  %v16863_v26 = vpop.f32.mrb[18].mxu0  ;;  %v21622_v63 = vld [vmem:[#allocation112_spill] sm:$0xff]  ;;  %v21627_v11 = vld [vmem:[#allocation115_spill] sm:$0xff]  ;;  %v21671_v28 = vld [vmem:[#allocation125_spill] sm:$0xff] }
 0x14a   : > { %v16801_v53 = vrot.slane %v21605_v18, %v14396_v9  ;;  %v4985_v18 = vrot.slane %v4977_v34, %v14396_v9  ;;  %v5389_v23 = vcombine.low %v16825_v49, %v16829_v44  ;;  %v21617_v34 = vcombine.low %v21615_v6, %v21616_v50  ;;  %v3295_v7 = vpop.f32.mrb[18].mxu1  ;;  %v13493_v6 = vpop.f32.mrb[19].mxu0  ;;  %v21623_v20 = vld [vmem:[#allocation111_spill] sm:$0xff]  ;;  %v21670_v49 = vld [vmem:[#allocation104_spill] sm:$0xff] }
 0x14b   : > { %v21618_v2 = vcombine.low %v21595_v55, %v16692_v21  ;;  %v5410_v0 = vrot.slane %v5388_v62, %v14396_v9  ;;  %v21621_v62 = vld [vmem:[#allocation92_spill] sm:$0xff]  ;;  %v13539_v50 = vpop.f32.mrb[19].mxu1  ;;  %v5026_v19 = vcombine.low %v5004_v12, %v5011_v58  ;;  %v21652_v12 = vld [vmem:[#allocation163_spill] sm:$0xff] }
 0x14c   : > { %v5396_v17 = vrot.slane %v21617_v34, %v14396_v9  ;;  %v5417_v55 = vrot.slane %v5389_v23, %v14396_v9  ;;  %v5043_v41 = vcombine.low %v21621_v62, %v21620_v15  ;;  %v21625_v23 = vld [vmem:[#allocation113_spill] sm:$0xff]  ;;  %v21631_v62 = vld [vmem:[#allocation135_spill] sm:$0xff] }
 0x14d   : > { %v5403_v40 = vrot.slane %v21618_v2, %v14396_v9  ;;  %v5044_v2 = vcombine.low %v21623_v20, %v21622_v63  ;;  %v5045_v31 = vcombine.low %v21625_v23, %v21624_v42  ;;  %v16892_v42 = vsel %vm14429_vm1, %v4829_v52, %v4834_v51  ;;  %v21629_v52 = vld [vmem:[#allocation134_spill] sm:$0xff]  ;;  %v21633_v63 = vld [vmem:[#allocation137_spill] sm:$0xff]  ;;  %v21634_v20 = vld [vmem:[#allocation136_spill] sm:$0xff] }
 0x14e   : > { %13695 = vmatmul.mubr.msk.bf16.gmra.mrb[100].mxu0 %vm2417_vm2, %v4944_v27  ;;  %13677 = vmatmul.mubr.msk.bf16.gmra.mrb[100].mxu1 %vm2417_vm2, %v4527_v57  ;;  %v16857_v27 = vrot.slane %v4553_v32, %v14396_v9  ;;  %v4993_v57 = vcombine.low %v4985_v18, %v4992_v16  ;;  %v16872_v32 = vadd.f32 %v3295_v7, %v16633_v30  ;;  %v21626_v16 = vld [vmem:[#allocation116_spill] sm:$0xff]  ;;  %v21635_v23 = vld [vmem:[#allocation139_spill] sm:$0xff] }
 0x14f   : > { %13698 = vmatprep.mubr.msk.bf16.mxu0 %vm14327_vm4, %v21251_v36  ;;  %13680 = vmatprep.mubr.msk.bf16.mxu1 %vm14327_vm4, %v21251_v36  ;;  %v5418_v34 = vcombine.low %v5396_v17, %v5403_v40  ;;  %v5419_v35 = vcombine.low %v5410_v0, %v5417_v55  ;;  %v5027_v18 = vcombine.low %v5018_v13, %v5025_v10 }
 0x150   : > { %21619 = vst [vmem:[#allocation23_spill] sm:$0xff] %v16857_v27  ;;  %v5046_v15 = vcombine.low %v21627_v11, %v21626_v16  ;;  %v4568_v7 = vcombine.low %v4560_v48, %v16857_v27  ;;  %v4569_v17 = vcombine.low %v16782_v4, %v16861_v54  ;;  %v5053_v11 = vrot.slane %v5043_v41, %v14396_v9  ;;  %v21632_v41 = vld [vmem:[#allocation133_spill] sm:$0xff]  ;;  %v21653_v48 = vld [vmem:[#allocation162_spill] sm:$0xff] }
 0x151   : > { %v16882_v30 = vrot.slane %v5418_v34, %v14396_v9  ;;  %v16888_v40 = vrot.slane %v5419_v35, %v14396_v9  ;;  %v5060_v58 = vrot.slane %v5044_v2, %v14396_v9  ;;  %v5034_v13 = vrot.slane %v5026_v19, %v14396_v9  ;;  %v21654_v27 = vld [vmem:[#allocation165_spill] sm:$0xff] }
 0x152   : > { %v5041_v35 = vrot.slane %v5027_v18, %v14396_v9  ;;  %v5067_v10 = vrot.slane %v5045_v31, %v14396_v9  ;;  %v5074_v51 = vrot.slane %v5046_v15, %v14396_v9  ;;  %v16909_v0 = vrot.slane %v4569_v17, %v14396_v9  ;;  %v21636_v18 = vld [vmem:[#allocation138_spill] sm:$0xff]  ;;  %v21638_v17 = vld [vmem:[#allocation35_spill] sm:$0xff] }
 0x153   : > { %v5075_v19 = vcombine.low %v5053_v11, %v5060_v58  ;;  %v5093_v6 = vcombine.low %v21632_v41, %v21631_v62  ;;  %v5094_v2 = vcombine.low %v21634_v20, %v21633_v63  ;;  %v5095_v16 = vcombine.low %v21636_v18, %v21635_v23  ;;  %v21640_v23 = vld [vmem:[#allocation50_spill] sm:$0xff] }
 0x154   : > { %21628 = vst [vmem:[#allocation24_spill] sm:$0xff] %v16909_v0  ;;  %v5042_v50 = vcombine.low %v5034_v13, %v5041_v35  ;;  %v5076_v34 = vcombine.low %v5067_v10, %v5074_v51  ;;  %v4583_v15 = vrot.slane %v16909_v0, %v14396_v9  ;;  %v5143_v0 = vcombine.low %v21653_v48, %v21652_v12 }
 0x155   : > { %v5109_v35 = vrot.slane %v5093_v6, %v14396_v9  ;;  %v5116_v62 = vrot.slane %v5094_v2, %v14396_v9  ;;  %v5123_v41 = vrot.slane %v5095_v16, %v14396_v9 }
 0x156   : > { %13699 = vmatmul.mubr.msk.bf16.gmra.mrb[104].mxu0 %vm2417_vm2, %v4993_v57  ;;  %13681 = vmatmul.mubr.msk.bf16.gmra.mrb[104].mxu1 %vm2417_vm2, %v4568_v7  ;;  %v21630_v57 = vld [vmem:[#allocation117_spill] sm:$0xff]  ;;  %v21637_v7 = vld [vmem:[#allocation36_spill] sm:$0xff] }
 0x157   : > { %13702 = vmatprep.mubr.msk.bf16.mxu0 %vm14327_vm4, %v21251_v36  ;;  %13684 = vmatprep.mubr.msk.bf16.mxu1 %vm14327_vm4, %v21251_v36  ;;  %v5092_v31 = vcombine.low %v21630_v57, %v21629_v52  ;;  %v12916_v11 = vcombine.high %v21638_v17, %v21637_v7  ;;  %v5083_v52 = vrot.slane %v5075_v19, %v14396_v9  ;;  %v21643_v7 = vld [vmem:[#allocation51_spill] sm:$0xff] }
 0x158   : > { %v16932_v10 = vpop.f32.mrb[20].mxu0  ;;  %v3300_v51 = vpop.f32.mrb[20].mxu1  ;;  %v5090_v57 = vrot.slane %v5076_v34, %v14396_v9  ;;  %v5125_v55 = vcombine.low %v5116_v62, %v5123_v41  ;;  %v5165_v62 = vrot.slane %v5143_v0, %v14396_v9 }
 0x159   : > { %v5102_v13 = vrot.slane %v5092_v31, %v14396_v9  ;;  %v16939_v63 = vadd.f32 %v3300_v51, %v16706_v38  ;;  %v13496_v20 = vpop.f32.mrb[21].mxu0  ;;  %v13542_v19 = vpop.f32.mrb[21].mxu1  ;;  %v21639_v31 = vld [vmem:[#allocation30_spill] sm:$0xff]  ;;  %v5679_v38 = vrot.slane %v12916_v11, %v14396_v9  ;;  %v21651_v11 = vld [vmem:[#allocation160_spill] sm:$0xff] }
 0x15a   : > { %v21641_v6 = vcombine.low %v21639_v31, %v21640_v23  ;;  %v16957_v2 = vpop.f32.mrb[22].mxu0  ;;  %v3303_v16 = vpop.f32.mrb[22].mxu1  ;;  %v21648_v23 = vld [vmem:[#allocation159_spill] sm:$0xff]  ;;  %v5091_v58 = vcombine.low %v5083_v52, %v5090_v57 }
 0x15b   : > { %v16962_v51 = vadd.f32 %v3303_v16, %v16727_v29  ;;  %v13497_v20 = vpop.f32.mrb[23].mxu0  ;;  %v13543_v19 = vpop.f32.mrb[23].mxu1  ;;  %v21655_v29 = vld [vmem:[#allocation164_spill] sm:$0xff]  ;;  %v21658_v31 = vld [vmem:[#allocation59_spill] sm:$0xff] }
 0x15c   : > { %v16945_v18 = vrot.slane %v21641_v6, %v14396_v9  ;;  %v21649_v6 = vld [vmem:[#allocation140_spill] sm:$0xff]  ;;  %v5144_v16 = vcombine.low %v21655_v29, %v21654_v27  ;;  %v12960_v20 = vld [vmem:[%s20745_s1 + $0xe] sm:$0x3]  ;;  %v5139_v27 = vrot.slane %v5125_v55, %v14396_v9  ;;  %v21662_v55 = vld [vmem:[#allocation178_spill] sm:$0xff] }
 0x15d   : > { %21647 = vst [vmem:[#allocation27_spill] sm:$0xff] %v16962_v51  ;;  %v21656_v19 = vld [vmem:[#allocation100_spill] sm:$0xff]  ;;  %v6989_v12 = vsel %vm2457_vm0, %v12960_v20, 0  ;;  %v21667_v20 = vld [vmem:[#allocation181_spill] sm:$0xff] }
 0x15e   : > { %13703 = vmatmul.mubr.msk.bf16.gmra.mrb[108].mxu0 %vm2417_vm2, %v5042_v50  ;;  %21642 = vst [vmem:[#allocation25_spill] sm:$0xff] %v16945_v18  ;;  %v21644_v50 = vld [vmem:[#allocation52_spill] sm:$0xff]  ;;  %13685 = vmatmul.mubr.msk.bf16.gmra.mrb[108].mxu1 %vm2417_vm2, %v4583_v15  ;;  %v5124_v15 = vcombine.low %v5102_v13, %v5109_v35  ;;  %v5680_v13 = vcombine.low %v5679_v38, %v21656_v19  ;;  %v21659_v38 = vld [vmem:[#allocation78_spill] sm:$0xff]  ;;  %v21686_v18 = vld [vmem:[#allocation103_spill] sm:$0xff] }
 0x15f   : > { %v21645_v17 = vcombine.low %v21643_v7, %v21644_v50  ;;  %13706 = vmatprep.mubr.msk.bf16.mxu0 %vm14327_vm4, %v21251_v36  ;;  %13744 = vmatprep.mubr.msk.bf16.mxu1 %vm14327_vm4, %v21251_v36  ;;  %v5141_v7 = vcombine.low %v21649_v6, %v21648_v23  ;;  %v21650_v50 = vld [vmem:[#allocation161_spill] sm:$0xff]  ;;  %v21657_v35 = vld [vmem:[#allocation60_spill] sm:$0xff]  ;;  %v5172_v41 = vrot.slane %v5144_v16, %v14396_v9  ;;  %v21666_v16 = vld [vmem:[#allocation182_spill] sm:$0xff] }
 0x160   : > { %v5689_v23 = vcombine.low %v21658_v31, %v21657_v35  ;;  %v5132_v52 = vrot.slane %v5124_v15, %v14396_v9  ;;  %v21660_v31 = vld [vmem:[#allocation82_spill] sm:$0xff]  ;;  %v5687_v15 = vrot.slane %v5680_v13, %v14396_v9  ;;  %v5192_v35 = vcombine.low %v21667_v20, %v21666_v16  ;;  %v21687_v51 = vld [vmem:[#allocation109_spill] sm:$0xff] }
 0x161   : > { %v16951_v34 = vrot.slane %v21645_v17, %v14396_v9  ;;  %v5142_v17 = vcombine.low %v21651_v11, %v21650_v50  ;;  %v5151_v57 = vrot.slane %v5141_v7, %v14396_v9  ;;  %v21661_v50 = vcombine.low %v21659_v38, %v21660_v31  ;;  %v21663_v7 = vld [vmem:[#allocation166_spill] sm:$0xff]  ;;  %v21664_v11 = vld [vmem:[#allocation180_spill] sm:$0xff]  ;;  %v21669_v31 = vld [vmem:[#allocation183_spill] sm:$0xff] }
 0x162   : > { %v5190_v0 = vcombine.low %v21663_v7, %v21662_v55  ;;  %v21668_v38 = vld [vmem:[#allocation184_spill] sm:$0xff]  ;;  %v5140_v13 = vcombine.low %v5132_v52, %v5139_v27  ;;  %v5174_v6 = vcombine.low %v5165_v62, %v5172_v41  ;;  %v5688_v21 = vcombine.low %v21670_v49, %v5687_v15  ;;  %v21672_v55 = vld [vmem:[#allocation77_spill] sm:$0xff] }
 0x163   : > { %21646 = vst [vmem:[#allocation26_spill] sm:$0xff] %v16951_v34  ;;  %v5158_v48 = vrot.slane %v5142_v17, %v14396_v9  ;;  %v21665_v17 = vld [vmem:[#allocation179_spill] sm:$0xff]  ;;  %v5723_v61 = vcombine.low %v21687_v51, %v21686_v18 }
 0x164   : > { %v5191_v29 = vcombine.low %v21665_v17, %v21664_v11  ;;  %v5200_v11 = vrot.slane %v5190_v0, %v14396_v9  ;;  %v5188_v62 = vrot.slane %v5174_v6, %v14396_v9  ;;  %v21676_v6 = vld [vmem:[#allocation198_spill] sm:$0xff] }
 0x165   : > { %v5730_v51 = vrot.slane %v5723_v61, %v14396_v9 }
 0x166   : > { %13707 = vmatmul.mubr.msk.bf16.gmra.mrb[112].mxu0 %vm2417_vm2, %v5091_v58  ;;  %13745 = vmatmul.mubr.msk.bf16.vlgmr.msra.gmra.mrb[112].mxu1 %vm2417_vm2, %v21661_v50  ;;  %v5696_v58 = vrot.slane %v5689_v23, %v14396_v9  ;;  %v5193_v50 = vcombine.low %v21669_v31, %v21668_v38  ;;  %v5173_v23 = vcombine.low %v5151_v57, %v5158_v48  ;;  %v21677_v31 = vld [vmem:[#allocation185_spill] sm:$0xff] }
 0x167   : > { %13710 = vmatprep.mubr.msk.bf16.mxu0 %vm14327_vm4, %v21251_v36  ;;  %13748 = vmatprep.mubr.msk.bf16.mxu1 %vm14327_vm4, %v21251_v36  ;;  %v5207_v20 = vrot.slane %v5191_v29, %v14396_v9  ;;  %v5214_v38 = vrot.slane %v5192_v35, %v14396_v9 }
 0x168   : > { %13851 = vmatpush3.bf16.msra.mxu1 %v6989_v12  ;;  %v5697_v34 = vcombine.low %v5696_v58, %v21671_v28  ;;  %v21673_v12 = vld [vmem:[#allocation58_spill] sm:$0xff]  ;;  %v17014_v17 = vpop.f32.mrb[24].mxu0  ;;  %v3308_v16 = vpop.f32.mrb[24].mxu1  ;;  %v5221_v52 = vrot.slane %v5193_v50, %v14396_v9  ;;  %v5181_v48 = vrot.slane %v5173_v23, %v14396_v9  ;;  %v5239_v50 = vcombine.low %v21677_v31, %v21676_v6 }
 0x169   : > { %13958 = vmatprep.subr.bf16.mxu1 %v21251_v36  ;;  %v12917_v7 = vcombine.high %v21673_v12, %v21672_v55  ;;  %v17020_v57 = vadd.f32 %v3308_v16, %v16835_v25  ;;  %v13500_v49 = vpop.f32.mrb[25].mxu0  ;;  %v13546_v27 = vpop.f32.mrb[25].mxu1  ;;  %v21680_v55 = vld [vmem:[#allocation202_spill] sm:$0xff]  ;;  %v21681_v12 = vld [vmem:[#allocation201_spill] sm:$0xff] }
 0x16a   : > { %v17025_v41 = vpop.f32.mrb[26].mxu0  ;;  %v3311_v15 = vpop.f32.mrb[26].mxu1  ;;  %v5704_v58 = vrot.slane %v5697_v34, %v14396_v9  ;;  %v5241_v16 = vcombine.low %v21681_v12, %v21680_v55  ;;  %v21682_v34 = vld [vmem:[#allocation204_spill] sm:$0xff]  ;;  %v21683_v49 = vld [vmem:[#allocation203_spill] sm:$0xff]  ;;  %v5222_v27 = vcombine.low %v5200_v11, %v5207_v20  ;;  %v5249_v6 = vrot.slane %v5239_v50, %v14396_v9  ;;  %v21692_v12 = vld [vmem:[#allocation222_spill] sm:$0xff] }
 0x16b   : > { %21674 = vst [vmem:[#allocation217_spill] sm:$0xff] %v17020_v57  ;;  %v5713_v25 = vrot.slane %v12917_v7, %v14396_v9  ;;  %v17033_v0 = vadd.f32 %v3311_v15, %v16863_v26  ;;  %v13501_v29 = vpop.f32.mrb[27].mxu0  ;;  %v13547_v35 = vpop.f32.mrb[27].mxu1  ;;  %v5242_v7 = vcombine.low %v21683_v49, %v21682_v34  ;;  %v5223_v26 = vcombine.low %v5214_v38, %v5221_v52  ;;  %v21691_v50 = vld [vmem:[#allocation219_spill] sm:$0xff]  ;;  %v21694_v49 = vld [vmem:[#allocation224_spill] sm:$0xff] }
 0x16c   : > { %v5189_v15 = vcombine.low %v5181_v48, %v5188_v62  ;;  %v21684_v29 = vld [vmem:[#allocation128_spill] sm:$0xff]  ;;  %v5230_v55 = vrot.slane %v5222_v27, %v14396_v9  ;;  %v21688_v48 = vld [vmem:[#allocation218_spill] sm:$0xff]  ;;  %v21689_v62 = vld [vmem:[#allocation205_spill] sm:$0xff] }
 0x16d   : > { %21675 = vst [vmem:[#allocation149_spill] sm:$0xff] %v17033_v0  ;;  %v5705_v35 = vcombine.low %v21684_v29, %v5704_v58  ;;  %v21685_v0 = vld [vmem:[#allocation144_spill] sm:$0xff]  ;;  %v5237_v11 = vrot.slane %v5223_v26, %v14396_v9  ;;  %v5288_v58 = vcombine.low %v21689_v62, %v21688_v48  ;;  %v21696_v27 = vld [vmem:[#allocation155_spill] sm:$0xff]  ;;  %v21697_v26 = vld [vmem:[#allocation170_spill] sm:$0xff] }
 0x16e   : > { %13711 = vmatmul.mubr.msk.bf16.gmra.mrb[116].mxu0 %vm2417_vm2, %v5140_v13  ;;  %13749 = vmatmul.mubr.msk.bf16.gmra.mrb[116].mxu1 %vm2417_vm2, %v5688_v21  ;;  %v21678_v13 = vld [vmem:[#allocation200_spill] sm:$0xff]  ;;  %v21679_v21 = vld [vmem:[#allocation199_spill] sm:$0xff]  ;;  %v5714_v57 = vcombine.low %v21685_v0, %v5713_v25 }
 0x16f   : > { %13714 = vmatprep.mubr.msk.bf16.mxu0 %vm14327_vm4, %v21251_v36  ;;  %13752 = vmatprep.mubr.msk.bf16.mxu1 %vm14327_vm4, %v21251_v36  ;;  %v5240_v23 = vcombine.low %v21679_v21, %v21678_v13  ;;  %v5263_v13 = vrot.slane %v5241_v16, %v14396_v9  ;;  %v5270_v21 = vrot.slane %v5242_v7, %v14396_v9  ;;  %v21690_v25 = vld [vmem:[#allocation220_spill] sm:$0xff]  ;;  %v21693_v16 = vld [vmem:[#allocation221_spill] sm:$0xff]  ;;  %v21695_v7 = vld [vmem:[#allocation223_spill] sm:$0xff] }
 0x170   : > { %v5721_v18 = vrot.slane %v5714_v57, %v14396_v9  ;;  %v5238_v52 = vcombine.low %v5230_v55, %v5237_v11  ;;  %v5290_v34 = vcombine.low %v21693_v16, %v21692_v12  ;;  %v5291_v57 = vcombine.low %v21695_v7, %v21694_v49  ;;  %v21698_v29 = vld [vmem:[#allocation108_spill] sm:$0xff]  ;;  %v21702_v49 = vld [vmem:[#allocation225_spill] sm:$0xff] }
 0x171   : > { %v5256_v31 = vrot.slane %v5240_v23, %v14396_v9  ;;  %v5272_v38 = vcombine.low %v5263_v13, %v5270_v21  ;;  %v5289_v23 = vcombine.low %v21691_v50, %v21690_v25 }
 0x172   : > { %v5722_v61 = vcombine.low %v5721_v18, %v21696_v27  ;;  %v5298_v18 = vrot.slane %v5288_v58, %v14396_v9  ;;  %v5312_v25 = vrot.slane %v5290_v34, %v14396_v9  ;;  %v21701_v34 = vld [vmem:[#allocation7_spill] sm:$0xff]  ;;  %v21704_v27 = vld [vmem:[#allocation8_spill] sm:$0xff] }
 0x173   : > { %v5271_v20 = vcombine.low %v5249_v6, %v5256_v31  ;;  %v5286_v13 = vrot.slane %v5272_v38, %v14396_v9  ;;  %v5337_v7 = vcombine.low %v21702_v49, %v21701_v34  ;;  %v21712_v34 = vld [vmem:[#allocation190_spill] sm:$0xff] }
 0x175   : > { %v5279_v31 = vrot.slane %v5271_v20, %v14396_v9  ;;  %v5319_v20 = vrot.slane %v5291_v57, %v14396_v9  ;;  %v21703_v57 = vld [vmem:[#allocation9_spill] sm:$0xff] }
 0x176   : > { %13715 = vmatmul.mubr.msk.bf16.gmra.mrb[120].mxu0 %vm2417_vm2, %v5189_v15  ;;  %13753 = vmatmul.mubr.msk.bf16.gmra.mrb[120].mxu1 %vm2417_vm2, %v5705_v35  ;;  %v5731_v15 = vcombine.low %v21697_v26, %v5730_v51  ;;  %v21699_v35 = vld [vmem:[#allocation107_spill] sm:$0xff]  ;;  %v5305_v51 = vrot.slane %v5289_v23, %v14396_v9 }
 0x177   : > { %13718 = vmatprep.mubr.msk.bf16.mxu0 %vm14327_vm4, %v21251_v36  ;;  %13756 = vmatprep.mubr.msk.bf16.mxu1 %vm14327_vm4, %v21251_v36  ;;  %v12918_v6 = vcombine.high %v21699_v35, %v21698_v29  ;;  %v5287_v16 = vcombine.low %v5279_v31, %v5286_v13  ;;  %v21705_v29 = vld [vmem:[#allocation11_spill] sm:$0xff]  ;;  %v21706_v35 = vld [vmem:[#allocation10_spill] sm:$0xff] }
 0x178   : > { %v17077_v21 = vpop.f32.mrb[28].mxu0  ;;  %v21711_v13 = vld [vmem:[#allocation175_spill] sm:$0xff] }
 0x179   : > { %v3316_v55 = vpop.f32.mrb[28].mxu1  ;;  %v13504_v48 = vpop.f32.mrb[29].mxu0 }
 0x17a   : > { %v17080_v11 = vadd.f32 %v3316_v55, %v16932_v10  ;;  %v13550_v62 = vpop.f32.mrb[29].mxu1  ;;  %v17087_v50 = vpop.f32.mrb[30].mxu0  ;;  %v5738_v10 = vrot.slane %v5731_v15, %v14396_v9  ;;  %v5339_v15 = vcombine.low %v21706_v35, %v21705_v29  ;;  %v21707_v55 = vld [vmem:[#allocation13_spill] sm:$0xff] }
 0x17b   : > { %v3319_v38 = vpop.f32.mrb[30].mxu1  ;;  %v13505_v23 = vpop.f32.mrb[31].mxu0  ;;  %v5321_v62 = vcombine.low %v5312_v25, %v5319_v20 }
 0x17c   : > { %v17095_v58 = vadd.f32 %v3319_v38, %v16957_v2  ;;  %v13551_v12 = vpop.f32.mrb[31].mxu1  ;;  %v5320_v2 = vcombine.low %v5298_v18, %v5305_v51  ;;  %v21709_v38 = vld [vmem:[#allocation132_spill] sm:$0xff]  ;;  %v5361_v29 = vrot.slane %v5339_v15, %v14396_v9 }
 0x17d   : > { %v5757_v23 = vcombine.low %v21709_v38, %v21523_v56  ;;  %v21710_v12 = vld [vmem:[#allocation151_spill] sm:$0xff]  ;;  %v5335_v56 = vrot.slane %v5321_v62, %v14396_v9  ;;  %v12937_v38 = vld.sshfl [vmem:[%s14392_s28 + $0x78] sm:$0x33 pattern:$0x75316420] }
 0x17e   : > { %13719 = vmatmul.mubr.msk.bf16.gmra.mrb[124].mxu0 %vm2417_vm2, %v5238_v52  ;;  %13757 = vmatmul.mubr.msk.bf16.gmra.mrb[124].mxu1 %vm2417_vm2, %v5722_v61  ;;  %v5747_v52 = vrot.slane %v12918_v6, %v14396_v9  ;;  %21700 = vst [vmem:[#allocation130_spill] sm:$0xff] %v17095_v58  ;;  %v5338_v61 = vcombine.low %v21704_v27, %v21703_v57  ;;  %v21708_v6 = vld [vmem:[#allocation12_spill] sm:$0xff] }
 0x17f   : > { %13722 = vmatprep.mubr.msk.bf16.mxu0 %vm14327_vm4, %v21251_v36  ;;  %13760 = vmatprep.mubr.msk.bf16.mxu1 %vm14327_vm4, %v21251_v36  ;;  %v5340_v48 = vcombine.low %v21708_v6, %v21707_v55  ;;  %v12919_v31 = vcombine.high %v21710_v12, %v21527_v33  ;;  %v5739_v58 = vcombine.low %v5738_v10, %v21711_v13  ;;  %v21715_v55 = vld [vmem:[#allocation196_spill] sm:$0xff] }
 0x180   : > { %v5748_v49 = vcombine.low %v5747_v52, %v21712_v34  ;;  %v5347_v57 = vrot.slane %v5337_v7, %v14396_v9  ;;  %v5354_v27 = vrot.slane %v5338_v61, %v14396_v9  ;;  %v5328_v18 = vrot.slane %v5320_v2, %v14396_v9  ;;  %v21714_v61 = vld [vmem:[#allocation212_spill] sm:$0xff]  ;;  %v21716_v2 = vld [vmem:[#allocation177_spill] sm:$0xff] }
 0x181   : > { %v5368_v35 = vrot.slane %v5340_v48, %v14396_v9  ;;  %v5765_v33 = vrot.slane %v5757_v23, %v14396_v9  ;;  %v5772_v51 = vrot.slane %v12919_v31, %v14396_v9  ;;  %v5790_v62 = vcombine.low %v21716_v2, %v15626_v37 }
 0x182   : > { %v5755_v25 = vrot.slane %v5748_v49, %v14396_v9  ;;  %v5369_v20 = vcombine.low %v5347_v57, %v5354_v27  ;;  %v5336_v52 = vcombine.low %v5328_v18, %v5335_v56  ;;  %v6126_v56 = vcombine.high %v12937_v38, %v12937_v38 }
 0x183   : > { %v5370_v10 = vcombine.low %v5361_v29, %v5368_v35  ;;  %v5774_v15 = vcombine.low %v21714_v61, %v5772_v51  ;;  %v17155_v51 = vcombine.high %v16782_v4, %v16782_v4 }
 0x184   : > { %v5756_v6 = vcombine.low %v5755_v25, %v21715_v55  ;;  %v5377_v13 = vrot.slane %v5369_v20, %v14396_v9  ;;  %v17160_v20 = vrot.slane %v12937_v38, %v14396_v9 }
 0x185   : > { %v5384_v49 = vrot.slane %v5370_v10, %v14396_v9  ;;  %v5788_v35 = vrot.slane %v5774_v15, %v14396_v9  ;;  %v17163_v10 = vrot.slane %v6126_v56, %v14396_v9  ;;  %v4837_v15 = vshrl.u32 %v16861_v54, 16 }
 0x186   : > { %13723 = vmatmul.mubr.msk.bf16.gmra.mrb[128].mxu0 %vm2417_vm2, %v5287_v16  ;;  %13761 = vmatmul.mubr.msk.bf16.gmra.mrb[128].mxu1 %vm2417_vm2, %v5739_v58  ;;  %v21713_v16 = vld [vmem:[#allocation210_spill] sm:$0xff]  ;;  %v4842_v55 = vshll.u32 %v17155_v51, 16  ;;  %v6624_v2 = vshrl.u32 %v17160_v20, 16 }
 0x187   : > { %13726 = vmatprep.mubr.msk.bf16.mxu0 %vm14327_vm4, %v21251_v36  ;;  %13764 = vmatprep.mubr.msk.bf16.mxu1 %vm14327_vm4, %v21251_v36  ;;  %v5773_v7 = vcombine.low %v5765_v33, %v21713_v16  ;;  %v5797_v33 = vrot.slane %v5790_v62, %v14396_v9  ;;  %v5385_v25 = vcombine.low %v5377_v13, %v5384_v49  ;;  %v6629_v62 = vshll.u32 %v17163_v10, 16 }
 0x188   : > { %v17131_v48 = vpop.f32.mrb[32].mxu0 }
 0x189   : > { %v3324_v58 = vpop.f32.mrb[32].mxu1  ;;  %v13508_v12 = vpop.f32.mrb[33].mxu0  ;;  %v5781_v29 = vrot.slane %v5773_v7, %v14396_v9 }
 0x18a   : > { %v17137_v23 = vadd.f32 %v3324_v58, %v17014_v17  ;;  %v13554_v31 = vpop.f32.mrb[33].mxu1  ;;  %v17141_v57 = vpop.f32.mrb[34].mxu0  ;;  %v4844_v12 = vsel %vm14429_vm1, %v4837_v15, %v4842_v55 }
 0x18b   : > { %v3327_v27 = vpop.f32.mrb[34].mxu1  ;;  %v13509_v17 = vpop.f32.mrb[35].mxu0  ;;  %v5435_v49 = vcombine.low %v16892_v42, %v4844_v12 }
 0x18c   : > { %v17147_v37 = vadd.f32 %v3327_v27, %v17025_v41  ;;  %v13555_v18 = vpop.f32.mrb[35].mxu1  ;;  %v5789_v41 = vcombine.low %v5781_v29, %v5788_v35  ;;  %v21719_v27 = vld [vmem:[#allocation216_spill] sm:$0xff]  ;;  %v21720_v35 = vld [vmem:[#allocation234_spill] sm:$0xff] }
 0x18d   : > { %v5824_v29 = vcombine.low %v21719_v27, %v15904_v14 }
 0x18e   : > { %13727 = vmatmul.mubr.msk.bf16.gmra.mrb[132].mxu0 %vm2417_vm2, %v5336_v52  ;;  %13765 = vmatmul.mubr.msk.bf16.gmra.mrb[132].mxu1 %vm2417_vm2, %v5756_v6  ;;  %v21717_v52 = vld [vmem:[#allocation232_spill] sm:$0xff]  ;;  %v21718_v6 = vld [vmem:[#allocation195_spill] sm:$0xff] }
 0x18f   : > { %13730 = vmatprep.mubr.msk.bf16.mxu0 %vm14327_vm4, %v21251_v36  ;;  %13768 = vmatprep.mubr.msk.bf16.mxu1 %vm14327_vm4, %v21251_v36  ;;  %v5798_v7 = vcombine.low %v21717_v52, %v5797_v33  ;;  %v12920_v58 = vcombine.high %v21718_v6, %v15758_v59  ;;  %v6631_v59 = vsel %vm14429_vm1, %v6624_v2, %v6629_v62 }
 0x190   : > { %v6886_v33 = vcombine.low %v4844_v12, %v6631_v59  ;;  %v21722_v2 = vcombine.low %v16882_v30, %v16888_v40  ;;  %v5442_v62 = vrot.slane %v5435_v49, %v14396_v9  ;;  %v5831_v12 = vrot.slane %v5824_v29, %v14396_v9  ;;  %v21724_v49 = vld [vmem:[#allocation239_spill] sm:$0xff] }
 0x191   : > { %v5805_v38 = vrot.slane %v5798_v7, %v14396_v9  ;;  %v5814_v31 = vrot.slane %v12920_v58, %v14396_v9  ;;  %v21723_v30 = vcombine.low %v16829_v44, %v16892_v42  ;;  %v21725_v29 = vld [vmem:[#allocation243_spill] sm:$0xff]  ;;  %v12921_v44 = vcombine.high %v14485_v60, %v14495_v3  ;;  %v12974_v60 = vld [vmem:[%s20745_s1 + $0x10] sm:$0x3] }
 0x192   : > { %v5449_v59 = vrot.slane %v5442_v62, %v14396_v9 }
 0x193   : > { %v5806_v17 = vcombine.low %v21720_v35, %v5805_v38  ;;  %v17213_v40 = vrot.slane %v21723_v30, %v14396_v9  ;;  %v5832_v35 = vcombine.low %v5831_v12, %v21725_v29  ;;  %v21730_v30 = vld [vmem:[#allocation244_spill] sm:$0xff] }
 0x195   : > { %v5839_v42 = vrot.slane %v5832_v35, %v14396_v9  ;;  %v12922_v35 = vcombine.high %v16653_v1, %v16656_v45 }
 0x196   : > { %13731 = vmatmul.mubr.msk.bf16.gmra.mrb[136].mxu0 %vm2417_vm2, %v5385_v25  ;;  %13769 = vmatmul.mubr.msk.bf16.gmra.mrb[136].mxu1 %vm2417_vm2, %v5789_v41  ;;  %v21721_v25 = vld [vmem:[#allocation238_spill] sm:$0xff] }
 0x197   : > { %13734 = vmatprep.mubr.msk.bf16.mxu0 %vm14327_vm4, %v21251_v36  ;;  %13772 = vmatprep.mubr.msk.bf16.mxu1 %vm14327_vm4, %v21251_v36  ;;  %v5815_v41 = vcombine.low %v5814_v31, %v21721_v25 }
 0x198   : > { %v17184_v13 = vpop.f32.mrb[36].mxu0 }
 0x199   : > { %v3332_v18 = vpop.f32.mrb[36].mxu1  ;;  %v13512_v56 = vpop.f32.mrb[37].mxu0 }
 0x19a   : > { %v17192_v7 = vadd.f32 %v3332_v18, %v17077_v21  ;;  %v13558_v15 = vpop.f32.mrb[37].mxu1  ;;  %v17194_v55 = vpop.f32.mrb[38].mxu0  ;;  %v5822_v21 = vrot.slane %v5815_v41, %v14396_v9 }
 0x19b   : > { %v3335_v6 = vpop.f32.mrb[38].mxu1  ;;  %v13513_v58 = vpop.f32.mrb[39].mxu0  ;;  %v21727_v15 = vld [vmem:[#allocation123_spill] sm:$0xff] }
 0x19c   : > { %v17201_v14 = vadd.f32 %v3335_v6, %v17087_v50  ;;  %v13559_v38 = vpop.f32.mrb[39].mxu1  ;;  %v17216_v50 = vrot.slane %v6886_v33, %v14396_v9  ;;  %v5823_v27 = vcombine.low %v21724_v49, %v5822_v21  ;;  %v21726_v33 = vld [vmem:[#allocation121_spill] sm:$0xff]  ;;  %v21728_v6 = vld [vmem:[#allocation122_spill] sm:$0xff] }
 0x19d   : > { %v6185_v41 = vcombine.low %v21656_v19, %v21726_v33  ;;  %v6186_v58 = vcombine.low %v21728_v6, %v21727_v15  ;;  %v21731_v49 = vld [vmem:[#allocation245_spill] sm:$0xff] }
 0x19e   : > { %13735 = vmatmul.mubr.msk.bf16.gmra.mrb[140].mxu0 %vm2417_vm2, %v21722_v2  ;;  %13773 = vmatmul.mubr.msk.bf16.gmra.mrb[140].mxu1 %vm2417_vm2, %v5806_v17  ;;  %v5848_v17 = vrot.slane %v12921_v44, %v14396_v9  ;;  %v21729_v2 = vld [vmem:[#allocation31_spill] sm:$0xff] }
 0x19f   : > { %13738 = vmatprep.mubr.msk.bf16.mxu0 %vm14327_vm4, %v21251_v36  ;;  %13776 = vmatprep.mubr.msk.bf16.mxu1 %vm14327_vm4, %v21251_v36  ;;  %v5858_v62 = vcombine.low %v21729_v2, %v16656_v45 }
 0x1a6   : > { %13739 = vmatmul.mubr.msk.bf16.gmra.mrb[144].mxu0 %vm2417_vm2, %v5449_v59  ;;  %13777 = vmatmul.mubr.msk.bf16.gmra.mrb[144].mxu1 %vm2417_vm2, %v5823_v27  ;;  %v5840_v59 = vcombine.low %v21730_v30, %v5839_v42  ;;  %v5849_v27 = vcombine.low %v21731_v49, %v5848_v17  ;;  %v6193_v42 = vrot.slane %v6185_v41, %v14396_v9  ;;  %v21734_v30 = vld [vmem:[#allocation147_spill] sm:$0xff] }
 0x1a7   : > { %13798 = vmatprep.mubr.msk.bf16.mxu0 %vm14327_vm4, %v21251_v36  ;;  %13780 = vmatprep.mubr.msk.bf16.mxu1 %vm14327_vm4, %v21251_v36  ;;  %v6200_v17 = vrot.slane %v6186_v58, %v14396_v9 }
 0x1a8   : > { %v17235_v18 = vpop.f32.mrb[40].mxu0 }
 0x1a9   : > { %v3340_v3 = vpop.f32.mrb[40].mxu1  ;;  %v13516_v56 = vpop.f32.mrb[41].mxu0 }
 0x1aa   : > { %v17247_v38 = vadd.f32 %v3340_v3, %v17131_v48  ;;  %v13562_v12 = vpop.f32.mrb[41].mxu1  ;;  %v2578_v21 = vpop.f32.mrb[42].mxu0  ;;  %v7357_v56 = vsel %vm2457_vm0, %v12974_v60, 0  ;;  %v21732_v48 = vcombine.low %v16748_v47, %v16801_v53  ;;  %v5867_v3 = vrot.slane %v5858_v62, %v14396_v9 }
 0x1ab   : > { %v3343_v44 = vpop.f32.mrb[42].mxu1  ;;  %v13517_v19 = vpop.f32.mrb[43].mxu0  ;;  %v5856_v60 = vrot.slane %v5849_v27, %v14396_v9  ;;  %v21733_v47 = vcombine.low %v16714_v8, %v16782_v4  ;;  %v6201_v62 = vcombine.low %v6193_v42, %v6200_v17  ;;  %v6202_v12 = vcombine.low %v21671_v28, %v21685_v0 }
 0x1ac   : > { %v17255_v33 = vadd.f32 %v3343_v44, %v17141_v57  ;;  %v13563_v15 = vpop.f32.mrb[43].mxu1  ;;  %v17267_v57 = vrot.slane %v12922_v35, %v14396_v9  ;;  %vm9337_vm0 = vcmask 1043456  }
 0x1ad   : > { %v17273_v53 = vrot.slane %v21733_v47, %v14396_v9 }
 0x1ae   : > { %13799 = vmatmul.mubr.msk.bf16.vlgmr.msra.gmra.mrb[148].mxu0 %vm2417_vm2, %v21732_v48  ;;  %13781 = vmatmul.mubr.msk.bf16.gmra.mrb[148].mxu1 %vm2417_vm2, %v5840_v59  ;;  %v21735_v59 = vld [vmem:[#allocation145_spill] sm:$0xff]  ;;  %v21737_v48 = vld [vmem:[#allocation54_spill] sm:$0xff] }
 0x1af   : > { %13905 = vmatpush3.bf16.msra.mxu0 %v7357_v56  ;;  %13784 = vmatprep.mubr.msk.bf16.mxu1 %vm14327_vm4, %v21251_v36  ;;  %v6203_v27 = vcombine.low %v21735_v59, %v21734_v30  ;;  %v21736_v56 = vld [vmem:[#allocation34_spill] sm:$0xff]  ;;  %v5882_v47 = vcombine.low %v21737_v48, %v5867_v3  ;;  %v21738_v30 = vld [vmem:[#allocation148_spill] sm:$0xff] }
 0x1b0   : > { %13802 = vmatprep.mubr.msk.bf16.mxu0 %vm14327_vm4, %v21251_v36  ;;  %14034 = vmatprep.subr.bf16.mxu0 %v21251_v36  ;;  %v5857_v15 = vcombine.low %v5856_v60, %v21736_v56  ;;  %v6219_v59 = vcombine.low %v21738_v30, %v21697_v26 }
 0x1b1   : > { %v4059_v41 = vpop.f32.mrb[44].mxu0  ;;  %v3348_v6 = vpop.f32.mrb[44].mxu1  ;;  %v6217_v60 = vrot.slane %v6203_v27, %v14396_v9  ;;  %v5890_v3 = vrot.slane %v5882_v47, %v14396_v9  ;;  %v21739_v27 = vld [vmem:[#allocation172_spill] sm:$0xff] }
 0x1b2   : > { %v17281_v58 = vadd.f32 %v4059_v41, %v16626_v24  ;;  %v13584_v2 = vpop.f32.mrb[45].mxu0  ;;  %v17288_v35 = vadd.f32 %v3348_v6, %v17184_v13  ;;  %v13566_v44 = vpop.f32.mrb[45].mxu1  ;;  %v5883_v24 = vcombine.low %v17267_v57, %v17273_v53  ;;  %v6210_v13 = vrot.slane %v6202_v12, %v14396_v9 }
 0x1b3   : > { %v4062_v19 = vpop.f32.mrb[46].mxu0  ;;  %v3351_v41 = vpop.f32.mrb[46].mxu1  ;;  %v21740_v44 = vld [vmem:[#allocation171_spill] sm:$0xff]  ;;  %v6227_v26 = vrot.slane %v6219_v59, %v14396_v9  ;;  %v21744_v59 = vld [vmem:[#allocation193_spill] sm:$0xff] }
 0x1b4   : > { %v17295_v42 = vadd.f32 %v4062_v19, %v16641_v46  ;;  %v13585_v28 = vpop.f32.mrb[47].mxu0  ;;  %v17298_v0 = vadd.f32 %v3351_v41, %v17194_v55  ;;  %v13567_v17 = vpop.f32.mrb[47].mxu1  ;;  %v5897_v46 = vrot.slane %v5883_v24, %v14396_v9  ;;  %v6218_v12 = vcombine.low %v6210_v13, %v6217_v60 }
 0x1b5   : > { %v6220_v19 = vcombine.low %v21740_v44, %v21739_v27  ;;  %v6237_v27 = vcombine.low %v21712_v34, %v21744_v59  ;;  %v21745_v44 = vld [vmem:[#allocation84_spill] sm:$0xff] }
 0x1b6   : > { %13803 = vmatmul.mubr.msk.bf16.gmra.mrb[152].mxu0 %vm2417_vm2, %v6201_v62  ;;  %13785 = vmatmul.mubr.msk.bf16.gmra.mrb[152].mxu1 %vm2417_vm2, %v5857_v15  ;;  %v5898_v24 = vcombine.low %v5890_v3, %v5897_v46 }
 0x1b7   : > { %13806 = vmatprep.mubr.msk.bf16.mxu0 %vm14327_vm4, %v21251_v36  ;;  %13788 = vmatprep.mubr.msk.bf16.mxu1 %vm14327_vm4, %v21251_v36  ;;  %v6234_v60 = vrot.slane %v6220_v19, %v14396_v9 }
 0x1b9   : > { %v4067_v55 = vpop.f32.mrb[48].mxu0  ;;  %v3356_v6 = vpop.f32.mrb[48].mxu1 }
 0x1ba   : > { %v17311_v2 = vadd.f32 %v4067_v55, %v16717_v43  ;;  %v13588_v62 = vpop.f32.mrb[49].mxu0  ;;  %v17318_v56 = vadd.f32 %v3356_v6, %v17235_v18  ;;  %v13570_v15 = vpop.f32.mrb[49].mxu1  ;;  %v6235_v6 = vcombine.low %v6227_v26, %v6234_v60  ;;  %v6251_v26 = vrot.slane %v6237_v27, %v14396_v9 }
 0x1bb   : > { %v4070_v47 = vpop.f32.mrb[50].mxu0  ;;  %v3359_v41 = vpop.f32.mrb[50].mxu1  ;;  %v21742_v62 = vld [vmem:[#allocation189_spill] sm:$0xff] }
 0x1bc   : > { %v17321_v28 = vadd.f32 %v4070_v47, %v16740_v5  ;;  %v13589_v43 = vpop.f32.mrb[51].mxu0  ;;  %v17323_v17 = vadd.f32 %v3359_v41, %v2578_v21  ;;  %v13571_v13 = vpop.f32.mrb[51].mxu1  ;;  %v21741_v5 = vcombine.high %v16714_v8, %v16782_v4  ;;  %v21746_v41 = vld [vmem:[#allocation126_spill] sm:$0xff] }
 0x1be   : > { %13807 = vmatmul.mubr.msk.bf16.gmra.mrb[156].mxu0 %vm2417_vm2, %v6218_v12  ;;  %13789 = vmatmul.mubr.msk.bf16.gmra.mrb[156].mxu1 %vm2417_vm2, %v5898_v24  ;;  %v5906_v18 = vrot.slane %v21741_v5, %v14396_v9  ;;  %v21743_v12 = vld [vmem:[#allocation174_spill] sm:$0xff] }
 0x1bf   : > { %13810 = vmatprep.mubr.msk.bf16.mxu0 %vm14327_vm4, %v21251_v36  ;;  %13792 = vmatprep.mubr.msk.bf16.mxu1 %vm14327_vm4, %v21251_v36  ;;  %v6236_v30 = vcombine.low %v21743_v12, %v21742_v62  ;;  %v6254_v62 = vcombine.low %v21713_v16, %v21714_v61  ;;  %v21749_v12 = vld [vmem:[#allocation56_spill] sm:$0xff] }
 0x1c0   : > { %v5913_v15 = vrot.slane %v5906_v18, %v14396_v9 }
 0x1c1   : > { %v4075_v21 = vpop.f32.mrb[52].mxu0  ;;  %v3364_v3 = vpop.f32.mrb[52].mxu1  ;;  %v6244_v34 = vrot.slane %v6236_v30, %v14396_v9  ;;  %v6268_v61 = vrot.slane %v6254_v62, %v14396_v9 }
 0x1c2   : > { %v17338_v46 = vadd.f32 %v4075_v21, %v16846_v22  ;;  %v13592_v55 = vpop.f32.mrb[53].mxu0  ;;  %v17345_v19 = vadd.f32 %v3364_v3, %v21745_v44  ;;  %v13574_v8 = vpop.f32.mrb[53].mxu1  ;;  %v21747_v3 = vld [vmem:[#allocation209_spill] sm:$0xff]  ;;  %v21750_v44 = vld [vmem:[#allocation71_spill] sm:$0xff] }
 0x1c3   : > { %v4078_v4 = vpop.f32.mrb[54].mxu0  ;;  %v3367_v47 = vpop.f32.mrb[54].mxu1  ;;  %v6252_v21 = vcombine.low %v6244_v34, %v6251_v26  ;;  %v21748_v55 = vld [vmem:[#allocation194_spill] sm:$0xff]  ;;  %v21751_v8 = vld [vmem:[#allocation53_spill] sm:$0xff] }
 0x1c4   : > { %v17349_v24 = vadd.f32 %v4078_v4, %v16872_v32  ;;  %v13593_v22 = vpop.f32.mrb[55].mxu0  ;;  %v17352_v43 = vadd.f32 %v3367_v47, %v21746_v41  ;;  %v13575_v13 = vpop.f32.mrb[55].mxu1  ;;  %v6699_v4 = vcombine.low %v21751_v8, %v21750_v44  ;;  %v21753_v47 = vld [vmem:[#allocation72_spill] sm:$0xff]  ;;  %v21759_v44 = vld [vmem:[#allocation229_spill] sm:$0xff] }
 0x1c5   : > { %v21754_v22 = vld [vmem:[#allocation27_spill] sm:$0xff]  ;;  %v21760_v8 = vld [vmem:[#allocation213_spill] sm:$0xff] }
 0x1c6   : > { %13811 = vmatmul.mubr.msk.bf16.gmra.mrb[160].mxu0 %vm2417_vm2, %v6235_v6  ;;  %13793 = vmatmul.mubr.msk.bf16.gmra.mrb[160].mxu1 %vm2417_vm2, %v5913_v15  ;;  %v6253_v6 = vcombine.low %v21748_v55, %v21747_v3  ;;  %v21752_v15 = vld [vmem:[#allocation73_spill] sm:$0xff]  ;;  %v6707_v3 = vrot.slane %v6699_v4, %v14396_v9 }
 0x1c7   : > { %13814 = vmatprep.mubr.msk.bf16.mxu0 %vm14327_vm4, %v21251_v36  ;;  %13852 = vmatprep.mubr.msk.bf16.mxu1 %vm14327_vm4, %v21251_v36 }
 0x1c8   : > { %v6261_v16 = vrot.slane %v6253_v6, %v14396_v9 }
 0x1c9   : > { %v4083_v32 = vpop.f32.mrb[56].mxu0  ;;  %v3372_v60 = vpop.f32.mrb[56].mxu1 }
 0x1ca   : > { %v17363_v5 = vadd.f32 %v4083_v32, %v16939_v63  ;;  %v13596_v18 = vpop.f32.mrb[57].mxu0  ;;  %v17370_v30 = vadd.f32 %v3372_v60, %v21749_v12  ;;  %v13578_v27 = vpop.f32.mrb[57].mxu1  ;;  %v6700_v63 = vcombine.low %v21753_v47, %v21752_v15  ;;  %v21755_v32 = vld [vmem:[#allocation25_spill] sm:$0xff]  ;;  %v21756_v60 = vld [vmem:[#allocation26_spill] sm:$0xff]  ;;  %v6270_v15 = vcombine.low %v21760_v8, %v21759_v44 }
 0x1cb   : > { %v4086_v59 = vpop.f32.mrb[58].mxu0  ;;  %v3375_v34 = vpop.f32.mrb[58].mxu1  ;;  %v21757_v18 = vcombine.low %v21755_v32, %v21756_v60  ;;  %v21758_v12 = vld [vmem:[#allocation217_spill] sm:$0xff]  ;;  %v6269_v27 = vcombine.low %v6261_v16, %v6268_v61  ;;  %v21761_v47 = vld [vmem:[#allocation230_spill] sm:$0xff] }
 0x1cc   : > { %v17377_v41 = vadd.f32 %v4086_v59, %v21754_v22  ;;  %v13597_v13 = vpop.f32.mrb[59].mxu0  ;;  %v13579_v26 = vpop.f32.mrb[59].mxu1  ;;  %v6714_v55 = vrot.slane %v6700_v63, %v14396_v9  ;;  %v6271_v22 = vcombine.low %v21761_v47, %v21717_v52  ;;  %v21763_v32 = vld [vmem:[#allocation74_spill] sm:$0xff] }
 0x1cd   : > { %v21762_v26 = vld [vmem:[#allocation93_spill] sm:$0xff] }
 0x1ce   : > { %13815 = vmatmul.mubr.msk.bf16.gmra.mrb[164].mxu0 %vm2417_vm2, %v6252_v21  ;;  %13853 = vmatmul.mubr.msk.bf16.vlgmr.msra.gmra.mrb[164].mxu1 %vm2417_vm2, %v21757_v18  ;;  %v6715_v34 = vcombine.low %v6707_v3, %v6714_v55  ;;  %v6716_v60 = vcombine.low %v21763_v32, %v21762_v26  ;;  %v21764_v18 = vld [vmem:[#allocation95_spill] sm:$0xff]  ;;  %v6285_v3 = vrot.slane %v6271_v22, %v14396_v9  ;;  %v21769_v26 = vld [vmem:[#allocation237_spill] sm:$0xff]  ;;  %v21770_v32 = vld [vmem:[#allocation236_spill] sm:$0xff] }
 0x1cf   : > { %13818 = vmatprep.mubr.msk.bf16.mxu0 %vm14327_vm4, %v21251_v36  ;;  %13856 = vmatprep.mubr.msk.bf16.mxu1 %vm14327_vm4, %v21251_v36  ;;  %v21767_v22 = vld [vmem:[#allocation235_spill] sm:$0xff] }
 0x1d0   : > { %v6724_v55 = vrot.slane %v6716_v60, %v14396_v9 }
 0x1d1   : > { %v4091_v21 = vpop.f32.mrb[60].mxu0  ;;  %v4660_v62 = vpop.f32.mrb[60].mxu1 }
 0x1d2   : > { %v17393_v6 = vadd.f32 %v4091_v21, %v21758_v12  ;;  %v13600_v59 = vpop.f32.mrb[61].mxu0  ;;  %v17400_v4 = vadd.f32 %v4660_v62, %v17281_v58  ;;  %v13638_v63 = vpop.f32.mrb[61].mxu1  ;;  %v21765_v21 = vld [vmem:[#allocation94_spill] sm:$0xff]  ;;  %v6278_v58 = vrot.slane %v6270_v15, %v14396_v9 }
 0x1d3   : > { %v4094_v13 = vpop.f32.mrb[62].mxu0  ;;  %v6717_v12 = vcombine.low %v21765_v21, %v21764_v18  ;;  %v21766_v59 = vld [vmem:[#allocation149_spill] sm:$0xff]  ;;  %v4663_v61 = vpop.f32.mrb[62].mxu1  ;;  %v6288_v18 = vcombine.low %v21770_v32, %v21769_v26 }
 0x1d4   : > { %v17407_v16 = vadd.f32 %v4094_v13, %v21766_v59  ;;  %v13601_v44 = vpop.f32.mrb[63].mxu0  ;;  %v17410_v8 = vadd.f32 %v4663_v61, %v17295_v42  ;;  %v13639_v52 = vpop.f32.mrb[63].mxu1  ;;  %v6286_v63 = vcombine.low %v6278_v58, %v6285_v3  ;;  %v21768_v13 = vld [vmem:[#allocation233_spill] sm:$0xff]  ;;  %v21771_v61 = vld [vmem:[#allocation118_spill] sm:$0xff] }
 0x1d5   : > { %v6731_v62 = vrot.slane %v6717_v12, %v14396_v9  ;;  %v21772_v44 = vld [vmem:[#allocation99_spill] sm:$0xff] }
 0x1d6   : > { %13819 = vmatmul.mubr.msk.bf16.gmra.mrb[168].mxu0 %vm2417_vm2, %v6269_v27  ;;  %13857 = vmatmul.mubr.msk.bf16.gmra.mrb[168].mxu1 %vm2417_vm2, %v6715_v34  ;;  %v6287_v34 = vcombine.low %v21768_v13, %v21767_v22  ;;  %v6733_v52 = vcombine.low %v21772_v44, %v21771_v61  ;;  %v21778_v61 = vld [vmem:[#allocation241_spill] sm:$0xff] }
 0x1d7   : > { %13822 = vmatprep.mubr.msk.bf16.mxu0 %vm14327_vm4, %v21251_v36  ;;  %13860 = vmatprep.mubr.msk.bf16.mxu1 %vm14327_vm4, %v21251_v36  ;;  %v6732_v59 = vcombine.low %v6724_v55, %v6731_v62  ;;  %v6302_v55 = vrot.slane %v6288_v18, %v14396_v9  ;;  %v21776_v18 = vld [vmem:[#allocation240_spill] sm:$0xff] }
 0x1d8   : > { %v6741_v62 = vrot.slane %v6733_v52, %v14396_v9 }
 0x1d9   : > { %v4099_v42 = vpop.f32.mrb[64].mxu0  ;;  %v4668_v27 = vpop.f32.mrb[64].mxu1 }
 0x1da   : > { %v17423_v47 = vadd.f32 %v4099_v42, %v17080_v11  ;;  %v13604_v15 = vpop.f32.mrb[65].mxu0  ;;  %v17430_v60 = vadd.f32 %v4668_v27, %v17311_v2  ;;  %v13642_v21 = vpop.f32.mrb[65].mxu1  ;;  %v21773_v11 = vld [vmem:[#allocation120_spill] sm:$0xff]  ;;  %v21774_v42 = vld [vmem:[#allocation119_spill] sm:$0xff]  ;;  %v6295_v2 = vrot.slane %v6287_v34, %v14396_v9 }
 0x1db   : > { %v4102_v12 = vpop.f32.mrb[66].mxu0  ;;  %v6734_v31 = vcombine.low %v21774_v42, %v21773_v11  ;;  %v21775_v15 = vld [vmem:[#allocation130_spill] sm:$0xff]  ;;  %v4671_v3 = vpop.f32.mrb[66].mxu1 }
 0x1dc   : > { %v17437_v58 = vadd.f32 %v4102_v12, %v21775_v15  ;;  %v13605_v22 = vpop.f32.mrb[67].mxu0  ;;  %v17440_v13 = vadd.f32 %v4671_v3, %v17321_v28  ;;  %v13643_v26 = vpop.f32.mrb[67].mxu1  ;;  %v6303_v21 = vcombine.low %v6295_v2, %v6302_v55  ;;  %v6304_v12 = vcombine.low %v21721_v25, %v21776_v18  ;;  %v21779_v15 = vld [vmem:[#allocation141_spill] sm:$0xff]  ;;  %v21780_v3 = vld [vmem:[#allocation124_spill] sm:$0xff] }
 0x1dd   : > { %v6748_v27 = vrot.slane %v6734_v31, %v14396_v9  ;;  %v6750_v22 = vcombine.low %v21780_v3, %v21779_v15  ;;  %v21782_v26 = vld [vmem:[#allocation142_spill] sm:$0xff] }
 0x1de   : > { %13823 = vmatmul.mubr.msk.bf16.gmra.mrb[172].mxu0 %vm2417_vm2, %v6286_v63  ;;  %13861 = vmatmul.mubr.msk.bf16.gmra.mrb[172].mxu1 %vm2417_vm2, %v6732_v59  ;;  %v21777_v59 = vld [vmem:[#allocation242_spill] sm:$0xff] }
 0x1df   : > { %13826 = vmatprep.mubr.msk.bf16.mxu0 %vm14327_vm4, %v21251_v36  ;;  %13864 = vmatprep.mubr.msk.bf16.mxu1 %vm14327_vm4, %v21251_v36  ;;  %v6305_v44 = vcombine.low %v21778_v61, %v21777_v59  ;;  %v6749_v42 = vcombine.low %v6741_v62, %v6748_v27  ;;  %v6338_v61 = vcombine.low %v16653_v1, %v16656_v45 }
 0x1e1   : > { %v4107_v28 = vpop.f32.mrb[68].mxu0  ;;  %v4676_v63 = vpop.f32.mrb[68].mxu1  ;;  %v6319_v62 = vrot.slane %v6305_v44, %v14396_v9 }
 0x1e2   : > { %v17453_v32 = vadd.f32 %v4107_v28, %v17137_v23  ;;  %v13608_v34 = vpop.f32.mrb[69].mxu0  ;;  %v17460_v52 = vadd.f32 %v4676_v63, %v17338_v46  ;;  %v13646_v31 = vpop.f32.mrb[69].mxu1  ;;  %v21781_v23 = vld [vmem:[#allocation143_spill] sm:$0xff]  ;;  %v6312_v46 = vrot.slane %v6304_v12, %v14396_v9  ;;  %v6321_v63 = vcombine.low %v21725_v29, %v21731_v49  ;;  %v21784_v12 = vld [vmem:[#allocation246_spill] sm:$0xff] }
 0x1e3   : > { %v4110_v11 = vpop.f32.mrb[70].mxu0  ;;  %v6751_v28 = vcombine.low %v21782_v26, %v21781_v23  ;;  %v4679_v55 = vpop.f32.mrb[70].mxu1  ;;  %v21785_v26 = vld [vmem:[#allocation167_spill] sm:$0xff]  ;;  %v21786_v29 = vld [vmem:[#allocation146_spill] sm:$0xff] }
 0x1e4   : > { %v17467_v2 = vadd.f32 %v4110_v11, %v17147_v37  ;;  %v13609_v25 = vpop.f32.mrb[71].mxu0  ;;  %v17470_v34 = vadd.f32 %v4679_v55, %v17349_v24  ;;  %v13647_v18 = vpop.f32.mrb[71].mxu1  ;;  %v6758_v37 = vrot.slane %v6750_v22, %v14396_v9  ;;  %v6767_v49 = vcombine.low %v21786_v29, %v21785_v26  ;;  %v21788_v55 = vld [vmem:[#allocation168_spill] sm:$0xff] }
 0x1e5   : > { %v6765_v27 = vrot.slane %v6751_v28, %v14396_v9  ;;  %v21787_v28 = vld [vmem:[#allocation169_spill] sm:$0xff] }
 0x1e6   : > { %13827 = vmatmul.mubr.msk.bf16.gmra.mrb[176].mxu0 %vm2417_vm2, %v6303_v21  ;;  %13865 = vmatmul.mubr.msk.bf16.gmra.mrb[176].mxu1 %vm2417_vm2, %v6749_v42  ;;  %v21783_v21 = vld [vmem:[#allocation247_spill] sm:$0xff]  ;;  %v6320_v42 = vcombine.low %v6312_v46, %v6319_v62  ;;  %v6768_v25 = vcombine.low %v21788_v55, %v21787_v28  ;;  %v17499_v18 = vld.sshfl [vmem:[%s14392_s28 + $0x7c] sm:$0x33 pattern:$0x75316420]  ;;  %v6329_v62 = vrot.slane %v6321_v63, %v14396_v9  ;;  %v21790_v55 = vld [vmem:[#allocation186_spill] sm:$0xff]  ;;  %s20559_s28 = scalar_lea.vmem %s20749_s5, %s14302_s25 }
 0x1e7   : > { %13830 = vmatprep.mubr.msk.bf16.mxu0 %vm14327_vm4, %v21251_v36  ;;  %13868 = vmatprep.mubr.msk.bf16.mxu1 %vm14327_vm4, %v21251_v36  ;;  %v6322_v59 = vcombine.low %v21784_v12, %v21783_v21  ;;  %v6766_v23 = vcombine.low %v6758_v37, %v6765_v27  ;;  %v6345_v27 = vrot.slane %v6338_v61, %v14396_v9  ;;  %v21789_v61 = vld [vmem:[#allocation248_spill] sm:$0xff] }
 0x1e8   : > { %v6775_v63 = vrot.slane %v6767_v49, %v14396_v9  ;;  %v6782_v21 = vrot.slane %v6768_v25, %v14396_v9 }
 0x1e9   : > { %v4115_v24 = vpop.f32.mrb[72].mxu0  ;;  %v4684_v31 = vpop.f32.mrb[72].mxu1  ;;  %v6336_v37 = vrot.slane %v6322_v59, %v14396_v9 }
 0x1ea   : > { %v17489_v44 = vadd.f32 %v4115_v24, %v17192_v7  ;;  %v13612_v11 = vpop.f32.mrb[73].mxu0  ;;  %v17492_v15 = vadd.f32 %v4684_v31, %v17363_v5  ;;  %v13650_v3 = vpop.f32.mrb[73].mxu1  ;;  %v17513_v24 = vcombine.high %v17160_v20, %v17160_v20  ;;  %v6346_v31 = vcombine.low %v21789_v61, %v21737_v48 }
 0x1eb   : > { %v4118_v22 = vpop.f32.mrb[74].mxu0  ;;  %v4687_v45 = vpop.f32.mrb[74].mxu1  ;;  %v6337_v59 = vcombine.low %v6329_v62, %v6336_v37  ;;  %v6347_v11 = vcombine.low %v6345_v27, %v17267_v57  ;;  %v6783_v57 = vcombine.low %v6775_v63, %v6782_v21 }
 0x1ec   : > { %v17502_v1 = vadd.f32 %v4118_v22, %v17201_v14  ;;  %v13613_v7 = vpop.f32.mrb[75].mxu0  ;;  %v17505_v46 = vadd.f32 %v4687_v45, %v17377_v41  ;;  %v13651_v5 = vpop.f32.mrb[75].mxu1  ;;  %v17517_v14 = vcombine.high %v17163_v10, %v17163_v10  ;;  %v17521_v41 = vrot.slane %v17499_v18, %v14396_v9  ;;  %v21792_v45 = vld [vmem:[#allocation188_spill] sm:$0xff] }
 0x1ed   : > { %v6364_v26 = vcombine.low %v17163_v10, %v17513_v24  ;;  %v21793_v7 = vld [vmem:[#allocation187_spill] sm:$0xff]  ;;  %v6361_v63 = vrot.slane %v6347_v11, %v14396_v9 }
 0x1ee   : > { %13831 = vmatmul.mubr.msk.bf16.gmra.mrb[180].mxu0 %vm2417_vm2, %v6320_v42  ;;  %13869 = vmatmul.mubr.msk.bf16.gmra.mrb[180].mxu1 %vm2417_vm2, %v6766_v23  ;;  %v6363_v23 = vcombine.low %v16861_v54, %v17160_v20  ;;  %v6365_v29 = vcombine.low %v17517_v14, %v17521_v41  ;;  %v6785_v5 = vcombine.low %v21793_v7, %v21792_v45  ;;  %v21795_v45 = vld [vmem:[#allocation192_spill] sm:$0xff] }
 0x1ef   : > { %13834 = vmatprep.mubr.msk.bf16.mxu0 %vm14327_vm4, %v21251_v36  ;;  %13872 = vmatprep.mubr.msk.bf16.mxu1 %vm14327_vm4, %v21251_v36  ;;  %v6379_v61 = vrot.slane %v6364_v26, %v14396_v9 }
 0x1f0   : > { %v6372_v21 = vrot.slane %v6363_v23, %v14396_v9 }
 0x1f1   : > { %v4123_v12 = vpop.f32.mrb[76].mxu0  ;;  %v4692_v3 = vpop.f32.mrb[76].mxu1 }
 0x1f2   : > { %v17534_v42 = vadd.f32 %v4123_v12, %v17247_v38  ;;  %v13616_v22 = vpop.f32.mrb[77].mxu0  ;;  %v17543_v49 = vadd.f32 %v4692_v3, %v17393_v6  ;;  %v13654_v48 = vpop.f32.mrb[77].mxu1  ;;  %v21791_v38 = vld [vmem:[#allocation173_spill] sm:$0xff]  ;;  %v6354_v6 = vrot.slane %v6346_v31, %v14396_v9  ;;  %v6386_v3 = vrot.slane %v6365_v29, %v14396_v9 }
 0x1f3   : > { %v4126_v28 = vpop.f32.mrb[78].mxu0  ;;  %v6784_v25 = vcombine.low %v21791_v38, %v21790_v55  ;;  %v4695_v62 = vpop.f32.mrb[78].mxu1  ;;  %v6387_v29 = vcombine.low %v17273_v53, %v6372_v21 }
 0x1f4   : > { %v17550_v54 = vadd.f32 %v4126_v28, %v17255_v33  ;;  %v13617_v37 = vpop.f32.mrb[79].mxu0  ;;  %v17553_v27 = vadd.f32 %v4695_v62, %v17407_v16  ;;  %v13655_v12 = vpop.f32.mrb[79].mxu1  ;;  %v6799_v16 = vrot.slane %v6785_v5, %v14396_v9  ;;  %v6362_v26 = vcombine.low %v6354_v6, %v6361_v63  ;;  %v21797_v5 = vld [vmem:[#allocation207_spill] sm:$0xff] }
 0x1f5   : > { %v6792_v33 = vrot.slane %v6784_v25, %v14396_v9  ;;  %v6388_v48 = vcombine.low %v6379_v61, %v6386_v3  ;;  %v21794_v25 = vld [vmem:[#allocation206_spill] sm:$0xff]  ;;  %v6395_v21 = vrot.slane %v6387_v29, %v14396_v9 }
 0x1f6   : > { %13835 = vmatmul.mubr.msk.bf16.gmra.mrb[184].mxu0 %vm2417_vm2, %v6337_v59  ;;  %13873 = vmatmul.mubr.msk.bf16.gmra.mrb[184].mxu1 %vm2417_vm2, %v6783_v57  ;;  %v6150_v59 = vcombine.high %v17499_v18, %v17499_v18  ;;  %v6801_v7 = vcombine.low %v21795_v45, %v21794_v25  ;;  %v21796_v18 = vld [vmem:[#allocation208_spill] sm:$0xff] }
 0x1f7   : > { %13838 = vmatprep.mubr.msk.bf16.mxu0 %vm14327_vm4, %v21251_v36  ;;  %13876 = vmatprep.mubr.msk.bf16.mxu1 %vm14327_vm4, %v21251_v36  ;;  %v6800_v38 = vcombine.low %v6792_v33, %v6799_v16  ;;  %v6802_v62 = vcombine.low %v21797_v5, %v21796_v18  ;;  %v21798_v16 = vld [vmem:[#allocation226_spill] sm:$0xff] }
 0x1f8   : > { %v17585_v53 = vrot.slane %v6150_v59, %v14396_v9  ;;  %v6809_v61 = vrot.slane %v6801_v7, %v14396_v9  ;;  %v21799_v59 = vld [vmem:[#allocation211_spill] sm:$0xff] }
 0x1f9   : > { %v4131_v31 = vpop.f32.mrb[80].mxu0  ;;  %v4700_v22 = vpop.f32.mrb[80].mxu1  ;;  %v6816_v3 = vrot.slane %v6802_v62, %v14396_v9 }
 0x1fa   : > { %v17571_v11 = vadd.f32 %v4131_v31, %v17288_v35  ;;  %v13620_v23 = vpop.f32.mrb[81].mxu0  ;;  %v17575_v28 = vadd.f32 %v4700_v22, %v17423_v47  ;;  %v13658_v57 = vpop.f32.mrb[81].mxu1  ;;  %v17589_v47 = vcombine.high %v17521_v41, %v17521_v41  ;;  %v6818_v31 = vcombine.low %v21799_v59, %v21798_v16  ;;  %v21800_v22 = vld [vmem:[#allocation228_spill] sm:$0xff] }
 0x1fb   : > { %v4134_v55 = vpop.f32.mrb[82].mxu0  ;;  %v4703_v37 = vpop.f32.mrb[82].mxu1  ;;  %v21801_v23 = vld [vmem:[#allocation227_spill] sm:$0xff]  ;;  %v6817_v7 = vcombine.low %v6809_v61, %v6816_v3  ;;  %v21806_v59 = vld [vmem:[#allocation4_spill] sm:$0xff] }
 0x1fc   : > { %v17582_v35 = vadd.f32 %v4134_v55, %v17298_v0  ;;  %v13621_v12 = vpop.f32.mrb[83].mxu0  ;;  %v17592_v6 = vadd.f32 %v4703_v37, %v17437_v58  ;;  %v13659_v63 = vpop.f32.mrb[83].mxu1  ;;  %v6402_v0 = vrot.slane %v6388_v48, %v14396_v9  ;;  %v6404_v58 = vcombine.low %v17585_v53, %v17589_v47  ;;  %v21803_v61 = vld [vmem:[#allocation231_spill] sm:$0xff] }
 0x1fd   : > { %v6826_v63 = vrot.slane %v6818_v31, %v14396_v9  ;;  %v21807_v31 = vld [vmem:[#allocation101_spill] sm:$0xff] }
 0x1fe   : > { %13839 = vmatmul.mubr.msk.bf16.gmra.mrb[188].mxu0 %vm2417_vm2, %v6362_v26  ;;  %13877 = vmatmul.mubr.msk.bf16.gmra.mrb[188].mxu1 %vm2417_vm2, %v6800_v38  ;;  %v6819_v26 = vcombine.low %v21801_v23, %v21800_v22  ;;  %v6403_v55 = vcombine.low %v6395_v21, %v6402_v0  ;;  %v6411_v37 = vrot.slane %v6404_v58, %v14396_v9  ;;  %v21802_v0 = vld [vmem:[#allocation15_spill] sm:$0xff]  ;;  %v21804_v58 = vld [vmem:[#allocation17_spill] sm:$0xff] }
 0x1ff   : > { %13842 = vmatprep.mubr.msk.bf16.mxu0 %vm14327_vm4, %v21251_v36  ;;  %13880 = vmatprep.mubr.msk.bf16.mxu1 %vm14327_vm4, %v21251_v36  ;;  %v6835_v3 = vcombine.low %v21803_v61, %v21802_v0  ;;  %v6852_v22 = vcombine.low %v21807_v31, %v21806_v59  ;;  %v6653_v61 = vshll.u32 %v17521_v41, 16 }
 0x200   : > { %v6833_v21 = vrot.slane %v6819_v26, %v14396_v9 }
 0x201   : > { %v4139_v33 = vpop.f32.mrb[84].mxu0  ;;  %v4708_v48 = vpop.f32.mrb[84].mxu1 }
 0x202   : > { %v17611_v29 = vadd.f32 %v4139_v33, %v17318_v56  ;;  %v13624_v57 = vpop.f32.mrb[85].mxu0  ;;  %v17614_v38 = vadd.f32 %v4708_v48, %v17453_v32  ;;  %v13662_v25 = vpop.f32.mrb[85].mxu1  ;;  %v21805_v33 = vld [vmem:[#allocation16_spill] sm:$0xff] }
 0x203   : > { %v4142_v45 = vpop.f32.mrb[86].mxu0  ;;  %v4711_v5 = vpop.f32.mrb[86].mxu1  ;;  %v6836_v16 = vcombine.low %v21805_v33, %v21804_v58  ;;  %v21808_v57 = vld [vmem:[#allocation22_spill] sm:$0xff]  ;;  %v6656_v58 = vshrl.u32 %v17521_v41, 16 }
 0x204   : > { %v17617_v18 = vadd.f32 %v4142_v45, %v17323_v17  ;;  %v13625_v62 = vpop.f32.mrb[87].mxu0  ;;  %v17621_v12 = vadd.f32 %v4711_v5, %v17467_v2  ;;  %v13663_v56 = vpop.f32.mrb[87].mxu1  ;;  %v6418_v17 = vrot.slane %v6411_v37, %v14396_v9  ;;  %v6834_v2 = vcombine.low %v6826_v63, %v6833_v21 }
 0x205   : > { %v6632_v45 = vshrl.u32 %v17163_v10, 16  ;;  %v6640_v56 = vshrl.u32 %v17513_v24, 16  ;;  %v6645_v63 = vshll.u32 %v17517_v14, 16 }
 0x206   : > { %13843 = vmatmul.mubr.msk.bf16.gmra.mrb[192].mxu0 %vm2417_vm2, %v6403_v55  ;;  %13881 = vmatmul.mubr.msk.bf16.gmra.mrb[192].mxu1 %vm2417_vm2, %v6817_v7  ;;  %v21809_v55 = vld [vmem:[#allocation21_spill] sm:$0xff]  ;;  %v6637_v7 = vshll.u32 %v17513_v24, 16  ;;  %v6843_v24 = vrot.slane %v6835_v3, %v14396_v9 }
 0x207   : > { %13846 = vmatprep.mubr.msk.bf16.mxu0 %vm14327_vm4, %v21251_v36  ;;  %13884 = vmatprep.mubr.msk.bf16.mxu1 %vm14327_vm4, %v21251_v36  ;;  %v6853_v25 = vcombine.low %v21809_v55, %v21808_v57  ;;  %v21810_v55 = vld [vmem:[#allocation38_spill] sm:$0xff] }
 0x209   : > { %v4147_v32 = vpop.f32.mrb[88].mxu0  ;;  %v4716_v26 = vpop.f32.mrb[88].mxu1  ;;  %v6867_v31 = vrot.slane %v6853_v25, %v14396_v9  ;;  %v21811_v25 = vld [vmem:[#allocation19_spill] sm:$0xff] }
 0x20a   : > { %v17639_v23 = vadd.f32 %v4147_v32, %v17345_v19  ;;  %v13628_v48 = vpop.f32.mrb[89].mxu0  ;;  %v17646_v5 = vadd.f32 %v4716_v26, %v17489_v44  ;;  %v13666_v62 = vpop.f32.mrb[89].mxu1  ;;  %v6648_v19 = vshrl.u32 %v17517_v14, 16  ;;  %v6661_v44 = vshll.u32 %v17585_v53, 16 }
 0x20b   : > { %v4150_v37 = vpop.f32.mrb[90].mxu0  ;;  %v4719_v32 = vpop.f32.mrb[90].mxu1  ;;  %v6850_v14 = vrot.slane %v6836_v16, %v14396_v9  ;;  %v6868_v62 = vcombine.low %v21811_v25, %v21810_v55  ;;  %v21818_v25 = vld [vmem:[#allocation37_spill] sm:$0xff] }
 0x20c   : > { %v17652_v21 = vadd.f32 %v4150_v37, %v17352_v43  ;;  %v13629_v0 = vpop.f32.mrb[91].mxu0  ;;  %v17658_v33 = vadd.f32 %v4719_v32, %v17502_v1  ;;  %v13667_v59 = vpop.f32.mrb[91].mxu1  ;;  %v6860_v43 = vrot.slane %v6852_v22, %v14396_v9  ;;  %v6639_v1 = vsel %vm14429_vm1, %v6632_v45, %v6637_v7  ;;  %v21812_v45 = vld [vmem:[#allocation41_spill] sm:$0xff]  ;;  %v21813_v7 = vld [vmem:[#allocation39_spill] sm:$0xff] }
 0x20d   : > { %v6655_v3 = vsel %vm14429_vm1, %v6648_v19, %v6653_v61  ;;  %v6851_v57 = vcombine.low %v6843_v24, %v6850_v14  ;;  %v7163_v37 = vcombine.low %v21813_v7, %v21812_v45  ;;  %v21814_v24 = vld [vmem:[#allocation61_spill] sm:$0xff]  ;;  %v21815_v14 = vld [vmem:[#allocation18_spill] sm:$0xff] }
 0x20e   : > { %13847 = vmatmul.mubr.msk.bf16.gmra.mrb[196].mxu0 %vm2417_vm2, %v6418_v17  ;;  %13885 = vmatmul.mubr.msk.bf16.gmra.mrb[196].mxu1 %vm2417_vm2, %v6834_v2  ;;  %v6647_v17 = vsel %vm14429_vm1, %v6640_v56, %v6645_v63  ;;  %v6663_v2 = vsel %vm14429_vm1, %v6656_v58, %v6661_v44  ;;  %v6869_v32 = vcombine.low %v6860_v43, %v6867_v31 }
 0x20f   : > { %13906 = vmatprep.mubr.msk.bf16.mxu0 %vm14327_vm4, %v21251_v36  ;;  %13888 = vmatprep.mubr.msk.bf16.mxu1 %vm14327_vm4, %v21251_v36  ;;  %v6887_v0 = vcombine.low %v6639_v1, %v6647_v17  ;;  %v6888_v61 = vcombine.low %v6655_v3, %v6663_v2  ;;  %v6622_v1 = vcombine.high %v17585_v53, %v17585_v53 }
 0x210   : > { %v6883_v43 = vrot.slane %v6869_v32, %v14396_v9 }
 0x211   : > { %v4155_v16 = vpop.f32.mrb[92].mxu0  ;;  %v4724_v26 = vpop.f32.mrb[92].mxu1  ;;  %v6916_v31 = vrot.slane %v6888_v61, %v14396_v9 }
 0x212   : > { %v17679_v22 = vadd.f32 %v4155_v16, %v17370_v30  ;;  %v13632_v48 = vpop.f32.mrb[93].mxu0  ;;  %v17686_v56 = vadd.f32 %v4724_v26, %v17534_v42  ;;  %v13670_v63 = vpop.f32.mrb[93].mxu1  ;;  %v21816_v16 = vcombine.low %v21814_v24, %v21815_v14  ;;  %v7170_v42 = vrot.slane %v7163_v37, %v14396_v9 }
 0x213   : > { %v4158_v19 = vpop.f32.mrb[94].mxu0  ;;  %v4727_v58 = vpop.f32.mrb[94].mxu1  ;;  %v6876_v48 = vrot.slane %v6868_v62, %v14396_v9  ;;  %v21819_v62 = vld [vmem:[#allocation40_spill] sm:$0xff]  ;;  %v6677_v24 = vshll.u32 %v6622_v1, 16 }
 0x214   : > { %v13633_v30 = vpop.f32.mrb[95].mxu0  ;;  %v17689_v44 = vadd.f32 %v4727_v58, %v17550_v54  ;;  %v13671_v59 = vpop.f32.mrb[95].mxu1  ;;  %v6909_v54 = vrot.slane %v6887_v0, %v14396_v9  ;;  %v7172_v45 = vcombine.low %v21819_v62, %v21818_v25  ;;  %v6664_v0 = vshrl.u32 %v17585_v53, 16 }
 0x215   : > { %v6884_v19 = vcombine.low %v6876_v48, %v6883_v43  ;;  %v6669_v30 = vshll.u32 %v17589_v47, 16  ;;  %v6672_v59 = vshrl.u32 %v17589_v47, 16 }
 0x216   : > { %13907 = vmatmul.mubr.msk.bf16.vlgmr.msra.gmra.mrb[200].mxu0 %vm2417_vm2, %v21816_v16  ;;  %13889 = vmatmul.mubr.msk.bf16.gmra.mrb[200].mxu1 %vm2417_vm2, %v6851_v57  ;;  %v21817_v57 = vld [vmem:[#allocation79_spill] sm:$0xff]  ;;  %v6918_v32 = vcombine.low %v6909_v54, %v6916_v31  ;;  %v7179_v16 = vrot.slane %v7172_v45, %v14396_v9 }
 0x217   : > { %13910 = vmatprep.mubr.msk.bf16.mxu0 %vm14327_vm4, %v21251_v36  ;;  %13892 = vmatprep.mubr.msk.bf16.mxu1 %vm14327_vm4, %v21251_v36  ;;  %v7171_v55 = vcombine.low %v21817_v57, %v7170_v42  ;;  %v6679_v42 = vsel %vm14429_vm1, %v6672_v59, %v6677_v24  ;;  %v21825_v59 = vld [vmem:[#allocation6_spill] sm:$0xff] }
 0x218   : > { %v6932_v47 = vrot.slane %v6918_v32, %v14396_v9  ;;  %v21826_v24 = vld [vmem:[#allocation62_spill] sm:$0xff] }
 0x219   : > { %v5526_v17 = vpop.f32.mrb[96].mxu0  ;;  %v4732_v3 = vpop.f32.mrb[96].mxu1 }
 0x21a   : > { %v17708_v2 = vadd.f32 %v5526_v17, %v17400_v4  ;;  %v13692_v26 = vpop.f32.mrb[97].mxu0  ;;  %v17714_v7 = vadd.f32 %v4732_v3, %v17571_v11  ;;  %v13674_v37 = vpop.f32.mrb[97].mxu1  ;;  %v21821_v17 = vld [vmem:[#allocation131_spill] sm:$0xff] }
 0x21b   : > { %v5529_v63 = vpop.f32.mrb[98].mxu0  ;;  %v4735_v61 = vpop.f32.mrb[98].mxu1  ;;  %v21823_v3 = vld [vmem:[#allocation55_spill] sm:$0xff] }
 0x21c   : > { %v17718_v58 = vadd.f32 %v5529_v63, %v17410_v8  ;;  %v13693_v4 = vpop.f32.mrb[99].mxu0  ;;  %v17723_v14 = vadd.f32 %v4735_v61, %v17582_v35  ;;  %v13675_v11 = vpop.f32.mrb[99].mxu1  ;;  %v21820_v8 = vcombine.low %v17213_v40, %v17216_v50  ;;  %v6671_v35 = vsel %vm14429_vm1, %v6664_v0, %v6669_v30  ;;  %v21822_v50 = vld [vmem:[#allocation20_spill] sm:$0xff]  ;;  %vm8741_vm1 = vmor %vm8739_vm10, %vm8740_vm11 }
 0x21d   : > { %v7180_v40 = vcombine.low %v21821_v17, %v7179_v16  ;;  %v7181_v26 = vcombine.low %v21823_v3, %v21822_v50  ;;  %v6934_v45 = vcombine.low %v6671_v35, %v6679_v42  ;;  %v21824_v4 = vld [vmem:[#allocation57_spill] sm:$0xff]  ;;  %v7190_v11 = vcombine.low %v21826_v24, %v21825_v59  ;;  %v21828_v3 = vld [vmem:[#allocation80_spill] sm:$0xff]  ;;  %v21833_v24 = vld [vmem:[#allocation106_spill] sm:$0xff] }
 0x21e   : > { %13911 = vmatmul.mubr.msk.bf16.gmra.mrb[204].mxu0 %vm2417_vm2, %v7171_v55  ;;  %13893 = vmatmul.mubr.msk.bf16.gmra.mrb[204].mxu1 %vm2417_vm2, %v6884_v19  ;;  %v6925_v48 = vrot.slane %v21820_v8, %v14396_v9 }
 0x21f   : > { %13914 = vmatprep.mubr.msk.bf16.mxu0 %vm14327_vm4, %v21251_v36  ;;  %13896 = vmatprep.mubr.msk.bf16.mxu1 %vm14327_vm4, %v21251_v36  ;;  %v7188_v32 = vrot.slane %v7181_v26, %v14396_v9  ;;  %v21829_v26 = vld [vmem:[#allocation76_spill] sm:$0xff] }
 0x220   : > { %v6933_v62 = vcombine.low %v6925_v48, %v6932_v47 }
 0x221   : > { %v5534_v43 = vpop.f32.mrb[100].mxu0  ;;  %v4740_v54 = vpop.f32.mrb[100].mxu1  ;;  %v7189_v30 = vcombine.low %v7188_v32, %v21824_v4 }
 0x222   : > { %v17742_v31 = vadd.f32 %v5534_v43, %v17430_v60  ;;  %v13696_v1 = vpop.f32.mrb[101].mxu0  ;;  %v17748_v57 = vadd.f32 %v4740_v54, %v17611_v29  ;;  %v13678_v55 = vpop.f32.mrb[101].mxu1  ;;  %v6941_v29 = vrot.slane %v6934_v45, %v14396_v9 }
 0x223   : > { %v5537_v25 = vpop.f32.mrb[102].mxu0  ;;  %v4743_v39 = vpop.f32.mrb[102].mxu1  ;;  %v7197_v1 = vrot.slane %v7190_v11, %v14396_v9  ;;  %v7199_v55 = vcombine.low %v21829_v26, %v21828_v3  ;;  %v21834_v11 = vld [vmem:[#allocation105_spill] sm:$0xff] }
 0x224   : > { %v17751_v37 = vadd.f32 %v5537_v25, %v17440_v13  ;;  %v13697_v63 = vpop.f32.mrb[103].mxu0  ;;  %v17754_v60 = vadd.f32 %v4743_v39, %v17617_v18  ;;  %v13679_v19 = vpop.f32.mrb[103].mxu1  ;;  %v6948_v48 = vrot.slane %v6941_v29, %v14396_v9 }
 0x226   : > { %13915 = vmatmul.mubr.msk.bf16.gmra.mrb[208].mxu0 %vm2417_vm2, %v7180_v40  ;;  %13897 = vmatmul.mubr.msk.bf16.gmra.mrb[208].mxu1 %vm2417_vm2, %v6933_v62 }
 0x227   : > { %13918 = vmatprep.mubr.msk.bf16.mxu0 %vm14327_vm4, %v21251_v36  ;;  %13900 = vmatprep.mubr.msk.bf16.mxu1 %vm14327_vm4, %v21251_v36 }
 0x229   : > { %v5542_v13 = vpop.f32.mrb[104].mxu0  ;;  %v4748_v0 = vpop.f32.mrb[104].mxu1 }
 0x22a   : > { %v17765_v18 = vadd.f32 %v5542_v13, %v17460_v52  ;;  %v13700_v61 = vpop.f32.mrb[105].mxu0  ;;  %v13682_v16 = vpop.f32.mrb[105].mxu1  ;;  %v17772_v47 = vadd.f32 %v4748_v0, %v17639_v23 }
 0x22b   : > { %v5545_v8 = vpop.f32.mrb[106].mxu0  ;;  %v4751_v35 = vpop.f32.mrb[106].mxu1  ;;  %v21830_v61 = vld [vmem:[#allocation156_spill] sm:$0xff]  ;;  %v7209_v16 = vcombine.low %v21834_v11, %v21833_v24  ;;  %v21838_v24 = vld [vmem:[#allocation150_spill] sm:$0xff] }
 0x22c   : > { %v17775_v42 = vadd.f32 %v5545_v8, %v17470_v34  ;;  %v13701_v43 = vpop.f32.mrb[107].mxu0  ;;  %v13683_v52 = vpop.f32.mrb[107].mxu1  ;;  %v17778_v54 = vadd.f32 %v4751_v35, %v17652_v21  ;;  %v21827_v21 = vld [vmem:[#allocation153_spill] sm:$0xff]  ;;  %v21839_v11 = vld [vmem:[#allocation152_spill] sm:$0xff] }
 0x22d   : > { %v7198_v50 = vcombine.low %v7197_v1, %v21827_v21  ;;  %v7223_v21 = vrot.slane %v7209_v16, %v14396_v9  ;;  %v7234_v16 = vcombine.low %v21839_v11, %v21838_v24  ;;  %v7261_v24 = vcombine.low %v17155_v51, %v17163_v10 }
 0x22e   : > { %13919 = vmatmul.mubr.msk.bf16.gmra.mrb[212].mxu0 %vm2417_vm2, %v7189_v30  ;;  %13901 = vmatmul.mubr.msk.bf16.gmra.mrb[212].mxu1 %vm2417_vm2, %v6948_v48  ;;  %v21832_v30 = vld [vmem:[#allocation83_spill] sm:$0xff]  ;;  %v7263_v11 = vcombine.low %v17521_v41, %v17585_v53 }
 0x22f   : > { %13922 = vmatprep.mubr.msk.bf16.mxu0 %vm14327_vm4, %v21251_v36  ;;  %13960 = vmatprep.mubr.msk.bf16.mxu1 %vm14327_vm4, %v21251_v36 }
 0x231   : > { %v5550_v23 = vpop.f32.mrb[108].mxu0  ;;  %v4756_v34 = vpop.f32.mrb[108].mxu1 }
 0x232   : > { %v17788_v17 = vadd.f32 %v5550_v23, %v17492_v15  ;;  %v13704_v40 = vpop.f32.mrb[109].mxu0  ;;  %v13686_v62 = vpop.f32.mrb[109].mxu1  ;;  %v17794_v45 = vadd.f32 %v4756_v34, %v17679_v22  ;;  %v7206_v15 = vrot.slane %v7199_v55, %v14396_v9  ;;  %v21835_v55 = vld [vmem:[#allocation127_spill] sm:$0xff] }
 0x233   : > { %v5553_v25 = vpop.f32.mrb[110].mxu0  ;;  %v4759_v19 = vpop.f32.mrb[110].mxu1 }
 0x234   : > { %v17797_v39 = vadd.f32 %v5553_v25, %v17505_v46  ;;  %v13705_v63 = vpop.f32.mrb[111].mxu0  ;;  %v13687_v32 = vpop.f32.mrb[111].mxu1  ;;  %v7207_v4 = vcombine.low %v7206_v15, %v21830_v61  ;;  %v21831_v46 = vld [vmem:[#allocation81_spill] sm:$0xff] }
 0x235   : > { %v7208_v59 = vcombine.low %v21832_v30, %v21831_v46  ;;  %v21836_v25 = vld [vmem:[#allocation129_spill] sm:$0xff]  ;;  %v21837_v30 = vld [vmem:[#allocation102_spill] sm:$0xff] }
 0x236   : > { %13923 = vmatmul.mubr.msk.bf16.gmra.mrb[216].mxu0 %vm2417_vm2, %v7198_v50  ;;  %v7225_v62 = vcombine.low %v21836_v25, %v21835_v55 }
 0x237   : > { %13926 = vmatprep.mubr.msk.bf16.mxu0 %vm14327_vm4, %v21251_v36 }
 0x238   : > { %v7232_v61 = vrot.slane %v7225_v62, %v14396_v9 }
 0x239   : > { %v5558_v29 = vpop.f32.mrb[112].mxu0  ;;  %v5990_v0 = vpop.f32.mrb[112].mxu1 }
 0x23a   : > { %v17804_v13 = vadd.f32 %v5558_v29, %v17543_v49  ;;  %v13708_v22 = vpop.f32.mrb[113].mxu0  ;;  %v13746_v8 = vpop.f32.mrb[113].mxu1  ;;  %v17812_v35 = vadd.f32 %v5990_v0, %v17708_v2  ;;  %v13003_v49 = vld [vmem:[%s20747_s3 + $0x4] sm:$0xf]  ;;  %v7216_v2 = vrot.slane %v7208_v59, %v14396_v9  ;;  %v7233_v59 = vcombine.low %v21837_v30, %v7232_v61 }
 0x23b   : > { %v5561_v48 = vpop.f32.mrb[114].mxu0  ;;  %v5993_v52 = vpop.f32.mrb[114].mxu1  ;;  %v9339_v23 = vsel %vm9337_vm0, %v13003_v49, 0 }
 0x23c   : > { %v17818_v43 = vadd.f32 %v5561_v48, %v17553_v27  ;;  %v13709_v1 = vpop.f32.mrb[115].mxu0  ;;  %v13747_v34 = vpop.f32.mrb[115].mxu1  ;;  %v17822_v40 = vadd.f32 %v5993_v52, %v17718_v58  ;;  %13959 = vmatpush3.bf16.msra.mxu1 %v9339_v23  ;;  %v7224_v58 = vcombine.low %v7216_v2, %v7223_v21  ;;  %v21840_v21 = vld [vmem:[#allocation158_spill] sm:$0xff] }
 0x23d   : > { %13996 = vmatprep.subr.bf16.mxu1 %v21251_v36  ;;  %v7241_v34 = vrot.slane %v7234_v16, %v14396_v9 }
 0x23e   : > { %13927 = vmatmul.mubr.msk.bf16.gmra.mrb[220].mxu0 %vm2417_vm2, %v7207_v4 }
 0x23f   : > { %13930 = vmatprep.mubr.msk.bf16.mxu0 %vm14327_vm4, %v21251_v36 }
 0x241   : > { %v5566_v27 = vpop.f32.mrb[116].mxu0  ;;  %v5998_v3 = vpop.f32.mrb[116].mxu1 }
 0x242   : > { %v17831_v50 = vadd.f32 %v5566_v27, %v17575_v28  ;;  %v13712_v26 = vpop.f32.mrb[117].mxu0  ;;  %v13750_v63 = vpop.f32.mrb[117].mxu1  ;;  %v17836_v32 = vadd.f32 %v5998_v3, %v17742_v31 }
 0x243   : > { %v5569_v19 = vpop.f32.mrb[118].mxu0  ;;  %v6001_v29 = vpop.f32.mrb[118].mxu1  ;;  %v21842_v26 = vld [vmem:[#allocation191_spill] sm:$0xff] }
 0x244   : > { %v17839_v15 = vadd.f32 %v5569_v19, %v17592_v6  ;;  %v13713_v0 = vpop.f32.mrb[119].mxu0  ;;  %v13751_v22 = vpop.f32.mrb[119].mxu1  ;;  %v17842_v28 = vadd.f32 %v6001_v29, %v17751_v37 }
 0x246   : > { %13931 = vmatmul.mubr.msk.bf16.gmra.mrb[224].mxu0 %vm2417_vm2, %v7224_v58  ;;  %v7242_v58 = vcombine.low %v21842_v26, %v7241_v34 }
 0x247   : > { %13934 = vmatprep.mubr.msk.bf16.mxu0 %vm14327_vm4, %v21251_v36 }
 0x249   : > { %v5574_v4 = vpop.f32.mrb[120].mxu0  ;;  %v6006_v46 = vpop.f32.mrb[120].mxu1 }
 0x24a   : > { %v17849_v31 = vadd.f32 %v5574_v4, %v17614_v38  ;;  %v13716_v6 = vpop.f32.mrb[121].mxu0  ;;  %v13754_v37 = vpop.f32.mrb[121].mxu1  ;;  %v17855_v48 = vadd.f32 %v6006_v46, %v17765_v18  ;;  %v21841_v18 = vld [vmem:[#allocation154_spill] sm:$0xff]  ;;  %v21843_v4 = vld [vmem:[#allocation197_spill] sm:$0xff]  ;;  %v21844_v46 = vld [vmem:[#allocation176_spill] sm:$0xff] }
 0x24b   : > { %v5577_v8 = vpop.f32.mrb[122].mxu0  ;;  %v6009_v52 = vpop.f32.mrb[122].mxu1  ;;  %v7243_v27 = vcombine.low %v21841_v18, %v21840_v21  ;;  %v21845_v6 = vld [vmem:[#allocation157_spill] sm:$0xff] }
 0x24c   : > { %v17858_v49 = vadd.f32 %v5577_v8, %v17621_v12  ;;  %v13717_v1 = vpop.f32.mrb[123].mxu0  ;;  %v13755_v23 = vpop.f32.mrb[123].mxu1  ;;  %v17861_v38 = vadd.f32 %v6009_v52, %v17775_v42  ;;  %v7252_v30 = vcombine.low %v21845_v6, %v21844_v46 }
 0x24d   : > { %v7250_v22 = vrot.slane %v7243_v27, %v14396_v9  ;;  %v21846_v27 = vld [vmem:[#allocation23_spill] sm:$0xff] }
 0x24e   : > { %13935 = vmatmul.mubr.msk.bf16.gmra.mrb[228].mxu0 %vm2417_vm2, %v7233_v59 }
 0x24f   : > { %13938 = vmatprep.mubr.msk.bf16.mxu0 %vm14327_vm4, %v21251_v36 }
 0x251   : > { %v5582_v2 = vpop.f32.mrb[124].mxu0  ;;  %v6014_v3 = vpop.f32.mrb[124].mxu1 }
 0x252   : > { %v13720_v12 = vpop.f32.mrb[125].mxu0  ;;  %v17871_v55 = vadd.f32 %v5582_v2, %v17646_v5  ;;  %v13758_v42 = vpop.f32.mrb[125].mxu1  ;;  %v17874_v62 = vadd.f32 %v6014_v3, %v17788_v17  ;;  %v7251_v17 = vcombine.low %v21843_v4, %v7250_v22 }
 0x253   : > { %v5585_v25 = vpop.f32.mrb[126].mxu0  ;;  %v6017_v63 = vpop.f32.mrb[126].mxu1 }
 0x254   : > { %v13721_v19 = vpop.f32.mrb[127].mxu0  ;;  %v17877_v29 = vadd.f32 %v5585_v25, %v17658_v33  ;;  %v13759_v0 = vpop.f32.mrb[127].mxu1  ;;  %v17881_v61 = vadd.f32 %v6017_v63, %v17797_v39  ;;  %v12975_v39 = vcombine.high %v17160_v20, %v17163_v10  ;;  %v7259_v20 = vrot.slane %v7252_v30, %v14396_v9 }
 0x255   : > { %v7270_v10 = vrot.slane %v7261_v24, %v14396_v9 }
 0x256   : > { %13939 = vmatmul.mubr.msk.bf16.gmra.mrb[232].mxu0 %vm2417_vm2, %v7242_v58  ;;  %v7260_v3 = vcombine.low %v7259_v20, %v21846_v27 }
 0x257   : > { %13942 = vmatprep.mubr.msk.bf16.mxu0 %vm14327_vm4, %v21251_v36 }
 0x259   : > { %v5590_v5 = vpop.f32.mrb[128].mxu0  ;;  %v6022_v59 = vpop.f32.mrb[128].mxu1 }
 0x25a   : > { %v13724_v33 = vpop.f32.mrb[129].mxu0  ;;  %v17896_v16 = vadd.f32 %v5590_v5, %v17686_v56  ;;  %v13762_v37 = vpop.f32.mrb[129].mxu1  ;;  %v17899_v52 = vadd.f32 %v6022_v59, %v17804_v13  ;;  %v7277_v56 = vrot.slane %v12975_v39, %v14396_v9  ;;  %v7284_v13 = vrot.slane %v7263_v11, %v14396_v9 }
 0x25b   : > { %v5593_v8 = vpop.f32.mrb[130].mxu0  ;;  %v6025_v1 = vpop.f32.mrb[130].mxu1 }
 0x25c   : > { %v13725_v23 = vpop.f32.mrb[131].mxu0  ;;  %v17902_v34 = vadd.f32 %v5593_v8, %v17689_v44  ;;  %v13763_v51 = vpop.f32.mrb[131].mxu1  ;;  %v17905_v2 = vadd.f32 %v6025_v1, %v17818_v43  ;;  %v21847_v43 = vld [vmem:[#allocation24_spill] sm:$0xff]  ;;  %v7286_v26 = vcombine.low %v7277_v56, %v7284_v13 }
 0x25d   : > { %v7285_v12 = vcombine.low %v21847_v43, %v7270_v10 }
 0x25e   : > { %13943 = vmatmul.mubr.msk.bf16.gmra.mrb[236].mxu0 %vm2417_vm2, %v7251_v17  ;;  %v7300_v46 = vrot.slane %v7286_v26, %v14396_v9 }
 0x25f   : > { %13946 = vmatprep.mubr.msk.bf16.mxu0 %vm14327_vm4, %v21251_v36  ;;  %v7293_v17 = vrot.slane %v7285_v12, %v14396_v9 }
 0x261   : > { %v5598_v21 = vpop.f32.mrb[132].mxu0  ;;  %v6030_v44 = vpop.f32.mrb[132].mxu1  ;;  %v7301_v30 = vcombine.low %v7293_v17, %v7300_v46 }
 0x262   : > { %v13728_v18 = vpop.f32.mrb[133].mxu0  ;;  %v5646_v58 = vadd.f32 %v5598_v21, %v17714_v7  ;;  %v13766_v42 = vpop.f32.mrb[133].mxu1  ;;  %v17918_v63 = vadd.f32 %v6030_v44, %v17831_v50 }
 0x263   : > { %v5601_v25 = vpop.f32.mrb[134].mxu0  ;;  %v6033_v19 = vpop.f32.mrb[134].mxu1 }
 0x264   : > { %v13729_v0 = vpop.f32.mrb[135].mxu0  ;;  %v5647_v22 = vadd.f32 %v5601_v25, %v17723_v14  ;;  %v13767_v5 = vpop.f32.mrb[135].mxu1  ;;  %v17922_v4 = vadd.f32 %v6033_v19, %v17839_v15  ;;  %v12976_v14 = vcombine.high %v17521_v41, %v17585_v53 }
 0x266   : > { %13947 = vmatmul.mubr.msk.bf16.gmra.mrb[240].mxu0 %vm2417_vm2, %v7260_v3  ;;  %v7309_v23 = vrot.slane %v12976_v14, %v14396_v9 }
 0x267   : > { %13950 = vmatprep.mubr.msk.bf16.mxu0 %vm14327_vm4, %v21251_v36 }
 0x268   : > { %v7316_v51 = vrot.slane %v7309_v23, %v14396_v9 }
 0x269   : > { %v5606_v7 = vpop.f32.mrb[136].mxu0  ;;  %v6038_v50 = vpop.f32.mrb[136].mxu1 }
 0x26a   : > { %v13732_v6 = vpop.f32.mrb[137].mxu0  ;;  %v5648_v59 = vadd.f32 %v5606_v7, %v17748_v57  ;;  %v13770_v15 = vpop.f32.mrb[137].mxu1  ;;  %v17933_v24 = vadd.f32 %v6038_v50, %v17849_v31 }
 0x26b   : > { %v5609_v33 = vpop.f32.mrb[138].mxu0  ;;  %v6041_v39 = vpop.f32.mrb[138].mxu1 }
 0x26c   : > { %v13733_v11 = vpop.f32.mrb[139].mxu0  ;;  %v5649_v37 = vadd.f32 %v5609_v33, %v17754_v60  ;;  %v13771_v8 = vpop.f32.mrb[139].mxu1  ;;  %v17937_v1 = vadd.f32 %v6041_v39, %v17858_v49 }
 0x26e   : > { %13951 = vmatmul.mubr.msk.bf16.gmra.mrb[244].mxu0 %vm2417_vm2, %v7301_v30 }
 0x26f   : > { %13954 = vmatprep.mubr.msk.bf16.mxu0 %vm14327_vm4, %v21251_v36 }
 0x271   : > { %v5614_v41 = vpop.f32.mrb[140].mxu0  ;;  %v6046_v57 = vpop.f32.mrb[140].mxu1 }
 0x272   : > { %v5650_v53 = vadd.f32 %v5614_v41, %v17772_v47  ;;  %v13736_v31 = vpop.f32.mrb[141].mxu0  ;;  %v17946_v60 = vadd.f32 %v6046_v57, %v17871_v55  ;;  %v13774_v20 = vpop.f32.mrb[141].mxu1 }
 0x273   : > { %v5617_v49 = vpop.f32.mrb[142].mxu0  ;;  %v6049_v56 = vpop.f32.mrb[142].mxu1 }
 0x274   : > { %v5651_v10 = vadd.f32 %v5617_v49, %v17778_v54  ;;  %v13737_v13 = vpop.f32.mrb[143].mxu0  ;;  %v17950_v21 = vadd.f32 %v6049_v56, %v17877_v29  ;;  %v13775_v44 = vpop.f32.mrb[143].mxu1 }
 0x276   : > { %13955 = vmatmul.mubr.msk.bf16.gmra.mrb[248].mxu0 %vm2417_vm2, %v7316_v51  ;;  %vm18377_vm2 = vmor %vm8741_vm1, %vm8742_vm14 }
 0x277   : > { %14036 = vmatprep.mubr.msk.bf16.mxu0 %vm14327_vm4, %v21251_v36  ;;  %vm18397_vm3 = vmor %vm18377_vm2, %vm8744_vm15 }
 0x279   : > { %v5622_v47 = vpop.f32.mrb[144].mxu0  ;;  %v6054_v55 = vpop.f32.mrb[144].mxu1 }
 0x27a   : > { %v5652_v9 = vadd.f32 %v5622_v47, %v17794_v45  ;;  %v13740_v18 = vpop.f32.mrb[145].mxu0  ;;  %v17957_v27 = vadd.f32 %v6054_v55, %v17896_v16  ;;  %v13778_v54 = vpop.f32.mrb[145].mxu1 }
 0x27b   : > { %v5625_v3 = vpop.f32.mrb[146].mxu0  ;;  %v6057_v43 = vpop.f32.mrb[146].mxu1 }
 0x27c   : > { %v13741_v12 = vpop.f32.mrb[147].mxu0  ;;  %v17960_v29 = vadd.f32 %v6057_v43, %v17902_v34  ;;  %v13779_v26 = vpop.f32.mrb[147].mxu1 }
 0x281   : > { %v6495_v42 = vpop.f32.mrb[148].mxu0  ;;  %v6062_v25 = vpop.f32.mrb[148].mxu1 }
 0x282   : > { %v6597_v19 = vadd.f32 %v6495_v42, %v17812_v35  ;;  %v13800_v0 = vpop.f32.mrb[149].mxu0  ;;  %v17963_v5 = vadd.f32 %v6062_v25, %v5646_v58  ;;  %v13782_v45 = vpop.f32.mrb[149].mxu1 }
 0x283   : > { %v6498_v17 = vpop.f32.mrb[150].mxu0  ;;  %v6065_v46 = vpop.f32.mrb[150].mxu1 }
 0x284   : > { %v6598_v16 = vadd.f32 %v6498_v17, %v17822_v40  ;;  %v13801_v7 = vpop.f32.mrb[151].mxu0  ;;  %v17966_v50 = vadd.f32 %v6065_v46, %v5647_v22  ;;  %v13783_v6 = vpop.f32.mrb[151].mxu1 }
 0x289   : > { %v6503_v30 = vpop.f32.mrb[152].mxu0  ;;  %v6070_v34 = vpop.f32.mrb[152].mxu1 }
 0x28a   : > { %v6599_v14 = vadd.f32 %v6503_v30, %v17836_v32  ;;  %v13804_v15 = vpop.f32.mrb[153].mxu0  ;;  %v17969_v33 = vadd.f32 %v6070_v34, %v5648_v59  ;;  %v13786_v35 = vpop.f32.mrb[153].mxu1 }
 0x28b   : > { %v6506_v39 = vpop.f32.mrb[154].mxu0  ;;  %v6073_v58 = vpop.f32.mrb[154].mxu1 }
 0x28c   : > { %v6600_v11 = vadd.f32 %v6506_v39, %v17842_v28  ;;  %v13805_v8 = vpop.f32.mrb[155].mxu0  ;;  %v17972_v23 = vadd.f32 %v6073_v58, %v5649_v37  ;;  %v13787_v40 = vpop.f32.mrb[155].mxu1  ;;  %v13034_v37 = vld [vmem:[%s20747_s3 + $0x8] sm:$0xf] }
 0x28d   : > { %v10044_v44 = vsel %vm9337_vm0, %v13034_v37, 0 }
 0x28e   : > { %14035 = vmatpush3.bf16.msra.mxu0 %v10044_v44 }
 0x28f   : > { %14110 = vmatprep.subr.bf16.mxu0 %v21251_v36 }
 0x291   : > { %v6511_v41 = vpop.f32.mrb[156].mxu0  ;;  %v6078_v22 = vpop.f32.mrb[156].mxu1 }
 0x292   : > { %v6601_v57 = vadd.f32 %v6511_v41, %v17855_v48  ;;  %v13808_v31 = vpop.f32.mrb[157].mxu0  ;;  %v17975_v51 = vadd.f32 %v6078_v22, %v5650_v53  ;;  %v13790_v32 = vpop.f32.mrb[157].mxu1 }
 0x293   : > { %v6514_v20 = vpop.f32.mrb[158].mxu0  ;;  %v6081_v59 = vpop.f32.mrb[158].mxu1 }
 0x294   : > { %v6602_v49 = vadd.f32 %v6514_v20, %v17861_v38  ;;  %v13809_v56 = vpop.f32.mrb[159].mxu0  ;;  %v17978_v13 = vadd.f32 %v6081_v59, %v5651_v10  ;;  %v13791_v28 = vpop.f32.mrb[159].mxu1 }
 0x299   : > { %v6519_v48 = vpop.f32.mrb[160].mxu0  ;;  %v6086_v53 = vpop.f32.mrb[160].mxu1 }
 0x29a   : > { %v6603_v47 = vadd.f32 %v6519_v48, %v17874_v62  ;;  %v13812_v55 = vpop.f32.mrb[161].mxu0  ;;  %v17986_v18 = vadd.f32 %v6086_v53, %v5652_v9  ;;  %v13794_v10 = vpop.f32.mrb[161].mxu1 }
 0x29b   : > { %v6522_v38 = vpop.f32.mrb[162].mxu0  ;;  %v6089_v43 = vpop.f32.mrb[162].mxu1 }
 0x29c   : > { %v6604_v54 = vadd.f32 %v6522_v38, %v17881_v61  ;;  %v13813_v3 = vpop.f32.mrb[163].mxu0  ;;  %v13795_v12 = vpop.f32.mrb[163].mxu1 }
 0x2a1   : > { %v6527_v26 = vpop.f32.mrb[164].mxu0  ;;  %v7025_v25 = vpop.f32.mrb[164].mxu1 }
 0x2a2   : > { %v6605_v42 = vadd.f32 %v6527_v26, %v17899_v52  ;;  %v13816_v0 = vpop.f32.mrb[165].mxu0  ;;  %v17990_v45 = vadd.f32 %v7025_v25, %v6597_v19  ;;  %v13854_v17 = vpop.f32.mrb[165].mxu1 }
 0x2a3   : > { %v6530_v46 = vpop.f32.mrb[166].mxu0  ;;  %v7028_v9 = vpop.f32.mrb[166].mxu1 }
 0x2a4   : > { %v6606_v62 = vadd.f32 %v6530_v46, %v17905_v2  ;;  %v13817_v7 = vpop.f32.mrb[167].mxu0  ;;  %v17993_v6 = vadd.f32 %v7028_v9, %v6598_v16  ;;  %v13855_v30 = vpop.f32.mrb[167].mxu1 }
 0x2a9   : > { %v6535_v61 = vpop.f32.mrb[168].mxu0  ;;  %v7033_v15 = vpop.f32.mrb[168].mxu1 }
 0x2aa   : > { %v6607_v34 = vadd.f32 %v6535_v61, %v17918_v63  ;;  %v13820_v35 = vpop.f32.mrb[169].mxu0  ;;  %v17996_v39 = vadd.f32 %v7033_v15, %v6599_v14  ;;  %v13858_v52 = vpop.f32.mrb[169].mxu1 }
 0x2ab   : > { %v6538_v58 = vpop.f32.mrb[170].mxu0  ;;  %v7036_v8 = vpop.f32.mrb[170].mxu1 }
 0x2ac   : > { %v6608_v19 = vadd.f32 %v6538_v58, %v17922_v4  ;;  %v13821_v40 = vpop.f32.mrb[171].mxu0  ;;  %v17999_v41 = vadd.f32 %v7036_v8, %v6600_v11  ;;  %v13859_v2 = vpop.f32.mrb[171].mxu1 }
 0x2b1   : > { %v6543_v22 = vpop.f32.mrb[172].mxu0  ;;  %v7041_v31 = vpop.f32.mrb[172].mxu1 }
 0x2b2   : > { %v6609_v16 = vadd.f32 %v6543_v22, %v17933_v24  ;;  %v13824_v32 = vpop.f32.mrb[173].mxu0  ;;  %v18002_v20 = vadd.f32 %v7041_v31, %v6601_v57  ;;  %v13862_v63 = vpop.f32.mrb[173].mxu1 }
 0x2b3   : > { %v6546_v59 = vpop.f32.mrb[174].mxu0  ;;  %v7044_v56 = vpop.f32.mrb[174].mxu1 }
 0x2b4   : > { %v6610_v14 = vadd.f32 %v6546_v59, %v17937_v1  ;;  %v13825_v28 = vpop.f32.mrb[175].mxu0  ;;  %v18005_v37 = vadd.f32 %v7044_v56, %v6602_v49  ;;  %v13863_v4 = vpop.f32.mrb[175].mxu1 }
 0x2b9   : > { %v6551_v44 = vpop.f32.mrb[176].mxu0  ;;  %v7049_v48 = vpop.f32.mrb[176].mxu1 }
 0x2ba   : > { %v6611_v11 = vadd.f32 %v6551_v44, %v17946_v60  ;;  %v13828_v53 = vpop.f32.mrb[177].mxu0  ;;  %v18008_v55 = vadd.f32 %v7049_v48, %v6603_v47  ;;  %v13866_v24 = vpop.f32.mrb[177].mxu1 }
 0x2bb   : > { %v6554_v38 = vpop.f32.mrb[178].mxu0  ;;  %v7052_v10 = vpop.f32.mrb[178].mxu1 }
 0x2bc   : > { %v6612_v57 = vadd.f32 %v6554_v38, %v17950_v21  ;;  %v13829_v3 = vpop.f32.mrb[179].mxu0  ;;  %v18011_v43 = vadd.f32 %v7052_v10, %v6604_v54  ;;  %v13867_v1 = vpop.f32.mrb[179].mxu1 }
 0x2c1   : > { %v6559_v12 = vpop.f32.mrb[180].mxu0  ;;  %v7057_v26 = vpop.f32.mrb[180].mxu1 }
 0x2c2   : > { %v6613_v49 = vadd.f32 %v6559_v12, %v17957_v27  ;;  %v13832_v25 = vpop.f32.mrb[181].mxu0  ;;  %v18014_v0 = vadd.f32 %v7057_v26, %v6605_v42  ;;  %v13870_v60 = vpop.f32.mrb[181].mxu1 }
 0x2c3   : > { %v6562_v17 = vpop.f32.mrb[182].mxu0  ;;  %v7060_v46 = vpop.f32.mrb[182].mxu1 }
 0x2c4   : > { %v6614_v47 = vadd.f32 %v6562_v17, %v17960_v29  ;;  %v13833_v9 = vpop.f32.mrb[183].mxu0  ;;  %v18017_v7 = vadd.f32 %v7060_v46, %v6606_v62  ;;  %v13871_v21 = vpop.f32.mrb[183].mxu1  ;;  %v14328_v46 = vmov 1983009808  }
 0x2c9   : > { %v6567_v30 = vpop.f32.mrb[184].mxu0  ;;  %v7065_v61 = vpop.f32.mrb[184].mxu1 }
 0x2ca   : > { %v6615_v54 = vadd.f32 %v6567_v30, %v17963_v5  ;;  %v13836_v15 = vpop.f32.mrb[185].mxu0  ;;  %v18020_v35 = vadd.f32 %v7065_v61, %v6607_v34  ;;  %v13874_v27 = vpop.f32.mrb[185].mxu1 }
 0x2cb   : > { %v6570_v52 = vpop.f32.mrb[186].mxu0  ;;  %v7068_v58 = vpop.f32.mrb[186].mxu1 }
 0x2cc   : > { %v6616_v42 = vadd.f32 %v6570_v52, %v17966_v50  ;;  %v13837_v8 = vpop.f32.mrb[187].mxu0  ;;  %v18023_v40 = vadd.f32 %v7068_v58, %v6608_v19  ;;  %v13875_v29 = vpop.f32.mrb[187].mxu1 }
 0x2d1   : > { %v6575_v2 = vpop.f32.mrb[188].mxu0  ;;  %v7073_v22 = vpop.f32.mrb[188].mxu1 }
 0x2d2   : > { %v18026_v62 = vadd.f32 %v6575_v2, %v17969_v33  ;;  %v13840_v31 = vpop.f32.mrb[189].mxu0  ;;  %v18028_v5 = vadd.f32 %v7073_v22, %v6609_v16  ;;  %v13878_v32 = vpop.f32.mrb[189].mxu1 }
 0x2d3   : > { %v6578_v34 = vpop.f32.mrb[190].mxu0  ;;  %v7076_v59 = vpop.f32.mrb[190].mxu1 }
 0x2d4   : > { %v18031_v63 = vadd.f32 %v6578_v34, %v17972_v23  ;;  %v13841_v50 = vpop.f32.mrb[191].mxu0  ;;  %v18033_v56 = vadd.f32 %v7076_v59, %v6610_v14  ;;  %v13879_v19 = vpop.f32.mrb[191].mxu1 }
 0x2d9   : > { %v6583_v28 = vpop.f32.mrb[192].mxu0  ;;  %v7081_v33 = vpop.f32.mrb[192].mxu1 }
 0x2da   : > { %v18036_v4 = vadd.f32 %v6583_v28, %v17975_v51  ;;  %v13844_v44 = vpop.f32.mrb[193].mxu0  ;;  %v18038_v48 = vadd.f32 %v7081_v33, %v6611_v11  ;;  %v13882_v16 = vpop.f32.mrb[193].mxu1 }
 0x2db   : > { %v6586_v53 = vpop.f32.mrb[194].mxu0  ;;  %v7084_v23 = vpop.f32.mrb[194].mxu1 }
 0x2dc   : > { %v18041_v24 = vadd.f32 %v6586_v53, %v17978_v13  ;;  %v13845_v38 = vpop.f32.mrb[195].mxu0  ;;  %v18043_v10 = vadd.f32 %v7084_v23, %v6612_v57  ;;  %v13883_v14 = vpop.f32.mrb[195].mxu1  ;;  %v7604_v13 = vunpack.c.l.s4 %v14328_v46 }
 0x2de   : > { %v7605_v57 = vunpack.c.0.s8 %v7604_v13 }
 0x2e1   : > { %v6591_v3 = vpop.f32.mrb[196].mxu0  ;;  %v7089_v51 = vpop.f32.mrb[196].mxu1 }
 0x2e2   : > { %v18046_v1 = vadd.f32 %v6591_v3, %v17986_v18  ;;  %v13848_v12 = vpop.f32.mrb[197].mxu0  ;;  %v18048_v26 = vadd.f32 %v7089_v51, %v6613_v49  ;;  %v13886_v11 = vpop.f32.mrb[197].mxu1  ;;  %v18055_v18 = vld [vmem:[%s20746_s2] ss:$0 sm:$0xff] }
 0x2e3   : > { %v6594_v25 = vpop.f32.mrb[198].mxu0  ;;  %v7092_v60 = vpop.f32.mrb[198].mxu1 }
 0x2e4   : > { %v13849_v17 = vpop.f32.mrb[199].mxu0  ;;  %v18050_v9 = vadd.f32 %v7092_v60, %v6614_v47  ;;  %v13887_v21 = vpop.f32.mrb[199].mxu1  ;;  %v21849_v47 = vld [vmem:[#allocation2_spill] sm:$0xff] }
 0x2e5   : > { %v18062_v29 = vsub.s32 %v7605_v57, %v21849_v47 }
 0x2e9   : > { %v7393_v30 = vpop.f32.mrb[200].mxu0  ;;  %v7097_v61 = vpop.f32.mrb[200].mxu1 }
 0x2ea   : > { %v7495_v49 = vadd.f32 %v7393_v30, %v17990_v45  ;;  %v13908_v15 = vpop.f32.mrb[201].mxu0  ;;  %v18058_v27 = vadd.f32 %v7097_v61, %v6615_v54  ;;  %v13890_v52 = vpop.f32.mrb[201].mxu1 }
 0x2eb   : > { %v7396_v58 = vpop.f32.mrb[202].mxu0  ;;  %v7100_v2 = vpop.f32.mrb[202].mxu1 }
 0x2ec   : > { %21848 = vst [vmem:[#allocation5_spill] sm:$0xff] %v18058_v27  ;;  %v7527_v8 = vadd.f32 %v18055_v18, %v7495_v49  ;;  %v7496_v22 = vadd.f32 %v7396_v58, %v17993_v6  ;;  %v13909_v31 = vpop.f32.mrb[203].mxu0  ;;  %v18065_v32 = vadd.f32 %v7100_v2, %v6616_v42  ;;  %v13891_v34 = vpop.f32.mrb[203].mxu1 }
 0x2ee   : > { %21850 = vst [vmem:[#allocation214_spill] sm:$0xff] %v18065_v32  ;;  %v7552_v59 = vmax.f32 %v7527_v8, 0.0  ;;  %v7528_v45 = vadd.f32 %v18055_v18, %v7496_v22 }
 0x2f0   : > { %v7602_v50 = vcombine.high %v7552_v59, %v7552_v59  ;;  %v7609_v54 = vrot.slane %v7552_v59, %v18062_v29  ;;  %v7553_v19 = vmax.f32 %v7528_v45, 0.0 }
 0x2f1   : > { %v7401_v28 = vpop.f32.mrb[204].mxu0  ;;  %v7105_v23 = vpop.f32.mrb[204].mxu1 }
 0x2f2   : > { %v7616_v33 = vrot.slane %v7602_v50, %v18062_v29  ;;  %v7617_v44 = vcombine.high %v7609_v54, %v7609_v54  ;;  %v7619_v16 = vcombine.high %v7553_v19, %v7553_v19  ;;  %v7626_v53 = vrot.slane %v7553_v19, %v18062_v29  ;;  %v13912_v6 = vpop.f32.mrb[205].mxu0  ;;  %v13894_v14 = vpop.f32.mrb[205].mxu1 }
 0x2f3   : > { %v18072_v42 = vadd.f32 %v7105_v23, %v18026_v62  ;;  %v7497_v38 = vadd.f32 %v7401_v28, %v17996_v39  ;;  %v7404_v3 = vpop.f32.mrb[206].mxu0  ;;  %v7108_v60 = vpop.f32.mrb[206].mxu1 }
 0x2f4   : > { %v7618_v51 = vcombine.high %v7616_v33, %v7616_v33  ;;  %v8018_v12 = vcombine.low %v7609_v54, %v7617_v44  ;;  %v7633_v11 = vrot.slane %v7619_v16, %v18062_v29  ;;  %v7634_v25 = vcombine.high %v7626_v53, %v7626_v53  ;;  %v13913_v17 = vpop.f32.mrb[207].mxu0  ;;  %v13895_v62 = vpop.f32.mrb[207].mxu1 }
 0x2f5   : > { %21851 = vst [vmem:[#allocation215_spill] sm:$0xff] %v18072_v42  ;;  %v7529_v46 = vadd.f32 %v18055_v18, %v7497_v38  ;;  %v18078_v13 = vadd.f32 %v7108_v60, %v18031_v63  ;;  %v7498_v21 = vadd.f32 %v7404_v3, %v17999_v41 }
 0x2f6   : > { %v8019_v57 = vcombine.low %v7616_v33, %v7618_v51  ;;  %v8035_v30 = vcombine.low %v7626_v53, %v7634_v25  ;;  %v8026_v49 = vrot.slane %v8018_v12, %v18062_v29  ;;  %v8049_v58 = vrot.slane %v7633_v11, %v18062_v29 }
 0x2f7   : > { %21852 = vst [vmem:[#allocation42_spill] sm:$0xff] %v18078_v13  ;;  %v7554_v39 = vmax.f32 %v7529_v46, 0.0  ;;  %v7530_v61 = vadd.f32 %v18055_v18, %v7498_v21  ;;  %v7635_v8 = vcombine.high %v7633_v11, %v7633_v11 }
 0x2f8   : > { %v8033_v15 = vrot.slane %v8019_v57, %v18062_v29  ;;  %v8042_v52 = vrot.slane %v8035_v30, %v18062_v29 }
 0x2f9   : > { %v7636_v47 = vcombine.high %v7554_v39, %v7554_v39  ;;  %v7643_v63 = vrot.slane %v7554_v39, %v18062_v29  ;;  %v7555_v2 = vmax.f32 %v7530_v61, 0.0  ;;  %v7409_v41 = vpop.f32.mrb[208].mxu0  ;;  %v7113_v34 = vpop.f32.mrb[208].mxu1 }
 0x2fa   : > { %v18087_v22 = vcombine.low %v8026_v49, %v8033_v15  ;;  %v18089_v31 = vcombine.low %v8042_v52, %v8049_v58  ;;  %v7499_v59 = vadd.f32 %v7409_v41, %v18002_v20  ;;  %v13916_v45 = vpop.f32.mrb[209].mxu0  ;;  %v13898_v33 = vpop.f32.mrb[209].mxu1  ;;  %v18097_v23 = vadd.f32 %v7113_v34, %v18036_v4 }
 0x2fb   : > { %v7650_v50 = vrot.slane %v7636_v47, %v18062_v29  ;;  %v7651_v54 = vcombine.high %v7643_v63, %v7643_v63  ;;  %v8051_v19 = vcombine.low %v7635_v8, %v7643_v63  ;;  %v7653_v28 = vcombine.high %v7555_v2, %v7555_v2  ;;  %v7412_v44 = vpop.f32.mrb[210].mxu0  ;;  %v7116_v6 = vpop.f32.mrb[210].mxu1 }
 0x2fc   : > { %v8508_v16 = vpack.c.bf16 %v18089_v31, %v18087_v22  ;;  %v7660_v53 = vrot.slane %v7555_v2, %v18062_v29  ;;  %21853 = vst [vmem:[#allocation28_spill] sm:$0xff] %v18097_v23  ;;  %v13917_v38 = vpop.f32.mrb[211].mxu0  ;;  %v13899_v51 = vpop.f32.mrb[211].mxu1  ;;  %v7531_v11 = vadd.f32 %v18055_v18, %v7499_v59  ;;  %v18104_v46 = vadd.f32 %v7116_v6, %v18041_v24 }
 0x2fd   : > { %v8052_v14 = vcombine.low %v7651_v54, %v7650_v50  ;;  %v7652_v20 = vcombine.high %v7650_v50, %v7650_v50  ;;  %v7667_v3 = vrot.slane %v7653_v28, %v18062_v29  ;;  %v8059_v25 = vrot.slane %v8051_v19, %v18062_v29 }
 0x2fe   : > { %v7668_v12 = vcombine.high %v7660_v53, %v7660_v53  ;;  %21854 = vst [vmem:[#allocation44_spill] sm:$0xff] %v18104_v46  ;;  %v7556_v39 = vmax.f32 %v7531_v11, 0.0  ;;  %v7500_v52 = vadd.f32 %v7412_v44, %v18005_v37 }
 0x2ff   : > { %v8066_v60 = vrot.slane %v8052_v14, %v18062_v29  ;;  %v8068_v17 = vcombine.low %v7652_v20, %v7660_v53  ;;  %v7669_v21 = vcombine.high %v7667_v3, %v7667_v3 }
 0x300   : > { %v8082_v57 = vrot.slane %v7668_v12, %v18062_v29  ;;  %v7670_v47 = vcombine.high %v7556_v39, %v7556_v39  ;;  %v7677_v63 = vrot.slane %v7556_v39, %v18062_v29  ;;  %v7532_v50 = vadd.f32 %v18055_v18, %v7500_v52 }
 0x301   : > { %v18106_v4 = vcombine.low %v8059_v25, %v8066_v60  ;;  %v8075_v62 = vrot.slane %v8068_v17, %v18062_v29  ;;  %v7417_v30 = vpop.f32.mrb[212].mxu0  ;;  %v7121_v61 = vpop.f32.mrb[212].mxu1  ;;  %v8084_v59 = vcombine.low %v7667_v3, %v7669_v21 }
 0x302   : > { %v13920_v49 = vpop.f32.mrb[213].mxu0  ;;  %v18114_v58 = vadd.f32 %v7121_v61, %v18046_v1  ;;  %v13902_v8 = vpop.f32.mrb[213].mxu1  ;;  %v7501_v2 = vadd.f32 %v7417_v30, %v18008_v55  ;;  %v7684_v1 = vrot.slane %v7670_v47, %v18062_v29  ;;  %v7685_v19 = vcombine.high %v7677_v63, %v7677_v63 }
 0x303   : > { %v18110_v15 = vcombine.low %v8075_v62, %v8082_v57  ;;  %v7420_v24 = vpop.f32.mrb[214].mxu0  ;;  %v7124_v34 = vpop.f32.mrb[214].mxu1  ;;  %v7557_v33 = vmax.f32 %v7532_v50, 0.0  ;;  %v8092_v38 = vrot.slane %v8084_v59, %v18062_v29 }
 0x304   : > { %21855 = vst [vmem:[#allocation43_spill] sm:$0xff] %v18114_v58  ;;  %v13921_v41 = vpop.f32.mrb[215].mxu0  ;;  %v7502_v37 = vadd.f32 %v7420_v24, %v18011_v43  ;;  %v13903_v54 = vpop.f32.mrb[215].mxu1  ;;  %v7533_v28 = vadd.f32 %v18055_v18, %v7501_v2  ;;  %v7686_v55 = vcombine.high %v7684_v1, %v7684_v1  ;;  %v8085_v53 = vcombine.low %v7677_v63, %v7685_v19 }
 0x305   : > { %v8509_v45 = vpack.c.bf16 %v18110_v15, %v18106_v4  ;;  %v7687_v14 = vcombine.high %v7557_v33, %v7557_v33  ;;  %v7694_v20 = vrot.slane %v7557_v33, %v18062_v29 }
 0x306   : > { %v7534_v44 = vadd.f32 %v18055_v18, %v7502_v37  ;;  %v7558_v6 = vmax.f32 %v7533_v28, 0.0  ;;  %v8099_v43 = vrot.slane %v8085_v53, %v18062_v29  ;;  %v8101_v12 = vcombine.low %v7684_v1, %v7686_v55 }
 0x307   : > { %v7701_v17 = vrot.slane %v7687_v14, %v18062_v29  ;;  %v7702_v21 = vcombine.high %v7694_v20, %v7694_v20  ;;  %v8115_v39 = vrot.slane %v7694_v20, %v18062_v29 }
 0x308   : > { %v7559_v3 = vmax.f32 %v7534_v44, 0.0  ;;  %v7704_v11 = vcombine.high %v7558_v6, %v7558_v6  ;;  %v7711_v25 = vrot.slane %v7558_v6, %v18062_v29  ;;  %v18130_v57 = vcombine.low %v8092_v38, %v8099_v43 }
 0x309   : > { %v7425_v51 = vpop.f32.mrb[216].mxu0  ;;  %v8108_v30 = vrot.slane %v8101_v12, %v18062_v29  ;;  %v8117_v52 = vcombine.low %v7702_v21, %v7701_v17  ;;  %v7703_v24 = vcombine.high %v7701_v17, %v7701_v17 }
 0x30a   : > { %v13924_v60 = vpop.f32.mrb[217].mxu0  ;;  %v7718_v61 = vrot.slane %v7704_v11, %v18062_v29  ;;  %v7719_v8 = vcombine.high %v7711_v25, %v7711_v25  ;;  %v7721_v2 = vcombine.high %v7559_v3, %v7559_v3  ;;  %v7503_v59 = vadd.f32 %v7425_v51, %v18014_v0 }
 0x30b   : > { %v7428_v62 = vpop.f32.mrb[218].mxu0  ;;  %v18135_v47 = vcombine.low %v8108_v30, %v8115_v39  ;;  %v8118_v41 = vcombine.low %v7703_v24, %v7711_v25  ;;  %v8125_v50 = vrot.slane %v8117_v52, %v18062_v29  ;;  %v12991_v0 = vpack.c.bf16 %v18089_v31, %v18089_v31 }
 0x30c   : > { %v13925_v49 = vpop.f32.mrb[219].mxu0  ;;  %v7720_v63 = vcombine.high %v7718_v61, %v7718_v61  ;;  %v8134_v34 = vcombine.low %v7719_v8, %v7718_v61  ;;  %v7735_v28 = vrot.slane %v7721_v2, %v18062_v29  ;;  %v7535_v33 = vadd.f32 %v18055_v18, %v7503_v59 }
 0x30d   : > { %v8510_v37 = vpack.c.bf16 %v18135_v47, %v18130_v57  ;;  %v8132_v1 = vrot.slane %v8118_v41, %v18062_v29  ;;  %v7504_v55 = vadd.f32 %v7428_v62, %v18017_v7  ;;  %v7728_v14 = vrot.slane %v7559_v3, %v18062_v29 }
 0x30e   : > { %v8148_v54 = vrot.slane %v7720_v63, %v18062_v29  ;;  %v8141_v19 = vrot.slane %v8134_v34, %v18062_v29  ;;  %v7560_v51 = vmax.f32 %v7535_v33, 0.0  ;;  %v7737_v11 = vcombine.high %v7735_v28, %v7735_v28 }
 0x30f   : > { %v18149_v6 = vcombine.low %v8125_v50, %v8132_v1  ;;  %v18160_v7 = vrot.slane %v8508_v16, %v18062_v29  ;;  %v18163_v25 = vrot.slane %v12991_v0, %v18062_v29  ;;  %v7736_v60 = vcombine.high %v7728_v14, %v7728_v14 }
 0x310   : > { %v18151_v38 = vcombine.low %v8141_v19, %v8148_v54  ;;  %v7738_v17 = vcombine.high %v7560_v51, %v7560_v51  ;;  %v8151_v21 = vcombine.low %v7735_v28, %v7737_v11  ;;  %v7745_v62 = vrot.slane %v7560_v51, %v18062_v29 }
 0x311   : > { %v7433_v44 = vpop.f32.mrb[220].mxu0  ;;  %21856 = vst [vmem:[#allocation46_spill] sm:$0xff] %v18160_v7  ;;  %21857 = vst [vmem:[#allocation45_spill] sm:$0xff] %v18163_v25  ;;  %v18170_v39 = vcombine.high %v18160_v7, %v18160_v7  ;;  %v18174_v22 = vcombine.high %v18163_v25, %v18163_v25  ;;  %v8150_v31 = vcombine.low %v7728_v14, %v7736_v60  ;;  %v8747_v49 = vshrl.u32 %v18160_v7, 16 }
 0x312   : > { %v13928_v53 = vpop.f32.mrb[221].mxu0  ;;  %v8511_v12 = vpack.c.bf16 %v18151_v38, %v18149_v6  ;;  %v7752_v16 = vrot.slane %v7738_v17, %v18062_v29  ;;  %v7753_v52 = vcombine.high %v7745_v62, %v7745_v62  ;;  %v7536_v24 = vadd.f32 %v18055_v18, %v7504_v55 }
 0x313   : > { %v7436_v20 = vpop.f32.mrb[222].mxu0  ;;  %21858 = vst [vmem:[#allocation48_spill] sm:$0xff] %v18170_v39  ;;  %v7505_v8 = vadd.f32 %v7433_v44, %v18020_v35  ;;  %v12993_v41 = vpack.c.bf16 %v18135_v47, %v18135_v47  ;;  %v8165_v34 = vrot.slane %v8151_v21, %v18062_v29  ;;  %v8158_v35 = vrot.slane %v8150_v31, %v18062_v29 }
 0x314   : > { %v13929_v43 = vpop.f32.mrb[223].mxu0  ;;  %v7506_v59 = vadd.f32 %v7436_v20, %v18023_v40  ;;  %v8167_v50 = vcombine.low %v7745_v62, %v7753_v52  ;;  %v7561_v54 = vmax.f32 %v7536_v24, 0.0  ;;  %v7754_v1 = vcombine.high %v7752_v16, %v7752_v16 }
 0x315   : > { %v7537_v19 = vadd.f32 %v18055_v18, %v7505_v8  ;;  %v8181_v33 = vrot.slane %v7752_v16, %v18062_v29  ;;  %v12992_v14 = vpack.c.bf16 %v18110_v15, %v18110_v15  ;;  %v18197_v20 = vrot.slane %v12993_v41, %v18062_v29 }
 0x316   : > { %v7538_v44 = vadd.f32 %v18055_v18, %v7506_v59  ;;  %v8174_v55 = vrot.slane %v8167_v50, %v18062_v29  ;;  %v7755_v53 = vcombine.high %v7561_v54, %v7561_v54  ;;  %v7762_v0 = vrot.slane %v7561_v54, %v18062_v29 }
 0x317   : > { %v7562_v40 = vmax.f32 %v7537_v19, 0.0  ;;  %21859 = vst [vmem:[#allocation47_spill] sm:$0xff] %v18197_v20  ;;  %v18199_v51 = vcombine.low %v8158_v35, %v8165_v34  ;;  %v18208_v31 = vrot.slane %v8747_v49, 6  ;;  %v18225_v49 = vrot.slane %v8510_v37, %v18062_v29 }
 0x318   : > { %v18201_v43 = vmax.f32 %v7538_v44, 0.0  ;;  %v18205_v60 = vcombine.low %v8174_v55, %v8181_v33  ;;  %v7769_v17 = vrot.slane %v7755_v53, %v18062_v29  ;;  %v7770_v21 = vcombine.high %v7762_v0, %v7762_v0 }
 0x319   : > { %v18165_v3 = vpop.f32.mrb[224].mxu0  ;;  %v8183_v62 = vcombine.low %v7754_v1, %v7762_v0  ;;  %v7772_v16 = vcombine.high %v7562_v40, %v7562_v40  ;;  %v7779_v52 = vrot.slane %v7562_v40, %v18062_v29  ;;  %21861 = vst [vmem:[#allocation29_spill] sm:$0xff] %v18225_v49  ;;  %v18232_v4 = vrot.slane %v12992_v14, %v18062_v29 }
 0x31a   : > { %v13932_v30 = vpop.f32.mrb[225].mxu0  ;;  %v7796_v24 = vrot.slane %v18201_v43, %v18062_v29  ;;  %v8184_v34 = vcombine.low %v7770_v21, %v7769_v17  ;;  %v7771_v54 = vcombine.high %v7769_v17, %v7769_v17  ;;  %v9766_v15 = vrot.slane %v18197_v20, 7 }
 0x31b   : > { %v18177_v61 = vpop.f32.mrb[226].mxu0  ;;  %v8191_v50 = vrot.slane %v8183_v62, %v18062_v29  ;;  %v7786_v1 = vrot.slane %v7772_v16, %v18062_v29  ;;  %v7787_v19 = vcombine.high %v7779_v52, %v7779_v52  ;;  %21862 = vst [vmem:[#allocation63_spill] sm:$0xff] %v18232_v4  ;;  %v9743_v57 = vrot.slane %v18170_v39, 7 }
 0x31c   : > { %v13933_v63 = vpop.f32.mrb[227].mxu0  ;;  %v8200_v37 = vcombine.low %v7771_v54, %v7779_v52  ;;  %v7804_v33 = vcombine.high %v7796_v24, %v7796_v24  ;;  %v18246_v55 = vcombine.high %v18225_v49, %v18225_v49  ;;  %v18252_v53 = vrot.slane %v8511_v12, %v18062_v29 }
 0x31d   : > { %v18219_v63 = vrot.slane %v8509_v45, %v18062_v29  ;;  %v8198_v45 = vrot.slane %v8184_v34, %v18062_v29  ;;  %v7788_v47 = vcombine.high %v7786_v1, %v7786_v1  ;;  %v8214_v35 = vrot.slane %v7787_v19, %v18062_v29 }
 0x31e   : > { %21864 = vst [vmem:[#allocation65_spill] sm:$0xff] %v18246_v55  ;;  %v13022_v0 = vrot.slane %v18160_v7, 9  ;;  %v8207_v14 = vrot.slane %v8200_v37, %v18062_v29  ;;  %v9746_v21 = vrot.slane %v18163_v25, 7  ;;  %v13024_v16 = vrot.slane %v18225_v49, 9 }
 0x31f   : > { %21860 = vst [vmem:[#allocation3_spill] sm:$0xff] %v18219_v63  ;;  %v18242_v44 = vcombine.high %v18219_v63, %v18219_v63  ;;  %v18255_v40 = vcombine.low %v8191_v50, %v8198_v45  ;;  %v8216_v17 = vcombine.low %v7786_v1, %v7788_v47  ;;  %v9768_v6 = vrot.slane %v9766_v15, 2 }
 0x320   : > { %v9745_v52 = vrot.slane %v9743_v57, 2  ;;  %v8217_v54 = vcombine.low %v7796_v24, %v7804_v33  ;;  %v18276_v1 = vcombine.high %v18232_v4, %v18232_v4  ;;  %v18282_v45 = vcombine.high %v18252_v53, %v18252_v53 }
 0x321   : > { %v18203_v11 = vpop.f32.mrb[228].mxu0  ;;  %21863 = vst [vmem:[#allocation49_spill] sm:$0xff] %v18242_v44  ;;  %v8224_v50 = vrot.slane %v8216_v17, %v18062_v29  ;;  %v9749_v47 = vrot.slane %v18174_v22, 7  ;;  %v9753_v37 = vrot.slane %v18242_v44, 7  ;;  %v9763_v41 = vrot.slane %v18246_v55, 7 }
 0x322   : > { %v13936_v30 = vpop.f32.mrb[229].mxu0  ;;  %v8231_v33 = vrot.slane %v8217_v54, %v18062_v29  ;;  %v13023_v24 = vrot.slane %v18219_v63, 9  ;;  %v7789_v12 = vcombine.high %v18201_v43, %v18201_v43  ;;  %v9759_v46 = vrot.slane %v18276_v1, 7 }
 0x323   : > { %v18213_v8 = vpop.f32.mrb[230].mxu0  ;;  %v18263_v30 = vcombine.high %v18197_v20, %v18197_v20  ;;  %v9755_v2 = vrot.slane %v9753_v37, 2  ;;  %v13025_v23 = vrot.slane %v18252_v53, 9  ;;  %v9765_v42 = vrot.slane %v9763_v41, 2 }
 0x324   : > { %v13937_v59 = vpop.f32.mrb[231].mxu0  ;;  %v18304_v54 = vcombine.low %v8224_v50, %v8231_v33  ;;  %v9754_v13 = vsel %vm18293_vm12, %v13023_v24, %v9753_v37  ;;  %v9744_v27 = vsel %vm18293_vm12, %v13022_v0, %v9743_v57  ;;  %v9764_v37 = vsel %vm18293_vm12, %v13024_v16, %v9763_v41 }
 0x325   : > { %v18271_v59 = vcombine.low %v8207_v14, %v8214_v35  ;;  %v9756_v35 = vrot.slane %v18232_v4, 7  ;;  %v9769_v28 = vrot.slane %v18263_v30, 7  ;;  %v18325_v24 = vsel %vm18293_vm12, %v9765_v42, %v9766_v15 }
 0x326   : > { %21870 = vst [vmem:[#allocation64_spill] sm:$0xff] %v18325_v24 }
 0x327   : > { %v9758_v58 = vrot.slane %v9756_v35, 2  ;;  %v9757_v50 = vsel %vm18293_vm12, %v9755_v2, %v9756_v35  ;;  %v21872_v2 = vshrl.u32 %v18163_v25, 16  ;;  %v18342_v42 = vsel %vm18293_vm12, %v9768_v6, %v9769_v28 }
 0x328   : > { %21873 = vst [vmem:[#allocation66_spill] sm:$0xff] %v18342_v42  ;;  %v8784_v28 = vshll.u32 %v18219_v63, 16 }
 0x329   : > { %v18259_v62 = vpop.f32.mrb[232].mxu0  ;;  %v8772_v35 = vrot.slane %v21872_v2, 6  ;;  %v9760_v41 = vsel %vm18293_vm12, %v9758_v58, %v9759_v46  ;;  %v10849_v2 = vcombine.low %v9754_v13, %v9757_v50  ;;  %v8790_v58 = vshll.u32 %v18242_v44, 16 }
 0x32a   : > { %v13940_v34 = vpop.f32.mrb[233].mxu0  ;;  %v9880_v15 = vcombine.low %v9757_v50, %v9760_v41  ;;  %v10850_v46 = vcombine.low %v9760_v41, %v9764_v37 }
 0x32b   : > { %v18278_v19 = vpop.f32.mrb[234].mxu0  ;;  %v9748_v34 = vrot.slane %v9746_v21, 2 }
 0x32c   : > { %v13941_v14 = vpop.f32.mrb[235].mxu0  ;;  %v18366_v50 = vrot.slane %v10850_v46, %v18062_v29  ;;  %v9888_v41 = vrot.slane %v9880_v15, %v18062_v29  ;;  %v8776_v15 = vshll.u32 %v18174_v22, 16 }
 0x32d   : > { %v9747_v14 = vsel %vm18293_vm12, %v9745_v52, %v9746_v21  ;;  %v21081_v21 = vrot.slane %v18282_v45, 7  ;;  %v21869_v52 = vshll.u32 %v18160_v7, 16  ;;  %v9750_v43 = vsel %vm18293_vm12, %v9748_v34, %v9749_v47 }
 0x32e   : > { %v9863_v0 = vcombine.low %v9744_v27, %v9747_v14  ;;  %v7803_v34 = vrot.slane %v7789_v12, %v18062_v29  ;;  %v9864_v16 = vcombine.low %v9750_v43, %v9754_v13  ;;  %v9881_v27 = vcombine.low %v9764_v37, %v18325_v24  ;;  %21877 = vst [vmem:[#allocation75_spill] sm:$0xff] %v18366_v50 }
 0x32f   : > { %v8752_v32 = vrot.slane %v21869_v52, 7  ;;  %v18331_v57 = vsel %vm18293_vm12, %v13025_v23, %v21081_v21  ;;  %v18363_v13 = vrot.slane %v10849_v2, %v18062_v29  ;;  %v8834_v7 = vshll.u32 %v18197_v20, 16 }
 0x330   : > { %21871 = vst [vmem:[#allocation67_spill] sm:$0xff] %v18331_v57  ;;  %v9871_v23 = vrot.slane %v9863_v0, %v18062_v29  ;;  %v9897_v12 = vcombine.low %v18342_v42, %v18331_v57  ;;  %v18352_v43 = vrot.slane %v9881_v27, %v18062_v29  ;;  %v7805_v37 = vcombine.high %v7803_v34, %v7803_v34 }
 0x331   : > { %v18319_v33 = vpop.f32.mrb[236].mxu0  ;;  %v8753_v6 = vor.u32 %v8752_v32, %v18208_v31  ;;  %21876 = vst [vmem:[#allocation33_spill] sm:$0xff] %v18363_v13  ;;  %v8756_v27 = vshll.u32 %v18170_v39, 16  ;;  %v7507_v42 = vadd.f32 %v18165_v3, %v18028_v5  ;;  %v8778_v57 = vrot.slane %v8776_v15, 7 }
 0x332   : > { %v13944_v47 = vpop.f32.mrb[237].mxu0  ;;  %21874 = vst [vmem:[#allocation69_spill] sm:$0xff] %v18352_v43  ;;  %v8233_v24 = vcombine.low %v7803_v34, %v7805_v37  ;;  %v7508_v34 = vadd.f32 %v18177_v61, %v18033_v56  ;;  %v7509_v37 = vadd.f32 %v18203_v11, %v18038_v48 }
 0x333   : > { %v18338_v52 = vpop.f32.mrb[238].mxu0  ;;  %v9878_v47 = vrot.slane %v9864_v16, %v18062_v29  ;;  %v18360_v16 = vrot.slane %v9897_v12, %v18062_v29  ;;  %v8758_v2 = vrot.slane %v8756_v27, 7  ;;  %v8754_v31 = vrot.slane %v8753_v6, 2 }
 0x334   : > { %v13945_v14 = vpop.f32.mrb[239].mxu0  ;;  %v7539_v5 = vadd.f32 %v18055_v18, %v7507_v42  ;;  %v7540_v42 = vadd.f32 %v18055_v18, %v7508_v34  ;;  %v8240_v48 = vrot.slane %v8233_v24, %v18062_v29  ;;  %v8726_v34 = vld [vmem:[%s20747_s3] sm:$0xf] }
 0x335   : > { %v9879_v0 = vcombine.low %v9871_v23, %v9878_v47  ;;  %21875 = vst [vmem:[#allocation68_spill] sm:$0xff] %v18360_v16  ;;  %v8760_v14 = vshrl.u32 %v18170_v39, 16  ;;  %v8766_v47 = vshll.u32 %v18163_v25, 16  ;;  %v8759_v23 = vsel %vm18397_vm3, %v8754_v31, %v8758_v2 }
 0x336   : > { %v21893_v39 = vrot.slane %v18282_v45, 7 }
 0x337   : > { %14037 = vmatmul.mubr.msk.bf16.vlgmr.msra.gmra.mrb[252].mxu0 %vm9309_vm13, %v9879_v0  ;;  %v8762_v46 = vrot.slane %v8760_v14, 6  ;;  %v8781_v0 = vshrl.u32 %v18219_v63, 16  ;;  %v8768_v21 = vrot.slane %v8766_v47, 7  ;;  %v9896_v47 = vcombine.low %v9888_v41, %v18352_v43 }
 0x338   : > { %14040 = vmatprep.mubr.msk.bf16.mxu0 %vm14327_vm4, %v21251_v36  ;;  %v8824_v63 = vshll.u32 %v18246_v55, 16 }
 0x339   : > { %v18383_v12 = vpop.f32.mrb[240].mxu0  ;;  %v8763_v14 = vor.u32 %v8762_v46, %v8758_v2  ;;  %v8783_v50 = vrot.slane %v8781_v0, 6  ;;  %v8773_v13 = vor.u32 %v8772_v35, %v8768_v21  ;;  %v7564_v0 = vmax.f32 %v7539_v5, 0.0 }
 0x33a   : > { %v13948_v32 = vpop.f32.mrb[241].mxu0 }
 0x33b   : > { %v18392_v22 = vpop.f32.mrb[242].mxu0  ;;  %v8786_v32 = vrot.slane %v8784_v28, 7  ;;  %v8764_v3 = vrot.slane %v8763_v14, 2  ;;  %v8774_v46 = vrot.slane %v8773_v13, 2  ;;  %v18409_v28 = vrot.slane %v8790_v58, 7 }
 0x33c   : > { %v13949_v6 = vpop.f32.mrb[243].mxu0  ;;  %v7806_v56 = vcombine.high %v7564_v0, %v7564_v0  ;;  %v7813_v61 = vrot.slane %v7564_v0, %v18062_v29 }
 0x33d   : > { %v8787_v25 = vor.u32 %v8786_v32, %v8783_v50  ;;  %v8769_v35 = vsel %vm18397_vm3, %v8764_v3, %v8768_v21  ;;  %v7541_v50 = vadd.f32 %v18055_v18, %v7509_v37  ;;  %v8779_v58 = vsel %vm18397_vm3, %v8774_v46, %v8778_v57 }
 0x33e   : > { %v9156_v15 = vcombine.low %v8759_v23, %v8769_v35  ;;  %v7565_v21 = vmax.f32 %v7540_v42, 0.0  ;;  %v7820_v2 = vrot.slane %v7806_v56, %v18062_v29  ;;  %v7821_v14 = vcombine.high %v7813_v61, %v7813_v61 }
 0x33f   : > { %v8788_v41 = vrot.slane %v8787_v25, 2  ;;  %14041 = vmatmul.mubr.msk.bf16.gmra.mrb[0].mxu0 %vm9309_vm13, %v9896_v47  ;;  %v7566_v13 = vmax.f32 %v7541_v50, 0.0  ;;  %v8794_v32 = vshrl.u32 %v18242_v44, 16  ;;  %v8247_v47 = vrot.slane %v7813_v61, %v18062_v29 }
 0x340   : > { %14044 = vmatprep.mubr.msk.bf16.mxu0 %vm14327_vm4, %v21251_v36  ;;  %v9164_v57 = vrot.slane %v9156_v15, %v18062_v29  ;;  %v7823_v5 = vcombine.high %v7565_v21, %v7565_v21  ;;  %v7830_v3 = vrot.slane %v7565_v21, %v18062_v29  ;;  %v8249_v46 = vcombine.low %v7821_v14, %v7820_v2 }
 0x341   : > { %v18418_v11 = vpop.f32.mrb[244].mxu0  ;;  %v18425_v25 = vsel %vm18397_vm3, %v8788_v41, %v18409_v28  ;;  %v7822_v0 = vcombine.high %v7820_v2, %v7820_v2  ;;  %v7840_v35 = vcombine.high %v7566_v13, %v7566_v13  ;;  %v12995_v41 = vpack.c.bf16 %v18205_v60, %v18205_v60 }
 0x342   : > { %v13952_v31 = vpop.f32.mrb[245].mxu0  ;;  %v9157_v24 = vcombine.low %v8779_v58, %v18425_v25  ;;  %v18443_v42 = vcombine.low %v8240_v48, %v8247_v47  ;;  %v7837_v50 = vrot.slane %v7823_v5, %v18062_v29  ;;  %v7838_v15 = vcombine.high %v7830_v3, %v7830_v3 }
 0x343   : > { %v18432_v6 = vpop.f32.mrb[246].mxu0  ;;  %v21882_v56 = vpack.c.bf16 %v18151_v38, %v18151_v38  ;;  %v8250_v21 = vcombine.low %v7822_v0, %v7830_v3  ;;  %v9627_v31 = vsel %vm9337_vm0, %v8726_v34, 0  ;;  %v8796_v48 = vrot.slane %v8794_v32, 6 }
 0x344   : > { %v13953_v37 = vpop.f32.mrb[247].mxu0  ;;  %v9171_v23 = vrot.slane %v9157_v24, %v18062_v29  ;;  %v8514_v24 = vpack.c.bf16 %v18443_v42, %v18304_v54  ;;  %v7839_v2 = vcombine.high %v7837_v50, %v7837_v50  ;;  %v8266_v14 = vcombine.low %v7838_v15, %v7837_v50 }
 0x345   : > { %v18450_v61 = vrot.slane %v21882_v56, %v18062_v29  ;;  %v8257_v47 = vrot.slane %v8249_v46, %v18062_v29  ;;  %v8264_v5 = vrot.slane %v8250_v21, %v18062_v29  ;;  %v7847_v38 = vrot.slane %v7566_v13, %v18062_v29 }
 0x346   : > { %v9172_v58 = vcombine.low %v9164_v57, %v9171_v23  ;;  %v7854_v37 = vrot.slane %v7840_v35, %v18062_v29  ;;  %v18463_v3 = vrot.slane %v12995_v41, %v18062_v29  ;;  %v8273_v54 = vrot.slane %v8266_v14, %v18062_v29 }
 0x347   : > { %v8280_v34 = vrot.slane %v7839_v2, %v18062_v29  ;;  %v12996_v23 = vpack.c.bf16 %v18271_v59, %v18271_v59  ;;  %v18471_v46 = vcombine.low %v8257_v47, %v8264_v5  ;;  %v18475_v0 = vcombine.high %v18450_v61, %v18450_v61 }
 0x348   : > { %13961 = vmatmul.mubr.msk.bf16.vlgmr.msra.gmra.mrb[216].mxu1 %vm9309_vm13, %v9172_v58  ;;  %21884 = vst [vmem:[#allocation85_spill] sm:$0xff] %v18463_v3  ;;  %v9776_v35 = vrot.slane %v18450_v61, 7  ;;  %v8797_v41 = vor.u32 %v8796_v48, %v18409_v28  ;;  %v21885_v15 = vpack.c.bf16 %v18205_v60, %v18199_v51  ;;  %v7855_v21 = vcombine.high %v7847_v38, %v7847_v38 }
 0x349   : > { %v18460_v57 = vpop.f32.mrb[248].mxu0  ;;  %13964 = vmatprep.mubr.msk.bf16.mxu1 %vm14327_vm4, %v21251_v36  ;;  %13997 = vmatpush3.bf16.msra.mxu1 %v9627_v31  ;;  %v18486_v58 = vcombine.low %v8273_v54, %v8280_v34  ;;  %v7856_v31 = vcombine.high %v7854_v37, %v7854_v37  ;;  %v21088_v14 = vrot.slane %v18463_v3, 7  ;;  %v8800_v28 = vshll.u32 %v18232_v4, 16 }
 0x34a   : > { %21883 = vst [vmem:[#allocation96_spill] sm:$0xff] %v18460_v57  ;;  %v13956_v32 = vpop.f32.mrb[249].mxu0  ;;  %14072 = vmatprep.subr.bf16.mxu1 %v21251_v36  ;;  %v18484_v56 = vrot.slane %v21885_v15, %v18062_v29  ;;  %v18494_v48 = vcombine.high %v18463_v3, %v18463_v3  ;;  %v21887_v51 = vpack.c.bf16 %v18271_v59, %v18255_v40  ;;  %v9778_v34 = vrot.slane %v9776_v35, 2 }
 0x34b   : > { %v7492_v13 = vpop.f32.mrb[250].mxu0  ;;  %v18503_v47 = vrot.slane %v12996_v23, %v18062_v29  ;;  %v9779_v32 = vrot.slane %v18475_v0, 7  ;;  %v8282_v59 = vcombine.low %v7847_v38, %v7855_v21  ;;  %v8283_v15 = vcombine.low %v7854_v37, %v7856_v31 }
 0x34c   : > { %v13957_v50 = vpop.f32.mrb[251].mxu0  ;;  %21886 = vst [vmem:[#allocation70_spill] sm:$0xff] %v18484_v56  ;;  %v18500_v60 = vrot.slane %v21887_v51, %v18062_v29  ;;  %v8798_v13 = vrot.slane %v8797_v41, 2  ;;  %v18517_v23 = vrot.slane %v21088_v14, 2  ;;  %v8802_v51 = vrot.slane %v8800_v28, 7 }
 0x34d   : > { %21889 = vst [vmem:[#allocation98_spill] sm:$0xff] %v18503_v47  ;;  %v18512_v50 = vcombine.high %v18484_v56, %v18484_v56  ;;  %v8804_v2 = vshrl.u32 %v18232_v4, 16  ;;  %v8815_v54 = vshrl.u32 %v18225_v49, 16  ;;  %v18528_v40 = vcombine.high %v18503_v47, %v18503_v47 }
 0x34e   : > { %21888 = vst [vmem:[#allocation97_spill] sm:$0xff] %v18500_v60  ;;  %v18524_v41 = vcombine.high %v18500_v60, %v18500_v60  ;;  %v12997_v37 = vpack.c.bf16 %v18443_v42, %v18443_v42  ;;  %v18534_v21 = vrot.slane %v8514_v24, %v18062_v29  ;;  %v8803_v31 = vsel %vm18397_vm3, %v8798_v13, %v8802_v51 }
 0x34f   : > { %21890 = vst [vmem:[#allocation87_spill] sm:$0xff] %v18512_v50  ;;  %v8806_v28 = vrot.slane %v8804_v2, 6  ;;  %v8290_v14 = vrot.slane %v8282_v59, %v18062_v29  ;;  %v8297_v5 = vrot.slane %v8283_v15, %v18062_v29  ;;  %v8817_v43 = vrot.slane %v8815_v54, 6 }
 0x350   : > { %21891 = vst [vmem:[#allocation86_spill] sm:$0xff] %v18524_v41  ;;  %21892 = vst [vmem:[#allocation89_spill] sm:$0xff] %v18534_v21  ;;  %v8818_v4 = vshll.u32 %v18225_v49, 16  ;;  %v8810_v38 = vshll.u32 %v18276_v1, 16  ;;  %v8828_v42 = vshrl.u32 %v18246_v55, 16  ;;  %v10531_v13 = vcombine.low %v18425_v25, %v8803_v31 }
 0x351   : > { %v8807_v44 = vor.u32 %v8806_v28, %v8802_v51  ;;  %v7510_v2 = vadd.f32 %v18213_v8, %v18043_v10  ;;  %v8826_v15 = vrot.slane %v8824_v63, 7  ;;  %v9775_v51 = vrot.slane %v21893_v39, 2 }
 0x352   : > { %v8820_v24 = vrot.slane %v8818_v4, 7  ;;  %v8830_v54 = vrot.slane %v8828_v42, 6  ;;  %v18551_v1 = vrot.slane %v12997_v37, %v18062_v29  ;;  %v18553_v28 = vcombine.low %v8290_v14, %v8297_v5 }
 0x353   : > { %v8808_v59 = vrot.slane %v8807_v44, 2  ;;  %v7542_v4 = vadd.f32 %v18055_v18, %v7510_v2  ;;  %v8812_v49 = vrot.slane %v8810_v38, 7  ;;  %v18558_v25 = vsel %vm18293_vm12, %v9775_v51, %v9776_v35 }
 0x354   : > { %21894 = vst [vmem:[#allocation88_spill] sm:$0xff] %v18551_v1  ;;  %v8821_v55 = vor.u32 %v8820_v24, %v8817_v43  ;;  %v8831_v57 = vor.u32 %v8830_v54, %v8826_v15  ;;  %21895 = vst [vmem:[#allocation91_spill] sm:$0xff] %v18558_v25  ;;  %v18562_v10 = vsel %vm18293_vm12, %v9778_v34, %v9779_v32  ;;  %v8836_v39 = vrot.slane %v8834_v7, 7 }
 0x355   : > { %21896 = vst [vmem:[#allocation90_spill] sm:$0xff] %v18562_v10  ;;  %v7567_v63 = vmax.f32 %v7542_v4, 0.0  ;;  %v9898_v44 = vcombine.low %v18558_v25, %v18562_v10  ;;  %v8813_v43 = vsel %vm18397_vm3, %v8808_v59, %v8812_v49  ;;  %v7511_v5 = vadd.f32 %v18259_v62, %v18048_v26 }
 0x356   : > { %v8822_v8 = vrot.slane %v8821_v55, 2  ;;  %v8832_v14 = vrot.slane %v8831_v57, 2  ;;  %v8838_v35 = vshrl.u32 %v18197_v20, 16  ;;  %v9173_v34 = vcombine.low %v8803_v31, %v8813_v43 }
 0x357   : > { %v7857_v32 = vcombine.high %v7567_v63, %v7567_v63  ;;  %v7864_v7 = vrot.slane %v7567_v63, %v18062_v29  ;;  %v18579_v49 = vrot.slane %v9898_v44, %v18062_v29  ;;  %v7543_v57 = vadd.f32 %v18055_v18, %v7511_v5 }
 0x358   : > { %v8827_v38 = vsel %vm18397_vm3, %v8822_v8, %v8826_v15  ;;  %v18576_v55 = vsel %vm18397_vm3, %v8832_v14, %v8836_v39  ;;  %v18584_v62 = vrot.slane %v10531_v13, %v18062_v29  ;;  %v8840_v15 = vrot.slane %v8838_v35, 6 }
 0x359   : > { %v10532_v37 = vcombine.low %v8813_v43, %v8827_v38  ;;  %21897 = vst [vmem:[#allocation14_spill] sm:$0xff] %v18579_v49  ;;  %v9174_v26 = vcombine.low %v8827_v38, %v18576_v55  ;;  %v7871_v31 = vrot.slane %v7857_v32, %v18062_v29  ;;  %v7872_v42 = vcombine.high %v7864_v7, %v7864_v7 }
 0x35a   : > { %v9913_v2 = vcombine.low %v18360_v16, %v18579_v49  ;;  %v7568_v59 = vmax.f32 %v7543_v57, 0.0  ;;  %v9181_v54 = vrot.slane %v9173_v34, %v18062_v29  ;;  %v8849_v5 = vshrl.u32 %v18252_v53, 16 }
 0x35b   : > { %v18588_v24 = vrot.slane %v10532_v37, %v18062_v29  ;;  %v18594_v18 = vrot.slane %v9174_v26, %v18062_v29  ;;  %v8299_v51 = vcombine.low %v7864_v7, %v7872_v42  ;;  %v8313_v13 = vrot.slane %v7871_v31, %v18062_v29 }
 0x35c   : > { %14045 = vmatmul.mubr.msk.bf16.gmra.mrb[4].mxu0 %vm9309_vm13, %v9913_v2  ;;  %v7873_v8 = vcombine.high %v7871_v31, %v7871_v31  ;;  %v7874_v63 = vcombine.high %v7568_v59, %v7568_v59  ;;  %v7881_v44 = vrot.slane %v7568_v59, %v18062_v29  ;;  %v8852_v35 = vshll.u32 %v18252_v53, 16 }
 0x35d   : > { %21898 = vst [vmem:[#allocation32_spill] sm:$0xff] %v18594_v18  ;;  %v9189_v43 = vcombine.low %v9181_v54, %v18594_v18  ;;  %v8306_v14 = vrot.slane %v8299_v51, %v18062_v29  ;;  %14048 = vmatprep.mubr.msk.bf16.mxu0 %vm14327_vm4, %v21251_v36  ;;  %v8841_v7 = vor.u32 %v8840_v15, %v8836_v39  ;;  %v8851_v57 = vrot.slane %v8849_v5, 6 }
 0x35e   : > { %v18608_v38 = vrot.slane %v7874_v63, %v18062_v29  ;;  %v7889_v34 = vcombine.high %v7881_v44, %v7881_v44  ;;  %v8315_v32 = vcombine.low %v7873_v8, %v7881_v44  ;;  %v8854_v26 = vrot.slane %v8852_v35, 7 }
 0x35f   : > { %13965 = vmatmul.mubr.msk.bf16.gmra.mrb[220].mxu1 %vm9309_vm13, %v9189_v43  ;;  %v18611_v37 = vcombine.low %v8306_v14, %v8313_v13  ;;  %v8858_v31 = vshll.u32 %v18282_v45, 16  ;;  %v18616_v42 = vcombine.high %v18534_v21, %v18534_v21  ;;  %v8844_v59 = vshll.u32 %v18263_v30, 16 }
 0x360   : > { %13968 = vmatprep.mubr.msk.bf16.mxu1 %vm14327_vm4, %v21251_v36  ;;  %v8316_v2 = vcombine.low %v7889_v34, %v18608_v38  ;;  %v8862_v39 = vshrl.u32 %v18282_v45, 16  ;;  %v8323_v54 = vrot.slane %v8315_v32, %v18062_v29  ;;  %v8855_v51 = vor.u32 %v8854_v26, %v8851_v57 }
 0x361   : > { %v8860_v13 = vrot.slane %v8858_v31, 7  ;;  %v8868_v44 = vshll.u32 %v18450_v61, 16  ;;  %v8872_v43 = vshrl.u32 %v18450_v61, 16  ;;  %v21103_v14 = vrot.slane %v18551_v1, 7 }
 0x362   : > { %v8330_v8 = vrot.slane %v8316_v2, %v18062_v29  ;;  %v8864_v63 = vrot.slane %v8862_v39, 6  ;;  %v8842_v5 = vrot.slane %v8841_v7, 2  ;;  %v8856_v30 = vrot.slane %v8855_v51, 2 }
 0x363   : > { %v8878_v35 = vshll.u32 %v18475_v0, 16  ;;  %v8870_v15 = vrot.slane %v8868_v44, 7  ;;  %v8874_v32 = vrot.slane %v8872_v43, 6  ;;  %v13027_v57 = vrot.slane %v18500_v60, 9 }
 0x364   : > { %v18631_v34 = vcombine.low %v8323_v54, %v8330_v8  ;;  %v8865_v4 = vor.u32 %v8864_v63, %v8860_v13  ;;  %v21899_v26 = vrot.slane %v18503_v47, 7  ;;  %v8846_v39 = vrot.slane %v8844_v59, 7 }
 0x365   : > { %v18641_v7 = vcombine.high %v18551_v1, %v18551_v1  ;;  %v8861_v0 = vsel %vm18397_vm3, %v8856_v30, %v8860_v13  ;;  %v8875_v51 = vor.u32 %v8874_v32, %v8870_v15  ;;  %v21108_v63 = vrot.slane %v18616_v42, 7 }
 0x366   : > { %v18636_v31 = vrot.slane %v21899_v26, 2  ;;  %v8866_v54 = vrot.slane %v8865_v4, 2  ;;  %v18649_v44 = vrot.slane %v21103_v14, 2  ;;  %v8847_v59 = vsel %vm18397_vm3, %v8842_v5, %v8846_v39 }
 0x367   : > { %v8876_v26 = vrot.slane %v8875_v51, 2  ;;  %v8880_v2 = vrot.slane %v8878_v35, 7  ;;  %v9190_v10 = vcombine.low %v8847_v59, %v8861_v0  ;;  %v10548_v4 = vcombine.low %v18576_v55, %v8847_v59 }
 0x368   : > { %v8871_v43 = vsel %vm18397_vm3, %v8866_v54, %v8870_v15  ;;  %v7512_v30 = vadd.f32 %v18278_v19, %v18050_v9  ;;  %v7890_v32 = vcombine.high %v18608_v38, %v18608_v38  ;;  %v9783_v15 = vrot.slane %v18512_v50, 7 }
 0x369   : > { %v10549_v13 = vcombine.low %v8861_v0, %v8871_v43  ;;  %v18662_v14 = vsel %vm18397_vm3, %v8876_v26, %v8880_v2  ;;  %v18665_v5 = vrot.slane %v9190_v10, %v18062_v29  ;;  %v21901_v35 = vrot.slane %v18494_v48, 7  ;;  %v18685_v10 = vld [vmem:[%s20746_s2] ss:$0 sm:$0xff] }
 0x36a   : > { %v9191_v9 = vcombine.low %v8871_v43, %v18662_v14  ;;  %v18677_v19 = vrot.slane %v10548_v4, %v18062_v29  ;;  %v7544_v2 = vadd.f32 %v18685_v10, %v7512_v30  ;;  %v9785_v54 = vrot.slane %v9783_v15, 2  ;;  %v21906_v4 = vld [vmem:[#allocation5_spill] sm:$0xff] }
 0x36b   : > { %21900 = vst [vmem:[#allocation110_spill] sm:$0xff] %v18665_v5  ;;  %v18673_v55 = vsel %vm18293_vm12, %v18517_v23, %v21901_v35  ;;  %v18680_v38 = vrot.slane %v10549_v13, %v18062_v29  ;;  %v21903_v23 = vrot.slane %v18484_v56, 9  ;;  %v21104_v51 = vrot.slane %v18524_v41, 7 }
 0x36c   : > { %21902 = vst [vmem:[#allocation92_spill] sm:$0xff] %v18673_v55  ;;  %v18698_v59 = vrot.slane %v9191_v9, %v18062_v29  ;;  %v7569_v26 = vmax.f32 %v7544_v2, 0.0  ;;  %v7513_v13 = vadd.f32 %v18319_v33, %v21906_v4  ;;  %v21907_v30 = vrot.slane %v18463_v3, 7  ;;  %v21910_v9 = vld [vmem:[#allocation214_spill] sm:$0xff] }
 0x36d   : > { %v18694_v0 = vsel %vm18293_vm12, %v21903_v23, %v9783_v15  ;;  %v18714_v15 = vsel %vm18293_vm12, %v13027_v57, %v21104_v51  ;;  %v7514_v23 = vadd.f32 %v18338_v52, %v21910_v9  ;;  %v8883_v2 = vshrl.u32 %v18484_v56, 16 }
 0x36e   : > { %21904 = vst [vmem:[#allocation112_spill] sm:$0xff] %v18694_v0  ;;  %21905 = vst [vmem:[#allocation111_spill] sm:$0xff] %v18698_v59  ;;  %v18708_v35 = vsel %vm18293_vm12, %v9785_v54, %v21907_v30  ;;  %v9206_v33 = vcombine.low %v18665_v5, %v18698_v59  ;;  %v7891_v4 = vcombine.high %v7569_v26, %v7569_v26  ;;  %v9805_v9 = vrot.slane %v21108_v63, 2 }
 0x36f   : > { %21908 = vst [vmem:[#allocation114_spill] sm:$0xff] %v18708_v35  ;;  %21909 = vst [vmem:[#allocation113_spill] sm:$0xff] %v18714_v15  ;;  %v7898_v39 = vrot.slane %v7569_v26, %v18062_v29  ;;  %v9914_v54 = vcombine.low %v18694_v0, %v18708_v35  ;;  %v12998_v30 = vpack.c.bf16 %v18486_v58, %v18486_v58  ;;  %v21917_v49 = vrot.slane %v18534_v21, 9 }
 0x370   : > { %v9915_v57 = vcombine.low %v18673_v55, %v18714_v15  ;;  %v7545_v43 = vadd.f32 %v18685_v10, %v7513_v13  ;;  %v7546_v52 = vadd.f32 %v18685_v10, %v7514_v23  ;;  %13969 = vmatmul.mubr.msk.bf16.gmra.mrb[224].mxu1 %vm9309_vm13, %v9206_v33  ;;  %v7905_v26 = vrot.slane %v7891_v4, %v18062_v29 }
 0x371   : > { %v7906_v51 = vcombine.high %v7898_v39, %v7898_v39  ;;  %v8332_v8 = vcombine.low %v7890_v32, %v7898_v39  ;;  %v18735_v5 = vrot.slane %v9914_v54, %v18062_v29  ;;  %13972 = vmatprep.mubr.msk.bf16.mxu1 %vm14327_vm4, %v21251_v36  ;;  %v8886_v13 = vshll.u32 %v18484_v56, 16 }
 0x372   : > { %v18738_v18 = vrot.slane %v9915_v57, %v18062_v29  ;;  %v7570_v15 = vmax.f32 %v7545_v43, 0.0  ;;  %v7907_v23 = vcombine.high %v7905_v26, %v7905_v26  ;;  %v8885_v4 = vrot.slane %v8883_v2, 6 }
 0x373   : > { %21911 = vst [vmem:[#allocation116_spill] sm:$0xff] %v18735_v5  ;;  %v8339_v63 = vrot.slane %v8332_v8, %v18062_v29  ;;  %v8346_v33 = vrot.slane %v7906_v51, %v18062_v29  ;;  %v7571_v57 = vmax.f32 %v7546_v52, 0.0  ;;  %v21913_v43 = vpack.c.bf16 %v18486_v58, %v18471_v46 }
 0x374   : > { %21912 = vst [vmem:[#allocation115_spill] sm:$0xff] %v18738_v18  ;;  %v9930_v32 = vcombine.low %v18735_v5, %v18738_v18  ;;  %v7908_v39 = vcombine.high %v7570_v15, %v7570_v15  ;;  %v7915_v54 = vrot.slane %v7570_v15, %v18062_v29  ;;  %v18755_v35 = vrot.slane %v12998_v30, %v18062_v29 }
 0x375   : > { %v18752_v0 = vrot.slane %v21913_v43, %v18062_v29  ;;  %v8347_v8 = vcombine.low %v8339_v63, %v8346_v33  ;;  %v8888_v55 = vrot.slane %v8886_v13, 7  ;;  %v8348_v2 = vcombine.low %v7905_v26, %v7907_v23 }
 0x376   : > { %21915 = vst [vmem:[#allocation117_spill] sm:$0xff] %v18755_v35  ;;  %14049 = vmatmul.mubr.msk.bf16.gmra.mrb[8].mxu0 %vm9309_vm13, %v9930_v32  ;;  %v7922_v18 = vrot.slane %v7908_v39, %v18062_v29  ;;  %v7923_v15 = vcombine.high %v7915_v54, %v7915_v54  ;;  %v21916_v52 = vrot.slane %v18616_v42, 7  ;;  %v21919_v58 = vrot.slane %v18551_v1, 7 }
 0x377   : > { %21914 = vst [vmem:[#allocation134_spill] sm:$0xff] %v18752_v0  ;;  %v8517_v30 = vpack.c.bf16 %v8347_v8, %v18631_v34  ;;  %v8892_v26 = vshll.u32 %v18512_v50, 16  ;;  %14052 = vmatprep.mubr.msk.bf16.mxu0 %vm14327_vm4, %v21251_v36  ;;  %v7932_v33 = vrot.slane %v7571_v57, %v18062_v29  ;;  %v8889_v32 = vor.u32 %v8888_v55, %v8885_v4 }
 0x378   : > { %v18766_v46 = vsel %vm18293_vm12, %v21917_v49, %v21916_v52  ;;  %v18772_v63 = vsel %vm18293_vm12, %v9805_v9, %v21919_v58  ;;  %v7924_v13 = vcombine.high %v7922_v18, %v7922_v18  ;;  %v8349_v23 = vcombine.low %v7915_v54, %v7923_v15 }
 0x379   : > { %21918 = vst [vmem:[#allocation135_spill] sm:$0xff] %v18766_v46  ;;  %21920 = vst [vmem:[#allocation133_spill] sm:$0xff] %v18772_v63  ;;  %v18781_v49 = vcombine.high %v18752_v0, %v18752_v0  ;;  %v18785_v9 = vcombine.high %v18755_v35, %v18755_v35  ;;  %v12999_v34 = vpack.c.bf16 %v18611_v37, %v18611_v37  ;;  %v8896_v15 = vshrl.u32 %v18512_v50, 16 }
 0x37a   : > { %v7925_v39 = vcombine.high %v7571_v57, %v7571_v57  ;;  %v8356_v43 = vrot.slane %v8348_v2, %v18062_v29  ;;  %v8363_v52 = vrot.slane %v8349_v23, %v18062_v29  ;;  %v8365_v54 = vcombine.low %v7922_v18, %v7924_v13 }
 0x37b   : > { %21921 = vst [vmem:[#allocation137_spill] sm:$0xff] %v18781_v49  ;;  %v13000_v4 = vpack.c.bf16 %v8347_v8, %v8347_v8  ;;  %v8894_v58 = vrot.slane %v8892_v26, 7  ;;  %v8902_v51 = vshll.u32 %v18463_v3, 16  ;;  %v8379_v16 = vrot.slane %v7932_v33, %v18062_v29 }
 0x37c   : > { %v18794_v5 = vcombine.low %v8356_v43, %v8363_v52  ;;  %v8372_v25 = vrot.slane %v8365_v54, %v18062_v29  ;;  %v8890_v57 = vrot.slane %v8889_v32, 2  ;;  %v21922_v18 = vpack.c.bf16 %v18611_v37, %v18553_v28 }
 0x37d   : > { %v18807_v8 = vrot.slane %v12999_v34, %v18062_v29  ;;  %v18810_v26 = vrot.slane %v7925_v39, %v18062_v29  ;;  %v7940_v43 = vcombine.high %v7932_v33, %v7932_v33  ;;  %v8898_v32 = vrot.slane %v8896_v15, 6 }
 0x37e   : > { %v18804_v13 = vrot.slane %v21922_v18, %v18062_v29  ;;  %v18812_v52 = vcombine.low %v8372_v25, %v8379_v16  ;;  %v8904_v54 = vrot.slane %v8902_v51, 7  ;;  %v8906_v55 = vshrl.u32 %v18463_v3, 16 }
 0x37f   : > { %21924 = vst [vmem:[#allocation139_spill] sm:$0xff] %v18807_v8  ;;  %v8917_v23 = vshrl.u32 %v18500_v60, 16  ;;  %v8920_v2 = vshll.u32 %v18500_v60, 16  ;;  %v18818_v28 = vrot.slane %v13000_v4, %v18062_v29  ;;  %v8895_v34 = vsel %vm18397_vm3, %v8890_v57, %v8894_v58 }
 0x380   : > { %21923 = vst [vmem:[#allocation136_spill] sm:$0xff] %v18804_v13  ;;  %v8518_v37 = vpack.c.bf16 %v18812_v52, %v18794_v5  ;;  %v8899_v33 = vor.u32 %v8898_v32, %v8894_v58  ;;  %v8908_v16 = vrot.slane %v8906_v55, 6  ;;  %v8926_v51 = vshll.u32 %v18524_v41, 16 }
 0x381   : > { %21925 = vst [vmem:[#allocation138_spill] sm:$0xff] %v18818_v28  ;;  %v8919_v25 = vrot.slane %v8917_v23, 6  ;;  %v8922_v39 = vrot.slane %v8920_v2, 7  ;;  %v18827_v15 = vcombine.high %v18807_v8, %v18807_v8  ;;  %v8912_v56 = vshll.u32 %v18494_v48, 16 }
 0x382   : > { %v8900_v4 = vrot.slane %v8899_v33, 2  ;;  %v18832_v5 = vrot.slane %v8517_v30, %v18062_v29  ;;  %v8909_v50 = vor.u32 %v8908_v16, %v8904_v54  ;;  %v10565_v55 = vcombine.low %v18662_v14, %v8895_v34 }
 0x383   : > { %v8923_v57 = vor.u32 %v8922_v39, %v8919_v25  ;;  %v21927_v58 = vrot.slane %v18755_v35, 7  ;;  %v18841_v23 = vcombine.high %v18818_v28, %v18818_v28  ;;  %v18845_v33 = vcombine.low %v7940_v43, %v18810_v26 }
 0x384   : > { %21926 = vst [vmem:[#allocation36_spill] sm:$0xff] %v18832_v5  ;;  %v8905_v48 = vsel %vm18397_vm3, %v8900_v4, %v8904_v54  ;;  %v8910_v30 = vrot.slane %v8909_v50, 2  ;;  %v18849_v25 = vrot.slane %v8926_v51, 7  ;;  %v18853_v14 = vcombine.high %v18804_v13, %v18804_v13 }
 0x385   : > { %v18837_v2 = vrot.slane %v21927_v58, 2  ;;  %v8924_v16 = vrot.slane %v8923_v57, 2  ;;  %v8914_v58 = vrot.slane %v8912_v56, 7  ;;  %v21929_v18 = vrot.slane %v18524_v41, 7 }
 0x386   : > { %21928 = vst [vmem:[#allocation35_spill] sm:$0xff] %v18853_v14  ;;  %v21930_v43 = vrot.slane %v18807_v8, 7  ;;  %v18865_v50 = vcombine.high %v18832_v5, %v18832_v5  ;;  %v9207_v57 = vcombine.low %v8895_v34, %v8905_v48  ;;  %v18887_v56 = vrot.slane %v10565_v55, %v18062_v29 }
 0x387   : > { %v9795_v32 = vrot.slane %v21929_v18, 2  ;;  %v18870_v51 = vsel %vm18397_vm3, %v8924_v16, %v18849_v25  ;;  %v8915_v4 = vsel %vm18397_vm3, %v8910_v30, %v8914_v58  ;;  %v21935_v18 = vrot.slane %v18503_v47, 7 }
 0x388   : > { %v18860_v3 = vrot.slane %v21930_v43, 2  ;;  %21931 = vst [vmem:[#allocation30_spill] sm:$0xff] %v18865_v50  ;;  %v21932_v43 = vrot.slane %v18818_v28, 7  ;;  %v9208_v60 = vcombine.low %v8915_v4, %v18870_v51  ;;  %v10566_v20 = vcombine.low %v8905_v48, %v8915_v4  ;;  %21934 = vst [vmem:[#allocation51_spill] sm:$0xff] %v18887_v56 }
 0x389   : > { %v18884_v16 = vrot.slane %v9207_v57, %v18062_v29  ;;  %v18893_v34 = vsel %vm18293_vm12, %v9795_v32, %v21935_v18  ;;  %v21937_v30 = vrot.slane %v18528_v40, 7  ;;  %v9932_v32 = vcombine.low %v18766_v46, %v18772_v63 }
 0x38a   : > { %v18879_v39 = vrot.slane %v21932_v43, 2  ;;  %21936 = vst [vmem:[#allocation52_spill] sm:$0xff] %v18893_v34  ;;  %v18903_v48 = vrot.slane %v9208_v60, %v18062_v29  ;;  %v18906_v4 = vrot.slane %v10566_v20, %v18062_v29  ;;  %v13001_v18 = vpack.c.bf16 %v18812_v52, %v18812_v52  ;;  %v21942_v60 = vld [vmem:[#allocation42_spill] sm:$0xff] }
 0x38b   : > { %21933 = vst [vmem:[#allocation50_spill] sm:$0xff] %v18884_v16  ;;  %v18900_v58 = vsel %vm18293_vm12, %v18636_v31, %v21937_v30  ;;  %v21941_v31 = vld [vmem:[#allocation215_spill] sm:$0xff]  ;;  %v7516_v30 = vadd.f32 %v18392_v22, %v21942_v60  ;;  %v18928_v52 = vrot.slane %v9932_v32, %v18062_v29  ;;  %v8936_v22 = vshll.u32 %v18503_v47, 16 }
 0x38c   : > { %21938 = vst [vmem:[#allocation159_spill] sm:$0xff] %v18900_v58  ;;  %21939 = vst [vmem:[#allocation140_spill] sm:$0xff] %v18903_v48  ;;  %v9931_v55 = vcombine.low %v18893_v34, %v18900_v58  ;;  %v7515_v43 = vadd.f32 %v18383_v12, %v21941_v31  ;;  %v9223_v20 = vcombine.low %v18884_v16, %v18903_v48  ;;  %v8930_v12 = vshrl.u32 %v18524_v41, 16 }
 0x38d   : > { %21940 = vst [vmem:[#allocation161_spill] sm:$0xff] %v18906_v4  ;;  %21944 = vst [vmem:[#allocation163_spill] sm:$0xff] %v18928_v52  ;;  %v7548_v59 = vadd.f32 %v18685_v10, %v7516_v30  ;;  %v18935_v31 = vrot.slane %v8518_v37, %v18062_v29  ;;  %v8940_v60 = vshrl.u32 %v18503_v47, 16  ;;  %v8951_v32 = vshrl.u32 %v18534_v21, 16 }
 0x38e   : > { %v18925_v63 = vrot.slane %v9931_v55, %v18062_v29  ;;  %v7547_v57 = vadd.f32 %v18685_v10, %v7515_v43  ;;  %13973 = vmatmul.mubr.msk.bf16.gmra.mrb[228].mxu1 %vm9309_vm13, %v9223_v20  ;;  %v8932_v30 = vrot.slane %v8930_v12, 6  ;;  %v8938_v16 = vrot.slane %v8936_v22, 7 }
 0x38f   : > { %21945 = vst [vmem:[#allocation162_spill] sm:$0xff] %v18935_v31  ;;  %13976 = vmatprep.mubr.msk.bf16.mxu1 %vm14327_vm4, %v21251_v36  ;;  %v7573_v43 = vmax.f32 %v7548_v59, 0.0  ;;  %v7941_v37 = vcombine.high %v18810_v26, %v18810_v26  ;;  %v8942_v20 = vrot.slane %v8940_v60, 6  ;;  %v8953_v34 = vrot.slane %v8951_v32, 6 }
 0x390   : > { %21943 = vst [vmem:[#allocation160_spill] sm:$0xff] %v18925_v63  ;;  %v9947_v55 = vcombine.low %v18925_v63, %v18928_v52  ;;  %v7572_v54 = vmax.f32 %v7547_v57, 0.0  ;;  %v8954_v52 = vshll.u32 %v18534_v21, 16  ;;  %v8946_v57 = vshll.u32 %v18528_v40, 16 }
 0x391   : > { %v7959_v63 = vcombine.high %v7573_v43, %v7573_v43  ;;  %v7966_v59 = vrot.slane %v7573_v43, %v18062_v29  ;;  %v8933_v12 = vor.u32 %v8932_v30, %v18849_v25  ;;  %v8943_v22 = vor.u32 %v8942_v20, %v8938_v16 }
 0x392   : > { %14053 = vmatmul.mubr.msk.bf16.gmra.mrb[12].mxu0 %vm9309_vm13, %v9947_v55  ;;  %v7942_v58 = vcombine.high %v7572_v54, %v7572_v54  ;;  %v7949_v46 = vrot.slane %v7572_v54, %v18062_v29  ;;  %v8956_v55 = vrot.slane %v8954_v52, 7  ;;  %v8960_v41 = vshll.u32 %v18616_v42, 16 }
 0x393   : > { %14056 = vmatprep.mubr.msk.bf16.mxu0 %vm14327_vm4, %v21251_v36  ;;  %v7973_v54 = vrot.slane %v7959_v63, %v18062_v29  ;;  %v8934_v47 = vrot.slane %v8933_v12, 2  ;;  %v8944_v21 = vrot.slane %v8943_v22, 2  ;;  %v18958_v4 = vrot.slane %v13001_v18, %v18062_v29 }
 0x394   : > { %v7956_v26 = vrot.slane %v7942_v58, %v18062_v29  ;;  %v7957_v60 = vcombine.high %v7949_v46, %v7949_v46  ;;  %v8382_v32 = vcombine.low %v7941_v37, %v7949_v46  ;;  %v8957_v40 = vor.u32 %v8956_v55, %v8953_v34 }
 0x395   : > { %v18963_v52 = vcombine.high %v18935_v31, %v18935_v31  ;;  %v8939_v46 = vsel %vm18397_vm3, %v8934_v47, %v8938_v16  ;;  %v8948_v58 = vrot.slane %v8946_v57, 7  ;;  %v21947_v63 = vrot.slane %v18845_v33, %v18062_v29 }
 0x396   : > { %v7958_v56 = vcombine.high %v7956_v26, %v7956_v26  ;;  %v8396_v43 = vrot.slane %v8382_v32, %v18062_v29  ;;  %v8398_v25 = vcombine.low %v7957_v60, %v7956_v26  ;;  %v8958_v30 = vrot.slane %v8957_v40, 2 }
 0x397   : > { %21946 = vst [vmem:[#allocation165_spill] sm:$0xff] %v18963_v52  ;;  %v7974_v20 = vcombine.high %v7966_v59, %v7966_v59  ;;  %v7975_v12 = vcombine.high %v7973_v54, %v7973_v54  ;;  %v8949_v22 = vsel %vm18397_vm3, %v8944_v21, %v8948_v58  ;;  %v8962_v55 = vrot.slane %v8960_v41, 7 }
 0x398   : > { %v8397_v34 = vcombine.low %v21947_v63, %v8396_v43  ;;  %v8405_v18 = vrot.slane %v8398_v25, %v18062_v29  ;;  %v8412_v37 = vrot.slane %v7958_v56, %v18062_v29  ;;  %v8964_v26 = vshrl.u32 %v18616_v42, 16 }
 0x399   : > { %v8970_v47 = vshll.u32 %v18551_v1, 16  ;;  %v9224_v16 = vcombine.low %v8939_v46, %v8949_v22  ;;  %v10582_v33 = vcombine.low %v18870_v51, %v8939_v46  ;;  %v18981_v57 = vcombine.high %v18958_v4, %v18958_v4 }
 0x39a   : > { %v18975_v60 = vcombine.low %v8405_v18, %v8412_v37  ;;  %v8963_v32 = vsel %vm18397_vm3, %v8958_v30, %v8962_v55  ;;  %v8966_v21 = vrot.slane %v8964_v26, 6  ;;  %v21143_v40 = vrot.slane %v18958_v4, 7 }
 0x39b   : > { %v18990_v25 = vrot.slane %v9224_v16, %v18062_v29  ;;  %v18992_v51 = vcombine.low %v7966_v59, %v7974_v20  ;;  %v10583_v58 = vcombine.low %v8949_v22, %v8963_v32  ;;  %v9813_v63 = vrot.slane %v18781_v49, 7 }
 0x39c   : > { %v8519_v43 = vpack.c.bf16 %v18975_v60, %v8397_v34  ;;  %v8967_v46 = vor.u32 %v8966_v21, %v8962_v55  ;;  %v18998_v30 = vcombine.low %v7973_v54, %v7975_v12  ;;  %v8972_v37 = vrot.slane %v8970_v47, 7  ;;  %v21960_v55 = vld [vmem:[#allocation44_spill] sm:$0xff] }
 0x39d   : > { %21948 = vst [vmem:[#allocation164_spill] sm:$0xff] %v18990_v25  ;;  %v19003_v34 = vrot.slane %v10582_v33, %v18062_v29  ;;  %v19006_v59 = vrot.slane %v10583_v58, %v18062_v29  ;;  %v9815_v20 = vrot.slane %v9813_v63, 2  ;;  %v19010_v22 = vrot.slane %v21143_v40, 2  ;;  %v21958_v58 = vld [vmem:[#allocation28_spill] sm:$0xff] }
 0x39e   : > { %v18996_v18 = vrot.slane %v8519_v43, %v18062_v29  ;;  %v8968_v56 = vrot.slane %v8967_v46, 2  ;;  %v21950_v12 = vrot.slane %v18752_v0, 9  ;;  %v21952_v43 = vrot.slane %v18755_v35, 7 }
 0x39f   : > { %21949 = vst [vmem:[#allocation100_spill] sm:$0xff] %v19006_v59  ;;  %v21956_v26 = vrot.slane %v18785_v9, 7  ;;  %v7518_v40 = vadd.f32 %v18432_v6, %v21960_v55  ;;  %v9008_v59 = vshrl.u32 %v18755_v35, 16 }
 0x3a0   : > { %v19015_v54 = vcombine.high %v18996_v18, %v18996_v18  ;;  %v19021_v47 = vsel %vm18293_vm12, %v21950_v12, %v9813_v63  ;;  %v19027_v33 = vsel %vm18397_vm3, %v8968_v56, %v8972_v37  ;;  %v19035_v46 = vsel %vm18293_vm12, %v9815_v20, %v21952_v43 }
 0x3a1   : > { %21951 = vst [vmem:[#allocation60_spill] sm:$0xff] %v19021_v47  ;;  %21953 = vst [vmem:[#allocation59_spill] sm:$0xff] %v19035_v46  ;;  %v9225_v63 = vcombine.low %v8963_v32, %v19027_v33  ;;  %v21954_v12 = vrot.slane %v18641_v7, 7  ;;  %v19052_v21 = vsel %vm18293_vm12, %v18837_v2, %v21956_v26  ;;  %v8429_v20 = vrot.slane %v18998_v30, %v18062_v29 }
 0x3a2   : > { %21957 = vst [vmem:[#allocation82_spill] sm:$0xff] %v19052_v21  ;;  %v9949_v43 = vcombine.low %v19035_v46, %v19052_v21  ;;  %v8974_v2 = vshrl.u32 %v18551_v1, 16  ;;  %v8980_v26 = vshll.u32 %v18641_v7, 16  ;;  %v8988_v21 = vshll.u32 %v18752_v0, 16 }
 0x3a3   : > { %v19045_v56 = vsel %vm18293_vm12, %v18649_v44, %v21954_v12  ;;  %v7517_v44 = vadd.f32 %v18418_v11, %v21958_v58  ;;  %v19063_v12 = vrot.slane %v9225_v63, %v18062_v29  ;;  %v8985_v11 = vshrl.u32 %v18752_v0, 16 }
 0x3a4   : > { %21955 = vst [vmem:[#allocation78_spill] sm:$0xff] %v19045_v56  ;;  %v9948_v32 = vcombine.low %v19045_v56, %v19021_v47  ;;  %v19073_v41 = vrot.slane %v9949_v43, %v18062_v29  ;;  %v7550_v63 = vadd.f32 %v18685_v10, %v7518_v40  ;;  %v8976_v6 = vrot.slane %v8974_v2, 6 }
 0x3a5   : > { %21959 = vst [vmem:[#allocation178_spill] sm:$0xff] %v19063_v12  ;;  %v7549_v16 = vadd.f32 %v18685_v10, %v7517_v44  ;;  %v9240_v58 = vcombine.low %v18990_v25, %v19063_v12  ;;  %v8982_v55 = vrot.slane %v8980_v26, 7  ;;  %v8994_v56 = vshll.u32 %v18781_v49, 16 }
 0x3a6   : > { %v19070_v30 = vrot.slane %v9948_v32, %v18062_v29  ;;  %21962 = vst [vmem:[#allocation180_spill] sm:$0xff] %v19073_v41  ;;  %v8987_v32 = vrot.slane %v8985_v11, 6  ;;  %v7575_v43 = vmax.f32 %v7550_v63, 0.0  ;;  %v8977_v44 = vor.u32 %v8976_v6, %v8972_v37 }
 0x3a7   : > { %v7574_v48 = vmax.f32 %v7549_v16, 0.0  ;;  %13977 = vmatmul.mubr.msk.bf16.gmra.mrb[232].mxu1 %vm9309_vm13, %v9240_v58  ;;  %v8998_v47 = vshrl.u32 %v18781_v49, 16  ;;  %v8990_v16 = vrot.slane %v8988_v21, 7  ;;  %v9004_v26 = vshll.u32 %v18755_v35, 16 }
 0x3a8   : > { %21961 = vst [vmem:[#allocation166_spill] sm:$0xff] %v19070_v30  ;;  %v9964_v7 = vcombine.low %v19070_v30, %v19073_v41  ;;  %13980 = vmatprep.mubr.msk.bf16.mxu1 %vm14327_vm4, %v21251_v36  ;;  %v7993_v11 = vcombine.high %v7575_v43, %v7575_v43  ;;  %v8000_v58 = vrot.slane %v7575_v43, %v18062_v29  ;;  %v8978_v63 = vrot.slane %v8977_v44, 2 }
 0x3a9   : > { %v7976_v40 = vcombine.high %v7574_v48, %v7574_v48  ;;  %v7983_v2 = vrot.slane %v7574_v48, %v18062_v29  ;;  %v8996_v37 = vrot.slane %v8994_v56, 7  ;;  %v8991_v25 = vor.u32 %v8990_v16, %v8987_v32 }
 0x3aa   : > { %14057 = vmatmul.mubr.msk.bf16.gmra.mrb[16].mxu0 %vm9309_vm13, %v9964_v7  ;;  %v9000_v41 = vrot.slane %v8998_v47, 6  ;;  %v8007_v48 = vrot.slane %v7993_v11, %v18062_v29  ;;  %v8008_v46 = vcombine.high %v8000_v58, %v8000_v58  ;;  %v8983_v21 = vsel %vm18397_vm3, %v8978_v63, %v8982_v55 }
 0x3ab   : > { %14060 = vmatprep.mubr.msk.bf16.mxu0 %vm14327_vm4, %v21251_v36  ;;  %v7990_v6 = vrot.slane %v7976_v40, %v18062_v29  ;;  %v7991_v7 = vcombine.high %v7983_v2, %v7983_v2  ;;  %v9006_v30 = vrot.slane %v9004_v26, 7  ;;  %v8992_v56 = vrot.slane %v8991_v25, 2 }
 0x3ac   : > { %v8448_v0 = vcombine.low %v8008_v46, %v8007_v48  ;;  %v9001_v49 = vor.u32 %v9000_v41, %v8996_v37  ;;  %v9014_v40 = vshll.u32 %v18785_v9, 16  ;;  %v10599_v55 = vcombine.low %v19027_v33, %v8983_v21 }
 0x3ad   : > { %v8431_v1 = vcombine.low %v7983_v2, %v7991_v7  ;;  %v8445_v43 = vrot.slane %v7990_v6, %v18062_v29  ;;  %v7992_v44 = vcombine.high %v7990_v6, %v7990_v6  ;;  %v8997_v16 = vsel %vm18397_vm3, %v8992_v56, %v8996_v37  ;;  %v21965_v6 = vld [vmem:[#allocation96_spill] sm:$0xff] }
 0x3ae   : > { %v13002_v2 = vpack.c.bf16 %v18975_v60, %v18975_v60  ;;  %v8462_v26 = vrot.slane %v8448_v0, %v18062_v29  ;;  %v9002_v25 = vrot.slane %v9001_v49, 2  ;;  %v9010_v46 = vrot.slane %v9008_v59, 6  ;;  %v21964_v60 = vld [vmem:[#allocation43_spill] sm:$0xff] }
 0x3af   : > { %v8438_v47 = vrot.slane %v8431_v1, %v18062_v29  ;;  %v8447_v32 = vcombine.low %v7992_v44, %v8000_v58  ;;  %v21963_v41 = vrot.slane %v18992_v51, %v18062_v29  ;;  %v9241_v58 = vcombine.low %v8983_v21, %v8997_v16 }
 0x3b0   : > { %v9007_v33 = vsel %vm18397_vm3, %v9002_v25, %v9006_v30  ;;  %v9011_v63 = vor.u32 %v9010_v46, %v9006_v30  ;;  %v9016_v37 = vrot.slane %v9014_v40, 7  ;;  %v7519_v0 = vadd.f32 %v21965_v6, %v21964_v60 }
 0x3b1   : > { %v19111_v11 = vcombine.low %v21963_v41, %v8429_v20  ;;  %v19113_v9 = vcombine.low %v8438_v47, %v8445_v43  ;;  %v8455_v1 = vrot.slane %v8447_v32, %v18062_v29  ;;  %v19127_v20 = vrot.slane %v9241_v58, %v18062_v29 }
 0x3b2   : > { %v9012_v7 = vrot.slane %v9011_v63, 2  ;;  %v10600_v21 = vcombine.low %v8997_v16, %v9007_v33  ;;  %v7551_v43 = vadd.f32 %v18685_v10, %v7519_v0  ;;  %v9823_v30 = vrot.slane %v18853_v14, 7 }
 0x3b3   : > { %v13044_v51 = vpack.c.bf16 %v19113_v9, %v19113_v9  ;;  %v19124_v59 = vcombine.low %v8455_v1, %v8462_v26  ;;  %21966 = vst [vmem:[#allocation179_spill] sm:$0xff] %v19127_v20  ;;  %v21967_v44 = vrot.slane %v18963_v52, 7  ;;  %v21968_v56 = vrot.slane %v18935_v31, 9 }
 0x3b4   : > { %v19142_v26 = vrot.slane %v13002_v2, %v18062_v29  ;;  %v19148_v10 = vsel %vm18397_vm3, %v9012_v7, %v9016_v37  ;;  %v19151_v25 = vrot.slane %v10599_v55, %v18062_v29  ;;  %v19154_v46 = vrot.slane %v10600_v21, %v18062_v29 }
 0x3b5   : > { %v19137_v40 = vsel %vm18293_vm12, %v21968_v56, %v21967_v44  ;;  %v21969_v47 = vmov %v21967_v44  ;;  %v7576_v41 = vmax.f32 %v7551_v43, 0.0  ;;  %v19157_v1 = vrot.slane %v13044_v51, %v18062_v29 }
 0x3b6   : > { %v9845_v32 = vrot.slane %v21969_v47, 2  ;;  %21970 = vst [vmem:[#allocation182_spill] sm:$0xff] %v19142_v26  ;;  %21971 = vst [vmem:[#allocation181_spill] sm:$0xff] %v19151_v25  ;;  %v9242_v2 = vcombine.low %v9007_v33, %v19148_v10  ;;  %v8009_v58 = vcombine.high %v8007_v48, %v8007_v48  ;;  %v21973_v63 = vrot.slane %v18827_v15, 7 }
 0x3b7   : > { %21972 = vst [vmem:[#allocation184_spill] sm:$0xff] %v19154_v46  ;;  %v8016_v60 = vrot.slane %v7576_v41, %v18062_v29  ;;  %v9825_v6 = vrot.slane %v9823_v30, 2  ;;  %v21159_v0 = vrot.slane %v18865_v50, 7  ;;  %v21976_v48 = vrot.slane %v18804_v13, 9 }
 0x3b8   : > { %v19165_v37 = vsel %vm18293_vm12, %v18860_v3, %v21973_v63  ;;  %v19172_v51 = vrot.slane %v9242_v2, %v18062_v29  ;;  %v9019_v3 = vshrl.u32 %v18804_v13, 16  ;;  %v9022_v7 = vshll.u32 %v18804_v13, 16 }
 0x3b9   : > { %21974 = vst [vmem:[#allocation183_spill] sm:$0xff] %v19165_v37  ;;  %v19178_v33 = vsel %vm18293_vm12, %v21976_v48, %v9823_v30  ;;  %v8017_v21 = vcombine.high %v8016_v60, %v8016_v60  ;;  %v8464_v43 = vcombine.low %v8009_v58, %v8016_v60  ;;  %v21978_v44 = vrot.slane %v18807_v8, 7 }
 0x3ba   : > { %21975 = vst [vmem:[#allocation104_spill] sm:$0xff] %v19172_v51  ;;  %21977 = vst [vmem:[#allocation125_spill] sm:$0xff] %v19178_v33  ;;  %v21980_v47 = vrot.slane %v18832_v5, 9  ;;  %v9257_v41 = vcombine.low %v19127_v20, %v19172_v51  ;;  %v9021_v63 = vrot.slane %v9019_v3, 6  ;;  %v9024_v48 = vrot.slane %v9022_v7, 7 }
 0x3bb   : > { %v19186_v56 = vsel %vm18293_vm12, %v9825_v6, %v21978_v44  ;;  %v8471_v60 = vrot.slane %v8464_v43, %v18062_v29  ;;  %v8478_v6 = vrot.slane %v8017_v21, %v18062_v29  ;;  %v9028_v44 = vshll.u32 %v18853_v14, 16 }
 0x3bc   : > { %21979 = vst [vmem:[#allocation77_spill] sm:$0xff] %v19186_v56  ;;  %v19194_v30 = vsel %vm18293_vm12, %v21980_v47, %v21159_v0  ;;  %v9965_v2 = vcombine.low %v19178_v33, %v19186_v56  ;;  %13981 = vmatmul.mubr.msk.bf16.gmra.mrb[236].mxu1 %vm9309_vm13, %v9257_v41  ;;  %v9032_v55 = vshrl.u32 %v18853_v14, 16  ;;  %v9038_v0 = vshll.u32 %v18807_v8, 16 }
 0x3bd   : > { %v9966_v58 = vcombine.low %v19165_v37, %v19194_v30  ;;  %v19216_v3 = vcombine.high %v19142_v26, %v19142_v26  ;;  %v8479_v21 = vcombine.low %v8471_v60, %v8478_v6  ;;  %13984 = vmatprep.mubr.msk.bf16.mxu1 %vm14327_vm4, %v21251_v36  ;;  %v9030_v7 = vrot.slane %v9028_v44, 7 }
 0x3be   : > { %v19207_v47 = vrot.slane %v9965_v2, %v18062_v29  ;;  %v9042_v43 = vshrl.u32 %v18807_v8, 16  ;;  %v9034_v49 = vrot.slane %v9032_v55, 6  ;;  %v9025_v33 = vor.u32 %v9024_v48, %v9021_v63 }
 0x3bf   : > { %v19210_v16 = vrot.slane %v9966_v58, %v18062_v29  ;;  %v8521_v20 = vpack.c.bf16 %v8479_v21, %v19124_v59  ;;  %v13076_v12 = vpack.c.bf16 %v8479_v21, %v8479_v21  ;;  %v9040_v56 = vrot.slane %v9038_v0, 7 }
 0x3c0   : > { %21981 = vst [vmem:[#allocation58_spill] sm:$0xff] %v19207_v47  ;;  %v9035_v60 = vor.u32 %v9034_v49, %v9030_v7  ;;  %v9044_v6 = vrot.slane %v9042_v43, 6  ;;  %v9053_v44 = vshrl.u32 %v18832_v5, 16  ;;  %v9056_v37 = vshll.u32 %v18832_v5, 16 }
 0x3c1   : > { %21982 = vst [vmem:[#allocation198_spill] sm:$0xff] %v19210_v16  ;;  %v9981_v58 = vcombine.low %v19207_v47, %v19210_v16  ;;  %v21983_v41 = vrot.slane %v18958_v4, 7  ;;  %v19237_v59 = vrot.slane %v8521_v20, %v18062_v29  ;;  %v19240_v0 = vrot.slane %v13076_v12, %v18062_v29 }
 0x3c2   : > { %v21984_v49 = vrot.slane %v19142_v26, 7  ;;  %v9048_v20 = vshll.u32 %v18827_v15, 16  ;;  %v21987_v12 = vrot.slane %v19157_v1, 7  ;;  %v9036_v48 = vrot.slane %v9035_v60, 2 }
 0x3c3   : > { %14061 = vmatmul.mubr.msk.bf16.gmra.mrb[20].mxu0 %vm9309_vm13, %v9981_v58  ;;  %v19233_v2 = vsel %vm18293_vm12, %v9845_v32, %v21983_v41  ;;  %v21985_v32 = vpack.c.bf16 %v19113_v9, %v19111_v11  ;;  %v19262_v41 = vcombine.high %v19237_v59, %v19237_v59  ;;  %v19266_v58 = vcombine.high %v19240_v0, %v19240_v0 }
 0x3c4   : > { %14064 = vmatprep.mubr.msk.bf16.mxu0 %vm14327_vm4, %v21251_v36  ;;  %v19246_v63 = vrot.slane %v21984_v49, 2  ;;  %v19258_v43 = vrot.slane %v21987_v12, 2  ;;  %v9026_v49 = vrot.slane %v9025_v33, 2  ;;  %v9045_v55 = vor.u32 %v9044_v6, %v9040_v56 }
 0x3c5   : > { %v19253_v21 = vrot.slane %v21985_v32, %v18062_v29  ;;  %v9055_v11 = vrot.slane %v9053_v44, 6  ;;  %v9058_v9 = vrot.slane %v9056_v37, 7  ;;  %v11381_v32 = vshll.u32 %v19240_v0, 16 }
 0x3c6   : > { %v13097_v12 = vrot.slane %v19237_v59, 9  ;;  %v11585_v16 = vrot.slane %v19262_v41, 7  ;;  %v11588_v47 = vrot.slane %v19240_v0, 7  ;;  %v11591_v13 = vrot.slane %v19266_v58, 7 }
 0x3c7   : > { %21986 = vst [vmem:[#allocation185_spill] sm:$0xff] %v19253_v21  ;;  %v9050_v14 = vrot.slane %v9048_v20, 7  ;;  %v9062_v33 = vshll.u32 %v18865_v50, 16  ;;  %v9031_v44 = vsel %vm18397_vm3, %v9026_v49, %v9030_v7  ;;  %v11385_v15 = vshrl.u32 %v19240_v0, 16 }
 0x3c8   : > { %v19279_v37 = vsel %vm18293_vm12, %v13097_v12, %v11585_v16  ;;  %v11587_v6 = vrot.slane %v11585_v16, 2  ;;  %v11590_v8 = vrot.slane %v11588_v47, 2  ;;  %v9041_v5 = vsel %vm18397_vm3, %v9036_v48, %v9040_v56 }
 0x3c9   : > { %v9046_v35 = vrot.slane %v9045_v55, 2  ;;  %v19286_v20 = vrot.slane %v11381_v32, 7  ;;  %v9059_v46 = vor.u32 %v9058_v9, %v9055_v11  ;;  %v9258_v12 = vcombine.low %v9031_v44, %v9041_v5 }
 0x3ca   : > { %v19290_v60 = vsel %vm18293_vm12, %v11587_v6, %v11588_v47  ;;  %v19294_v16 = vsel %vm18293_vm12, %v11590_v8, %v11591_v13  ;;  %v9064_v49 = vrot.slane %v9062_v33, 7  ;;  %v10616_v25 = vcombine.low %v19148_v10, %v9031_v44 }
 0x3cb   : > { %21988 = vst [vmem:[#allocation200_spill] sm:$0xff] %v19290_v60  ;;  %21989 = vst [vmem:[#allocation199_spill] sm:$0xff] %v19294_v16  ;;  %v9051_v7 = vsel %vm18397_vm3, %v9046_v35, %v9050_v14  ;;  %v9060_v55 = vrot.slane %v9059_v46, 2  ;;  %v19302_v48 = vrot.slane %v9258_v12, %v18062_v29  ;;  %v21992_v13 = vrot.slane %v18865_v50, 7 }
 0x3cc   : > { %v10617_v47 = vcombine.low %v9041_v5, %v9051_v7  ;;  %v19305_v11 = vrot.slane %v10616_v25, %v18062_v29  ;;  %v21993_v9 = vrot.slane %v18841_v23, 7  ;;  %v9983_v14 = vcombine.low %v19137_v40, %v19233_v2 }
 0x3cd   : > { %21990 = vst [vmem:[#allocation202_spill] sm:$0xff] %v19302_v48  ;;  %v9835_v8 = vrot.slane %v21992_v13, 2  ;;  %v9065_v10 = vsel %vm18397_vm3, %v9060_v55, %v9064_v49  ;;  %v9066_v46 = vshrl.u32 %v18865_v50, 16  ;;  %v21995_v33 = vrot.slane %v18818_v28, 7 }
 0x3ce   : > { %21991 = vst [vmem:[#allocation201_spill] sm:$0xff] %v19305_v11  ;;  %v19314_v35 = vsel %vm18293_vm12, %v18879_v39, %v21993_v9  ;;  %v19321_v5 = vrot.slane %v10617_v47, %v18062_v29  ;;  %v9259_v32 = vcombine.low %v9051_v7, %v9065_v10  ;;  %v19333_v6 = vrot.slane %v9983_v14, %v18062_v29 }
 0x3cf   : > { %v19330_v39 = vsel %vm18293_vm12, %v9835_v8, %v21995_v33  ;;  %v9072_v44 = vshll.u32 %v18818_v28, 16  ;;  %v9068_v47 = vrot.slane %v9066_v46, 6  ;;  %v9076_v7 = vshrl.u32 %v18818_v28, 16 }
 0x3d0   : > { %21994 = vst [vmem:[#allocation204_spill] sm:$0xff] %v19321_v5  ;;  %21996 = vst [vmem:[#allocation203_spill] sm:$0xff] %v19333_v6  ;;  %v9982_v55 = vcombine.low %v19330_v39, %v19314_v35  ;;  %v19342_v13 = vrot.slane %v9259_v32, %v18062_v29  ;;  %v9082_v8 = vshll.u32 %v18841_v23, 16  ;;  %v9087_v14 = vshrl.u32 %v18935_v31, 16 }
 0x3d1   : > { %v9074_v9 = vrot.slane %v9072_v44, 7  ;;  %v9069_v25 = vor.u32 %v9068_v47, %v9064_v49  ;;  %v9078_v56 = vrot.slane %v9076_v7, 6  ;;  %v9090_v12 = vshll.u32 %v18935_v31, 16 }
 0x3d2   : > { %21997 = vst [vmem:[#allocation128_spill] sm:$0xff] %v19342_v13  ;;  %v19347_v33 = vrot.slane %v9982_v55, %v18062_v29  ;;  %v19350_v51 = vrot.slane %v11385_v15, 6  ;;  %v9274_v46 = vcombine.low %v19302_v48, %v19342_v13  ;;  %v9089_v50 = vrot.slane %v9087_v14, 6 }
 0x3d3   : > { %v9096_v32 = vshll.u32 %v18963_v52, 16  ;;  %v9070_v44 = vrot.slane %v9069_v25, 2  ;;  %v9079_v28 = vor.u32 %v9078_v56, %v9074_v9  ;;  %v9092_v5 = vrot.slane %v9090_v12, 7 }
 0x3d4   : > { %21998 = vst [vmem:[#allocation144_spill] sm:$0xff] %v19347_v33  ;;  %v9998_v23 = vcombine.low %v19347_v33, %v19333_v6  ;;  %13985 = vmatmul.mubr.msk.bf16.gmra.mrb[240].mxu1 %vm9309_vm13, %v9274_v46  ;;  %v9084_v49 = vrot.slane %v9082_v8, 7  ;;  %v9100_v47 = vshrl.u32 %v18963_v52, 16  ;;  %v9106_v15 = vshll.u32 %v18958_v4, 16 }
 0x3d5   : > { %v9098_v55 = vrot.slane %v9096_v32, 7  ;;  %13988 = vmatprep.mubr.msk.bf16.mxu1 %vm14327_vm4, %v21251_v36  ;;  %v9075_v7 = vsel %vm18397_vm3, %v9070_v44, %v9074_v9  ;;  %v9080_v14 = vrot.slane %v9079_v28, 2  ;;  %v9093_v25 = vor.u32 %v9092_v5, %v9089_v50 }
 0x3d6   : > { %14065 = vmatmul.mubr.msk.bf16.gmra.mrb[24].mxu0 %vm9309_vm13, %v9998_v23  ;;  %v9853_v56 = vrot.slane %v19015_v54, 7  ;;  %v9102_v12 = vrot.slane %v9100_v47, 6  ;;  %v9108_v46 = vrot.slane %v9106_v15, 7  ;;  %v10633_v8 = vcombine.low %v9065_v10, %v9075_v7 }
 0x3d7   : > { %14068 = vmatprep.mubr.msk.bf16.mxu0 %vm14327_vm4, %v21251_v36  ;;  %v21999_v32 = vrot.slane %v18981_v57, 7  ;;  %v9085_v9 = vsel %vm18397_vm3, %v9080_v14, %v9084_v49  ;;  %v9094_v28 = vrot.slane %v9093_v25, 2  ;;  %v22000_v50 = vrot.slane %v18996_v18, 9 }
 0x3d8   : > { %v9855_v10 = vrot.slane %v9853_v56, 2  ;;  %v9103_v44 = vor.u32 %v9102_v12, %v9098_v55  ;;  %v9275_v47 = vcombine.low %v9075_v7, %v9085_v9  ;;  %v22001_v15 = vrot.slane %v19216_v3, 7 }
 0x3d9   : > { %v19373_v23 = vsel %vm18293_vm12, %v19010_v22, %v21999_v32  ;;  %v19381_v5 = vsel %vm18293_vm12, %v22000_v50, %v9853_v56  ;;  %v9099_v14 = vsel %vm18397_vm3, %v9094_v28, %v9098_v55  ;;  %v19395_v25 = vrot.slane %v10633_v8, %v18062_v29 }
 0x3da   : > { %v19388_v22 = vsel %vm18293_vm12, %v19246_v63, %v22001_v15  ;;  %v9999_v49 = vcombine.low %v19373_v23, %v19381_v5  ;;  %v22004_v56 = vrot.slane %v19142_v26, 7  ;;  %v9110_v12 = vshrl.u32 %v18958_v4, 16 }
 0x3db   : > { %22002 = vst [vmem:[#allocation103_spill] sm:$0xff] %v19388_v22  ;;  %22003 = vst [vmem:[#allocation109_spill] sm:$0xff] %v19395_v25  ;;  %v9104_v32 = vrot.slane %v9103_v44, 2  ;;  %v19405_v63 = vrot.slane %v9275_v47, %v18062_v29  ;;  %v10634_v50 = vcombine.low %v9085_v9, %v9099_v14  ;;  %v9116_v28 = vshll.u32 %v18981_v57, 16 }
 0x3dc   : > { %v19401_v7 = vsel %vm18293_vm12, %v9855_v10, %v22004_v56  ;;  %v19410_v55 = vrot.slane %v9999_v49, %v18062_v29  ;;  %v9112_v8 = vrot.slane %v9110_v12, 6  ;;  %v9121_v48 = vshrl.u32 %v18996_v18, 16 }
 0x3dd   : > { %22005 = vst [vmem:[#allocation218_spill] sm:$0xff] %v19405_v63  ;;  %v10000_v15 = vcombine.low %v19401_v7, %v19388_v22  ;;  %v19416_v10 = vsel %vm18397_vm3, %v9104_v32, %v9108_v46  ;;  %v19419_v44 = vrot.slane %v10634_v50, %v18062_v29  ;;  %v9124_v57 = vshll.u32 %v18996_v18, 16 }
 0x3de   : > { %22006 = vst [vmem:[#allocation205_spill] sm:$0xff] %v19410_v55  ;;  %v9276_v49 = vcombine.low %v9099_v14, %v19416_v10  ;;  %v9113_v56 = vor.u32 %v9112_v8, %v9108_v46  ;;  %v9123_v12 = vrot.slane %v9121_v48, 6  ;;  %v9130_v50 = vshll.u32 %v19015_v54, 16 }
 0x3df   : > { %22007 = vst [vmem:[#allocation220_spill] sm:$0xff] %v19419_v44  ;;  %v19424_v47 = vrot.slane %v10000_v15, %v18062_v29  ;;  %v9134_v31 = vshrl.u32 %v19015_v54, 16  ;;  %v9126_v13 = vrot.slane %v9124_v57, 7  ;;  %v9140_v46 = vshll.u32 %v19142_v26, 16 }
 0x3e0   : > { %v19435_v9 = vrot.slane %v9276_v49, %v18062_v29  ;;  %v9114_v15 = vrot.slane %v9113_v56, 2  ;;  %v11388_v48 = vor.u32 %v19350_v51, %v19286_v20  ;;  %v9132_v14 = vrot.slane %v9130_v50, 7 }
 0x3e1   : > { %22008 = vst [vmem:[#allocation219_spill] sm:$0xff] %v19424_v47  ;;  %v10015_v32 = vcombine.low %v19410_v55, %v19424_v47  ;;  %v9136_v8 = vrot.slane %v9134_v31, 6  ;;  %v9144_v33 = vshrl.u32 %v19142_v26, 16  ;;  %v9118_v44 = vrot.slane %v9116_v28, 7  ;;  %v22088_v55 = vld [vmem:[#allocation138_spill] sm:$0xff] }
 0x3e2   : > { %22009 = vst [vmem:[#allocation222_spill] sm:$0xff] %v19435_v9  ;;  %v9291_v52 = vcombine.low %v19405_v63, %v19435_v9  ;;  %v9127_v25 = vor.u32 %v9126_v13, %v9123_v12  ;;  %v9142_v49 = vrot.slane %v9140_v46, 7  ;;  %v9150_v11 = vshll.u32 %v19216_v3, 16 }
 0x3e3   : > { %14069 = vmatmul.mubr.msk.bf16.gmra.mrb[28].mxu0 %vm9309_vm13, %v10015_v32  ;;  %v9137_v56 = vor.u32 %v9136_v8, %v9132_v14  ;;  %v9146_v57 = vrot.slane %v9144_v33, 6  ;;  %v19449_v51 = vcombine.high %v19253_v21, %v19253_v21  ;;  %v9119_v31 = vsel %vm18397_vm3, %v9114_v15, %v9118_v44 }
 0x3e4   : > { %14112 = vmatprep.mubr.msk.bf16.mxu0 %vm14327_vm4, %v21251_v36  ;;  %13989 = vmatmul.mubr.msk.bf16.gmra.mrb[244].mxu1 %vm9309_vm13, %v9291_v52  ;;  %v9128_v32 = vrot.slane %v9127_v25, 2  ;;  %v10496_v13 = vshrl.u32 %v19253_v21, 16  ;;  %v10499_v28 = vshll.u32 %v19253_v21, 16  ;;  %v10515_v25 = vshll.u32 %v19157_v1, 16 }
 0x3e5   : > { %13992 = vmatprep.mubr.msk.bf16.mxu1 %vm14327_vm4, %v21251_v36  ;;  %v9138_v33 = vrot.slane %v9137_v56, 2  ;;  %v9147_v12 = vor.u32 %v9146_v57, %v9142_v49  ;;  %v10505_v3 = vshll.u32 %v19449_v51, 16  ;;  %v10509_v50 = vshrl.u32 %v19449_v51, 16 }
 0x3e6   : > { %v9133_v52 = vsel %vm18397_vm3, %v9128_v32, %v9132_v14  ;;  %v10498_v46 = vrot.slane %v10496_v13, 6  ;;  %v10501_v8 = vrot.slane %v10499_v28, 7  ;;  %v9152_v63 = vrot.slane %v9150_v11, 7 }
 0x3e7   : > { %v9143_v44 = vsel %vm18397_vm3, %v9138_v33, %v9142_v49  ;;  %v9148_v15 = vrot.slane %v9147_v12, 2  ;;  %v10507_v22 = vrot.slane %v10505_v3, 7  ;;  %v9292_v16 = vcombine.low %v9119_v31, %v9133_v52 }
 0x3e8   : > { %v10502_v56 = vor.u32 %v10501_v8, %v10498_v46  ;;  %v10511_v57 = vrot.slane %v10509_v50, 6  ;;  %v10519_v60 = vshrl.u32 %v19157_v1, 16  ;;  %v11391_v47 = vshll.u32 %v19266_v58, 16 }
 0x3e9   : > { %v19469_v14 = vsel %vm18397_vm3, %v9148_v15, %v9152_v63  ;;  %v10517_v32 = vrot.slane %v10515_v25, 7  ;;  %v10650_v13 = vcombine.low %v19416_v10, %v9119_v31  ;;  %v10494_v11 = vcombine.high %v19157_v1, %v19157_v1 }
 0x3ea   : > { %v9293_v28 = vcombine.low %v9143_v44, %v19469_v14  ;;  %v10512_v49 = vor.u32 %v10511_v57, %v10507_v22  ;;  %v10521_v33 = vrot.slane %v10519_v60, 6  ;;  %v11365_v12 = vshll.u32 %v19237_v59, 16 }
 0x3eb   : > { %v19476_v3 = vrot.slane %v11388_v48, 2  ;;  %v10651_v50 = vcombine.low %v9133_v52, %v9143_v44  ;;  %v21201_v58 = vrot.slane %v19449_v51, 7  ;;  %v19480_v63 = vrot.slane %v9292_v16, %v18062_v29 }
 0x3ec   : > { %v19483_v46 = vrot.slane %v9293_v28, %v18062_v29  ;;  %v10503_v10 = vrot.slane %v10502_v56, 2  ;;  %v10513_v31 = vrot.slane %v10512_v49, 2  ;;  %v10522_v8 = vor.u32 %v10521_v33, %v10517_v32 }
 0x3ed   : > { %22010 = vst [vmem:[#allocation221_spill] sm:$0xff] %v19480_v63  ;;  %v19486_v25 = vrot.slane %v10650_v13, %v18062_v29  ;;  %v19489_v60 = vrot.slane %v10651_v50, %v18062_v29  ;;  %v10841_v48 = vrot.slane %v21201_v58, 2  ;;  %v11393_v52 = vrot.slane %v11391_v47, 7 }
 0x3ee   : > { %22011 = vst [vmem:[#allocation224_spill] sm:$0xff] %v19483_v46  ;;  %v9308_v16 = vcombine.low %v19480_v63, %v19483_v46  ;;  %v10525_v44 = vshll.u32 %v10494_v11, 16  ;;  %v10845_v15 = vrot.slane %v10494_v11, 7  ;;  %v19497_v56 = vsel %vm18397_vm3, %v10513_v31, %v10517_v32  ;;  %v22048_v46 = vld [vmem:[#allocation100_spill] sm:$0xff] }
 0x3ef   : > { %22012 = vst [vmem:[#allocation223_spill] sm:$0xff] %v19486_v25  ;;  %22013 = vst [vmem:[#allocation155_spill] sm:$0xff] %v19489_v60  ;;  %v22014_v13 = vrot.slane %v19157_v1, 7  ;;  %v22015_v47 = vshrl.u32 %v19237_v59, 16  ;;  %v19512_v11 = vsel %vm18397_vm3, %v10503_v10, %v10507_v22  ;;  %v11367_v33 = vrot.slane %v11365_v12, 7  ;;  %v22021_v10 = vld [vmem:[#allocation46_spill] sm:$0xff] }
 0x3f0   : > { %13993 = vmatmul.mubr.msk.bf16.gmra.mrb[248].mxu1 %vm9309_vm13, %v9308_v16  ;;  %v19517_v32 = vsel %vm18293_vm12, %v19258_v43, %v10845_v15  ;;  %v11371_v50 = vshll.u32 %v19262_v41, 16  ;;  %v10523_v31 = vrot.slane %v10522_v8, 2  ;;  %v11394_v16 = vsel %vm18397_vm3, %v19476_v3, %v11393_v52  ;;  %v13055_v22 = vld [vmem:[%s20747_s3 + $0x10] sm:$0xf]  ;;  %v22016_v15 = vld [vmem:[#allocation29_spill] sm:$0xff]  ;;  %v22022_v25 = vld [vmem:[#allocation3_spill] sm:$0xff] }
 0x3f1   : > { %v19505_v28 = vsel %vm18293_vm12, %v10841_v48, %v22014_v13  ;;  %v11364_v49 = vrot.slane %v22015_v47, 6  ;;  %v11375_v13 = vshrl.u32 %v19262_v41, 16  ;;  %13998 = vmatprep.mubr.msk.bf16.mxu1 %vm14327_vm4, %v21251_v36  ;;  %v11404_v8 = vcombine.low %v19512_v11, %v19497_v56  ;;  %v22017_v47 = vld [vmem:[#allocation65_spill] sm:$0xff] }
 0x3f2   : > { %v11373_v12 = vrot.slane %v11371_v50, 7  ;;  %v22018_v57 = vcombine.low %v22016_v15, %v22017_v47  ;;  %v10527_v52 = vrot.slane %v10525_v44, 7  ;;  %v22020_v50 = vld [vmem:[#allocation48_spill] sm:$0xff]  ;;  %v22023_v47 = vld [vmem:[#allocation45_spill] sm:$0xff]  ;;  %v22043_v58 = vrot.slane %v19449_v51, 7 }
 0x3f3   : > { %v11368_v43 = vor.u32 %v11367_v33, %v11364_v49  ;;  %v11377_v48 = vrot.slane %v11375_v13, 6  ;;  %v19544_v49 = vrot.slane %v11404_v8, %v18062_v29  ;;  %v10712_v33 = vsel %vm9337_vm0, %v13055_v22, 0  ;;  %v13045_v22 = vld [vmem:[%s20747_s3 + $0xc] sm:$0xf] }
 0x3f4   : > { %v19539_v3 = vrot.slane %v22018_v57, %v18062_v29  ;;  %v9446_v63 = vcombine.low %v22021_v10, %v22020_v50  ;;  %14111 = vmatpush3.bf16.msra.mxu0 %v10712_v33  ;;  %v9447_v57 = vcombine.low %v22023_v47, %v22022_v25  ;;  %v19553_v44 = vsel %vm18397_vm3, %v10523_v31, %v10527_v52  ;;  %v22025_v10 = vld [vmem:[#allocation63_spill] sm:$0xff] }
 0x3f5   : > { %v11369_v60 = vrot.slane %v11368_v43, 2  ;;  %22019 = vst [vmem:[#allocation170_spill] sm:$0xff] %v19544_v49  ;;  %v11378_v9 = vor.u32 %v11377_v48, %v11373_v12  ;;  %v22024_v48 = vld [vmem:[#allocation49_spill] sm:$0xff]  ;;  %14186 = vmatprep.subr.bf16.mxu0 %v21251_v36  ;;  %v22027_v50 = vcombine.low %v18584_v62, %v18588_v24 }
 0x3f6   : > { %v22026_v8 = vcombine.low %v22024_v48, %v22025_v10  ;;  %v9454_v52 = vrot.slane %v9446_v63, %v18062_v29  ;;  %v13077_v62 = vld [vmem:[%s20747_s3 + $0x18] sm:$0xf] }
 0x3f7   : > { %v11374_v13 = vsel %vm18397_vm3, %v11369_v60, %v11373_v12  ;;  %v11379_v47 = vrot.slane %v11378_v9, 2  ;;  %v9461_v60 = vrot.slane %v9447_v57, %v18062_v29  ;;  %v9582_v12 = vcombine.low %v18958_v4, %v18996_v18  ;;  %14113 = vmatmul.mubr.msk.bf16.vlgmr.msra.gmra.mrb[32].mxu0 %vm9309_vm13, %v22027_v50 }
 0x3f8   : > { %v9471_v33 = vrot.slane %v22026_v8, %v18062_v29  ;;  %v11413_v31 = vcombine.low %v19553_v44, %v11374_v13  ;;  %v9583_v8 = vcombine.low %v19015_v54, %v19142_v26  ;;  %v10369_v57 = vsel %vm9337_vm0, %v13045_v22, 0  ;;  %14116 = vmatprep.mubr.msk.bf16.mxu0 %vm14327_vm4, %v21251_v36  ;;  %v22092_v26 = vld [vmem:[#allocation155_spill] sm:$0xff] }
 0x3f9   : > { %v11384_v9 = vsel %vm18397_vm3, %v11379_v47, %v19286_v20  ;;  %v9462_v63 = vcombine.low %v9454_v52, %v9461_v60  ;;  %v11235_v27 = vsel %vm9337_vm0, %v13077_v62, 0  ;;  %v19595_v20 = vrot.slane %v9582_v12, %v18062_v29  ;;  %v22036_v62 = vld [vmem:[#allocation85_spill] sm:$0xff] }
 0x3fa   : > { %v9479_v43 = vcombine.low %v9471_v33, %v19539_v3  ;;  %v11414_v24 = vcombine.low %v11384_v9, %v11394_v16  ;;  %v11421_v13 = vrot.slane %v11413_v31, %v18062_v29  ;;  %v19598_v22 = vrot.slane %v9583_v8, %v18062_v29  ;;  %14187 = vmatpush3.bf16.msra.mxu0 %v11235_v27  ;;  %v22033_v8 = vld [vmem:[#allocation47_spill] sm:$0xff] }
 0x3fb   : > { %13999 = vmatmul.mubr.msk.bf16.vlgmr.msra.gmra.mrb[252].mxu1 %vm9309_vm13, %v9462_v63  ;;  %v11190_v16 = vcombine.low %v19157_v1, %v19237_v59  ;;  %14262 = vmatprep.subr.bf16.mxu0 %v21251_v36  ;;  %v22029_v52 = vcombine.low %v19262_v41, %v19240_v0  ;;  %v22031_v12 = vcombine.low %v18677_v19, %v18680_v38  ;;  %v22042_v19 = vld [vmem:[#allocation70_spill] sm:$0xff] }
 0x3fc   : > { %v11428_v33 = vrot.slane %v11414_v24, %v18062_v29  ;;  %14073 = vmatpush3.bf16.msra.mxu1 %v10369_v57  ;;  %14002 = vmatprep.mubr.msk.bf16.mxu1 %vm14327_vm4, %v21251_v36  ;;  %v9481_v59 = vcombine.low %v18282_v45, %v18450_v61  ;;  %v9480_v9 = vcombine.low %v22033_v8, %v18252_v53  ;;  %v22035_v57 = vld [vmem:[#allocation97_spill] sm:$0xff]  ;;  %v13065_v24 = vrot.slane %v19253_v21, 9 }
 0x3fd   : > { %14148 = vmatprep.subr.bf16.mxu1 %v21251_v36  ;;  %v19612_v60 = vrot.slane %v22029_v52, %v18062_v29  ;;  %v19623_v50 = vrot.slane %v11190_v16, %v18062_v29  ;;  %v11181_v0 = vcombine.low %v19253_v21, %v19449_v51  ;;  %v22037_v16 = vld [vmem:[#allocation51_spill] sm:$0xff]  ;;  %v22038_v52 = vld [vmem:[#allocation161_spill] sm:$0xff] }
 0x3fe   : > { %v19602_v47 = vcombine.low %v11421_v13, %v11428_v33  ;;  %v19635_v38 = vrot.slane %v9481_v59, %v18062_v29  ;;  %v19646_v13 = vrot.slane %v9480_v9, %v18062_v29  ;;  %v10840_v9 = vsel %vm18293_vm12, %v13065_v24, %v22043_v58 }
 0x3ff   : > { %22030 = vst [vmem:[#allocation107_spill] sm:$0xff] %v19612_v60  ;;  %14117 = vmatmul.mubr.msk.bf16.gmra.mrb[36].mxu0 %vm9309_vm13, %v22031_v12  ;;  %22032 = vst [vmem:[#allocation7_spill] sm:$0xff] %v19623_v50  ;;  %v19638_v41 = vrot.slane %v11181_v0, %v18062_v29  ;;  %v22039_v12 = vcombine.low %v22037_v16, %v22038_v52  ;;  %v22041_v0 = vld [vmem:[#allocation87_spill] sm:$0xff]  ;;  %v11602_v16 = vcombine.low %v10840_v9, %v19505_v28 }
 0x400   : > { %22028 = vst [vmem:[#allocation108_spill] sm:$0xff] %v19602_v47  ;;  %14120 = vmatprep.mubr.msk.bf16.mxu0 %vm14327_vm4, %v21251_v36  ;;  %v9497_v31 = vcombine.low %v22042_v19, %v22041_v0  ;;  %v9496_v47 = vcombine.low %v19646_v13, %v19635_v38  ;;  %v10951_v24 = vcombine.low %v19194_v30, %v19330_v39  ;;  %v22091_v50 = vld [vmem:[#allocation223_spill] sm:$0xff] }
 0x401   : > { %v10968_v30 = vcombine.low %v19233_v2, %v19373_v23  ;;  %v10969_v39 = vcombine.low %v19381_v5, %v19401_v7  ;;  %v22053_v2 = vcombine.low %v19517_v32, %v19279_v37  ;;  %v22055_v5 = vld [vmem:[#allocation200_spill] sm:$0xff]  ;;  %v22056_v7 = vld [vmem:[#allocation199_spill] sm:$0xff]  ;;  %v10667_v60 = vcombine.low %v19469_v14, %v19512_v11 }
 0x402   : > { %v19674_v17 = vrot.slane %v9497_v31, %v18062_v29  ;;  %v19692_v58 = vrot.slane %v10951_v24, %v18062_v29 }
 0x403   : > { %14003 = vmatmul.mubr.msk.bf16.gmra.mrb[0].mxu1 %vm9309_vm13, %v9479_v43  ;;  %v9498_v43 = vcombine.low %v22036_v62, %v22035_v57  ;;  %v19713_v23 = vrot.slane %v22053_v2, %v18062_v29  ;;  %v19724_v24 = vrot.slane %v10968_v30, %v18062_v29  ;;  %v22062_v2 = vcombine.low %v19505_v28, %v19517_v32  ;;  %v22065_v30 = vld [vmem:[#allocation86_spill] sm:$0xff] }
 0x404   : > { %14006 = vmatprep.mubr.msk.bf16.mxu1 %vm14327_vm4, %v21251_v36  ;;  %22047 = vst [vmem:[#allocation10_spill] sm:$0xff] %v19692_v58 }
 0x405   : > { %v19669_v52 = vrot.slane %v9498_v43, %v18062_v29  ;;  %v19687_v43 = vrot.slane %v11602_v16, %v18062_v29  ;;  %22054 = vst [vmem:[#allocation132_spill] sm:$0xff] %v19713_v23  ;;  %22059 = vst [vmem:[#allocation175_spill] sm:$0xff] %v19724_v24  ;;  %v22061_v16 = vld [vmem:[#allocation103_spill] sm:$0xff] }
 0x406   : > { %v10985_v37 = vcombine.low %v22061_v16, %v10840_v9  ;;  %v22069_v9 = vld [vmem:[#allocation184_spill] sm:$0xff] }
 0x407   : > { %14121 = vmatmul.mubr.msk.bf16.gmra.mrb[40].mxu0 %vm9309_vm13, %v22039_v12  ;;  %v22044_v12 = vld [vmem:[#allocation89_spill] sm:$0xff]  ;;  %22046 = vst [vmem:[#allocation11_spill] sm:$0xff] %v19687_v43  ;;  %v9513_v31 = vcombine.low %v19674_v17, %v19669_v52 }
 0x408   : > { %14124 = vmatprep.mubr.msk.bf16.mxu0 %vm14327_vm4, %v21251_v36 }
 0x40a   : > { %v19640_v63 = vpop.f32.mrb[252].mxu0 }
 0x40b   : > { %22034 = vst [vmem:[#allocation225_spill] sm:$0xff] %v19640_v63  ;;  %v14038_v27 = vpop.f32.mrb[253].mxu0  ;;  %14007 = vmatmul.mubr.msk.bf16.gmra.mrb[4].mxu1 %vm9309_vm13, %v9496_v47  ;;  %v10952_v47 = vcombine.low %v19314_v35, %v19137_v40  ;;  %v22073_v63 = vld [vmem:[#allocation137_spill] sm:$0xff] }
 0x40c   : > { %v19654_v59 = vpop.f32.mrb[254].mxu0  ;;  %14010 = vmatprep.mubr.msk.bf16.mxu1 %vm14327_vm4, %v21251_v36 }
 0x40d   : > { %22040 = vst [vmem:[#allocation9_spill] sm:$0xff] %v19654_v59  ;;  %v14039_v27 = vpop.f32.mrb[255].mxu0  ;;  %v19705_v35 = vrot.slane %v10952_v47, %v18062_v29  ;;  %v19727_v47 = vrot.slane %v10969_v39, %v18062_v29  ;;  %v19746_v39 = vrot.slane %v10985_v37, %v18062_v29  ;;  %v22072_v59 = vld [vmem:[#allocation117_spill] sm:$0xff] }
 0x40e   : > { %v9515_v27 = vcombine.low %v22044_v12, %v18616_v42 }
 0x40f   : > { %22051 = vst [vmem:[#allocation12_spill] sm:$0xff] %v19705_v35  ;;  %22060 = vst [vmem:[#allocation190_spill] sm:$0xff] %v19727_v47  ;;  %v22081_v47 = vld [vmem:[#allocation35_spill] sm:$0xff]  ;;  %v22087_v35 = vld [vmem:[#allocation162_spill] sm:$0xff] }
 0x410   : > { %22066 = vst [vmem:[#allocation212_spill] sm:$0xff] %v19746_v39  ;;  %v19751_v28 = vrot.slane %v9515_v27, %v18062_v29  ;;  %v9532_v27 = vcombine.low %v22073_v63, %v22072_v59  ;;  %v22080_v39 = vld [vmem:[#allocation139_spill] sm:$0xff] }
 0x412   : > { %v19682_v33 = vpop.f32.mrb[0].mxu0 }
 0x413   : > { %22045 = vst [vmem:[#allocation8_spill] sm:$0xff] %v19682_v33  ;;  %v14042_v49 = vpop.f32.mrb[1].mxu0  ;;  %v22049_v33 = vcombine.low %v19003_v34, %v22048_v46  ;;  %v22057_v34 = vcombine.low %v22055_v5, %v22056_v7  ;;  %14011 = vmatmul.mubr.msk.bf16.gmra.mrb[8].mxu1 %vm9309_vm13, %v9513_v31  ;;  %v22068_v7 = vld [vmem:[#allocation181_spill] sm:$0xff] }
 0x414   : > { %v19702_v40 = vpop.f32.mrb[2].mxu0  ;;  %14014 = vmatprep.mubr.msk.bf16.mxu1 %vm14327_vm4, %v21251_v36  ;;  %v22070_v5 = vcombine.low %v22068_v7, %v22069_v9  ;;  %v22076_v9 = vld [vmem:[#allocation201_spill] sm:$0xff] }
 0x415   : > { %14125 = vmatmul.mubr.msk.bf16.gmra.mrb[44].mxu0 %vm9309_vm13, %v22049_v33  ;;  %22050 = vst [vmem:[#allocation13_spill] sm:$0xff] %v19702_v40  ;;  %v19719_v46 = vrot.slane %v22057_v34, %v18062_v29  ;;  %v14043_v33 = vpop.f32.mrb[3].mxu0  ;;  %v19734_v40 = vrot.slane %v22062_v2, %v18062_v29  ;;  %v22064_v34 = vld [vmem:[#allocation98_spill] sm:$0xff]  ;;  %v22086_v49 = vld [vmem:[#allocation165_spill] sm:$0xff] }
 0x416   : > { %14128 = vmatprep.mubr.msk.bf16.mxu0 %vm14327_vm4, %v21251_v36  ;;  %v9514_v33 = vcombine.low %v22065_v30, %v22064_v34  ;;  %v9566_v58 = vcombine.low %v22087_v35, %v22086_v49 }
 0x417   : > { %22058 = vst [vmem:[#allocation151_spill] sm:$0xff] %v19719_v46  ;;  %22063 = vst [vmem:[#allocation210_spill] sm:$0xff] %v19734_v40 }
 0x418   : > { %v19758_v2 = vrot.slane %v9514_v33, %v18062_v29  ;;  %v22074_v33 = vld [vmem:[#allocation134_spill] sm:$0xff] }
 0x41a   : > { %v9530_v46 = vcombine.low %v19758_v2, %v19751_v28 }
 0x41b   : > { %v19755_v16 = vpop.f32.mrb[216].mxu1 }
 0x41c   : > { %22067 = vst [vmem:[#allocation196_spill] sm:$0xff] %v19755_v16  ;;  %v13962_v31 = vpop.f32.mrb[217].mxu1  ;;  %v22075_v16 = vld [vmem:[#allocation88_spill] sm:$0xff]  ;;  %14015 = vmatmul.mubr.msk.bf16.gmra.mrb[12].mxu1 %vm9309_vm13, %v9530_v46 }
 0x41d   : > { %14129 = vmatmul.mubr.msk.bf16.gmra.mrb[48].mxu0 %vm9309_vm13, %v22070_v5  ;;  %v19764_v37 = vpop.f32.mrb[218].mxu1  ;;  %v9531_v31 = vcombine.low %v22075_v16, %v22074_v33  ;;  %14018 = vmatprep.mubr.msk.bf16.mxu1 %vm14327_vm4, %v21251_v36  ;;  %v19778_v5 = vrot.slane %v9532_v27, %v18062_v29  ;;  %v22082_v27 = vld [vmem:[#allocation136_spill] sm:$0xff] }
 0x41e   : > { %22071 = vst [vmem:[#allocation177_spill] sm:$0xff] %v19764_v37  ;;  %14132 = vmatprep.mubr.msk.bf16.mxu0 %vm14327_vm4, %v21251_v36  ;;  %v13963_v32 = vpop.f32.mrb[219].mxu1  ;;  %v22077_v37 = vld [vmem:[#allocation204_spill] sm:$0xff]  ;;  %v9548_v24 = vcombine.low %v22082_v27, %v22081_v47 }
 0x41f   : > { %v19781_v7 = vrot.slane %v9531_v31, %v18062_v29  ;;  %v22078_v40 = vcombine.low %v22076_v9, %v22077_v37  ;;  %v22079_v32 = vld [vmem:[#allocation36_spill] sm:$0xff]  ;;  %v22083_v31 = vld [vmem:[#allocation109_spill] sm:$0xff] }
 0x420   : > { %v9549_v23 = vcombine.low %v22080_v39, %v22079_v32  ;;  %v22084_v9 = vld [vmem:[#allocation220_spill] sm:$0xff] }
 0x421   : > { %v9547_v46 = vcombine.low %v19781_v7, %v19778_v5  ;;  %v22085_v43 = vcombine.low %v22083_v31, %v22084_v9 }
 0x422   : > { %v19799_v37 = vrot.slane %v9549_v23, %v18062_v29  ;;  %v22089_v23 = vld [vmem:[#allocation30_spill] sm:$0xff] }
 0x423   : > { %v9565_v6 = vcombine.low %v22089_v23, %v22088_v55 }
 0x424   : > { %14019 = vmatmul.mubr.msk.bf16.gmra.mrb[16].mxu1 %vm9309_vm13, %v9547_v46 }
 0x425   : > { %14133 = vmatmul.mubr.msk.bf16.gmra.mrb[52].mxu0 %vm9309_vm13, %v22078_v40  ;;  %14022 = vmatprep.mubr.msk.bf16.mxu1 %vm14327_vm4, %v21251_v36  ;;  %v19802_v40 = vrot.slane %v9548_v24, %v18062_v29  ;;  %v19820_v24 = vrot.slane %v9566_v58, %v18062_v29  ;;  %v19825_v31 = vrot.slane %v9565_v6, %v18062_v29 }
 0x426   : > { %14136 = vmatprep.mubr.msk.bf16.mxu0 %vm14327_vm4, %v21251_v36 }
 0x427   : > { %v9564_v46 = vcombine.low %v19802_v40, %v19799_v37  ;;  %v9581_v58 = vcombine.low %v19825_v31, %v19820_v24 }
 0x42c   : > { %14023 = vmatmul.mubr.msk.bf16.gmra.mrb[20].mxu1 %vm9309_vm13, %v9564_v46  ;;  %v22093_v46 = vcombine.low %v22091_v50, %v22092_v26  ;;  %v10675_v26 = vrot.slane %v10667_v60, %v18062_v29  ;;  %v22094_v60 = vcombine.low %v19595_v20, %v19598_v22 }
 0x42d   : > { %14137 = vmatmul.mubr.msk.bf16.gmra.mrb[56].mxu0 %vm9309_vm13, %v22085_v43  ;;  %14026 = vmatprep.mubr.msk.bf16.mxu1 %vm14327_vm4, %v21251_v36  ;;  %v10668_v43 = vcombine.low %v19497_v56, %v19553_v44 }
 0x42e   : > { %14140 = vmatprep.mubr.msk.bf16.mxu0 %vm14327_vm4, %v21251_v36 }
 0x42f   : > { %v19827_v9 = vpop.f32.mrb[4].mxu0  ;;  %v10682_v6 = vrot.slane %v10668_v43, %v18062_v29  ;;  %v10189_v43 = vcombine.low %v22025_v10, %v22016_v15  ;;  %v11174_v10 = vcombine.low %v19539_v3, %v19646_v13  ;;  %v22095_v3 = vld [vmem:[#allocation65_spill] sm:$0xff] }
 0x430   : > { %22090 = vst [vmem:[#allocation232_spill] sm:$0xff] %v19827_v9  ;;  %v14046_v21 = vpop.f32.mrb[5].mxu0  ;;  %v10205_v13 = vcombine.low %v22095_v3, %v22033_v8  ;;  %v11179_v3 = vcombine.low %v19799_v37, %v19825_v31  ;;  %v11180_v31 = vcombine.low %v19820_v24, %v19595_v20  ;;  %v22096_v20 = vcombine.low %v18996_v18, %v19015_v54 }
 0x431   : > { %v19839_v56 = vpop.f32.mrb[6].mxu0  ;;  %v10683_v50 = vcombine.low %v10675_v26, %v10682_v6  ;;  %v10203_v15 = vrot.slane %v10189_v43, %v18062_v29  ;;  %v22097_v24 = vcombine.low %v19598_v22, %v19638_v41 }
 0x432   : > { %v19842_v44 = vpop.f32.mrb[220].mxu1  ;;  %v14047_v9 = vpop.f32.mrb[7].mxu0  ;;  %v10213_v8 = vrot.slane %v10205_v13, %v18062_v29 }
 0x433   : > { %v13966_v14 = vpop.f32.mrb[221].mxu1  ;;  %v10188_v9 = vcombine.low %v22022_v25, %v22024_v48  ;;  %v13066_v25 = vld [vmem:[%s20747_s3 + $0x14] sm:$0xf] }
 0x434   : > { %14027 = vmatmul.mubr.msk.bf16.gmra.mrb[24].mxu1 %vm9309_vm13, %v9581_v58  ;;  %v19848_v21 = vpop.f32.mrb[222].mxu1  ;;  %v10206_v14 = vcombine.low %v18252_v53, %v18282_v45  ;;  %v11030_v26 = vsel %vm9337_vm0, %v13066_v25, 0  ;;  %v11175_v45 = vcombine.low %v19635_v38, %v19674_v17  ;;  %v10222_v38 = vcombine.low %v18450_v61, %v22042_v19 }
 0x435   : > { %14141 = vmatmul.mubr.msk.bf16.gmra.mrb[60].mxu0 %vm9309_vm13, %v22093_v46  ;;  %14030 = vmatprep.mubr.msk.bf16.mxu1 %vm14327_vm4, %v21251_v36  ;;  %v13967_v11 = vpop.f32.mrb[223].mxu1  ;;  %v13098_v46 = vld [vmem:[%s20747_s3 + $0x20] sm:$0xf]  ;;  %v10196_v58 = vrot.slane %v10188_v9, %v18062_v29  ;;  %v10240_v61 = vcombine.low %v22064_v34, %v22044_v12  ;;  %v10257_v12 = vcombine.low %v22074_v33, %v22073_v63 }
 0x436   : > { %14144 = vmatprep.mubr.msk.bf16.mxu0 %vm14327_vm4, %v21251_v36  ;;  %v11656_v48 = vsel %vm9337_vm0, %v13098_v46, 0  ;;  %v10274_v63 = vcombine.low %v22081_v47, %v22080_v39 }
 0x437   : > { %v10204_v6 = vcombine.low %v10196_v58, %v10203_v15  ;;  %v10239_v58 = vcombine.low %v22035_v57, %v22065_v30  ;;  %v10256_v57 = vcombine.low %v18616_v42, %v22075_v16  ;;  %v10271_v30 = vrot.slane %v10257_v12, %v18062_v29 }
 0x438   : > { %v10273_v16 = vcombine.low %v22072_v59, %v22082_v27  ;;  %v10288_v47 = vrot.slane %v10274_v63, %v18062_v29 }
 0x43a   : > { %v10281_v59 = vrot.slane %v10273_v16, %v18062_v29  ;;  %v22111_v16 = vld [vmem:[#allocation116_spill] sm:$0xff] }
 0x43c   : > { %14031 = vmatmul.mubr.msk.bf16.gmra.mrb[28].mxu1 %vm9309_vm13, %v22094_v60  ;;  %v10223_v60 = vcombine.low %v22041_v0, %v22036_v62  ;;  %v11176_v0 = vcombine.low %v19669_v52, %v19758_v2  ;;  %v10254_v52 = vrot.slane %v10240_v61, %v18062_v29  ;;  %v11177_v2 = vcombine.low %v19751_v28, %v19781_v7 }
 0x43d   : > { %14145 = vmatmul.mubr.msk.bf16.gmra.mrb[64].mxu0 %vm9309_vm13, %v10683_v50  ;;  %14074 = vmatprep.mubr.msk.bf16.mxu1 %vm14327_vm4, %v21251_v36  ;;  %v10220_v50 = vrot.slane %v10206_v14, %v18062_v29  ;;  %v11178_v28 = vcombine.low %v19778_v5, %v19802_v40  ;;  %v10264_v7 = vrot.slane %v10256_v57, %v18062_v29  ;;  %v22107_v57 = vld [vmem:[#allocation67_spill] sm:$0xff] }
 0x43e   : > { %14188 = vmatprep.mubr.msk.bf16.mxu0 %vm14327_vm4, %v21251_v36  ;;  %v10237_v62 = vrot.slane %v10223_v60, %v18062_v29  ;;  %v22099_v60 = vld [vmem:[#allocation182_spill] sm:$0xff] }
 0x43f   : > { %v10221_v46 = vcombine.low %v10213_v8, %v10220_v50  ;;  %v10272_v33 = vcombine.low %v10264_v7, %v10271_v30  ;;  %v10291_v50 = vcombine.low %v22088_v55, %v22087_v35  ;;  %v10307_v35 = vcombine.low %v22086_v49, %v18958_v4  ;;  %v22098_v49 = vld [vmem:[#allocation185_spill] sm:$0xff]  ;;  %v22109_v7 = vld [vmem:[#allocation75_spill] sm:$0xff] }
 0x440   : > { %v10325_v4 = vcombine.low %v19449_v51, %v19157_v1 }
 0x441   : > { %v10305_v37 = vrot.slane %v10291_v50, %v18062_v29 }
 0x442   : > { %v10339_v41 = vrot.slane %v10325_v4, %v18062_v29  ;;  %v22120_v4 = vld [vmem:[#allocation160_spill] sm:$0xff] }
 0x443   : > { %v19885_v11 = vpop.f32.mrb[224].mxu1 }
 0x444   : > { %14075 = vmatmul.mubr.msk.bf16.vlgmr.msra.gmra.mrb[32].mxu1 %vm9309_vm13, %v10204_v6  ;;  %v13970_v53 = vpop.f32.mrb[225].mxu1  ;;  %v10247_v6 = vrot.slane %v10239_v58, %v18062_v29  ;;  %v13087_v58 = vld [vmem:[%s20747_s3 + $0x1c] sm:$0xf] }
 0x445   : > { %14189 = vmatmul.mubr.msk.bf16.vlgmr.msra.gmra.mrb[68].mxu0 %vm9309_vm13, %v11174_v10  ;;  %14149 = vmatpush3.bf16.msra.mxu1 %v11030_v26  ;;  %v19891_v43 = vpop.f32.mrb[226].mxu1  ;;  %v10289_v53 = vcombine.low %v10281_v59, %v10288_v47  ;;  %v11458_v12 = vsel %vm9337_vm0, %v13087_v58, 0  ;;  %v22126_v58 = vld [vmem:[#allocation166_spill] sm:$0xff]  ;;  %vm12510_vm0 = vcmask 1041409  }
 0x446   : > { %14192 = vmatprep.mubr.msk.bf16.mxu0 %vm14327_vm4, %v21251_v36  ;;  %14263 = vmatpush3.bf16.msra.mxu0 %v11656_v48  ;;  %v13971_v9 = vpop.f32.mrb[227].mxu1  ;;  %v10230_v48 = vrot.slane %v10222_v38, %v18062_v29  ;;  %v10255_v34 = vcombine.low %v10247_v6, %v10254_v52  ;;  %v22103_v52 = vld [vmem:[#allocation69_spill] sm:$0xff] }
 0x447   : > { %14078 = vmatprep.mubr.msk.bf16.mxu1 %vm14327_vm4, %v21251_v36  ;;  %14224 = vmatprep.subr.bf16.mxu1 %v21251_v36 }
 0x448   : > { %v10238_v19 = vcombine.low %v10230_v48, %v10237_v62  ;;  %v22101_v48 = vld [vmem:[#allocation107_spill] sm:$0xff] }
 0x449   : > { %v19899_v15 = vpop.f32.mrb[8].mxu0 }
 0x44a   : > { %v14050_v10 = vpop.f32.mrb[9].mxu0 }
 0x44b   : > { %v19904_v17 = vpop.f32.mrb[10].mxu0 }
 0x44c   : > { %14079 = vmatmul.mubr.msk.bf16.gmra.mrb[36].mxu1 %vm9309_vm13, %v10221_v46  ;;  %v14051_v25 = vpop.f32.mrb[11].mxu0  ;;  %v10324_v46 = vcombine.low %v22099_v60, %v22098_v49  ;;  %v22121_v49 = vld [vmem:[#allocation115_spill] sm:$0xff] }
 0x44d   : > { %14193 = vmatmul.mubr.msk.bf16.gmra.mrb[72].mxu0 %vm9309_vm13, %v11175_v45  ;;  %14082 = vmatprep.mubr.msk.bf16.mxu1 %vm14327_vm4, %v21251_v36  ;;  %v10290_v45 = vcombine.low %v22079_v32, %v22089_v23  ;;  %v10322_v32 = vrot.slane %v22096_v20, %v18062_v29  ;;  %v10315_v23 = vrot.slane %v10307_v35, %v18062_v29  ;;  %v22119_v35 = vld [vmem:[#allocation90_spill] sm:$0xff] }
 0x44e   : > { %14196 = vmatprep.mubr.msk.bf16.mxu0 %vm14327_vm4, %v21251_v36  ;;  %v10332_v51 = vrot.slane %v10324_v46, %v18062_v29  ;;  %v11597_v60 = vcombine.low %v22121_v49, %v22120_v4 }
 0x44f   : > { %v10298_v8 = vrot.slane %v10290_v45, %v18062_v29  ;;  %v10323_v9 = vcombine.low %v10315_v23, %v10322_v32  ;;  %v22117_v45 = vld [vmem:[#allocation114_spill] sm:$0xff] }
 0x451   : > { %v10306_v55 = vcombine.low %v10298_v8, %v10305_v37 }
 0x454   : > { %14083 = vmatmul.mubr.msk.bf16.gmra.mrb[40].mxu1 %vm9309_vm13, %v10238_v19  ;;  %v10340_v19 = vcombine.low %v10332_v51, %v10339_v41  ;;  %v22123_v51 = vld [vmem:[#allocation159_spill] sm:$0xff] }
 0x455   : > { %14197 = vmatmul.mubr.msk.bf16.gmra.mrb[76].mxu0 %vm9309_vm13, %v11176_v0  ;;  %14086 = vmatprep.mubr.msk.bf16.mxu1 %vm14327_vm4, %v21251_v36  ;;  %v22100_v0 = vld [vmem:[#allocation7_spill] sm:$0xff] }
 0x456   : > { %14200 = vmatprep.mubr.msk.bf16.mxu0 %vm14327_vm4, %v21251_v36  ;;  %v22102_v61 = vcombine.low %v22100_v0, %v22101_v48  ;;  %v22124_v0 = vld [vmem:[#allocation52_spill] sm:$0xff]  ;;  %v22125_v48 = vld [vmem:[#allocation113_spill] sm:$0xff] }
 0x45c   : > { %14087 = vmatmul.mubr.msk.bf16.gmra.mrb[44].mxu1 %vm9309_vm13, %v10255_v34  ;;  %v22106_v34 = vld [vmem:[#allocation91_spill] sm:$0xff] }
 0x45d   : > { %14201 = vmatmul.mubr.msk.bf16.gmra.mrb[80].mxu0 %vm9309_vm13, %v11177_v2  ;;  %14090 = vmatprep.mubr.msk.bf16.mxu1 %vm14327_vm4, %v21251_v36  ;;  %v22104_v2 = vld [vmem:[#allocation68_spill] sm:$0xff]  ;;  %v10867_v30 = vcombine.low %v22107_v57, %v22106_v34  ;;  %v22128_v34 = vld [vmem:[#allocation59_spill] sm:$0xff] }
 0x45e   : > { %14204 = vmatprep.mubr.msk.bf16.mxu0 %vm14327_vm4, %v21251_v36  ;;  %v22105_v6 = vcombine.low %v22103_v52, %v22104_v2  ;;  %v22127_v52 = vld [vmem:[#allocation163_spill] sm:$0xff]  ;;  %v22129_v57 = vld [vmem:[#allocation60_spill] sm:$0xff] }
 0x45f   : > { %v11598_v2 = vcombine.low %v22127_v52, %v22126_v58  ;;  %v22141_v58 = vld [vmem:[#allocation205_spill] sm:$0xff] }
 0x461   : > { %v19945_v42 = vpop.f32.mrb[228].mxu1 }
 0x462   : > { %v13974_v14 = vpop.f32.mrb[229].mxu1 }
 0x463   : > { %v19952_v5 = vpop.f32.mrb[230].mxu1  ;;  %v22112_v14 = vld [vmem:[#allocation14_spill] sm:$0xff] }
 0x464   : > { %14091 = vmatmul.mubr.msk.bf16.gmra.mrb[48].mxu1 %vm9309_vm13, %v10272_v33  ;;  %v13975_v39 = vpop.f32.mrb[231].mxu1  ;;  %v10881_v33 = vrot.slane %v10867_v30, %v18062_v29  ;;  %v11596_v47 = vcombine.low %v22112_v14, %v22111_v16  ;;  %v10918_v30 = vcombine.low %v22129_v57, %v22128_v34  ;;  %v22132_v16 = vld [vmem:[#allocation58_spill] sm:$0xff]  ;;  %v22133_v14 = vld [vmem:[#allocation180_spill] sm:$0xff] }
 0x465   : > { %14205 = vmatmul.mubr.msk.bf16.gmra.mrb[84].mxu0 %vm9309_vm13, %v11178_v28  ;;  %14094 = vmatprep.mubr.msk.bf16.mxu1 %vm14327_vm4, %v21251_v36  ;;  %v19954_v40 = vpop.f32.mrb[12].mxu0  ;;  %v22108_v28 = vld [vmem:[#allocation33_spill] sm:$0xff]  ;;  %v22113_v39 = vld [vmem:[#allocation64_spill] sm:$0xff]  ;;  %v22143_v34 = vld [vmem:[#allocation10_spill] sm:$0xff] }
 0x466   : > { %14208 = vmatprep.mubr.msk.bf16.mxu0 %vm14327_vm4, %v21251_v36  ;;  %v14054_v26 = vpop.f32.mrb[13].mxu0  ;;  %v22110_v63 = vcombine.low %v22108_v28, %v22109_v7  ;;  %v22130_v28 = vld [vmem:[#allocation78_spill] sm:$0xff]  ;;  %v22131_v7 = vld [vmem:[#allocation133_spill] sm:$0xff]  ;;  %v22144_v57 = vld [vmem:[#allocation12_spill] sm:$0xff] }
 0x467   : > { %v19959_v13 = vpop.f32.mrb[14].mxu0  ;;  %v22114_v26 = vld [vmem:[#allocation66_spill] sm:$0xff] }
 0x468   : > { %v14055_v27 = vpop.f32.mrb[15].mxu0 }
 0x46c   : > { %14095 = vmatmul.mubr.msk.bf16.gmra.mrb[52].mxu1 %vm9309_vm13, %v10289_v53  ;;  %v22116_v53 = vld [vmem:[#allocation92_spill] sm:$0xff] }
 0x46d   : > { %14209 = vmatmul.mubr.msk.bf16.gmra.mrb[88].mxu0 %vm9309_vm13, %v11179_v3  ;;  %14098 = vmatprep.mubr.msk.bf16.mxu1 %vm14327_vm4, %v21251_v36  ;;  %v22115_v3 = vcombine.low %v22113_v39, %v22114_v26  ;;  %v10884_v37 = vcombine.low %v22117_v45, %v22116_v53 }
 0x46e   : > { %14212 = vmatprep.mubr.msk.bf16.mxu0 %vm14327_vm4, %v21251_v36 }
 0x46f   : > { %v10874_v59 = vrot.slane %v22115_v3, %v18062_v29 }
 0x471   : > { %v10882_v50 = vcombine.low %v10874_v59, %v10881_v33  ;;  %v10932_v33 = vrot.slane %v10918_v30, %v18062_v29  ;;  %v22134_v59 = vld [vmem:[#allocation183_spill] sm:$0xff]  ;;  %v22145_v30 = vcombine.low %v22143_v34, %v22144_v57  ;;  %v22162_v34 = vld [vmem:[#allocation110_spill] sm:$0xff] }
 0x474   : > { %14099 = vmatmul.mubr.msk.bf16.gmra.mrb[56].mxu1 %vm9309_vm13, %v10306_v55  ;;  %v22118_v55 = vld [vmem:[#allocation112_spill] sm:$0xff] }
 0x475   : > { %14213 = vmatmul.mubr.msk.bf16.gmra.mrb[92].mxu0 %vm9309_vm13, %v11180_v31  ;;  %14102 = vmatprep.mubr.msk.bf16.mxu1 %vm14327_vm4, %v21251_v36  ;;  %v10883_v20 = vcombine.low %v22119_v35, %v22118_v55  ;;  %v22136_v35 = vld [vmem:[#allocation125_spill] sm:$0xff] }
 0x476   : > { %14216 = vmatprep.mubr.msk.bf16.mxu0 %vm14327_vm4, %v21251_v36 }
 0x47a   : > { %v20000_v18 = vpop.f32.mrb[232].mxu1 }
 0x47b   : > { %v13978_v54 = vpop.f32.mrb[233].mxu1 }
 0x47c   : > { %14103 = vmatmul.mubr.msk.bf16.gmra.mrb[60].mxu1 %vm9309_vm13, %v10323_v9  ;;  %v20007_v10 = vpop.f32.mrb[234].mxu1  ;;  %v10891_v54 = vrot.slane %v10883_v20, %v18062_v29  ;;  %v22137_v20 = vld [vmem:[#allocation82_spill] sm:$0xff] }
 0x47d   : > { %14217 = vmatmul.mubr.msk.bf16.gmra.mrb[96].mxu0 %vm9309_vm13, %v22097_v24  ;;  %14106 = vmatprep.mubr.msk.bf16.mxu1 %vm14327_vm4, %v21251_v36  ;;  %v20004_v22 = vpop.f32.mrb[16].mxu0  ;;  %v13979_v25 = vpop.f32.mrb[235].mxu1  ;;  %v10898_v24 = vrot.slane %v10884_v37, %v18062_v29 }
 0x47e   : > { %14220 = vmatprep.mubr.msk.bf16.mxu0 %vm14327_vm4, %v21251_v36  ;;  %v14058_v38 = vpop.f32.mrb[17].mxu0  ;;  %v22122_v25 = vld [vmem:[#allocation135_spill] sm:$0xff] }
 0x47f   : > { %v20009_v1 = vpop.f32.mrb[18].mxu0  ;;  %v10899_v38 = vcombine.low %v10891_v54, %v10898_v24  ;;  %v22139_v54 = vld [vmem:[#allocation198_spill] sm:$0xff] }
 0x480   : > { %v14059_v62 = vpop.f32.mrb[19].mxu0 }
 0x481   : > { %v10901_v62 = vcombine.low %v22123_v51, %v22122_v25 }
 0x484   : > { %14107 = vmatmul.mubr.msk.bf16.gmra.mrb[64].mxu1 %vm9309_vm13, %v10340_v19  ;;  %v10915_v19 = vrot.slane %v10901_v62, %v18062_v29 }
 0x485   : > { %14221 = vmatmul.mubr.msk.bf16.gmra.mrb[100].mxu0 %vm9309_vm13, %v22102_v61  ;;  %14150 = vmatprep.mubr.msk.bf16.mxu1 %vm14327_vm4, %v21251_v36  ;;  %v10900_v61 = vcombine.low %v22125_v48, %v22124_v0 }
 0x486   : > { %14264 = vmatprep.mubr.msk.bf16.mxu0 %vm14327_vm4, %v21251_v36 }
 0x48c   : > { %14151 = vmatmul.mubr.msk.bf16.vlgmr.msra.gmra.mrb[68].mxu1 %vm9309_vm13, %v22110_v63  ;;  %v10917_v63 = vcombine.low %v22131_v7, %v22130_v28  ;;  %v22146_v28 = vld [vmem:[#allocation219_spill] sm:$0xff] }
 0x48d   : > { %14265 = vmatmul.mubr.msk.bf16.vlgmr.msra.gmra.mrb[104].mxu0 %vm9309_vm13, %v22105_v6  ;;  %14225 = vmatpush3.bf16.msra.mxu1 %v11458_v12  ;;  %v10908_v6 = vrot.slane %v10900_v61, %v18062_v29  ;;  %v22147_v7 = vld [vmem:[#allocation11_spill] sm:$0xff] }
 0x48e   : > { %14268 = vmatprep.mubr.msk.bf16.mxu0 %vm14327_vm4, %v21251_v36  ;;  %14154 = vmatprep.mubr.msk.bf16.mxu1 %vm14327_vm4, %v21251_v36  ;;  %v10925_v39 = vrot.slane %v10917_v63, %v18062_v29  ;;  %v22148_v63 = vcombine.low %v22146_v28, %v22147_v7 }
 0x48f   : > { %v20047_v27 = vpop.f32.mrb[236].mxu1  ;;  %v10916_v12 = vcombine.low %v10908_v6, %v10915_v19  ;;  %v22140_v19 = vld [vmem:[#allocation203_spill] sm:$0xff] }
 0x490   : > { %v13982_v31 = vpop.f32.mrb[237].mxu1  ;;  %v10933_v3 = vcombine.low %v10925_v39, %v10932_v33  ;;  %v22142_v52 = vcombine.low %v22140_v19, %v22141_v58  ;;  %v22149_v33 = vld [vmem:[#allocation175_spill] sm:$0xff]  ;;  %v22160_v58 = vld [vmem:[#allocation225_spill] sm:$0xff] }
 0x491   : > { %v20053_v8 = vpop.f32.mrb[238].mxu1 }
 0x492   : > { %v13983_v32 = vpop.f32.mrb[239].mxu1 }
 0x493   : > { %v10934_v32 = vcombine.low %v22137_v20, %v22136_v35  ;;  %v22155_v35 = vld [vmem:[#allocation212_spill] sm:$0xff]  ;;  %v22156_v20 = vld [vmem:[#allocation210_spill] sm:$0xff] }
 0x494   : > { %14155 = vmatmul.mubr.msk.bf16.gmra.mrb[72].mxu1 %vm9309_vm13, %v10882_v50  ;;  %v22135_v50 = vld [vmem:[#allocation77_spill] sm:$0xff] }
 0x495   : > { %14269 = vmatmul.mubr.msk.bf16.gmra.mrb[108].mxu0 %vm9309_vm13, %v11596_v47  ;;  %14158 = vmatprep.mubr.msk.bf16.mxu1 %vm14327_vm4, %v21251_v36  ;;  %v11599_v47 = vcombine.low %v22133_v14, %v22132_v16  ;;  %v10935_v53 = vcombine.low %v22135_v50, %v22134_v59  ;;  %v22150_v16 = vld [vmem:[#allocation190_spill] sm:$0xff]  ;;  %v22152_v50 = vld [vmem:[#allocation132_spill] sm:$0xff] }
 0x496   : > { %14272 = vmatprep.mubr.msk.bf16.mxu0 %vm14327_vm4, %v21251_v36  ;;  %v20060_v23 = vpop.f32.mrb[20].mxu0  ;;  %v22151_v14 = vcombine.low %v22149_v33, %v22150_v16 }
 0x497   : > { %v14062_v9 = vpop.f32.mrb[21].mxu0  ;;  %v10949_v49 = vrot.slane %v10935_v53, %v18062_v29  ;;  %v22153_v53 = vld [vmem:[#allocation151_spill] sm:$0xff] }
 0x498   : > { %v20065_v46 = vpop.f32.mrb[22].mxu0 }
 0x499   : > { %v14063_v41 = vpop.f32.mrb[23].mxu0 }
 0x49c   : > { %14159 = vmatmul.mubr.msk.bf16.gmra.mrb[76].mxu1 %vm9309_vm13, %v10899_v38  ;;  %v10942_v38 = vrot.slane %v10934_v32, %v18062_v29  ;;  %v22157_v32 = vcombine.low %v22155_v35, %v22156_v20 }
 0x49d   : > { %14273 = vmatmul.mubr.msk.bf16.gmra.mrb[112].mxu0 %vm9309_vm13, %v11597_v60  ;;  %14162 = vmatprep.mubr.msk.bf16.mxu1 %vm14327_vm4, %v21251_v36  ;;  %v22138_v60 = vld [vmem:[#allocation144_spill] sm:$0xff] }
 0x49e   : > { %14276 = vmatprep.mubr.msk.bf16.mxu0 %vm14327_vm4, %v21251_v36  ;;  %v11600_v41 = vcombine.low %v22139_v54, %v22138_v60  ;;  %v10950_v25 = vcombine.low %v10942_v38, %v10949_v49  ;;  %v22158_v54 = vld [vmem:[#allocation196_spill] sm:$0xff] }
 0x4a4   : > { %14163 = vmatmul.mubr.msk.bf16.gmra.mrb[80].mxu1 %vm9309_vm13, %v10916_v12 }
 0x4a5   : > { %14277 = vmatmul.mubr.msk.bf16.gmra.mrb[116].mxu0 %vm9309_vm13, %v11598_v2  ;;  %14166 = vmatprep.mubr.msk.bf16.mxu1 %vm14327_vm4, %v21251_v36 }
 0x4a6   : > { %14280 = vmatprep.mubr.msk.bf16.mxu0 %vm14327_vm4, %v21251_v36 }
 0x4a7   : > { %v20097_v26 = vpop.f32.mrb[240].mxu1 }
 0x4a8   : > { %v13986_v45 = vpop.f32.mrb[241].mxu1 }
 0x4a9   : > { %v20103_v37 = vpop.f32.mrb[24].mxu0  ;;  %v20105_v31 = vpop.f32.mrb[242].mxu1  ;;  %v22154_v45 = vcombine.low %v22152_v50, %v22153_v53 }
 0x4aa   : > { %v14066_v55 = vpop.f32.mrb[25].mxu0  ;;  %v13987_v24 = vpop.f32.mrb[243].mxu1 }
 0x4ab   : > { %v20110_v9 = vpop.f32.mrb[26].mxu0 }
 0x4ac   : > { %14167 = vmatmul.mubr.msk.bf16.gmra.mrb[84].mxu1 %vm9309_vm13, %v10933_v3  ;;  %v14067_v4 = vpop.f32.mrb[27].mxu0 }
 0x4ad   : > { %14281 = vmatmul.mubr.msk.bf16.gmra.mrb[120].mxu0 %vm9309_vm13, %v11599_v47  ;;  %14170 = vmatprep.mubr.msk.bf16.mxu1 %vm14327_vm4, %v21251_v36 }
 0x4ae   : > { %14284 = vmatprep.mubr.msk.bf16.mxu0 %vm14327_vm4, %v21251_v36 }
 0x4b4   : > { %14171 = vmatmul.mubr.msk.bf16.gmra.mrb[88].mxu1 %vm9309_vm13, %v10950_v25 }
 0x4b5   : > { %14285 = vmatmul.mubr.msk.bf16.gmra.mrb[124].mxu0 %vm9309_vm13, %v11600_v41  ;;  %14174 = vmatprep.mubr.msk.bf16.mxu1 %vm14327_vm4, %v21251_v36 }
 0x4b6   : > { %14288 = vmatprep.mubr.msk.bf16.mxu0 %vm14327_vm4, %v21251_v36  ;;  %v20124_v51 = vpop.f32.mrb[28].mxu0 }
 0x4b7   : > { %v14070_v62 = vpop.f32.mrb[29].mxu0  ;;  %v20128_v48 = vpop.f32.mrb[244].mxu1 }
 0x4b8   : > { %v20126_v0 = vpop.f32.mrb[30].mxu0  ;;  %v13990_v2 = vpop.f32.mrb[245].mxu1  ;;  %v22159_v62 = vld [vmem:[#allocation177_spill] sm:$0xff] }
 0x4b9   : > { %v14071_v61 = vpop.f32.mrb[31].mxu0  ;;  %v20136_v6 = vpop.f32.mrb[246].mxu1 }
 0x4ba   : > { %v13991_v12 = vpop.f32.mrb[247].mxu1 }
 0x4bb   : > { %v22161_v12 = vld [vmem:[#allocation32_spill] sm:$0xff] }
 0x4bc   : > { %14175 = vmatmul.mubr.msk.bf16.gmra.mrb[92].mxu1 %vm9309_vm13, %v22145_v30  ;;  %v22163_v57 = vcombine.low %v22161_v12, %v22162_v34  ;;  %v22164_v30 = vld [vmem:[#allocation9_spill] sm:$0xff]  ;;  %v22170_v12 = vld [vmem:[#allocation232_spill] sm:$0xff] }
 0x4bd   : > { %14289 = vmatmul.mubr.msk.bf16.gmra.mrb[128].mxu0 %vm9309_vm13, %v22142_v52  ;;  %14178 = vmatprep.mubr.msk.bf16.mxu1 %vm14327_vm4, %v21251_v36 }
 0x4be   : > { %14292 = vmatprep.mubr.msk.bf16.mxu0 %vm14327_vm4, %v21251_v36 }
 0x4c3   : > { %v20154_v47 = vpop.f32.mrb[248].mxu1 }
 0x4c4   : > { %14179 = vmatmul.mubr.msk.bf16.gmra.mrb[96].mxu1 %vm9309_vm13, %v22151_v14  ;;  %v13994_v39 = vpop.f32.mrb[249].mxu1 }
 0x4c5   : > { %14293 = vmatmul.mubr.msk.bf16.gmra.mrb[132].mxu0 %vm9309_vm13, %v22148_v63  ;;  %14182 = vmatprep.mubr.msk.bf16.mxu1 %vm14327_vm4, %v21251_v36  ;;  %v20158_v3 = vpop.f32.mrb[250].mxu1 }
 0x4c6   : > { %14296 = vmatprep.mubr.msk.bf16.mxu0 %vm14327_vm4, %v21251_v36  ;;  %v13995_v59 = vpop.f32.mrb[251].mxu1 }
 0x4ca   : > { %v20164_v55 = vpop.f32.mrb[32].mxu0 }
 0x4cb   : > { %v14114_v24 = vpop.f32.mrb[33].mxu0 }
 0x4cc   : > { %14183 = vmatmul.mubr.msk.bf16.gmra.mrb[100].mxu1 %vm9309_vm13, %v22157_v32  ;;  %v20172_v4 = vpop.f32.mrb[34].mxu0  ;;  %v22166_v32 = vld [vmem:[#allocation111_spill] sm:$0xff]  ;;  %v22167_v24 = vld [vmem:[#allocation50_spill] sm:$0xff] }
 0x4cd   : > { %14297 = vmatmul.mubr.msk.bf16.gmra.mrb[136].mxu0 %vm9309_vm13, %v22154_v45  ;;  %14226 = vmatprep.mubr.msk.bf16.mxu1 %vm14327_vm4, %v21251_v36  ;;  %v14115_v49 = vpop.f32.mrb[35].mxu0  ;;  %v22165_v45 = vld [vmem:[#allocation8_spill] sm:$0xff] }
 0x4ce   : > { %v9663_v60 = vpop.f32.mrb[252].mxu1  ;;  %v22168_v49 = vcombine.low %v22166_v32, %v22167_v24 }
 0x4cf   : > { %v9664_v41 = vadd.f32 %v9663_v60, %v22158_v54  ;;  %v14000_v38 = vpop.f32.mrb[253].mxu1  ;;  %v22169_v60 = vld [vmem:[#allocation13_spill] sm:$0xff] }
 0x4d0   : > { %v9666_v25 = vpop.f32.mrb[254].mxu1 }
 0x4d1   : > { %v9667_v61 = vadd.f32 %v9666_v25, %v22159_v62  ;;  %v14001_v19 = vpop.f32.mrb[255].mxu1  ;;  %v20177_v52 = vadd.f32 %v22160_v58, %v9664_v41 }
 0x4d2   : > { %v20179_v2 = vpop.f32.mrb[36].mxu0 }
 0x4d3   : > { %v20186_v28 = vadd.f32 %v22164_v30, %v9667_v61  ;;  %v14118_v7 = vpop.f32.mrb[37].mxu0  ;;  %v22171_v30 = vld [vmem:[#allocation140_spill] sm:$0xff] }
 0x4d4   : > { %14227 = vmatmul.mubr.msk.bf16.vlgmr.msra.gmra.mrb[104].mxu1 %vm9309_vm13, %v22163_v57  ;;  %v20190_v63 = vpop.f32.mrb[38].mxu0  ;;  %v22172_v7 = vld [vmem:[#allocation164_spill] sm:$0xff] }
 0x4d5   : > { %14230 = vmatprep.mubr.msk.bf16.mxu1 %vm14327_vm4, %v21251_v36  ;;  %v14119_v33 = vpop.f32.mrb[39].mxu0 }
 0x4d6   : > { %v9671_v16 = vpop.f32.mrb[0].mxu1  ;;  %v22173_v33 = vcombine.low %v22171_v30, %v22172_v7  ;;  %v22177_v30 = vld [vmem:[#allocation104_spill] sm:$0xff]  ;;  %v22178_v7 = vld [vmem:[#allocation202_spill] sm:$0xff] }
 0x4d7   : > { %v9672_v14 = vadd.f32 %v9671_v16, %v19842_v44  ;;  %v14004_v39 = vpop.f32.mrb[1].mxu1 }
 0x4d8   : > { %v9674_v59 = vpop.f32.mrb[2].mxu1 }
 0x4d9   : > { %v9675_v50 = vadd.f32 %v9674_v59, %v19848_v21  ;;  %v14005_v53 = vpop.f32.mrb[3].mxu1  ;;  %v20195_v35 = vadd.f32 %v22165_v45, %v9672_v14 }
 0x4da   : > { %v20197_v20 = vpop.f32.mrb[40].mxu0 }
 0x4db   : > { %v20204_v54 = vadd.f32 %v22169_v60, %v9675_v50  ;;  %v14122_v41 = vpop.f32.mrb[41].mxu0  ;;  %v22175_v60 = vld [vmem:[#allocation179_spill] sm:$0xff] }
 0x4dc   : > { %14231 = vmatmul.mubr.msk.bf16.gmra.mrb[108].mxu1 %vm9309_vm13, %v22168_v49  ;;  %v20208_v44 = vpop.f32.mrb[42].mxu0  ;;  %v22174_v49 = vld [vmem:[#allocation178_spill] sm:$0xff] }
 0x4dd   : > { %14234 = vmatprep.mubr.msk.bf16.mxu1 %vm14327_vm4, %v21251_v36  ;;  %v14123_v21 = vpop.f32.mrb[43].mxu0  ;;  %v22176_v41 = vcombine.low %v22174_v49, %v22175_v60  ;;  %v22180_v49 = vld [vmem:[#allocation128_spill] sm:$0xff]  ;;  %v22181_v60 = vld [vmem:[#allocation218_spill] sm:$0xff] }
 0x4de   : > { %v9679_v38 = vpop.f32.mrb[4].mxu1 }
 0x4df   : > { %v9680_v25 = vadd.f32 %v9679_v38, %v19885_v11  ;;  %v14008_v62 = vpop.f32.mrb[5].mxu1 }
 0x4e0   : > { %v9682_v61 = vpop.f32.mrb[6].mxu1 }
 0x4e1   : > { %v9683_v19 = vadd.f32 %v9682_v61, %v19891_v43  ;;  %v14009_v58 = vpop.f32.mrb[7].mxu1  ;;  %v20213_v34 = vadd.f32 %v22170_v12, %v9680_v25 }
 0x4e3   : > { %v20222_v16 = vadd.f32 %v19839_v56, %v9683_v19 }
 0x4e4   : > { %14235 = vmatmul.mubr.msk.bf16.gmra.mrb[112].mxu1 %vm9309_vm13, %v22173_v33  ;;  %v22179_v33 = vcombine.low %v22177_v30, %v22178_v7  ;;  %v22183_v30 = vld [vmem:[#allocation222_spill] sm:$0xff]  ;;  %v22184_v7 = vld [vmem:[#allocation221_spill] sm:$0xff] }
 0x4e5   : > { %14238 = vmatprep.mubr.msk.bf16.mxu1 %vm14327_vm4, %v21251_v36 }
 0x4e6   : > { %v9687_v39 = vpop.f32.mrb[8].mxu1 }
 0x4e7   : > { %v9688_v59 = vadd.f32 %v9687_v39, %v19945_v42  ;;  %v14012_v50 = vpop.f32.mrb[9].mxu1 }
 0x4e8   : > { %v20215_v57 = vpop.f32.mrb[44].mxu0  ;;  %v9690_v53 = vpop.f32.mrb[10].mxu1 }
 0x4e9   : > { %v14126_v14 = vpop.f32.mrb[45].mxu0  ;;  %v9691_v45 = vadd.f32 %v9690_v53, %v19952_v5  ;;  %v14013_v32 = vpop.f32.mrb[11].mxu1  ;;  %v20231_v24 = vadd.f32 %v19899_v15, %v9688_v59 }
 0x4ea   : > { %v20226_v11 = vpop.f32.mrb[46].mxu0 }
 0x4eb   : > { %v14127_v43 = vpop.f32.mrb[47].mxu0  ;;  %v20240_v21 = vadd.f32 %v19904_v17, %v9691_v45 }
 0x4ec   : > { %14239 = vmatmul.mubr.msk.bf16.gmra.mrb[116].mxu1 %vm9309_vm13, %v22176_v41  ;;  %v22182_v41 = vcombine.low %v22180_v49, %v22181_v60  ;;  %v22186_v49 = vld [vmem:[#allocation224_spill] sm:$0xff]  ;;  %v22187_v60 = vld [vmem:[#allocation170_spill] sm:$0xff] }
 0x4ed   : > { %14242 = vmatprep.mubr.msk.bf16.mxu1 %vm14327_vm4, %v21251_v36 }
 0x4ef   : > { %v9695_v25 = vpop.f32.mrb[12].mxu1 }
 0x4f0   : > { %v20233_v56 = vpop.f32.mrb[48].mxu0  ;;  %v9696_v15 = vadd.f32 %v9695_v25, %v20000_v18  ;;  %v14016_v62 = vpop.f32.mrb[13].mxu1 }
 0x4f1   : > { %v14130_v38 = vpop.f32.mrb[49].mxu0  ;;  %v9698_v61 = vpop.f32.mrb[14].mxu1 }
 0x4f2   : > { %v20244_v42 = vpop.f32.mrb[50].mxu0  ;;  %v9699_v19 = vadd.f32 %v9698_v61, %v20007_v10  ;;  %v14017_v58 = vpop.f32.mrb[15].mxu1  ;;  %v20249_v12 = vadd.f32 %v19954_v40, %v9696_v15 }
 0x4f3   : > { %v14131_v5 = vpop.f32.mrb[51].mxu0 }
 0x4f4   : > { %14243 = vmatmul.mubr.msk.bf16.gmra.mrb[120].mxu1 %vm9309_vm13, %v22179_v33  ;;  %v20258_v14 = vadd.f32 %v19959_v13, %v9699_v19  ;;  %v22185_v33 = vcombine.low %v22183_v30, %v22184_v7  ;;  %v22189_v30 = vld [vmem:[#allocation108_spill] sm:$0xff] }
 0x4f5   : > { %14246 = vmatprep.mubr.msk.bf16.mxu1 %vm14327_vm4, %v21251_v36 }
 0x4f7   : > { %v9703_v39 = vpop.f32.mrb[16].mxu1 }
 0x4f8   : > { %v20251_v17 = vpop.f32.mrb[52].mxu0  ;;  %v9704_v40 = vadd.f32 %v9703_v39, %v20047_v27  ;;  %v14020_v59 = vpop.f32.mrb[17].mxu1 }
 0x4f9   : > { %v14134_v43 = vpop.f32.mrb[53].mxu0  ;;  %v9706_v50 = vpop.f32.mrb[18].mxu1 }
 0x4fa   : > { %v20262_v18 = vpop.f32.mrb[54].mxu0  ;;  %v9707_v53 = vadd.f32 %v9706_v50, %v20053_v8  ;;  %v14021_v45 = vpop.f32.mrb[19].mxu1  ;;  %v20267_v32 = vadd.f32 %v20004_v22, %v9704_v40 }
 0x4fb   : > { %v14135_v10 = vpop.f32.mrb[55].mxu0 }
 0x4fc   : > { %14247 = vmatmul.mubr.msk.bf16.gmra.mrb[124].mxu1 %vm9309_vm13, %v22182_v41  ;;  %v20276_v38 = vadd.f32 %v20009_v1, %v9707_v53  ;;  %v22188_v41 = vcombine.low %v22186_v49, %v22187_v60 }
 0x4fd   : > { %14250 = vmatprep.mubr.msk.bf16.mxu1 %vm14327_vm4, %v21251_v36 }
 0x4ff   : > { %v9711_v25 = vpop.f32.mrb[20].mxu1 }
 0x500   : > { %v20269_v13 = vpop.f32.mrb[56].mxu0  ;;  %v9712_v22 = vadd.f32 %v9711_v25, %v20097_v26  ;;  %v14024_v15 = vpop.f32.mrb[21].mxu1 }
 0x501   : > { %v14138_v5 = vpop.f32.mrb[57].mxu0  ;;  %v9714_v62 = vpop.f32.mrb[22].mxu1 }
 0x502   : > { %v20280_v27 = vpop.f32.mrb[58].mxu0  ;;  %v9715_v61 = vadd.f32 %v9714_v62, %v20105_v31  ;;  %v14025_v19 = vpop.f32.mrb[23].mxu1  ;;  %v20285_v58 = vadd.f32 %v20060_v23, %v9712_v22 }
 0x503   : > { %v14139_v8 = vpop.f32.mrb[59].mxu0 }
 0x504   : > { %14251 = vmatmul.mubr.msk.bf16.gmra.mrb[128].mxu1 %vm9309_vm13, %v22185_v33  ;;  %v20294_v43 = vadd.f32 %v20065_v46, %v9715_v61 }
 0x505   : > { %14254 = vmatprep.mubr.msk.bf16.mxu1 %vm14327_vm4, %v21251_v36 }
 0x507   : > { %v9719_v39 = vpop.f32.mrb[24].mxu1 }
 0x508   : > { %v20287_v1 = vpop.f32.mrb[60].mxu0  ;;  %v9720_v23 = vadd.f32 %v9719_v39, %v20128_v48  ;;  %v14028_v40 = vpop.f32.mrb[25].mxu1 }
 0x509   : > { %v14142_v10 = vpop.f32.mrb[61].mxu0  ;;  %v9722_v59 = vpop.f32.mrb[26].mxu1 }
 0x50a   : > { %v20298_v26 = vpop.f32.mrb[62].mxu0  ;;  %v9723_v50 = vadd.f32 %v9722_v59, %v20136_v6  ;;  %v14029_v53 = vpop.f32.mrb[27].mxu1  ;;  %v20303_v45 = vadd.f32 %v20103_v37, %v9720_v23 }
 0x50b   : > { %v14143_v31 = vpop.f32.mrb[63].mxu0 }
 0x50c   : > { %14255 = vmatmul.mubr.msk.bf16.gmra.mrb[132].mxu1 %vm9309_vm13, %v22188_v41  ;;  %v20312_v5 = vadd.f32 %v20110_v9, %v9723_v50 }
 0x50d   : > { %14258 = vmatprep.mubr.msk.bf16.mxu1 %vm14327_vm4, %v21251_v36  ;;  %vm11896_vm4 = vcmask 60416  }
 0x50f   : > { %v9727_v25 = vpop.f32.mrb[28].mxu1 }
 0x510   : > { %v20305_v46 = vpop.f32.mrb[64].mxu0  ;;  %v9728_v37 = vadd.f32 %v9727_v25, %v20154_v47  ;;  %v14032_v22 = vpop.f32.mrb[29].mxu1 }
 0x511   : > { %v14146_v8 = vpop.f32.mrb[65].mxu0  ;;  %v9730_v15 = vpop.f32.mrb[30].mxu1 }
 0x512   : > { %v20316_v48 = vpop.f32.mrb[66].mxu0  ;;  %v9731_v62 = vadd.f32 %v9730_v15, %v20158_v3  ;;  %v14033_v61 = vpop.f32.mrb[31].mxu1  ;;  %v20321_v19 = vadd.f32 %v20124_v51, %v9728_v37 }
 0x513   : > { %v14147_v6 = vpop.f32.mrb[67].mxu0 }
 0x514   : > { %14259 = vmatmul.mubr.msk.bf16.gmra.mrb[136].mxu1 %vm9309_vm13, %v22189_v30  ;;  %v20328_v36 = vadd.f32 %v20126_v0, %v9731_v62 }
 0x517   : > { %v10405_v10 = vpop.f32.mrb[32].mxu1 }
 0x518   : > { %v20323_v9 = vpop.f32.mrb[68].mxu0  ;;  %v10476_v31 = vadd.f32 %v10405_v10, %v20177_v52  ;;  %v14076_v3 = vpop.f32.mrb[33].mxu1 }
 0x519   : > { %v14190_v7 = vpop.f32.mrb[69].mxu0  ;;  %v10408_v39 = vpop.f32.mrb[34].mxu1 }
 0x51a   : > { %v20330_v33 = vpop.f32.mrb[70].mxu0  ;;  %v10477_v51 = vadd.f32 %v10408_v39, %v20186_v28  ;;  %v14077_v23 = vpop.f32.mrb[35].mxu1  ;;  %v20335_v40 = vadd.f32 %v20164_v55, %v10476_v31 }
 0x51b   : > { %v14191_v47 = vpop.f32.mrb[71].mxu0 }
 0x51c   : > { %v20340_v0 = vadd.f32 %v20172_v4, %v10477_v51 }
 0x51f   : > { %v10413_v60 = vpop.f32.mrb[36].mxu1 }
 0x520   : > { %v20337_v59 = vpop.f32.mrb[72].mxu0  ;;  %v10478_v52 = vadd.f32 %v10413_v60, %v20195_v35  ;;  %v14080_v41 = vpop.f32.mrb[37].mxu1 }
 0x521   : > { %v14194_v50 = vpop.f32.mrb[73].mxu0  ;;  %v10416_v8 = vpop.f32.mrb[38].mxu1 }
 0x522   : > { %v20342_v53 = vpop.f32.mrb[74].mxu0  ;;  %v10479_v28 = vadd.f32 %v10416_v8, %v20204_v54  ;;  %v14081_v6 = vpop.f32.mrb[39].mxu1  ;;  %v20347_v55 = vadd.f32 %v20179_v2, %v10478_v52 }
 0x523   : > { %v14195_v49 = vpop.f32.mrb[75].mxu0 }
 0x524   : > { %v20352_v4 = vadd.f32 %v20190_v63, %v10479_v28 }
 0x527   : > { %v10421_v62 = vpop.f32.mrb[40].mxu1 }
 0x528   : > { %v20349_v25 = vpop.f32.mrb[76].mxu0  ;;  %v10480_v35 = vadd.f32 %v10421_v62, %v20213_v34  ;;  %v14084_v61 = vpop.f32.mrb[41].mxu1 }
 0x529   : > { %v14198_v37 = vpop.f32.mrb[77].mxu0  ;;  %v10424_v30 = vpop.f32.mrb[42].mxu1 }
 0x52a   : > { %v20354_v22 = vpop.f32.mrb[78].mxu0  ;;  %v10481_v54 = vadd.f32 %v10424_v30, %v20222_v16  ;;  %v14085_v7 = vpop.f32.mrb[43].mxu1  ;;  %v20359_v2 = vadd.f32 %v20197_v20, %v10480_v35 }
 0x52b   : > { %v14199_v15 = vpop.f32.mrb[79].mxu0 }
 0x52c   : > { %v20364_v63 = vadd.f32 %v20208_v44, %v10481_v54 }
 0x52f   : > { %v10429_v39 = vpop.f32.mrb[44].mxu1 }
 0x530   : > { %v20361_v47 = vpop.f32.mrb[80].mxu0  ;;  %v10482_v34 = vadd.f32 %v10429_v39, %v20231_v24  ;;  %v14088_v51 = vpop.f32.mrb[45].mxu1 }
 0x531   : > { %v14202_v10 = vpop.f32.mrb[81].mxu0  ;;  %v10432_v23 = vpop.f32.mrb[46].mxu1 }
 0x532   : > { %v20366_v31 = vpop.f32.mrb[82].mxu0  ;;  %v10483_v16 = vadd.f32 %v10432_v23, %v20240_v21  ;;  %v14089_v50 = vpop.f32.mrb[47].mxu1  ;;  %v20371_v20 = vadd.f32 %v20215_v57, %v10482_v34 }
 0x533   : > { %v14203_v3 = vpop.f32.mrb[83].mxu0 }
 0x534   : > { %v20376_v44 = vadd.f32 %v20226_v11, %v10483_v16 }
 0x537   : > { %v10437_v8 = vpop.f32.mrb[48].mxu1 }
 0x538   : > { %v20373_v49 = vpop.f32.mrb[84].mxu0  ;;  %v10484_v24 = vadd.f32 %v10437_v8, %v20249_v12  ;;  %v14092_v28 = vpop.f32.mrb[49].mxu1 }
 0x539   : > { %v14206_v60 = vpop.f32.mrb[85].mxu0  ;;  %v10440_v6 = vpop.f32.mrb[50].mxu1 }
 0x53a   : > { %v20378_v52 = vpop.f32.mrb[86].mxu0  ;;  %v10485_v21 = vadd.f32 %v10440_v6, %v20258_v14  ;;  %v14093_v37 = vpop.f32.mrb[51].mxu1  ;;  %v20383_v57 = vadd.f32 %v20233_v56, %v10484_v24 }
 0x53b   : > { %v14207_v41 = vpop.f32.mrb[87].mxu0 }
 0x53c   : > { %v20388_v11 = vadd.f32 %v20244_v42, %v10485_v21 }
 0x53f   : > { %v10445_v30 = vpop.f32.mrb[52].mxu1 }
 0x540   : > { %v20385_v15 = vpop.f32.mrb[88].mxu0  ;;  %v10486_v12 = vadd.f32 %v10445_v30, %v20267_v32  ;;  %v14096_v54 = vpop.f32.mrb[53].mxu1 }
 0x541   : > { %v14210_v62 = vpop.f32.mrb[89].mxu0  ;;  %v10448_v7 = vpop.f32.mrb[54].mxu1 }
 0x542   : > { %v20390_v35 = vpop.f32.mrb[90].mxu0  ;;  %v10487_v14 = vadd.f32 %v10448_v7, %v20276_v38  ;;  %v14097_v10 = vpop.f32.mrb[55].mxu1  ;;  %v20395_v56 = vadd.f32 %v20251_v17, %v10486_v12 }
 0x543   : > { %v14211_v61 = vpop.f32.mrb[91].mxu0 }
 0x544   : > { %v20400_v42 = vadd.f32 %v20262_v18, %v10487_v14 }
 0x547   : > { %v10453_v23 = vpop.f32.mrb[56].mxu1 }
 0x548   : > { %v20397_v3 = vpop.f32.mrb[92].mxu0  ;;  %v10488_v32 = vadd.f32 %v10453_v23, %v20285_v58  ;;  %v14100_v16 = vpop.f32.mrb[57].mxu1 }
 0x549   : > { %v14214_v39 = vpop.f32.mrb[93].mxu0  ;;  %v10456_v50 = vpop.f32.mrb[58].mxu1 }
 0x54a   : > { %v20402_v34 = vpop.f32.mrb[94].mxu0  ;;  %v10489_v38 = vadd.f32 %v10456_v50, %v20294_v43  ;;  %v14101_v60 = vpop.f32.mrb[59].mxu1  ;;  %v20407_v17 = vadd.f32 %v20269_v13, %v10488_v32 }
 0x54b   : > { %v14215_v51 = vpop.f32.mrb[95].mxu0 }
 0x54c   : > { %v20412_v18 = vadd.f32 %v20280_v27, %v10489_v38 }
 0x54f   : > { %v10461_v6 = vpop.f32.mrb[60].mxu1 }
 0x550   : > { %v20409_v41 = vpop.f32.mrb[96].mxu0  ;;  %v10490_v58 = vadd.f32 %v10461_v6, %v20303_v45  ;;  %v14104_v21 = vpop.f32.mrb[61].mxu1 }
 0x551   : > { %v14218_v8 = vpop.f32.mrb[97].mxu0  ;;  %v10464_v37 = vpop.f32.mrb[62].mxu1 }
 0x552   : > { %v20414_v24 = vpop.f32.mrb[98].mxu0  ;;  %v10491_v43 = vadd.f32 %v10464_v37, %v20312_v5  ;;  %v14105_v62 = vpop.f32.mrb[63].mxu1  ;;  %v20419_v13 = vadd.f32 %v20287_v1, %v10490_v58 }
 0x553   : > { %v14219_v28 = vpop.f32.mrb[99].mxu0 }
 0x554   : > { %v20424_v27 = vadd.f32 %v20298_v26, %v10491_v43 }
 0x557   : > { %v10469_v7 = vpop.f32.mrb[64].mxu1 }
 0x558   : > { %v20421_v61 = vpop.f32.mrb[100].mxu0  ;;  %v10492_v45 = vadd.f32 %v10469_v7, %v20321_v19  ;;  %v14108_v14 = vpop.f32.mrb[65].mxu1 }
 0x559   : > { %v14222_v30 = vpop.f32.mrb[101].mxu0  ;;  %v10472_v10 = vpop.f32.mrb[66].mxu1 }
 0x55a   : > { %v20426_v12 = vpop.f32.mrb[102].mxu0  ;;  %v10493_v5 = vadd.f32 %v10472_v10, %v20328_v36  ;;  %v14109_v39 = vpop.f32.mrb[67].mxu1  ;;  %v20431_v1 = vadd.f32 %v20305_v46, %v10492_v45 }
 0x55b   : > { %v14223_v54 = vpop.f32.mrb[103].mxu0 }
 0x55c   : > { %v20436_v26 = vadd.f32 %v20316_v48, %v10493_v5 }
 0x55f   : > { %v11066_v50 = vpop.f32.mrb[68].mxu1 }
 0x560   : > { %v20433_v51 = vpop.f32.mrb[104].mxu0  ;;  %v11137_v19 = vadd.f32 %v11066_v50, %v20335_v40  ;;  %v14152_v38 = vpop.f32.mrb[69].mxu1 }
 0x561   : > { %v14266_v23 = vpop.f32.mrb[105].mxu0  ;;  %v11069_v60 = vpop.f32.mrb[70].mxu1 }
 0x562   : > { %v20438_v32 = vpop.f32.mrb[106].mxu0  ;;  %v11138_v36 = vadd.f32 %v11069_v60, %v20340_v0  ;;  %v14153_v8 = vpop.f32.mrb[71].mxu1  ;;  %v20443_v46 = vadd.f32 %v20323_v9, %v11137_v19 }
 0x563   : > { %v14267_v16 = vpop.f32.mrb[107].mxu0 }
 0x564   : > { %v20448_v48 = vadd.f32 %v20330_v33, %v11138_v36 }
 0x567   : > { %v11074_v37 = vpop.f32.mrb[72].mxu1 }
 0x568   : > { %v20445_v28 = vpop.f32.mrb[108].mxu0  ;;  %v11139_v40 = vadd.f32 %v11074_v37, %v20347_v55  ;;  %v14156_v43 = vpop.f32.mrb[73].mxu1 }
 0x569   : > { %v14270_v6 = vpop.f32.mrb[109].mxu0  ;;  %v11077_v62 = vpop.f32.mrb[74].mxu1 }
 0x56a   : > { %v20450_v58 = vpop.f32.mrb[110].mxu0  ;;  %v11140_v0 = vadd.f32 %v11077_v62, %v20352_v4  ;;  %v14157_v30 = vpop.f32.mrb[75].mxu1  ;;  %v20455_v9 = vadd.f32 %v20337_v59, %v11139_v40 }
 0x56b   : > { %v14271_v21 = vpop.f32.mrb[111].mxu0 }
 0x56c   : > { %v20460_v33 = vadd.f32 %v20342_v53, %v11140_v0 }
 0x56f   : > { %v11082_v10 = vpop.f32.mrb[76].mxu1 }
 0x570   : > { %v20457_v54 = vpop.f32.mrb[112].mxu0  ;;  %v11141_v55 = vadd.f32 %v11082_v10, %v20359_v2  ;;  %v14160_v5 = vpop.f32.mrb[77].mxu1 }
 0x571   : > { %v14274_v7 = vpop.f32.mrb[113].mxu0  ;;  %v11085_v39 = vpop.f32.mrb[78].mxu1 }
 0x572   : > { %v20462_v45 = vpop.f32.mrb[114].mxu0  ;;  %v11142_v4 = vadd.f32 %v11085_v39, %v20364_v63  ;;  %v14161_v23 = vpop.f32.mrb[79].mxu1  ;;  %v20467_v59 = vadd.f32 %v20349_v25, %v11141_v55 }
 0x573   : > { %v14275_v14 = vpop.f32.mrb[115].mxu0 }
 0x574   : > { %v20472_v53 = vadd.f32 %v20354_v22, %v11142_v4 }
 0x577   : > { %v11090_v60 = vpop.f32.mrb[80].mxu1 }
 0x578   : > { %v20469_v16 = vpop.f32.mrb[116].mxu0  ;;  %v11143_v2 = vadd.f32 %v11090_v60, %v20371_v20  ;;  %v14164_v36 = vpop.f32.mrb[81].mxu1 }
 0x579   : > { %v14278_v50 = vpop.f32.mrb[117].mxu0  ;;  %v11093_v8 = vpop.f32.mrb[82].mxu1 }
 0x57a   : > { %v20474_v19 = vpop.f32.mrb[118].mxu0  ;;  %v11144_v63 = vadd.f32 %v11093_v8, %v20376_v44  ;;  %v14165_v6 = vpop.f32.mrb[83].mxu1  ;;  %v20479_v25 = vadd.f32 %v20361_v47, %v11143_v2 }
 0x57b   : > { %v14279_v38 = vpop.f32.mrb[119].mxu0 }
 0x57c   : > { %v20484_v22 = vadd.f32 %v20366_v31, %v11144_v63 }
 0x57f   : > { %v11098_v62 = vpop.f32.mrb[84].mxu1 }
 0x580   : > { %v20481_v21 = vpop.f32.mrb[120].mxu0  ;;  %v11145_v20 = vadd.f32 %v11098_v62, %v20383_v57  ;;  %v14168_v0 = vpop.f32.mrb[85].mxu1 }
 0x581   : > { %v14282_v37 = vpop.f32.mrb[121].mxu0  ;;  %v11101_v30 = vpop.f32.mrb[86].mxu1 }
 0x582   : > { %v20486_v40 = vpop.f32.mrb[122].mxu0  ;;  %v11146_v44 = vadd.f32 %v11101_v30, %v20388_v11  ;;  %v14169_v7 = vpop.f32.mrb[87].mxu1  ;;  %v20491_v47 = vadd.f32 %v20373_v49, %v11145_v20 }
 0x583   : > { %v14283_v43 = vpop.f32.mrb[123].mxu0 }
 0x584   : > { %v20496_v31 = vadd.f32 %v20378_v52, %v11146_v44 }
 0x587   : > { %v11106_v39 = vpop.f32.mrb[88].mxu1 }
 0x588   : > { %v20493_v14 = vpop.f32.mrb[124].mxu0  ;;  %v11147_v57 = vadd.f32 %v11106_v39, %v20395_v56  ;;  %v14172_v4 = vpop.f32.mrb[89].mxu1 }
 0x589   : > { %v14286_v10 = vpop.f32.mrb[125].mxu0  ;;  %v11109_v23 = vpop.f32.mrb[90].mxu1 }
 0x58a   : > { %v20498_v55 = vpop.f32.mrb[126].mxu0  ;;  %v11148_v11 = vadd.f32 %v11109_v23, %v20400_v42  ;;  %v14173_v50 = vpop.f32.mrb[91].mxu1  ;;  %v20503_v49 = vadd.f32 %v20385_v15, %v11147_v57 }
 0x58b   : > { %v14287_v5 = vpop.f32.mrb[127].mxu0 }
 0x58c   : > { %v20508_v52 = vadd.f32 %v20390_v35, %v11148_v11 }
 0x58f   : > { %v11114_v8 = vpop.f32.mrb[92].mxu1 }
 0x590   : > { %v20505_v38 = vpop.f32.mrb[128].mxu0  ;;  %v11149_v56 = vadd.f32 %v11114_v8, %v20407_v17  ;;  %v14176_v63 = vpop.f32.mrb[93].mxu1 }
 0x591   : > { %v14290_v60 = vpop.f32.mrb[129].mxu0  ;;  %v11117_v6 = vpop.f32.mrb[94].mxu1  ;;  %v20548_v63 = vld [vmem:[%s20748_s4] ss:$0 sm:$0xff] }
 0x592   : > { %v20510_v2 = vpop.f32.mrb[130].mxu0  ;;  %v11150_v42 = vadd.f32 %v11117_v6, %v20412_v18  ;;  %v14177_v37 = vpop.f32.mrb[95].mxu1  ;;  %v20515_v15 = vadd.f32 %v20397_v3, %v11149_v56 }
 0x593   : > { %v14291_v36 = vpop.f32.mrb[131].mxu0 }
 0x594   : > { %v20520_v35 = vadd.f32 %v20402_v34, %v11150_v42 }
 0x597   : > { %v11122_v30 = vpop.f32.mrb[96].mxu1 }
 0x598   : > { %v20517_v43 = vpop.f32.mrb[132].mxu0  ;;  %v11151_v17 = vadd.f32 %v11122_v30, %v20419_v13  ;;  %v14180_v44 = vpop.f32.mrb[97].mxu1 }
 0x599   : > { %v14294_v62 = vpop.f32.mrb[133].mxu0  ;;  %v11125_v7 = vpop.f32.mrb[98].mxu1 }
 0x59a   : > { %v20522_v20 = vpop.f32.mrb[134].mxu0  ;;  %v11152_v18 = vadd.f32 %v11125_v7, %v20424_v27  ;;  %v14181_v10 = vpop.f32.mrb[99].mxu1  ;;  %v20527_v3 = vadd.f32 %v20409_v41, %v11151_v17 }
 0x59b   : > { %v14295_v0 = vpop.f32.mrb[135].mxu0 }
 0x59c   : > { %v20532_v34 = vadd.f32 %v20414_v24, %v11152_v18 }
 0x59f   : > { %v11130_v23 = vpop.f32.mrb[100].mxu1 }
 0x5a0   : > { %v20529_v5 = vpop.f32.mrb[136].mxu0  ;;  %v11153_v13 = vadd.f32 %v11130_v23, %v20431_v1  ;;  %v14184_v11 = vpop.f32.mrb[101].mxu1 }
 0x5a1   : > { %v14298_v39 = vpop.f32.mrb[137].mxu0  ;;  %v11133_v50 = vpop.f32.mrb[102].mxu1 }
 0x5a2   : > { %v20534_v57 = vpop.f32.mrb[138].mxu0  ;;  %v11154_v27 = vadd.f32 %v11133_v50, %v20436_v26  ;;  %v14185_v60 = vpop.f32.mrb[103].mxu1  ;;  %v20539_v41 = vadd.f32 %v20421_v61, %v11153_v13 }
 0x5a3   : > { %v14299_v4 = vpop.f32.mrb[139].mxu0 }
 0x5a4   : > { %v20542_v36 = vadd.f32 %v20426_v12, %v11154_v27 }
 0x5a7   : > { %v11494_v24 = vpop.f32.mrb[104].mxu1 }
 0x5a8   : > { %v11565_v8 = vadd.f32 %v11494_v24, %v20443_v46  ;;  %v14228_v56 = vpop.f32.mrb[105].mxu1 }
 0x5a9   : > { %v11497_v1 = vpop.f32.mrb[106].mxu1 }
 0x5aa   : > { %v11763_v6 = vadd.f32 %v20433_v51, %v11565_v8  ;;  %v11566_v26 = vadd.f32 %v11497_v1, %v20448_v48  ;;  %v14229_v42 = vpop.f32.mrb[107].mxu1 }
 0x5ac   : > { %v11788_v61 = vadd.f32 %v20548_v63, %v11763_v6  ;;  %v11764_v12 = vadd.f32 %v20438_v32, %v11566_v26 }
 0x5ae   : > { %v11806_v37 = vmax.f32 %v11788_v61, 0.0  ;;  %v11789_v46 = vadd.f32 %v20548_v63, %v11764_v12 }
 0x5af   : > { %v11502_v51 = vpop.f32.mrb[108].mxu1 }
 0x5b0   : > { %v13202_v62 = vpack.c.bf16 %v11806_v37, %v11806_v37  ;;  %v11807_v48 = vmax.f32 %v11789_v46, 0.0  ;;  %v11567_v0 = vadd.f32 %v11502_v51, %v20455_v9  ;;  %v14232_v30 = vpop.f32.mrb[109].mxu1  ;;  %v11933_v50 = vcombine.high %v11806_v37, %v11806_v37 }
 0x5b1   : > { %v11505_v17 = vpop.f32.mrb[110].mxu1 }
 0x5b2   : > { %11897 = vst.msk [vmem:[%s20559_s28] sm:$0xf] %vm11896_vm4, %v13202_v62  ;;  %v13203_v32 = vpack.c.bf16 %v11807_v48, %v11807_v48  ;;  %v11934_v44 = vcombine.high %v11807_v48, %v11807_v48  ;;  %v11765_v7 = vadd.f32 %v20445_v28, %v11567_v0  ;;  %v11568_v18 = vadd.f32 %v11505_v17, %v20460_v33  ;;  %v14233_v10 = vpop.f32.mrb[111].mxu1 }
 0x5b4   : > { %11898 = vst.msk [vmem:[%s20559_s28 + $0x4] sm:$0xf] %vm11896_vm4, %v13203_v32  ;;  %v11969_v39 = vmax.f32 %v11806_v37, %v11934_v44  ;;  %v11790_v4 = vadd.f32 %v20548_v63, %v11765_v7  ;;  %v11766_v23 = vadd.f32 %v20450_v58, %v11568_v18 }
 0x5b6   : > { %v12011_v9 = vrot.slane %v11969_v39, %v18062_v29  ;;  %v11808_v13 = vmax.f32 %v11790_v4, 0.0  ;;  %v11791_v11 = vadd.f32 %v20548_v63, %v11766_v23 }
 0x5b7   : > { %v11510_v27 = vpop.f32.mrb[112].mxu1 }
 0x5b8   : > { %v12012_v60 = vcombine.high %v12011_v9, %v12011_v9  ;;  %v13127_v28 = vrot.slane %v12011_v9, 9  ;;  %v13204_v24 = vpack.c.bf16 %v11808_v13, %v11808_v13  ;;  %v11935_v33 = vcombine.high %v11808_v13, %v11808_v13  ;;  %v14236_v8 = vpop.f32.mrb[113].mxu1 }
 0x5b9   : > { %v11970_v56 = vmax.f32 %v11933_v50, %v11808_v13  ;;  %v20572_v1 = vmax.f32 %v11791_v11, 0.0  ;;  %v11569_v6 = vadd.f32 %v11510_v27, %v20467_v59  ;;  %v11513_v26 = vpop.f32.mrb[114].mxu1 }
 0x5ba   : > { %v13128_v58 = vrot.slane %v12012_v60, 9  ;;  %v12293_v42 = vmax.f32 %v12011_v9, %v13127_v28  ;;  %11899 = vst.msk [vmem:[%s20559_s28 + $0x8] sm:$0xf] %vm11896_vm4, %v13204_v24  ;;  %v11971_v61 = vmax.f32 %v11807_v48, %v11935_v33  ;;  %v11570_v12 = vadd.f32 %v11513_v26, %v20472_v53  ;;  %v14237_v37 = vpop.f32.mrb[115].mxu1 }
 0x5bb   : > { %v12019_v46 = vrot.slane %v11970_v56, %v18062_v29  ;;  %v13205_v51 = vpack.c.bf16 %v20572_v1, %v20572_v1  ;;  %v11767_v62 = vadd.f32 %v20457_v54, %v11569_v6  ;;  %v11936_v53 = vcombine.high %v20572_v1, %v20572_v1 }
 0x5bc   : > { %v12294_v0 = vmax.f32 %v12012_v60, %v13128_v58  ;;  %v13220_v59 = vpack.c.bf16 %v12293_v42, %v12293_v42  ;;  %v12027_v30 = vrot.slane %v11971_v61, %v18062_v29  ;;  %v11768_v17 = vadd.f32 %v20462_v45, %v11570_v12 }
 0x5bd   : > { %v12020_v32 = vcombine.high %v12019_v46, %v12019_v46  ;;  %v13129_v44 = vrot.slane %v12019_v46, 9  ;;  %11900 = vst.msk [vmem:[%s20559_s28 + $0xc] sm:$0xf] %vm11896_vm4, %v13205_v51  ;;  %v11792_v48 = vadd.f32 %v20548_v63, %v11767_v62 }
 0x5be   : > { %v13221_v7 = vpack.c.bf16 %v12294_v0, %v12294_v0  ;;  %v12473_v18 = vunpack.c.l.b16 %v13220_v59  ;;  %v12028_v10 = vcombine.high %v12027_v30, %v12027_v30  ;;  %v13131_v39 = vrot.slane %v12027_v30, 9 }
 0x5bf   : > { %v13130_v54 = vrot.slane %v12020_v32, 9  ;;  %v12295_v4 = vmax.f32 %v12019_v46, %v13129_v44  ;;  %v11810_v23 = vmax.f32 %v11792_v48, 0.0  ;;  %v11793_v9 = vadd.f32 %v20548_v63, %v11768_v17  ;;  %v11518_v45 = vpop.f32.mrb[116].mxu1 }
 0x5c0   : > { %v12474_v13 = vunpack.c.l.b16 %v13221_v7  ;;  %v13132_v11 = vrot.slane %v12028_v10, 9  ;;  %v12297_v50 = vmax.f32 %v12027_v30, %v13131_v39  ;;  %v11571_v27 = vadd.f32 %v11518_v45, %v20479_v25  ;;  %v14240_v60 = vpop.f32.mrb[117].mxu1 }
 0x5c1   : > { %v12296_v28 = vmax.f32 %v12020_v32, %v13130_v54  ;;  %v13222_v24 = vpack.c.bf16 %v12295_v4, %v12295_v4  ;;  %v13206_v33 = vpack.c.bf16 %v11810_v23, %v11810_v23  ;;  %v11937_v8 = vcombine.high %v11810_v23, %v11810_v23  ;;  %v11521_v56 = vpop.f32.mrb[118].mxu1 }
 0x5c2   : > { %v12509_v6 = vrot.slane %v12474_v13, 7  ;;  %v12298_v26 = vmax.f32 %v12028_v10, %v13132_v11  ;;  %v13224_v58 = vpack.c.bf16 %v12297_v50, %v12297_v50  ;;  %v11811_v42 = vmax.f32 %v11793_v9, 0.0  ;;  %v14241_v61 = vpop.f32.mrb[119].mxu1 }
 0x5c3   : > { %v13223_v12 = vpack.c.bf16 %v12296_v28, %v12296_v28  ;;  %v12475_v37 = vunpack.c.l.b16 %v13222_v24  ;;  %11901 = vst.msk [vmem:[%s20559_s28 + $0x10] sm:$0xf] %vm11896_vm4, %v13206_v33  ;;  %v11972_v25 = vmax.f32 %v20572_v1, %v11937_v8  ;;  %v11769_v46 = vadd.f32 %v20469_v16, %v11571_v27 }
 0x5c4   : > { %v12511_v51 = vsel %vm12510_vm0, %v12509_v6, %v12473_v18  ;;  %v13225_v62 = vpack.c.bf16 %v12298_v26, %v12298_v26  ;;  %v12477_v0 = vunpack.c.l.b16 %v13224_v58  ;;  %v13207_v59 = vpack.c.bf16 %v11811_v42, %v11811_v42 }
 0x5c5   : > { %v12476_v30 = vunpack.c.l.b16 %v13223_v12  ;;  %v12512_v17 = vrot.slane %v12475_v37, 6  ;;  %v12035_v32 = vrot.slane %v11972_v25, %v18062_v29  ;;  %v11938_v44 = vcombine.high %v11811_v42, %v11811_v42 }
 0x5c6   : > { %v12478_v48 = vunpack.c.l.b16 %v13225_v62  ;;  %v12518_v7 = vrot.slane %v12477_v0, 4  ;;  %11902 = vst.msk [vmem:[%s20559_s28 + $0x14] sm:$0xf] %vm11896_vm4, %v13207_v59  ;;  %v11973_v10 = vmax.f32 %v11936_v53, %v11811_v42  ;;  %v11794_v39 = vadd.f32 %v20548_v63, %v11769_v46 }
 0x5c7   : > { %v12514_v16 = vsel %vm9735_vm5, %v12512_v17, %v12511_v51  ;;  %v12515_v1 = vrot.slane %v12476_v30, 5  ;;  %v12036_v18 = vcombine.high %v12035_v32, %v12035_v32  ;;  %v13133_v54 = vrot.slane %v12035_v32, 9  ;;  %v11526_v4 = vpop.f32.mrb[120].mxu1 }
 0x5c8   : > { %v12521_v9 = vrot.slane %v12478_v48, 3  ;;  %v11974_v45 = vmax.f32 %v11810_v23, %v11938_v44  ;;  %v12043_v13 = vrot.slane %v11973_v10, %v18062_v29  ;;  %v20603_v11 = vmax.f32 %v11794_v39, 0.0  ;;  %v14244_v50 = vpop.f32.mrb[121].mxu1 }
 0x5c9   : > { %v12517_v27 = vsel %vm12516_vm7, %v12515_v1, %v12514_v16  ;;  %v13134_v60 = vrot.slane %v12036_v18, 9  ;;  %v12299_v53 = vmax.f32 %v12035_v32, %v13133_v54  ;;  %v11572_v28 = vadd.f32 %v11521_v56, %v20484_v22  ;;  %v11529_v24 = vpop.f32.mrb[122].mxu1 }
 0x5ca   : > { %v12520_v33 = vsel %vm9737_vm6, %v12518_v7, %v12517_v27  ;;  %v12044_v8 = vcombine.high %v12043_v13, %v12043_v13  ;;  %v12051_v6 = vrot.slane %v11974_v45, %v18062_v29  ;;  %v13135_v26 = vrot.slane %v12043_v13, 9  ;;  %v14245_v23 = vpop.f32.mrb[123].mxu1 }
 0x5cb   : > { %v12523_v58 = vsel %vm12522_vm8, %v12521_v9, %v12520_v33  ;;  %v12300_v42 = vmax.f32 %v12036_v18, %v13134_v60  ;;  %v13226_v61 = vpack.c.bf16 %v12299_v53, %v12299_v53  ;;  %v13208_v22 = vpack.c.bf16 %v20603_v11, %v20603_v11 }
 0x5cc   : > { %v12574_v56 = vpack.c.b16 %v12523_v58, %v12523_v58  ;;  %v12052_v12 = vcombine.high %v12051_v6, %v12051_v6  ;;  %v13136_v37 = vrot.slane %v12044_v8, 9  ;;  %v13137_v25 = vrot.slane %v12051_v6, 9 }
 0x5cd   : > { %v13227_v46 = vpack.c.bf16 %v12300_v42, %v12300_v42  ;;  %v12479_v51 = vunpack.c.l.b16 %v13226_v61  ;;  %v12301_v62 = vmax.f32 %v12043_v13, %v13135_v26  ;;  %11903 = vst.msk [vmem:[%s20559_s28 + $0x18] sm:$0xf] %vm11896_vm4, %v13208_v22  ;;  %v11939_v0 = vcombine.high %v20603_v11, %v20603_v11 }
 0x5ce   : > { %12587 = vst.msk [vmem:[%s20612_s7] sm:$0x7] %vm12586_vm9, %v12574_v56  ;;  %v13138_v59 = vrot.slane %v12052_v12, 9  ;;  %v12302_v30 = vmax.f32 %v12044_v8, %v13136_v37  ;;  %v12303_v17 = vmax.f32 %v12051_v6, %v13137_v25  ;;  %v11770_v32 = vadd.f32 %v20474_v19, %v11572_v28 }
 0x5cf   : > { %v12480_v44 = vunpack.c.l.b16 %v13227_v46  ;;  %v13228_v48 = vpack.c.bf16 %v12301_v62, %v12301_v62  ;;  %v11573_v7 = vadd.f32 %v11526_v4, %v20491_v47  ;;  %v11574_v10 = vadd.f32 %v11529_v24, %v20496_v31  ;;  %v11534_v39 = vpop.f32.mrb[124].mxu1 }
 0x5d0   : > { %v12304_v16 = vmax.f32 %v12052_v12, %v13138_v59  ;;  %v13229_v1 = vpack.c.bf16 %v12302_v30, %v12302_v30  ;;  %v13230_v18 = vpack.c.bf16 %v12303_v17, %v12303_v17  ;;  %v11795_v54 = vadd.f32 %v20548_v63, %v11770_v32  ;;  %v14248_v9 = vpop.f32.mrb[125].mxu1 }
 0x5d1   : > { %v12524_v45 = vrot.slane %v12480_v44, 7  ;;  %v12481_v13 = vunpack.c.l.b16 %v13228_v48  ;;  %v11771_v50 = vadd.f32 %v20481_v21, %v11573_v7  ;;  %v11772_v27 = vadd.f32 %v20486_v40, %v11574_v10  ;;  %v11537_v19 = vpop.f32.mrb[126].mxu1 }
 0x5d2   : > { %v13231_v60 = vpack.c.bf16 %v12304_v16, %v12304_v16  ;;  %v12482_v53 = vunpack.c.l.b16 %v13229_v1  ;;  %v12483_v28 = vunpack.c.l.b16 %v13230_v18  ;;  %v11813_v47 = vmax.f32 %v11795_v54, 0.0  ;;  %v14249_v31 = vpop.f32.mrb[127].mxu1 }
 0x5d3   : > { %v12525_v4 = vsel %vm12510_vm0, %v12524_v45, %v12479_v51  ;;  %v12526_v24 = vrot.slane %v12481_v13, 6  ;;  %v11796_v33 = vadd.f32 %v20548_v63, %v11771_v50  ;;  %v11797_v8 = vadd.f32 %v20548_v63, %v11772_v27 }
 0x5d4   : > { %v12484_v6 = vunpack.c.l.b16 %v13231_v60  ;;  %v12528_v26 = vrot.slane %v12482_v53, 5  ;;  %v12530_v23 = vrot.slane %v12483_v28, 4  ;;  %v13209_v21 = vpack.c.bf16 %v11813_v47, %v11813_v47 }
 0x5d5   : > { %v12527_v40 = vsel %vm9735_vm5, %v12526_v24, %v12525_v4  ;;  %v11940_v58 = vcombine.high %v11813_v47, %v11813_v47  ;;  %v11814_v42 = vmax.f32 %v11796_v33, 0.0  ;;  %v20633_v61 = vmax.f32 %v11797_v8, 0.0 }
 0x5d6   : > { %v12529_v22 = vsel %vm12516_vm7, %v12528_v26, %v12527_v40  ;;  %v12532_v56 = vrot.slane %v12484_v6, 3  ;;  %11904 = vst.msk [vmem:[%s20559_s28 + $0x1c] sm:$0xf] %vm11896_vm4, %v13209_v21  ;;  %v11575_v12 = vadd.f32 %v11534_v39, %v20503_v49  ;;  %v11576_v37 = vadd.f32 %v11537_v19, %v20508_v52 }
 0x5d7   : > { %v12531_v25 = vsel %vm9737_vm6, %v12530_v23, %v12529_v22  ;;  %v11975_v46 = vmax.f32 %v20603_v11, %v11940_v58  ;;  %v13210_v51 = vpack.c.bf16 %v11814_v42, %v11814_v42  ;;  %v11941_v62 = vcombine.high %v11814_v42, %v11814_v42  ;;  %v11542_v59 = vpop.f32.mrb[128].mxu1 }
 0x5d8   : > { %v12533_v30 = vsel %vm12522_vm8, %v12532_v56, %v12531_v25  ;;  %v11976_v17 = vmax.f32 %v11939_v0, %v11814_v42  ;;  %v13211_v32 = vpack.c.bf16 %v20633_v61, %v20633_v61  ;;  %v11942_v49 = vcombine.high %v20633_v61, %v20633_v61  ;;  %v14252_v44 = vpop.f32.mrb[129].mxu1 }
 0x5d9   : > { %v12575_v52 = vpack.c.b16 %v12533_v30, %v12533_v30  ;;  %v12059_v48 = vrot.slane %v11975_v46, %v18062_v29  ;;  %11905 = vst.msk [vmem:[%s20559_s28 + $0x20] sm:$0xf] %vm11896_vm4, %v13210_v51  ;;  %v11977_v11 = vmax.f32 %v11813_v47, %v11941_v62  ;;  %v11773_v7 = vadd.f32 %v20493_v14, %v11575_v12  ;;  %v11545_v10 = vpop.f32.mrb[130].mxu1 }
 0x5da   : > { %v12067_v39 = vrot.slane %v11976_v17, %v18062_v29  ;;  %11906 = vst.msk [vmem:[%s20559_s28 + $0x24] sm:$0xf] %vm11896_vm4, %v13211_v32  ;;  %v11774_v0 = vadd.f32 %v20498_v55, %v11576_v37  ;;  %v11577_v16 = vadd.f32 %v11542_v59, %v20515_v15  ;;  %v20657_v1 = vadd.f32 %v11545_v10, %v20520_v35  ;;  %v14253_v18 = vpop.f32.mrb[131].mxu1 }
 0x5db   : > { %12588 = vst.msk [vmem:[%s20612_s7 + $0x4] sm:$0x7] %vm12586_vm9, %v12575_v52  ;;  %v12060_v54 = vcombine.high %v12059_v48, %v12059_v48  ;;  %v13139_v9 = vrot.slane %v12059_v48, 9  ;;  %v12075_v45 = vrot.slane %v11977_v11, %v18062_v29  ;;  %v11798_v14 = vadd.f32 %v20548_v63, %v11773_v7 }
 0x5dc   : > { %v12068_v13 = vcombine.high %v12067_v39, %v12067_v39  ;;  %v13141_v50 = vrot.slane %v12067_v39, 9  ;;  %v11799_v27 = vadd.f32 %v20548_v63, %v11774_v0  ;;  %v11775_v55 = vadd.f32 %v20505_v38, %v11577_v16 }
 0x5dd   : > { %v13140_v19 = vrot.slane %v12060_v54, 9  ;;  %v12305_v15 = vmax.f32 %v12059_v48, %v13139_v9  ;;  %v12076_v60 = vcombine.high %v12075_v45, %v12075_v45  ;;  %v13143_v35 = vrot.slane %v12075_v45, 9 }
 0x5de   : > { %v13142_v53 = vrot.slane %v12068_v13, 9  ;;  %v12307_v28 = vmax.f32 %v12067_v39, %v13141_v50  ;;  %v11816_v47 = vmax.f32 %v11798_v14, 0.0  ;;  %v11817_v31 = vmax.f32 %v11799_v27, 0.0 }
 0x5df   : > { %v12306_v4 = vmax.f32 %v12060_v54, %v13140_v19  ;;  %v13232_v24 = vpack.c.bf16 %v12305_v15, %v12305_v15  ;;  %v13144_v33 = vrot.slane %v12076_v60, 9  ;;  %v12309_v8 = vmax.f32 %v12075_v45, %v13143_v35  ;;  %v20665_v6 = vpop.f32.mrb[132].mxu1 }
 0x5e0   : > { %v12308_v26 = vmax.f32 %v12068_v13, %v13142_v53  ;;  %v13234_v23 = vpack.c.bf16 %v12307_v28, %v12307_v28  ;;  %v13212_v21 = vpack.c.bf16 %v11816_v47, %v11816_v47  ;;  %v11943_v40 = vcombine.high %v11816_v47, %v11816_v47  ;;  %v14256_v38 = vpop.f32.mrb[133].mxu1 }
 0x5e1   : > { %v13233_v58 = vpack.c.bf16 %v12306_v4, %v12306_v4  ;;  %v12485_v42 = vunpack.c.l.b16 %v13232_v24  ;;  %v12310_v22 = vmax.f32 %v12076_v60, %v13144_v33  ;;  %v13236_v56 = vpack.c.bf16 %v12309_v8, %v12309_v8  ;;  %v20667_v12 = vpop.f32.mrb[134].mxu1 }
 0x5e2   : > { %v13235_v37 = vpack.c.bf16 %v12308_v26, %v12308_v26  ;;  %v12487_v25 = vunpack.c.l.b16 %v13234_v23  ;;  %11907 = vst.msk [vmem:[%s20559_s28 + $0x28] sm:$0xf] %vm11896_vm4, %v13212_v21  ;;  %v11978_v46 = vmax.f32 %v20633_v61, %v11943_v40  ;;  %v13213_v51 = vpack.c.bf16 %v11817_v31, %v11817_v31  ;;  %v14257_v62 = vpop.f32.mrb[135].mxu1 }
 0x5e3   : > { %v12486_v59 = vunpack.c.l.b16 %v13233_v58  ;;  %v13237_v30 = vpack.c.bf16 %v12310_v22, %v12310_v22  ;;  %v12489_v17 = vunpack.c.l.b16 %v13236_v56  ;;  %v11944_v32 = vcombine.high %v11817_v31, %v11817_v31 }
 0x5e4   : > { %v12488_v44 = vunpack.c.l.b16 %v13235_v37  ;;  %v12536_v52 = vrot.slane %v12487_v25, 6  ;;  %v12083_v48 = vrot.slane %v11978_v46, %v18062_v29  ;;  %11908 = vst.msk [vmem:[%s20559_s28 + $0x2c] sm:$0xf] %vm11896_vm4, %v13213_v51  ;;  %v11979_v11 = vmax.f32 %v11942_v49, %v11817_v31 }
 0x5e5   : > { %v12534_v7 = vrot.slane %v12486_v59, 7  ;;  %v12490_v10 = vunpack.c.l.b16 %v13237_v30  ;;  %v12540_v39 = vrot.slane %v12489_v17, 4  ;;  %v11980_v0 = vmax.f32 %v11816_v47, %v11944_v32 }
 0x5e6   : > { %v12538_v16 = vrot.slane %v12488_v44, 5  ;;  %v12084_v18 = vcombine.high %v12083_v48, %v12083_v48  ;;  %v13145_v61 = vrot.slane %v12083_v48, 9  ;;  %v12091_v54 = vrot.slane %v11979_v11, %v18062_v29 }
 0x5e7   : > { %v12535_v9 = vsel %vm12510_vm0, %v12534_v7, %v12485_v42  ;;  %v12542_v45 = vrot.slane %v12490_v10, 3  ;;  %v12099_v14 = vrot.slane %v11980_v0, %v18062_v29  ;;  %v11800_v13 = vadd.f32 %v20548_v63, %v11775_v55  ;;  %v11558_v50 = vpop.f32.mrb[136].mxu1 }
 0x5e8   : > { %v12537_v27 = vsel %vm9735_vm5, %v12536_v52, %v12535_v9  ;;  %v13146_v49 = vrot.slane %v12084_v18, 9  ;;  %v12311_v19 = vmax.f32 %v12083_v48, %v13145_v61  ;;  %v12092_v15 = vcombine.high %v12091_v54, %v12091_v54  ;;  %v14260_v60 = vpop.f32.mrb[137].mxu1 }
 0x5e9   : > { %v12539_v35 = vsel %vm12516_vm7, %v12538_v16, %v12537_v27  ;;  %v12100_v53 = vcombine.high %v12099_v14, %v12099_v14  ;;  %v13147_v28 = vrot.slane %v12091_v54, 9  ;;  %v13149_v47 = vrot.slane %v12099_v14, 9  ;;  %v11561_v31 = vpop.f32.mrb[138].mxu1 }
 0x5ea   : > { %v12541_v4 = vsel %vm9737_vm6, %v12540_v39, %v12539_v35  ;;  %v12312_v24 = vmax.f32 %v12084_v18, %v13146_v49  ;;  %v13238_v33 = vpack.c.bf16 %v12311_v19, %v12311_v19  ;;  %v13148_v8 = vrot.slane %v12092_v15, 9  ;;  %v14261_v55 = vpop.f32.mrb[139].mxu1 }
 0x5eb   : > { %v12543_v26 = vsel %vm12522_vm8, %v12542_v45, %v12541_v4  ;;  %v13150_v23 = vrot.slane %v12100_v53, 9  ;;  %v12313_v21 = vmax.f32 %v12091_v54, %v13147_v28  ;;  %v12315_v40 = vmax.f32 %v12099_v14, %v13149_v47 }
 0x5ec   : > { %v12576_v38 = vpack.c.b16 %v12543_v26, %v12543_v26  ;;  %v13239_v58 = vpack.c.bf16 %v12312_v24, %v12312_v24  ;;  %v12491_v42 = vunpack.c.l.b16 %v13238_v33  ;;  %v12314_v22 = vmax.f32 %v12092_v15, %v13148_v8 }
 0x5ed   : > { %v12316_v56 = vmax.f32 %v12100_v53, %v13150_v23  ;;  %v13240_v37 = vpack.c.bf16 %v12313_v21, %v12313_v21  ;;  %v13242_v25 = vpack.c.bf16 %v12315_v40, %v12315_v40  ;;  %v11818_v46 = vmax.f32 %v11800_v13, 0.0 }
 0x5ee   : > { %12589 = vst.msk [vmem:[%s20612_s7 + $0x8] sm:$0x7] %vm12586_vm9, %v12576_v38  ;;  %v12492_v51 = vunpack.c.l.b16 %v13239_v58  ;;  %v13241_v62 = vpack.c.bf16 %v12314_v22, %v12314_v22  ;;  %v11776_v59 = vadd.f32 %v20510_v2, %v20657_v1  ;;  %v11579_v30 = vadd.f32 %v20665_v6, %v20527_v3 }
 0x5ef   : > { %v13243_v17 = vpack.c.bf16 %v12316_v56, %v12316_v56  ;;  %v12493_v32 = vunpack.c.l.b16 %v13240_v37  ;;  %v12495_v44 = vunpack.c.l.b16 %v13242_v25  ;;  %v13214_v52 = vpack.c.bf16 %v11818_v46, %v11818_v46 }
 0x5f0   : > { %v12544_v48 = vrot.slane %v12492_v51, 7  ;;  %v12494_v11 = vunpack.c.l.b16 %v13241_v62  ;;  %v11945_v7 = vcombine.high %v11818_v46, %v11818_v46  ;;  %v11801_v10 = vadd.f32 %v20548_v63, %v11776_v59 }
 0x5f1   : > { %v12496_v39 = vunpack.c.l.b16 %v13243_v17  ;;  %v12546_v0 = vrot.slane %v12493_v32, 6  ;;  %v12550_v16 = vrot.slane %v12495_v44, 4  ;;  %11909 = vst.msk [vmem:[%s20559_s28 + $0x30] sm:$0xf] %vm11896_vm4, %v13214_v52  ;;  %v11777_v18 = vadd.f32 %v20517_v43, %v11579_v30 }
 0x5f2   : > { %v12545_v2 = vsel %vm12510_vm0, %v12544_v48, %v12491_v42  ;;  %v12548_v1 = vrot.slane %v12494_v11, 5  ;;  %v11819_v3 = vmax.f32 %v11801_v10, 0.0  ;;  %v11580_v6 = vadd.f32 %v20667_v12, %v20532_v34 }
 0x5f3   : > { %v12547_v61 = vsel %vm9735_vm5, %v12546_v0, %v12545_v2  ;;  %v12552_v54 = vrot.slane %v12496_v39, 3  ;;  %v11802_v9 = vadd.f32 %v20548_v63, %v11777_v18  ;;  %v11581_v45 = vadd.f32 %v11558_v50, %v20539_v41 }
 0x5f4   : > { %v12549_v14 = vsel %vm12516_vm7, %v12548_v1, %v12547_v61  ;;  %v13215_v13 = vpack.c.bf16 %v11819_v3, %v11819_v3  ;;  %v11946_v27 = vcombine.high %v11819_v3, %v11819_v3  ;;  %v11778_v43 = vadd.f32 %v20522_v20, %v11580_v6 }
 0x5f5   : > { %v12551_v49 = vsel %vm9737_vm6, %v12550_v16, %v12549_v14  ;;  %v11820_v19 = vmax.f32 %v11802_v9, 0.0  ;;  %v11779_v34 = vadd.f32 %v20529_v5, %v11581_v45  ;;  %v11582_v12 = vadd.f32 %v11561_v31, %v20542_v36 }
 0x5f6   : > { %v12553_v15 = vsel %vm12522_vm8, %v12552_v54, %v12551_v49  ;;  %11910 = vst.msk [vmem:[%s20559_s28 + $0x34] sm:$0xf] %vm11896_vm4, %v13215_v13  ;;  %v11981_v41 = vmax.f32 %v11818_v46, %v11946_v27  ;;  %v11803_v50 = vadd.f32 %v20548_v63, %v11778_v43 }
 0x5f7   : > { %v12577_v60 = vpack.c.b16 %v12553_v15, %v12553_v15  ;;  %v13216_v35 = vpack.c.bf16 %v11820_v19, %v11820_v19  ;;  %v11947_v53 = vcombine.high %v11820_v19, %v11820_v19  ;;  %v11982_v20 = vmax.f32 %v11945_v7, %v11820_v19 }
 0x5f8   : > { %v12107_v28 = vrot.slane %v11981_v41, %v18062_v29  ;;  %v11821_v47 = vmax.f32 %v11803_v50, 0.0  ;;  %v11804_v4 = vadd.f32 %v20548_v63, %v11779_v34  ;;  %v11780_v5 = vadd.f32 %v20534_v57, %v11582_v12 }
 0x5f9   : > { %12590 = vst.msk [vmem:[%s20612_s7 + $0xc] sm:$0x7] %vm12586_vm9, %v12577_v60  ;;  %v11983_v36 = vmax.f32 %v11819_v3, %v11947_v53  ;;  %v12115_v31 = vrot.slane %v11982_v20, %v18062_v29 }
 0x5fa   : > { %11911 = vst.msk [vmem:[%s20559_s28 + $0x38] sm:$0xf] %vm11896_vm4, %v13216_v35  ;;  %v12108_v24 = vcombine.high %v12107_v28, %v12107_v28  ;;  %v13151_v33 = vrot.slane %v12107_v28, 9  ;;  %v13217_v8 = vpack.c.bf16 %v11821_v47, %v11821_v47  ;;  %v11822_v21 = vmax.f32 %v11804_v4, 0.0 }
 0x5fb   : > { %v12116_v55 = vcombine.high %v12115_v31, %v12115_v31  ;;  %v12123_v26 = vrot.slane %v11983_v36, %v18062_v29  ;;  %v13153_v23 = vrot.slane %v12115_v31, 9  ;;  %v11948_v57 = vcombine.high %v11821_v47, %v11821_v47 }
 0x5fc   : > { %v13152_v40 = vrot.slane %v12108_v24, 9  ;;  %v12317_v38 = vmax.f32 %v12107_v28, %v13151_v33  ;;  %11912 = vst.msk [vmem:[%s20559_s28 + $0x3c] sm:$0xf] %vm11896_vm4, %v13217_v8  ;;  %v11805_v58 = vadd.f32 %v20548_v63, %v11780_v5  ;;  %v13218_v51 = vpack.c.bf16 %v11822_v21, %v11822_v21 }
 0x5fd   : > { %v12124_v42 = vcombine.high %v12123_v26, %v12123_v26  ;;  %v13154_v22 = vrot.slane %v12116_v55, 9  ;;  %v13155_v56 = vrot.slane %v12123_v26, 9  ;;  %v12319_v37 = vmax.f32 %v12115_v31, %v13153_v23 }
 0x5fe   : > { %v12318_v25 = vmax.f32 %v12108_v24, %v13152_v40  ;;  %v13244_v46 = vpack.c.bf16 %v12317_v38, %v12317_v38  ;;  %v11949_v62 = vcombine.high %v11822_v21, %v11822_v21  ;;  %11913 = vst.msk [vmem:[%s20559_s28 + $0x40] sm:$0xf] %vm11896_vm4, %v13218_v51  ;;  %v11823_v11 = vmax.f32 %v11805_v58, 0.0 }
 0x5ff   : > { %v13156_v59 = vrot.slane %v12124_v42, 9  ;;  %v12320_v30 = vmax.f32 %v12116_v55, %v13154_v22  ;;  %v12321_v17 = vmax.f32 %v12123_v26, %v13155_v56  ;;  %v13246_v32 = vpack.c.bf16 %v12319_v37, %v12319_v37 }
 0x600   : > { %v13245_v44 = vpack.c.bf16 %v12318_v25, %v12318_v25  ;;  %v12497_v52 = vunpack.c.l.b16 %v13244_v46  ;;  %v11984_v48 = vmax.f32 %v11821_v47, %v11949_v62  ;;  %v13219_v18 = vpack.c.bf16 %v11823_v11, %v11823_v11 }
 0x601   : > { %v12322_v63 = vmax.f32 %v12124_v42, %v13156_v59  ;;  %v13247_v7 = vpack.c.bf16 %v12320_v30, %v12320_v30  ;;  %v13248_v10 = vpack.c.bf16 %v12321_v17, %v12321_v17  ;;  %v12499_v39 = vunpack.c.l.b16 %v13246_v32 }
 0x602   : > { %v12498_v0 = vunpack.c.l.b16 %v13245_v44  ;;  %v12131_v16 = vrot.slane %v11984_v48, %v18062_v29  ;;  %v11950_v2 = vcombine.high %v11823_v11, %v11823_v11  ;;  %11914 = vst.msk [vmem:[%s20559_s28 + $0x44] sm:$0xf] %vm11896_vm4, %v13219_v18  ;;  %v11985_v14 = vmax.f32 %v11948_v57, %v11823_v11 }
 0x603   : > { %v13249_v1 = vpack.c.bf16 %v12322_v63, %v12322_v63  ;;  %v12500_v3 = vunpack.c.l.b16 %v13247_v7  ;;  %v12501_v6 = vunpack.c.l.b16 %v13248_v10  ;;  %v12556_v61 = vrot.slane %v12499_v39, 6 }
 0x604   : > { %v12554_v54 = vrot.slane %v12498_v0, 7  ;;  %v12132_v9 = vcombine.high %v12131_v16, %v12131_v16  ;;  %v13157_v45 = vrot.slane %v12131_v16, 9  ;;  %v11986_v49 = vmax.f32 %v11822_v21, %v11950_v2 }
 0x605   : > { %v12502_v13 = vunpack.c.l.b16 %v13249_v1  ;;  %v12558_v27 = vrot.slane %v12500_v3, 5  ;;  %v12560_v43 = vrot.slane %v12501_v6, 4  ;;  %v12139_v15 = vrot.slane %v11985_v14, %v18062_v29 }
 0x606   : > { %v12555_v19 = vsel %vm12510_vm0, %v12554_v54, %v12497_v52  ;;  %v13158_v34 = vrot.slane %v12132_v9, 9  ;;  %v12323_v12 = vmax.f32 %v12131_v16, %v13157_v45  ;;  %v12147_v60 = vrot.slane %v11986_v49, %v18062_v29 }
 0x607   : > { %v12557_v41 = vsel %vm9735_vm5, %v12556_v61, %v12555_v19  ;;  %v12562_v50 = vrot.slane %v12502_v13, 3  ;;  %v12140_v20 = vcombine.high %v12139_v15, %v12139_v15  ;;  %v13159_v4 = vrot.slane %v12139_v15, 9 }
 0x608   : > { %v12559_v35 = vsel %vm12516_vm7, %v12558_v27, %v12557_v41  ;;  %v12324_v53 = vmax.f32 %v12132_v9, %v13158_v34  ;;  %v12148_v47 = vcombine.high %v12147_v60, %v12147_v60  ;;  %v13161_v5 = vrot.slane %v12147_v60, 9 }
 0x609   : > { %v12561_v28 = vsel %vm9737_vm6, %v12560_v43, %v12559_v35  ;;  %v13250_v31 = vpack.c.bf16 %v12323_v12, %v12323_v12  ;;  %v13160_v33 = vrot.slane %v12140_v20, 9  ;;  %v12325_v26 = vmax.f32 %v12139_v15, %v13159_v4 }
 0x60a   : > { %v12563_v36 = vsel %vm12522_vm8, %v12562_v50, %v12561_v28  ;;  %v13251_v24 = vpack.c.bf16 %v12324_v53, %v12324_v53  ;;  %v13162_v55 = vrot.slane %v12148_v47, 9  ;;  %v12327_v23 = vmax.f32 %v12147_v60, %v13161_v5 }
 0x60b   : > { %v12578_v8 = vpack.c.b16 %v12563_v36, %v12563_v36  ;;  %v12326_v21 = vmax.f32 %v12140_v20, %v13160_v33  ;;  %v13252_v38 = vpack.c.bf16 %v12325_v26, %v12325_v26  ;;  %v12503_v58 = vunpack.c.l.b16 %v13250_v31 }
 0x60c   : > { %v12504_v29 = vunpack.c.l.b16 %v13251_v24  ;;  %v12328_v40 = vmax.f32 %v12148_v47, %v13162_v55  ;;  %v13254_v57 = vpack.c.bf16 %v12327_v23, %v12327_v23 }
 0x60d   : > { %12591 = vst.msk [vmem:[%s20612_s7 + $0x10] sm:$0x7] %vm12586_vm9, %v12578_v8  ;;  %v13253_v22 = vpack.c.bf16 %v12326_v21, %v12326_v21  ;;  %v12505_v37 = vunpack.c.l.b16 %v13252_v38 }
 0x60e   : > { %v12564_v42 = vrot.slane %v12504_v29, 7  ;;  %v13255_v56 = vpack.c.bf16 %v12328_v40, %v12328_v40  ;;  %v12507_v25 = vunpack.c.l.b16 %v13254_v57 }
 0x60f   : > { %v12506_v51 = vunpack.c.l.b16 %v13253_v22  ;;  %v12566_v59 = vrot.slane %v12505_v37, 6 }
 0x610   : > { %v12565_v46 = vsel %vm12510_vm0, %v12564_v42, %v12503_v58  ;;  %v12508_v62 = vunpack.c.l.b16 %v13255_v56  ;;  %v12570_v32 = vrot.slane %v12507_v25, 4 }
 0x611   : > { %v12568_v30 = vrot.slane %v12506_v51, 5  ;;  %v12567_v17 = vsel %vm9735_vm5, %v12566_v59, %v12565_v46 }
 0x612   : > { %v12572_v52 = vrot.slane %v12508_v62, 3 }
 0x613   : > { %v12569_v44 = vsel %vm12516_vm7, %v12568_v30, %v12567_v17 }
 0x614   : > { %v12571_v48 = vsel %vm9737_vm6, %v12570_v32, %v12569_v44 }
 0x615   : > { %v12573_v11 = vsel %vm12522_vm8, %v12572_v52, %v12571_v48 }
 0x616   : > { %v12579_v63 = vpack.c.b16 %v12573_v11, %v12573_v11 }
 0x618   : > { %12592 = vst.msk [vmem:[%s20612_s7 + $0x14] sm:$0x7] %vm12586_vm9, %v12579_v63 }
 0x619 PF: > { %s17_s21 = sadd.s32 1, %s14323_s21  }
 0x61a   : > { %p14_p4 = scmp.ge.s32.totalorder %s17_s21, 4  }
 0x61c   :  { %16 = sbr.rel (!%p14_p4) target bundleno = 1 (0x1), region = 98 }

</bundles_post_ra>
